<compile_context>
chip_gen: v7x
topology: tpu7x:2x2x1
jax: 0.10.0
libtpu: 0.0.40
codegen_flags: <defaults>
</compile_context>

<pallas_src>
import jax
import jax.numpy as jnp
from jax.experimental import pallas as pl
from jax.experimental.pallas import tpu as pltpu

HIDDEN = 1024  # fc1/fc2 width fixed by the module definition
TM_CAP = 512   # max batch tile


def _round_up(x, m):
    return (x + m - 1) // m * m


def _cdiv(a, b):
    return (a + b - 1) // b


def _vmem_plan():
    """Generation-aware (vmem_limit_bytes, K-tile cap)."""
    try:
        cap = pltpu.get_tpu_info().vmem_capacity_bytes
    except Exception:
        cap = 64 << 20                      # conservative: assume v7x-sized VMEM
    if cap >= (100 << 20):                  # v5e / v6e: 128 MiB physical VMEM
        return 96 << 20, 8192
    return 48 << 20, 4096                   # v7x: 64 MiB physical VMEM


# ----------------------------------------------------------------------------
# Kernels
# ----------------------------------------------------------------------------
def _mlp_tail(h1_f32, w2_ref, b2_ref, wh_ref, bh_ref):
    """relu(fc2) -> fused logit||delta head (bf16 operands, f32 accumulation)."""
    h2 = jnp.dot(h1_f32.astype(jnp.bfloat16), w2_ref[...],
                 preferred_element_type=jnp.float32)
    h2 = jnp.maximum(h2 + b2_ref[...], 0.0)
    # TODO(synk): F.dropout(p=0.5) is identity at inference (training=False);
    # training-mode dropout would use pltpu.prng_seed / pltpu.prng_random_bits.
    return jnp.dot(h2.astype(jnp.bfloat16), wh_ref[...],
                   preferred_element_type=jnp.float32) + bh_ref[...]


def _rcnn_head_kernel_multi_k(x_ref, w1_ref, b1_ref, w2_ref, b2_ref,
                              wh_ref, bh_ref, out_ref, acc_ref):
    k = pl.program_id(1)

    @pl.when(k == 0)
    def _():
        acc_ref[...] = jnp.zeros_like(acc_ref)

    # fc1: partial K-accumulation (x cast to bf16 in-VMEM, f32 MXU accumulator).
    acc_ref[...] += jnp.dot(x_ref[...].astype(jnp.bfloat16), w1_ref[...],
                            preferred_element_type=jnp.float32)

    @pl.when(k == pl.num_programs(1) - 1)
    def _():
        h1 = jnp.maximum(acc_ref[...] + b1_ref[...], 0.0)
        out = _mlp_tail(h1, w2_ref, b2_ref, wh_ref, bh_ref)
        out_ref[...] = out.astype(out_ref.dtype)


def _rcnn_head_kernel_single_k(x_ref, w1_ref, b1_ref, w2_ref, b2_ref,
                               wh_ref, bh_ref, out_ref):
    h1 = jnp.dot(x_ref[...].astype(jnp.bfloat16), w1_ref[...],
                 preferred_element_type=jnp.float32)
    h1 = jnp.maximum(h1 + b1_ref[...], 0.0)
    out = _mlp_tail(h1, w2_ref, b2_ref, wh_ref, bh_ref)
    out_ref[...] = out.astype(out_ref.dtype)


# ----------------------------------------------------------------------------
# One-time parameter preparation (hoisted out of the forward path)
# ----------------------------------------------------------------------------
def prepare_rcnn_head_params(params, num_classes, in_features):
    """Pad / cast / concatenate the weights once; returns arrays + tile plan."""
    vmem_limit, tk_cap = _vmem_plan()

    # K tiling: evenly divide round_up(K, 128) -> minimal zero padding.
    k_128 = _round_up(in_features, 128)
    n_kt = _cdiv(k_128, tk_cap)
    tk = _round_up(_cdiv(k_128, n_kt), 128)
    k_pad = tk * n_kt

    ho = num_classes * 5
    ho_pad = _round_up(ho, 128)          # lane-dense fused head output

    w1 = params["w1"].astype(jnp.bfloat16)
    if k_pad != in_features:
        w1 = jnp.pad(w1, ((0, k_pad - in_features), (0, 0)))
    w2 = params["w2"].astype(jnp.bfloat16)
    wh = jnp.concatenate([params["wl"], params["wd"]], axis=1).astype(jnp.bfloat16)
    if ho_pad != ho:
        wh = jnp.pad(wh, ((0, 0), (0, ho_pad - ho)))

    b1 = params["b1"].astype(jnp.float32).reshape(1, HIDDEN)
    b2 = params["b2"].astype(jnp.float32).reshape(1, HIDDEN)
    bh = jnp.concatenate([params["bl"], params["bd"]],
                         axis=1).astype(jnp.float32).reshape(1, ho)
    if ho_pad != ho:
        bh = jnp.pad(bh, ((0, 0), (0, ho_pad - ho)))

    meta = dict(in_features=in_features, k_pad=k_pad, tk=tk, n_kt=n_kt,
                num_classes=num_classes, ho=ho, ho_pad=ho_pad,
                vmem_limit=vmem_limit)
    return dict(w1=w1, b1=b1, w2=w2, b2=b2, wh=wh, bh=bh, meta=meta)


# ----------------------------------------------------------------------------
# Forward
# ----------------------------------------------------------------------------
def rcnn_head_forward(crops, prepped):
    """crops: (B, C, S, S) float32; prepped: output of prepare_rcnn_head_params."""
    meta = prepped["meta"]
    B = crops.shape[0]
    x = crops.reshape(B, -1).astype(jnp.float32)       # torch .view(B, -1)
    assert x.shape[1] == meta["in_features"]

    k_pad, tk, n_kt = meta["k_pad"], meta["tk"], meta["n_kt"]
    ho, ho_pad = meta["ho"], meta["ho_pad"]
    num_classes = meta["num_classes"]
    vmem_limit = meta["vmem_limit"]

    # Batch tiling: large TM (up to 512) with minimal row padding.
    n_bt = _cdiv(B, TM_CAP)
    tm = _round_up(_cdiv(B, n_bt), 8)
    b_pad = tm * n_bt

    # Pad x only for the true remainders (no full zeros().at[].set() copy;
    # no copy at all when B and K are already aligned).
    if b_pad != B or k_pad != x.shape[1]:
        x = jnp.pad(x, ((0, b_pad - B), (0, k_pad - x.shape[1])))

    w1, b1 = prepped["w1"], prepped["b1"]
    w2, b2 = prepped["w2"], prepped["b2"]
    wh, bh = prepped["wh"], prepped["bh"]

    flops = 2 * b_pad * (k_pad * HIDDEN + HIDDEN * HIDDEN + HIDDEN * ho_pad)
    # Weights are streamed once per batch tile (n_bt times total).
    bytes_accessed = (x.size * 4 + b_pad * ho_pad * 4 +
                      n_bt * ((w1.size + w2.size + wh.size) * 2 +
                              (b1.size + b2.size + bh.size) * 4))
    cost = pl.CostEstimate(flops=flops, transcendentals=0,
                           bytes_accessed=bytes_accessed)
    out_shape = jax.ShapeDtypeStruct((b_pad, ho_pad), jnp.float32)

    def build(single_buffer_constants):
        # Grid-invariant operands can be single-buffered (saves ~2.5 MiB VMEM).
        const = ({"pipeline_mode": pl.Buffered(1)}
                 if single_buffer_constants else {})

        if n_kt == 1:
            # Small-K fast path: no accumulator scratch, no K bookkeeping.
            grid = (n_bt,)
            in_specs = [
                pl.BlockSpec((tm, k_pad), lambda i: (i, 0)),               # x
                pl.BlockSpec((k_pad, HIDDEN), lambda i: (0, 0), **const),  # w1
                pl.BlockSpec((1, HIDDEN), lambda i: (0, 0), **const),      # b1
                pl.BlockSpec((HIDDEN, HIDDEN), lambda i: (0, 0), **const), # w2
                pl.BlockSpec((1, HIDDEN), lambda i: (0, 0), **const),      # b2
                pl.BlockSpec((HIDDEN, ho_pad), lambda i: (0, 0), **const), # wh
                pl.BlockSpec((1, ho_pad), lambda i: (0, 0), **const),      # bh
            ]
            out_specs = pl.BlockSpec((tm, ho_pad), lambda i: (i, 0))
            scratch = ()
            kernel = _rcnn_head_kernel_single_k
            semantics = ("parallel",)
        else:
            grid = (n_bt, n_kt)
            in_specs = [
                pl.BlockSpec((tm, tk), lambda i, k: (i, k)),                  # x
                pl.BlockSpec((tk, HIDDEN), lambda i, k: (k, 0)),              # w1
                pl.BlockSpec((1, HIDDEN), lambda i, k: (0, 0), **const),      # b1
                pl.BlockSpec((HIDDEN, HIDDEN), lambda i, k: (0, 0), **const), # w2
                pl.BlockSpec((1, HIDDEN), lambda i, k: (0, 0), **const),      # b2
                pl.BlockSpec((HIDDEN, ho_pad), lambda i, k: (0, 0), **const), # wh
                pl.BlockSpec((1, ho_pad), lambda i, k: (0, 0), **const),      # bh
            ]
            out_specs = pl.BlockSpec((tm, ho_pad), lambda i, k: (i, 0))
            scratch = (pltpu.VMEM((tm, HIDDEN), jnp.float32),)
            kernel = _rcnn_head_kernel_multi_k
            # TODO(synk): on v7x, when still w1-BW-bound, a HIDDEN-axis core
            # split (VMEM_SHARED + core_barrier) would beat this batch split.
            semantics = ("parallel", "arbitrary")

        return pl.pallas_call(
            kernel,
            out_shape=out_shape,
            grid_spec=pltpu.PrefetchScalarGridSpec(
                num_scalar_prefetch=0,
                grid=grid,
                in_specs=in_specs,
                out_specs=out_specs,
                scratch_shapes=scratch,
            ),
            compiler_params=pltpu.CompilerParams(
                dimension_semantics=semantics,
                vmem_limit_bytes=vmem_limit,
            ),
            cost_estimate=cost,
        )

    try:
        out = build(True)(x, w1, b1, w2, b2, wh, bh)
        out = jax.block_until_ready(out)
    except Exception:
        # pl.Buffered(1) unsupported on this build -> default double buffering.
        out = build(False)(x, w1, b1, w2, b2, wh, bh)

    logits = out[:B, :num_classes]
    deltas = out[:B, num_classes:ho]
    return logits, deltas


# ----------------------------------------------------------------------------
# Test scaffolding
# ----------------------------------------------------------------------------
def make_params(key, in_channels, crop_size, num_classes, hidden=HIDDEN):
    k_in = in_channels * crop_size * crop_size
    keys = jax.random.split(key, 8)

    def lin(kw, kb, fan_in, fan_out):
        scale = 1.0 / jnp.sqrt(fan_in)
        w = jax.random.uniform(kw, (fan_in, fan_out), jnp.float32, -scale, scale)
        b = jax.random.uniform(kb, (1, fan_out), jnp.float32, -scale, scale)
        return w, b

    w1, b1 = lin(keys[0], keys[1], k_in, hidden)
    w2, b2 = lin(keys[2], keys[3], hidden, hidden)
    wl, bl = lin(keys[4], keys[5], hidden, num_classes)
    wd, bd = lin(keys[6], keys[7], hidden, num_classes * 4)
    return dict(w1=w1, b1=b1, w2=w2, b2=b2, wl=wl, bl=bl, wd=wd, bd=bd)


def reference_forward(crops, params):
    # pure f32 reference (module semantics, eval-mode dropout = identity)
    x = crops.reshape(crops.shape[0], -1)
    h1 = jnp.maximum(x @ params["w1"] + params["b1"], 0.0)
    h2 = jnp.maximum(h1 @ params["w2"] + params["b2"], 0.0)
    logits = h2 @ params["wl"] + params["bl"]
    deltas = h2 @ params["wd"] + params["bd"]
    return logits, deltas


if __name__ == "__main__":
    # small synthetic config: cfg.num_classes = 4, cfg.rcnn_crop_size = 4,
    # in_channels = 4, batch = 8
    B, C, S, NUM_CLASSES = 8, 4, 4, 4

    key = jax.random.PRNGKey(0)
    k_x, k_p = jax.random.split(key)
    crops = jax.random.normal(k_x, (B, C, S, S), jnp.float32)
    params = make_params(k_p, in_channels=C, crop_size=S,
                         num_classes=NUM_CLASSES)

    # one-time weight prep (padding/cast/concat hoisted out of the forward)
    prepped = prepare_rcnn_head_params(params, NUM_CLASSES,
                                       in_features=C * S * S)
    prepped = jax.block_until_ready(prepped)

    logits, deltas = rcnn_head_forward(crops, prepped)
    logits, deltas = jax.block_until_ready((logits, deltas))

    ref_logits, ref_deltas = reference_forward(crops, params)
    assert logits.shape == (B, NUM_CLASSES)
    assert deltas.shape == (B, NUM_CLASSES * 4)
    # bf16 weight/activation path -> compare against f32 reference with
    # bf16-appropriate tolerances.
    assert jnp.allclose(logits, ref_logits, atol=5e-2, rtol=5e-2)
    assert jnp.allclose(deltas, ref_deltas, atol=5e-2, rtol=5e-2)

    print("KERNEL_OK")
</pallas_src>

<mosaic_0001>
module attributes {stable_mosaic.version = 11 : i64} {
  func.func @_rcnn_head_kernel_single_k(%arg0: i32, %arg1: memref<8x128xf32, #tpu.memory_space<vmem>>, %arg2: memref<128x1024xbf16, #tpu.memory_space<vmem>>, %arg3: memref<1x1024xf32, #tpu.memory_space<vmem>>, %arg4: memref<1024x1024xbf16, #tpu.memory_space<vmem>>, %arg5: memref<1x1024xf32, #tpu.memory_space<vmem>>, %arg6: memref<1024x128xbf16, #tpu.memory_space<vmem>>, %arg7: memref<1x128xf32, #tpu.memory_space<vmem>>, %arg8: memref<8x128xf32, #tpu.memory_space<vmem>>) attributes {dimension_semantics = [#tpu.dimension_semantics<parallel>], iteration_bounds = array<i64: 1>, scalar_prefetch = 0 : i64, scratch_operands = 0 : i64, tpu.core_type = #tpu.core_type<tc>, window_params = [{transform_indices = @transform_0, window_bounds = array<i64: 8, 128>}, {pipeline_mode = #tpu.pipeline_mode<synchronous>, transform_indices = @transform_1, window_bounds = array<i64: 128, 1024>}, {pipeline_mode = #tpu.pipeline_mode<synchronous>, transform_indices = @transform_2, window_bounds = array<i64: 1, 1024>}, {pipeline_mode = #tpu.pipeline_mode<synchronous>, transform_indices = @transform_3, window_bounds = array<i64: 1024, 1024>}, {pipeline_mode = #tpu.pipeline_mode<synchronous>, transform_indices = @transform_4, window_bounds = array<i64: 1, 1024>}, {pipeline_mode = #tpu.pipeline_mode<synchronous>, transform_indices = @transform_5, window_bounds = array<i64: 1024, 128>}, {pipeline_mode = #tpu.pipeline_mode<synchronous>, transform_indices = @transform_6, window_bounds = array<i64: 1, 128>}, {transform_indices = @transform_7, window_bounds = array<i64: 8, 128>}]} {
    %c0 = arith.constant 0 : index
    %c0_0 = arith.constant 0 : index
    %0 = vector.load %arg1[%c0, %c0_0] : memref<8x128xf32, #tpu.memory_space<vmem>>, vector<8x128xf32>
    %1 = arith.truncf %0 : vector<8x128xf32> to vector<8x128xbf16>
    %c0_1 = arith.constant 0 : index
    %c0_2 = arith.constant 0 : index
    %2 = vector.load %arg2[%c0_1, %c0_2] : memref<128x1024xbf16, #tpu.memory_space<vmem>>, vector<128x1024xbf16>
    %cst = arith.constant dense<0.000000e+00> : vector<8x1024xf32>
    %3 = tpu.matmul %1, %2, %cst {dimension_numbers = #tpu.dot_dimension_numbers<[1], [0], [0], [1], [0, 0, 1, 1], [], []>} : vector<8x128xbf16>, vector<128x1024xbf16>, vector<8x1024xf32> -> vector<8x1024xf32>
    %c0_3 = arith.constant 0 : index
    %c0_4 = arith.constant 0 : index
    %4 = vector.load %arg3[%c0_3, %c0_4] : memref<1x1024xf32, #tpu.memory_space<vmem>>, vector<1x1024xf32>
    %5 = vector.broadcast %4 : vector<1x1024xf32> to vector<8x1024xf32>
    %6 = arith.addf %3, %5 : vector<8x1024xf32>
    %cst_5 = arith.constant 0.000000e+00 : f32
    %7 = vector.broadcast %cst_5 : f32 to vector<8x1024xf32>
    %8 = arith.maximumf %6, %7 : vector<8x1024xf32>
    %9 = arith.truncf %8 : vector<8x1024xf32> to vector<8x1024xbf16>
    %c0_6 = arith.constant 0 : index
    %c0_7 = arith.constant 0 : index
    %10 = vector.load %arg4[%c0_6, %c0_7] : memref<1024x1024xbf16, #tpu.memory_space<vmem>>, vector<1024x1024xbf16>
    %cst_8 = arith.constant dense<0.000000e+00> : vector<8x1024xf32>
    %11 = tpu.matmul %9, %10, %cst_8 {dimension_numbers = #tpu.dot_dimension_numbers<[1], [0], [0], [1], [0, 0, 1, 1], [], []>} : vector<8x1024xbf16>, vector<1024x1024xbf16>, vector<8x1024xf32> -> vector<8x1024xf32>
    %c0_9 = arith.constant 0 : index
    %c0_10 = arith.constant 0 : index
    %12 = vector.load %arg5[%c0_9, %c0_10] : memref<1x1024xf32, #tpu.memory_space<vmem>>, vector<1x1024xf32>
    %13 = vector.broadcast %12 : vector<1x1024xf32> to vector<8x1024xf32>
    %14 = arith.addf %11, %13 : vector<8x1024xf32>
    %cst_11 = arith.constant 0.000000e+00 : f32
    %15 = vector.broadcast %cst_11 : f32 to vector<8x1024xf32>
    %16 = arith.maximumf %14, %15 : vector<8x1024xf32>
    %17 = arith.truncf %16 : vector<8x1024xf32> to vector<8x1024xbf16>
    %c0_12 = arith.constant 0 : index
    %c0_13 = arith.constant 0 : index
    %18 = vector.load %arg6[%c0_12, %c0_13] : memref<1024x128xbf16, #tpu.memory_space<vmem>>, vector<1024x128xbf16>
    %cst_14 = arith.constant dense<0.000000e+00> : vector<8x128xf32>
    %19 = tpu.matmul %17, %18, %cst_14 {dimension_numbers = #tpu.dot_dimension_numbers<[1], [0], [0], [1], [0, 0, 1, 1], [], []>} : vector<8x1024xbf16>, vector<1024x128xbf16>, vector<8x128xf32> -> vector<8x128xf32>
    %c0_15 = arith.constant 0 : index
    %c0_16 = arith.constant 0 : index
    %20 = vector.load %arg7[%c0_15, %c0_16] : memref<1x128xf32, #tpu.memory_space<vmem>>, vector<1x128xf32>
    %21 = vector.broadcast %20 : vector<1x128xf32> to vector<8x128xf32>
    %22 = arith.addf %19, %21 : vector<8x128xf32>
    %c0_17 = arith.constant 0 : index
    %c0_18 = arith.constant 0 : index
    %23 = vector.load %arg8[%c0_17, %c0_18] : memref<8x128xf32, #tpu.memory_space<vmem>>, vector<8x128xf32>
    tpu.vector_store %arg8[%c0_17, %c0_18], %22 {strides = array<i32>} : memref<8x128xf32, #tpu.memory_space<vmem>>, vector<8x128xf32>,
    return
  }
  func.func @transform_0(%arg0: i32) -> (i32, i32) {
    %c0_i32 = arith.constant 0 : i32
    %c0_i32_0 = arith.constant 0 : i32
    return %arg0, %c0_i32 : i32, i32
  }
  func.func @transform_1(%arg0: i32) -> (i32, i32) {
    %c0_i32 = arith.constant 0 : i32
    %c0_i32_0 = arith.constant 0 : i32
    %c0_i32_1 = arith.constant 0 : i32
    return %c0_i32, %c0_i32_0 : i32, i32
  }
  func.func @transform_2(%arg0: i32) -> (i32, i32) {
    %c0_i32 = arith.constant 0 : i32
    %c0_i32_0 = arith.constant 0 : i32
    %c0_i32_1 = arith.constant 0 : i32
    return %c0_i32, %c0_i32_0 : i32, i32
  }
  func.func @transform_3(%arg0: i32) -> (i32, i32) {
    %c0_i32 = arith.constant 0 : i32
    %c0_i32_0 = arith.constant 0 : i32
    %c0_i32_1 = arith.constant 0 : i32
    return %c0_i32, %c0_i32_0 : i32, i32
  }
  func.func @transform_4(%arg0: i32) -> (i32, i32) {
    %c0_i32 = arith.constant 0 : i32
    %c0_i32_0 = arith.constant 0 : i32
    %c0_i32_1 = arith.constant 0 : i32
    return %c0_i32, %c0_i32_0 : i32, i32
  }
  func.func @transform_5(%arg0: i32) -> (i32, i32) {
    %c0_i32 = arith.constant 0 : i32
    %c0_i32_0 = arith.constant 0 : i32
    %c0_i32_1 = arith.constant 0 : i32
    return %c0_i32, %c0_i32_0 : i32, i32
  }
  func.func @transform_6(%arg0: i32) -> (i32, i32) {
    %c0_i32 = arith.constant 0 : i32
    %c0_i32_0 = arith.constant 0 : i32
    %c0_i32_1 = arith.constant 0 : i32
    return %c0_i32, %c0_i32_0 : i32, i32
  }
  func.func @transform_7(%arg0: i32) -> (i32, i32) {
    %c0_i32 = arith.constant 0 : i32
    %c0_i32_0 = arith.constant 0 : i32
    return %arg0, %c0_i32 : i32, i32
  }
}

module attributes {stable_mosaic.version = 11 : i64} {
  func.func @_rcnn_head_kernel_single_k(%arg0: i32, %arg1: memref<8x128xf32, #tpu.memory_space<vmem>>, %arg2: memref<128x1024xbf16, #tpu.memory_space<vmem>>, %arg3: memref<1x1024xf32, #tpu.memory_space<vmem>>, %arg4: memref<1024x1024xbf16, #tpu.memory_space<vmem>>, %arg5: memref<1x1024xf32, #tpu.memory_space<vmem>>, %arg6: memref<1024x128xbf16, #tpu.memory_space<vmem>>, %arg7: memref<1x128xf32, #tpu.memory_space<vmem>>, %arg8: memref<8x128xf32, #tpu.memory_space<vmem>>) attributes {dimension_semantics = [#tpu.dimension_semantics<parallel>], iteration_bounds = array<i64: 1>, scalar_prefetch = 0 : i64, scratch_operands = 0 : i64, tpu.core_type = #tpu.core_type<tc>, window_params = [{transform_indices = @transform_0, window_bounds = array<i64: 8, 128>}, {pipeline_mode = #tpu.pipeline_mode<synchronous>, transform_indices = @transform_1, window_bounds = array<i64: 128, 1024>}, {pipeline_mode = #tpu.pipeline_mode<synchronous>, transform_indices = @transform_2, window_bounds = array<i64: 1, 1024>}, {pipeline_mode = #tpu.pipeline_mode<synchronous>, transform_indices = @transform_3, window_bounds = array<i64: 1024, 1024>}, {pipeline_mode = #tpu.pipeline_mode<synchronous>, transform_indices = @transform_4, window_bounds = array<i64: 1, 1024>}, {pipeline_mode = #tpu.pipeline_mode<synchronous>, transform_indices = @transform_5, window_bounds = array<i64: 1024, 128>}, {pipeline_mode = #tpu.pipeline_mode<synchronous>, transform_indices = @transform_6, window_bounds = array<i64: 1, 128>}, {transform_indices = @transform_7, window_bounds = array<i64: 8, 128>}]} {
    %c0 = arith.constant 0 : index
    %c0_0 = arith.constant 0 : index
    %0 = vector.load %arg1[%c0, %c0_0] : memref<8x128xf32, #tpu.memory_space<vmem>>, vector<8x128xf32>
    %1 = arith.truncf %0 : vector<8x128xf32> to vector<8x128xbf16>
    %c0_1 = arith.constant 0 : index
    %c0_2 = arith.constant 0 : index
    %2 = vector.load %arg2[%c0_1, %c0_2] : memref<128x1024xbf16, #tpu.memory_space<vmem>>, vector<128x1024xbf16>
    %cst = arith.constant dense<0.000000e+00> : vector<8x1024xf32>
    %3 = tpu.matmul %1, %2, %cst {dimension_numbers = #tpu.dot_dimension_numbers<[1], [0], [0], [1], [0, 0, 1, 1], [], []>} : vector<8x128xbf16>, vector<128x1024xbf16>, vector<8x1024xf32> -> vector<8x1024xf32>
    %c0_3 = arith.constant 0 : index
    %c0_4 = arith.constant 0 : index
    %4 = vector.load %arg3[%c0_3, %c0_4] : memref<1x1024xf32, #tpu.memory_space<vmem>>, vector<1x1024xf32>
    %5 = vector.broadcast %4 : vector<1x1024xf32> to vector<8x1024xf32>
    %6 = arith.addf %3, %5 : vector<8x1024xf32>
    %cst_5 = arith.constant 0.000000e+00 : f32
    %7 = vector.broadcast %cst_5 : f32 to vector<8x1024xf32>
    %8 = arith.maximumf %6, %7 : vector<8x1024xf32>
    %9 = arith.truncf %8 : vector<8x1024xf32> to vector<8x1024xbf16>
    %c0_6 = arith.constant 0 : index
    %c0_7 = arith.constant 0 : index
    %10 = vector.load %arg4[%c0_6, %c0_7] : memref<1024x1024xbf16, #tpu.memory_space<vmem>>, vector<1024x1024xbf16>
    %cst_8 = arith.constant dense<0.000000e+00> : vector<8x1024xf32>
    %11 = tpu.matmul %9, %10, %cst_8 {dimension_numbers = #tpu.dot_dimension_numbers<[1], [0], [0], [1], [0, 0, 1, 1], [], []>} : vector<8x1024xbf16>, vector<1024x1024xbf16>, vector<8x1024xf32> -> vector<8x1024xf32>
    %c0_9 = arith.constant 0 : index
    %c0_10 = arith.constant 0 : index
    %12 = vector.load %arg5[%c0_9, %c0_10] : memref<1x1024xf32, #tpu.memory_space<vmem>>, vector<1x1024xf32>
    %13 = vector.broadcast %12 : vector<1x1024xf32> to vector<8x1024xf32>
    %14 = arith.addf %11, %13 : vector<8x1024xf32>
    %cst_11 = arith.constant 0.000000e+00 : f32
    %15 = vector.broadcast %cst_11 : f32 to vector<8x1024xf32>
    %16 = arith.maximumf %14, %15 : vector<8x1024xf32>
    %17 = arith.truncf %16 : vector<8x1024xf32> to vector<8x1024xbf16>
    %c0_12 = arith.constant 0 : index
    %c0_13 = arith.constant 0 : index
    %18 = vector.load %arg6[%c0_12, %c0_13] : memref<1024x128xbf16, #tpu.memory_space<vmem>>, vector<1024x128xbf16>
    %cst_14 = arith.constant dense<0.000000e+00> : vector<8x128xf32>
    %19 = tpu.matmul %17, %18, %cst_14 {dimension_numbers = #tpu.dot_dimension_numbers<[1], [0], [0], [1], [0, 0, 1, 1], [], []>} : vector<8x1024xbf16>, vector<1024x128xbf16>, vector<8x128xf32> -> vector<8x128xf32>
    %c0_15 = arith.constant 0 : index
    %c0_16 = arith.constant 0 : index
    %20 = vector.load %arg7[%c0_15, %c0_16] : memref<1x128xf32, #tpu.memory_space<vmem>>, vector<1x128xf32>
    %21 = vector.broadcast %20 : vector<1x128xf32> to vector<8x128xf32>
    %22 = arith.addf %19, %21 : vector<8x128xf32>
    %c0_17 = arith.constant 0 : index
    %c0_18 = arith.constant 0 : index
    %23 = vector.load %arg8[%c0_17, %c0_18] : memref<8x128xf32, #tpu.memory_space<vmem>>, vector<8x128xf32>
    tpu.vector_store %arg8[%c0_17, %c0_18], %22 {strides = array<i32>} : memref<8x128xf32, #tpu.memory_space<vmem>>, vector<8x128xf32>,
    return
  }
  func.func @transform_0(%arg0: i32) -> (i32, i32) {
    %c0_i32 = arith.constant 0 : i32
    %c0_i32_0 = arith.constant 0 : i32
    return %arg0, %c0_i32 : i32, i32
  }
  func.func @transform_1(%arg0: i32) -> (i32, i32) {
    %c0_i32 = arith.constant 0 : i32
    %c0_i32_0 = arith.constant 0 : i32
    %c0_i32_1 = arith.constant 0 : i32
    return %c0_i32, %c0_i32_0 : i32, i32
  }
  func.func @transform_2(%arg0: i32) -> (i32, i32) {
    %c0_i32 = arith.constant 0 : i32
    %c0_i32_0 = arith.constant 0 : i32
    %c0_i32_1 = arith.constant 0 : i32
    return %c0_i32, %c0_i32_0 : i32, i32
  }
  func.func @transform_3(%arg0: i32) -> (i32, i32) {
    %c0_i32 = arith.constant 0 : i32
    %c0_i32_0 = arith.constant 0 : i32
    %c0_i32_1 = arith.constant 0 : i32
    return %c0_i32, %c0_i32_0 : i32, i32
  }
  func.func @transform_4(%arg0: i32) -> (i32, i32) {
    %c0_i32 = arith.constant 0 : i32
    %c0_i32_0 = arith.constant 0 : i32
    %c0_i32_1 = arith.constant 0 : i32
    return %c0_i32, %c0_i32_0 : i32, i32
  }
  func.func @transform_5(%arg0: i32) -> (i32, i32) {
    %c0_i32 = arith.constant 0 : i32
    %c0_i32_0 = arith.constant 0 : i32
    %c0_i32_1 = arith.constant 0 : i32
    return %c0_i32, %c0_i32_0 : i32, i32
  }
  func.func @transform_6(%arg0: i32) -> (i32, i32) {
    %c0_i32 = arith.constant 0 : i32
    %c0_i32_0 = arith.constant 0 : i32
    %c0_i32_1 = arith.constant 0 : i32
    return %c0_i32, %c0_i32_0 : i32, i32
  }
  func.func @transform_7(%arg0: i32) -> (i32, i32) {
    %c0_i32 = arith.constant 0 : i32
    %c0_i32_0 = arith.constant 0 : i32
    return %arg0, %c0_i32 : i32, i32
  }
}

</mosaic_0001>

<bundles_post_ra>
// kernel: tpu_custom_call.1
= control target key start
LH: loop header
LB: loop body
LE: loop exit
PB: predicated region body
PF: predicated region fallthrough
CT: control target
= control target key end

     0   :  { %12 = vsyncpa [#allocation3], 0  ;;  %s6551_s0 = inlined_call_operand.hbm [shape: f32[8,128], index: 0, kind: input, shape index: {}]   ;;  %s6552_s1 = inlined_call_operand.hbm [shape: bf16[128,1024], index: 1, kind: input, shape index: {}]   ;;  %s6553_s2 = inlined_call_operand.hbm [shape: f32[1,1024], index: 2, kind: input, shape index: {}]   ;;  %s6554_s3 = inlined_call_operand.hbm [shape: bf16[1024,1024], index: 3, kind: input, shape index: {}]   ;;  %s6555_s4 = inlined_call_operand.hbm [shape: f32[1,1024], index: 4, kind: input, shape index: {}]   ;;  %s6556_s5 = inlined_call_operand.hbm [shape: bf16[1024,128], index: 5, kind: input, shape index: {}]   ;;  %s6557_s6 = inlined_call_operand.hbm [shape: f32[1,128], index: 6, kind: input, shape index: {}]   ;;  %s6558_s7 = inlined_call_operand.hbm [shape: f32[8,128], index: 7, kind: output, shape index: {}]  }
   0x1   :  { %13 = vsyncpa [#allocation6], 0 }
   0x2   :  { %14 = vsyncpa [#allocation9], 0 }
   0x3   :  { %15 = vsyncpa [#allocation12], 0 }
   0x4   :  { %16 = vsyncpa [#allocation4], 0  ;;  %s6256_s24 = smov [#allocation5]   ;;  %s6070_s28 = scalar_lea.hbm %s6552_s1, 8192 }
   0x5   :  { %s32_s25 = sshll.u32 %s6256_s24, 4  ;;  %p6071_p0 = scmp.ne.s32.totalorder %s6552_s1, %s6070_s28  ;;  %s33_s25 = int_to_ptr.vmem [resolvable:$true] %s32_s25 }
   0x6   :  { %p6074_p1 = scmp.lt.u32.totalorder %s6070_s28, %s6552_s1 }
   0x8   :  { %p6076_p2 = pnand %p6074_p1, %p6071_p0 }
   0xa   :  { %6079 = shalt.err (!%p6076_p2)
}
   0xb   :  { %s6080_s10 = scalar_lea.vmem %s33_s25, 8192  ;;  %p6085_p4 = scmp.lt.s32.totalorder %s33_s25, %s33_s25 }
   0xc   :  { %p6081_p3 = scmp.ne.s32.totalorder %s33_s25, %s6080_s10  ;;  %p6086_p5 = scmp.lt.s32.totalorder %s6080_s10, %s6080_s10 }
   0xe   :  { %p6087_p6 = por %p6086_p5, %p6085_p4 }
  0x10   :  { %p6088_p7 = pnand %p6087_p6, %p6081_p3 }
  0x12   :  { %6091 = shalt.err (!%p6088_p7)
}
  0x13   :  { %s6257_s11 = smov 512   ;;  %s6258_s12 = smov 32  }
  0x14   :  { %38 = dma.hbm_to_vmem [thread:$0]  %s6552_s1, 8192, %s33_s25, [#allocation6], %s6257_s11, %s6257_s11, %s6258_s12  }
  0x15   :  { %s6259_s15 = smov [#allocation8]   ;;  %s6260_s17 = smov [#allocation11]  }
  0x16   :  { %s54_s16 = sshll.u32 %s6259_s15, 4  ;;  %s76_s18 = sshll.u32 %s6260_s17, 4  ;;  %s55_s16 = int_to_ptr.vmem [resolvable:$true] %s54_s16  ;;  %s77_s18 = int_to_ptr.vmem [resolvable:$true] %s76_s18 }
  0x17   :  { %s6092_s21 = scalar_lea.hbm %s6554_s3, 65536 }
  0x18   :  { %p6093_p8 = scmp.ne.s32.totalorder %s6554_s3, %s6092_s21  ;;  %p6096_p9 = scmp.lt.u32.totalorder %s6092_s21, %s6554_s3 }
  0x1a   :  { %p6098_p10 = pnand %p6096_p9, %p6093_p8 }
  0x1c   :  { %6101 = shalt.err (!%p6098_p10)
}
  0x1d   :  { %s6102_s1 = scalar_lea.vmem %s55_s16, 65536  ;;  %p6107_p12 = scmp.lt.s32.totalorder %s55_s16, %s55_s16 }
  0x1e   :  { %p6103_p11 = scmp.ne.s32.totalorder %s55_s16, %s6102_s1  ;;  %p6108_p13 = scmp.lt.s32.totalorder %s6102_s1, %s6102_s1 }
  0x20   :  { %p6109_p0 = por %p6108_p13, %p6107_p12 }
  0x22   :  { %p6110_p1 = pnand %p6109_p0, %p6103_p11 }
  0x24   :  { %6113 = shalt.err (!%p6110_p1)
}
  0x25   :  { %60 = dma.hbm_to_vmem [thread:$0]  %s6554_s3, 65536, %s55_s16, [#allocation9], %s6257_s11, %s6257_s11, %s6258_s12  }
  0x26   :  { %s6114_s30 = scalar_lea.hbm %s6556_s5, 8192 }
  0x27   :  { %p6115_p2 = scmp.ne.s32.totalorder %s6556_s5, %s6114_s30  ;;  %p6118_p3 = scmp.lt.u32.totalorder %s6114_s30, %s6556_s5 }
  0x29   :  { %p6120_p4 = pnand %p6118_p3, %p6115_p2 }
  0x2b   :  { %6123 = shalt.err (!%p6120_p4)
}
  0x2c   :  { %s6124_s14 = scalar_lea.vmem %s77_s18, 8192  ;;  %p6129_p6 = scmp.lt.s32.totalorder %s77_s18, %s77_s18 }
  0x2d   :  { %p6125_p5 = scmp.ne.s32.totalorder %s77_s18, %s6124_s14  ;;  %p6130_p7 = scmp.lt.s32.totalorder %s6124_s14, %s6124_s14 }
  0x2f   :  { %p6131_p8 = por %p6130_p7, %p6129_p6 }
  0x31   :  { %p6132_p9 = pnand %p6131_p8, %p6125_p5 }
  0x33   :  { %6135 = shalt.err (!%p6132_p9)
}
  0x34   :  { %s6261_s3 = smov 64   ;;  %s6262_s11 = smov 4  }
  0x35   :  { %82 = dma.hbm_to_vmem [thread:$0]  %s6556_s5, 8192, %s77_s18, [#allocation12], %s6261_s3, %s6261_s3, %s6262_s11  }
  0x36   :  { %s6263_s16 = smov [#allocation2]   ;;  %s6264_s19 = smov [#allocation7]  }
  0x37   :  { %s23_s17 = sshll.u32 %s6263_s16, 4  ;;  %s45_s20 = sshll.u32 %s6264_s19, 4  ;;  %s24_s17 = int_to_ptr.vmem [resolvable:$true] %s23_s17  ;;  %s46_s20 = int_to_ptr.vmem [resolvable:$true] %s45_s20 }
  0x38   :  { %s6136_s23 = scalar_lea.hbm %s6551_s0, 128 }
  0x39   :  { %p6137_p10 = scmp.ne.s32.totalorder %s6551_s0, %s6136_s23  ;;  %p6140_p11 = scmp.lt.u32.totalorder %s6136_s23, %s6551_s0 }
  0x3b   :  { %p6142_p12 = pnand %p6140_p11, %p6137_p10 }
  0x3d   :  { %6145 = shalt.err (!%p6142_p12)
}
  0x3e   :  { %s6146_s5 = scalar_lea.vmem %s24_s17, 128  ;;  %p6151_p0 = scmp.lt.s32.totalorder %s24_s17, %s24_s17 }
  0x3f   :  { %p6147_p13 = scmp.ne.s32.totalorder %s24_s17, %s6146_s5  ;;  %p6152_p1 = scmp.lt.s32.totalorder %s6146_s5, %s6146_s5 }
  0x41   :  { %p6153_p2 = por %p6152_p1, %p6151_p0 }
  0x43   :  { %p6154_p3 = pnand %p6153_p2, %p6147_p13 }
  0x45   :  { %6157 = shalt.err (!%p6154_p3)
}
  0x46   :  { %26 = dma.hbm_to_vmem [thread:$0]  %s6551_s0, 128, %s24_s17, [#allocation3]  }
  0x47   :  { %s6158_s30 = scalar_lea.hbm %s6553_s2, 128 }
  0x48   :  { %p6159_p4 = scmp.ne.s32.totalorder %s6553_s2, %s6158_s30  ;;  %p6162_p5 = scmp.lt.u32.totalorder %s6158_s30, %s6553_s2 }
  0x4a   :  { %p6164_p6 = pnand %p6162_p5, %p6159_p4 }
  0x4c   :  { %6167 = shalt.err (!%p6164_p6)
}
  0x4d   :  { %s6168_s14 = scalar_lea.vmem %s46_s20, 128  ;;  %p6173_p8 = scmp.lt.s32.totalorder %s46_s20, %s46_s20 }
  0x4e   :  { %p6169_p7 = scmp.ne.s32.totalorder %s46_s20, %s6168_s14  ;;  %p6174_p9 = scmp.lt.s32.totalorder %s6168_s14, %s6168_s14 }
  0x50   :  { %p6175_p10 = por %p6174_p9, %p6173_p8 }
  0x52   :  { %p6176_p11 = pnand %p6175_p10, %p6169_p7 }
  0x54   :  { %6179 = shalt.err (!%p6176_p11)
}
  0x55   :  { %48 = dma.hbm_to_vmem [thread:$0]  %s6553_s2, 128, %s46_s20, [#allocation6]  }
  0x56   :  { %s6265_s11 = smov [#allocation10]   ;;  %s6266_s15 = smov [#allocation13]  }
  0x57   :  { %s67_s12 = sshll.u32 %s6265_s11, 4  ;;  %s89_s16 = sshll.u32 %s6266_s15, 4  ;;  %s68_s12 = int_to_ptr.vmem [resolvable:$true] %s67_s12  ;;  %s90_s16 = int_to_ptr.vmem [resolvable:$true] %s89_s16 }
  0x58   :  { %s6180_s21 = scalar_lea.hbm %s6555_s4, 128 }
  0x59   :  { %p6181_p12 = scmp.ne.s32.totalorder %s6555_s4, %s6180_s21  ;;  %p6184_p13 = scmp.lt.u32.totalorder %s6180_s21, %s6555_s4 }
  0x5b   :  { %p6186_p0 = pnand %p6184_p13, %p6181_p12 }
  0x5d   :  { %6189 = shalt.err (!%p6186_p0)
}
  0x5e   :  { %s6190_s2 = scalar_lea.vmem %s68_s12, 128  ;;  %p6195_p2 = scmp.lt.s32.totalorder %s68_s12, %s68_s12 }
  0x5f   :  { %p6191_p1 = scmp.ne.s32.totalorder %s68_s12, %s6190_s2  ;;  %p6196_p3 = scmp.lt.s32.totalorder %s6190_s2, %s6190_s2 }
  0x61   :  { %p6197_p4 = por %p6196_p3, %p6195_p2 }
  0x63   :  { %p6198_p5 = pnand %p6197_p4, %p6191_p1 }
  0x65   :  { %6201 = shalt.err (!%p6198_p5)
}
  0x66   :  { %70 = dma.hbm_to_vmem [thread:$0]  %s6555_s4, 128, %s68_s12, [#allocation9]  }
  0x67   :  { %s6202_s18 = scalar_lea.hbm %s6557_s6, 16 }
  0x68   :  { %p6203_p6 = scmp.ne.s32.totalorder %s6557_s6, %s6202_s18  ;;  %p6206_p7 = scmp.lt.u32.totalorder %s6202_s18, %s6557_s6 }
  0x6a   :  { %p6208_p8 = pnand %p6206_p7, %p6203_p6 }
  0x6c   :  { %6211 = shalt.err (!%p6208_p8)
}
  0x6d   :  { %s6212_s8 = scalar_lea.vmem %s90_s16, 16  ;;  %s6216_s9 = scalar_lea.vmem %s90_s16, 32 }
  0x6e   :  { %p6213_p9 = scmp.ne.s32.totalorder %s90_s16, %s6212_s8  ;;  %p6217_p10 = scmp.lt.s32.totalorder %s90_s16, %s90_s16 }
  0x6f   :  { %p6218_p11 = scmp.lt.s32.totalorder %s6216_s9, %s6212_s8 }
  0x71   :  { %p6219_p12 = por %p6218_p11, %p6217_p10 }
  0x73   :  { %p6220_p13 = pnand %p6219_p12, %p6213_p9 }
  0x75   :  { %6223 = shalt.err (!%p6220_p13)
}
  0x76   :  { %92 = dma.hbm_to_vmem [thread:$0]  %s6557_s6, 16, %s90_s16, [#allocation12]  }
  0x77   :  { %6246 = dma.done.wait [#allocation3], 128  }
  0x78   :  { %6247 = vsyncadd [#allocation3], 4294967168 }
  0x79   :  { %6248 = dma.done.wait [#allocation6], 8320  }
  0x7a   :  { %6249 = vsyncadd [#allocation6], 4294958976 }
  0x7b   :  { %6250 = dma.done.wait [#allocation9], 65664  }
  0x7c   :  { %6251 = vsyncadd [#allocation9], 4294901632 }
  0x7d   :  { %6252 = dma.done.wait [#allocation12], 8208  }
  0x7e   :  { %6253 = vsyncadd [#allocation12], 4294959088  ;;  %v6267_v0 = vmov 0   ;;  %v117_v1 = vld [vmem:[#allocation5] sm:$0xff]  ;;  %v118_v14 = vld [vmem:[#allocation5 + $0x8] sm:$0xff]  ;;  %s6268_s6 = smov [#allocation14]  }
  0x7f   :  { %575 = vmatprep.mubr.bf16.mxu0 %v6267_v0  ;;  %616 = vmatprep.mubr.bf16.mxu1 %v6267_v0  ;;  %v121_v2 = vld [vmem:[#allocation5 + $0x20] sm:$0xff]  ;;  %v122_v15 = vld [vmem:[#allocation5 + $0x28] sm:$0xff]  ;;  %v119_v58 = vld [vmem:[#allocation5 + $0x10] sm:$0xff]  ;;  %s5195_s13 = sshll.u32 %s6268_s6, 4  ;;  %s5196_s13 = int_to_ptr.vmem [resolvable:$true] %s5195_s13 }
  0x80   :  { %v125_v3 = vld [vmem:[#allocation5 + $0x40] sm:$0xff]  ;;  %v5208_v4 = vcombine.high %v117_v1, %v121_v2  ;;  %v5207_v5 = vcombine.low %v117_v1, %v121_v2  ;;  %v126_v16 = vld [vmem:[#allocation5 + $0x48] sm:$0xff]  ;;  %v5210_v18 = vcombine.high %v118_v14, %v122_v15  ;;  %v5209_v19 = vcombine.low %v118_v14, %v122_v15  ;;  %v123_v59 = vld [vmem:[#allocation5 + $0x30] sm:$0xff]  ;;  %s6224_s14 = scalar_lea.vmem %s5196_s13, 128  ;;  %p6229_p1 = scmp.lt.s32.totalorder %s5196_s13, %s5196_s13 }
  0x81   :  { %v129_v6 = vld [vmem:[#allocation5 + $0x60] sm:$0xff]  ;;  %v130_v17 = vld [vmem:[#allocation5 + $0x68] sm:$0xff]  ;;  %v115_v62 = vld [vmem:[#allocation2] sm:$0xff]  ;;  %v5212_v2 = vcombine.high %v119_v58, %v123_v59  ;;  %p6225_p0 = scmp.ne.s32.totalorder %s5196_s13, %s6224_s14  ;;  %p6230_p2 = scmp.lt.s32.totalorder %s6224_s14, %s6224_s14 }
  0x82   :  { %v5216_v7 = vcombine.high %v125_v3, %v129_v6  ;;  %v133_v8 = vld [vmem:[#allocation5 + $0x80] sm:$0xff]  ;;  %543 = vmatprep.subr.bf16.mxu0 %v5208_v4  ;;  %v5215_v10 = vcombine.low %v125_v3, %v129_v6  ;;  %v5218_v20 = vcombine.high %v126_v16, %v130_v17  ;;  %v134_v22 = vld [vmem:[#allocation5 + $0x88] sm:$0xff]  ;;  %584 = vmatprep.subr.bf16.mxu1 %v5210_v18  ;;  %v127_v4 = vld [vmem:[#allocation5 + $0x50] sm:$0xff] }
  0x83   :  { %v137_v9 = vld [vmem:[#allocation5 + $0xa0] sm:$0xff]  ;;  %544 = vmatpush1.bf16.msra.mxu0 %v5207_v5  ;;  %v138_v23 = vld [vmem:[#allocation5 + $0xa8] sm:$0xff]  ;;  %585 = vmatpush1.bf16.msra.mxu1 %v5209_v19  ;;  %v5217_v27 = vcombine.low %v126_v16, %v130_v17  ;;  %v131_v5 = vld [vmem:[#allocation5 + $0x70] sm:$0xff]  ;;  %v6395_v6 = vpack.c.bf16 %v115_v62, %v115_v62  ;;  %p6231_p3 = por %p6230_p2, %p6229_p1 }
  0x84   :  { %545 = vmatprep.subr.bf16.mxu0 %v5216_v7  ;;  %v5224_v11 = vcombine.high %v133_v8, %v137_v9  ;;  %v141_v12 = vld [vmem:[#allocation5 + $0xc0] sm:$0xff]  ;;  %v5223_v21 = vcombine.low %v133_v8, %v137_v9  ;;  %586 = vmatprep.subr.bf16.mxu1 %v5218_v20  ;;  %v5226_v28 = vcombine.high %v134_v22, %v138_v23  ;;  %v142_v30 = vld [vmem:[#allocation5 + $0xc8] sm:$0xff]  ;;  %v120_v9 = vld [vmem:[#allocation5 + $0x18] sm:$0xff] }
  0x85   :  { %v145_v13 = vld [vmem:[#allocation5 + $0xe0] sm:$0xff]  ;;  %v146_v31 = vld [vmem:[#allocation5 + $0xe8] sm:$0xff]  ;;  %v5225_v35 = vcombine.low %v134_v22, %v138_v23  ;;  %v5211_v8 = vcombine.low %v119_v58, %v123_v59  ;;  %v139_v14 = vld [vmem:[#allocation5 + $0xb0] sm:$0xff]  ;;  %v5219_v16 = vcombine.low %v127_v4, %v131_v5  ;;  %p6232_p4 = pnand %p6231_p3, %p6225_p0 }
  0x86   :  { %v5232_v24 = vcombine.high %v141_v12, %v145_v13  ;;  %v149_v25 = vld [vmem:[#allocation5 + $0x100] sm:$0xff]  ;;  %v5231_v29 = vcombine.low %v141_v12, %v145_v13  ;;  %v5234_v36 = vcombine.high %v142_v30, %v146_v31  ;;  %v150_v38 = vld [vmem:[#allocation5 + $0x108] sm:$0xff]  ;;  %v5233_v43 = vcombine.low %v142_v30, %v146_v31  ;;  %v135_v13 = vld [vmem:[#allocation5 + $0x90] sm:$0xff] }
  0x87   :  { %546 = vmatpush1.bf16.msra.mxu0 %v5215_v10  ;;  %v153_v26 = vld [vmem:[#allocation5 + $0x120] sm:$0xff]  ;;  %587 = vmatpush1.bf16.msra.mxu1 %v5217_v27  ;;  %v154_v39 = vld [vmem:[#allocation5 + $0x128] sm:$0xff]  ;;  %v124_v10 = vld [vmem:[#allocation5 + $0x38] sm:$0xff]  ;;  %v5228_v19 = vcombine.high %v135_v13, %v139_v14 }
  0x88   :  { %547 = vmatprep.subr.bf16.mxu0 %v5224_v11  ;;  %v5240_v32 = vcombine.high %v149_v25, %v153_v26  ;;  %v157_v33 = vld [vmem:[#allocation5 + $0x140] sm:$0xff]  ;;  %588 = vmatprep.subr.bf16.mxu1 %v5226_v28  ;;  %v5239_v37 = vcombine.low %v149_v25, %v153_v26  ;;  %v5242_v44 = vcombine.high %v150_v38, %v154_v39  ;;  %v158_v46 = vld [vmem:[#allocation5 + $0x148] sm:$0xff]  ;;  %v128_v17 = vld [vmem:[#allocation5 + $0x58] sm:$0xff] }
  0x89   :  { %v161_v34 = vld [vmem:[#allocation5 + $0x160] sm:$0xff]  ;;  %v162_v47 = vld [vmem:[#allocation5 + $0x168] sm:$0xff]  ;;  %v5241_v51 = vcombine.low %v150_v38, %v154_v39  ;;  %v5220_v11 = vcombine.high %v127_v4, %v131_v5  ;;  %v5214_v15 = vcombine.high %v120_v9, %v124_v10  ;;  %v132_v18 = vld [vmem:[#allocation5 + $0x78] sm:$0xff]  ;;  %v5213_v22 = vcombine.low %v120_v9, %v124_v10 }
  0x8a   :  { %v5248_v40 = vcombine.high %v157_v33, %v161_v34  ;;  %v165_v41 = vld [vmem:[#allocation5 + $0x180] sm:$0xff]  ;;  %v5247_v45 = vcombine.low %v157_v33, %v161_v34  ;;  %v5250_v52 = vcombine.high %v158_v46, %v162_v47  ;;  %v166_v54 = vld [vmem:[#allocation5 + $0x188] sm:$0xff]  ;;  %v5249_v57 = vcombine.low %v158_v46, %v162_v47  ;;  %v143_v20 = vld [vmem:[#allocation5 + $0xd0] sm:$0xff] }
  0x8b   :  { %548 = vmatpush1.bf16.msra.mxu0 %v5223_v21  ;;  %v169_v42 = vld [vmem:[#allocation5 + $0x1a0] sm:$0xff]  ;;  %589 = vmatpush1.bf16.msra.mxu1 %v5225_v35  ;;  %v170_v55 = vld [vmem:[#allocation5 + $0x1a8] sm:$0xff]  ;;  %v147_v21 = vld [vmem:[#allocation5 + $0xf0] sm:$0xff]  ;;  %v5222_v23 = vcombine.high %v128_v17, %v132_v18  ;;  %v5221_v30 = vcombine.low %v128_v17, %v132_v18 }
  0x8c   :  { %549 = vmatprep.subr.bf16.mxu0 %v5232_v24  ;;  %590 = vmatprep.subr.bf16.mxu1 %v5234_v36  ;;  %v5256_v48 = vcombine.high %v165_v41, %v169_v42  ;;  %v173_v49 = vld [vmem:[#allocation5 + $0x1c0] sm:$0xff]  ;;  %v5255_v53 = vcombine.low %v165_v41, %v169_v42  ;;  %v5258_v60 = vcombine.high %v166_v54, %v170_v55  ;;  %v174_v63 = vld [vmem:[#allocation5 + $0x1c8] sm:$0xff]  ;;  %v151_v25 = vld [vmem:[#allocation5 + $0x110] sm:$0xff] }
  0x8d   :  { %v177_v50 = vld [vmem:[#allocation5 + $0x1e0] sm:$0xff]  ;;  %v178_v1 = vld [vmem:[#allocation5 + $0x1e8] sm:$0xff]  ;;  %v5257_v3 = vcombine.low %v166_v54, %v170_v55  ;;  %v5227_v24 = vcombine.low %v135_v13, %v139_v14  ;;  %v155_v26 = vld [vmem:[#allocation5 + $0x130] sm:$0xff]  ;;  %v5235_v34 = vcombine.low %v143_v20, %v147_v21 }
  0x8e   :  { %v5264_v56 = vcombine.high %v173_v49, %v177_v50  ;;  %v5263_v61 = vcombine.low %v173_v49, %v177_v50  ;;  %v5266_v7 = vcombine.high %v174_v63, %v178_v1  ;;  %v5265_v12 = vcombine.low %v174_v63, %v178_v1  ;;  %v136_v27 = vld [vmem:[#allocation5 + $0x98] sm:$0xff]  ;;  %v159_v35 = vld [vmem:[#allocation5 + $0x150] sm:$0xff]  ;;  %v723_v58 = vld [vmem:[#allocation8] sm:$0xff] }
  0x8f   :  { %550 = vmatpush1.bf16.msra.mxu0 %v5231_v29  ;;  %591 = vmatpush1.bf16.msra.mxu1 %v5233_v43  ;;  %v140_v28 = vld [vmem:[#allocation5 + $0xb8] sm:$0xff]  ;;  %v5236_v29 = vcombine.high %v143_v20, %v147_v21  ;;  %v163_v36 = vld [vmem:[#allocation5 + $0x170] sm:$0xff]  ;;  %v5243_v42 = vcombine.low %v151_v25, %v155_v26  ;;  %v727_v59 = vld [vmem:[#allocation8 + $0x20] sm:$0xff] }
  0x90   :  { %551 = vmatprep.subr.bf16.mxu0 %v5240_v32  ;;  %592 = vmatprep.subr.bf16.mxu1 %v5242_v44  ;;  %v144_v31 = vld [vmem:[#allocation5 + $0xd8] sm:$0xff]  ;;  %v5230_v33 = vcombine.high %v136_v27, %v140_v28  ;;  %v5229_v38 = vcombine.low %v136_v27, %v140_v28  ;;  %v167_v43 = vld [vmem:[#allocation5 + $0x190] sm:$0xff]  ;;  %v5251_v49 = vcombine.low %v159_v35, %v163_v36  ;;  %v735_v4 = vld [vmem:[#allocation8 + $0x60] sm:$0xff] }
  0x91   :  { %v148_v32 = vld [vmem:[#allocation5 + $0xf8] sm:$0xff]  ;;  %v171_v44 = vld [vmem:[#allocation5 + $0x1b0] sm:$0xff]  ;;  %v5272_v5 = vcombine.high %v723_v58, %v727_v59  ;;  %v743_v13 = vld [vmem:[#allocation8 + $0xa0] sm:$0xff] }
  0x92   :  { %v152_v39 = vld [vmem:[#allocation5 + $0x118] sm:$0xff]  ;;  %v5238_v41 = vcombine.high %v144_v31, %v148_v32  ;;  %v175_v50 = vld [vmem:[#allocation5 + $0x1d0] sm:$0xff]  ;;  %v747_v20 = vld [vmem:[#allocation8 + $0xc0] sm:$0xff] }
  0x93   :  { %552 = vmatpush1.bf16.msra.mxu0 %v5239_v37  ;;  %593 = vmatpush1.bf16.msra.mxu1 %v5241_v51  ;;  %v5244_v37 = vcombine.high %v151_v25, %v155_v26  ;;  %v160_v46 = vld [vmem:[#allocation5 + $0x158] sm:$0xff]  ;;  %v179_v51 = vld [vmem:[#allocation5 + $0x1f0] sm:$0xff]  ;;  %v751_v21 = vld [vmem:[#allocation8 + $0xe0] sm:$0xff] }
  0x94   :  { %553 = vmatprep.subr.bf16.mxu0 %v5248_v40  ;;  %594 = vmatprep.subr.bf16.mxu1 %v5250_v52  ;;  %v156_v40 = vld [vmem:[#allocation5 + $0x138] sm:$0xff]  ;;  %v5260_v52 = vcombine.high %v167_v43, %v171_v44  ;;  %v728_v9 = vld [vmem:[#allocation8 + $0x28] sm:$0xff]  ;;  %v755_v28 = vld [vmem:[#allocation8 + $0x100] sm:$0xff] }
  0x95   :  { %v164_v47 = vld [vmem:[#allocation5 + $0x178] sm:$0xff]  ;;  %v736_v17 = vld [vmem:[#allocation8 + $0x68] sm:$0xff] }
  0x96   :  { %v168_v54 = vld [vmem:[#allocation5 + $0x198] sm:$0xff]  ;;  %v744_v25 = vld [vmem:[#allocation8 + $0xa8] sm:$0xff] }
  0x97   :  { %554 = vmatpush1.bf16.msra.mxu0 %v5247_v45  ;;  %595 = vmatpush1.bf16.msra.mxu1 %v5249_v57  ;;  %v5237_v45 = vcombine.low %v144_v31, %v148_v32  ;;  %v172_v55 = vld [vmem:[#allocation5 + $0x1b8] sm:$0xff]  ;;  %v5259_v57 = vcombine.low %v167_v43, %v171_v44  ;;  %v748_v32 = vld [vmem:[#allocation8 + $0xc8] sm:$0xff]  ;;  %v771_v43 = vld [vmem:[#allocation8 + $0x180] sm:$0xff] }
  0x98   :  { %555 = vmatprep.subr.bf16.mxu0 %v5256_v48  ;;  %596 = vmatprep.subr.bf16.mxu1 %v5258_v60  ;;  %v5246_v48 = vcombine.high %v152_v39, %v156_v40  ;;  %v5268_v60 = vcombine.high %v175_v50, %v179_v51  ;;  %v176_v62 = vld [vmem:[#allocation5 + $0x1d8] sm:$0xff]  ;;  %v5262_v1 = vcombine.high %v168_v54, %v172_v55  ;;  %v775_v44 = vld [vmem:[#allocation8 + $0x1a0] sm:$0xff] }
  0x99   :  { %v180_v63 = vld [vmem:[#allocation5 + $0x1f8] sm:$0xff] }
  0x9a   :  { %v5270_v10 = vcombine.high %v176_v62, %v180_v63 }
  0x9b   :  { %556 = vmatpush1.bf16.msra.mxu0 %v5255_v53  ;;  %597 = vmatpush1.bf16.msra.mxu1 %v5257_v3  ;;  %v5245_v53 = vcombine.low %v152_v39, %v156_v40  ;;  %v731_v3 = vld [vmem:[#allocation8 + $0x40] sm:$0xff]  ;;  %v756_v40 = vld [vmem:[#allocation8 + $0x108] sm:$0xff] }
  0x9c   :  { %557 = vmatprep.subr.bf16.mxu0 %v5264_v56  ;;  %598 = vmatprep.subr.bf16.mxu1 %v5266_v7  ;;  %v5254_v56 = vcombine.high %v160_v46, %v164_v47  ;;  %v5261_v7 = vcombine.low %v168_v54, %v172_v55  ;;  %v5280_v14 = vcombine.high %v731_v3, %v735_v4 }
  0x9d   :  { %v5319_v55 = vcombine.low %v771_v43, %v775_v44 }
  0x9f   :  { %558 = vmatpush1.bf16.msra.mxu0 %v5263_v61  ;;  %599 = vmatpush1.bf16.msra.mxu1 %v5265_v12  ;;  %v5253_v61 = vcombine.low %v160_v46, %v164_v47  ;;  %v739_v12 = vld [vmem:[#allocation8 + $0x80] sm:$0xff] }
  0xa0   :  { %625 = vmatprep.subr.bf16.mxu0 %v5212_v2  ;;  %666 = vmatprep.subr.bf16.mxu1 %v5214_v15  ;;  %v5267_v2 = vcombine.low %v175_v50, %v179_v51  ;;  %v5269_v15 = vcombine.low %v176_v62, %v180_v63  ;;  %v5287_v27 = vcombine.low %v739_v12, %v743_v13 }
  0xa1   :  { %v5320_v50 = vcombine.high %v771_v43, %v775_v44 }
  0xa2   :  { %576 = vmatmul.mubr.bf16.vlgmr.msra.gmra.mrb[0].mxu0 %v6395_v6  ;;  %617 = vmatmul.mubr.bf16.vlgmr.msra.gmra.mrb[0].mxu1 %v6395_v6 }
  0xa3   :  { %626 = vmatpush1.bf16.msra.mxu0 %v5211_v8  ;;  %657 = vmatprep.mubr.bf16.mxu0 %v6267_v0  ;;  %v724_v8 = vld [vmem:[#allocation8 + $0x8] sm:$0xff] }
  0xa4   :  { %627 = vmatprep.subr.bf16.mxu0 %v5220_v11  ;;  %667 = vmatpush1.bf16.msra.mxu1 %v5213_v22  ;;  %v5271_v11 = vcombine.low %v723_v58, %v727_v59  ;;  %v5274_v18 = vcombine.high %v724_v8, %v728_v9  ;;  %v5288_v22 = vcombine.high %v739_v12, %v743_v13 }
  0xa5   :  { %698 = vmatprep.mubr.bf16.mxu1 %v6267_v0  ;;  %668 = vmatprep.subr.bf16.mxu1 %v5222_v23  ;;  %v5252_v0 = vcombine.high %v159_v35, %v163_v36  ;;  %v5273_v23 = vcombine.low %v724_v8, %v728_v9  ;;  %v5295_v35 = vcombine.low %v747_v20, %v751_v21  ;;  %v763_v36 = vld [vmem:[#allocation8 + $0x140] sm:$0xff] }
  0xa7   :  { %628 = vmatpush1.bf16.msra.mxu0 %v5219_v16  ;;  %v732_v16 = vld [vmem:[#allocation8 + $0x48] sm:$0xff] }
  0xa8   :  { %629 = vmatprep.subr.bf16.mxu0 %v5228_v19  ;;  %669 = vmatpush1.bf16.msra.mxu1 %v5221_v30  ;;  %v5279_v19 = vcombine.low %v731_v3, %v735_v4  ;;  %v5282_v26 = vcombine.high %v732_v16, %v736_v17  ;;  %v5296_v30 = vcombine.high %v747_v20, %v751_v21 }
  0xa9   :  { %670 = vmatprep.subr.bf16.mxu1 %v5230_v33  ;;  %v5281_v31 = vcombine.low %v732_v16, %v736_v17  ;;  %v752_v33 = vld [vmem:[#allocation8 + $0xe8] sm:$0xff] }
  0xab   :  { %630 = vmatpush1.bf16.msra.mxu0 %v5227_v24  ;;  %v740_v24 = vld [vmem:[#allocation8 + $0x88] sm:$0xff] }
  0xac   :  { %631 = vmatprep.subr.bf16.mxu0 %v5236_v29  ;;  %671 = vmatpush1.bf16.msra.mxu1 %v5229_v38  ;;  %v759_v29 = vld [vmem:[#allocation8 + $0x120] sm:$0xff]  ;;  %v5289_v39 = vcombine.low %v740_v24, %v744_v25 }
  0xad   :  { %672 = vmatprep.subr.bf16.mxu1 %v5238_v41  ;;  %v5304_v38 = vcombine.high %v755_v28, %v759_v29  ;;  %v760_v41 = vld [vmem:[#allocation8 + $0x128] sm:$0xff] }
  0xae   :  { %v5306_v46 = vcombine.high %v756_v40, %v760_v41  ;;  %v5305_v51 = vcombine.low %v756_v40, %v760_v41 }
  0xaf   :  { %632 = vmatpush1.bf16.msra.mxu0 %v5235_v34  ;;  %v5290_v34 = vcombine.high %v740_v24, %v744_v25 }
  0xb0   :  { %633 = vmatprep.subr.bf16.mxu0 %v5244_v37  ;;  %673 = vmatpush1.bf16.msra.mxu1 %v5237_v45  ;;  %v767_v37 = vld [vmem:[#allocation8 + $0x160] sm:$0xff]  ;;  %v5297_v45 = vcombine.low %v748_v32, %v752_v33 }
  0xb1   :  { %674 = vmatprep.subr.bf16.mxu1 %v5246_v48  ;;  %v5311_v47 = vcombine.low %v763_v36, %v767_v37  ;;  %v764_v48 = vld [vmem:[#allocation8 + $0x148] sm:$0xff] }
  0xb3   :  { %634 = vmatpush1.bf16.msra.mxu0 %v5243_v42  ;;  %v5303_v42 = vcombine.low %v755_v28, %v759_v29 }
  0xb4   :  { %635 = vmatprep.subr.bf16.mxu0 %v5252_v0  ;;  %675 = vmatpush1.bf16.msra.mxu1 %v5245_v53  ;;  %v5312_v0 = vcombine.high %v763_v36, %v767_v37  ;;  %v783_v53 = vld [vmem:[#allocation8 + $0x1e0] sm:$0xff] }
  0xb5   :  { %676 = vmatprep.subr.bf16.mxu1 %v5254_v56  ;;  %v772_v56 = vld [vmem:[#allocation8 + $0x188] sm:$0xff] }
  0xb7   :  { %636 = vmatpush1.bf16.msra.mxu0 %v5251_v49  ;;  %v768_v49 = vld [vmem:[#allocation8 + $0x168] sm:$0xff] }
  0xb8   :  { %637 = vmatprep.subr.bf16.mxu0 %v5260_v52  ;;  %677 = vmatpush1.bf16.msra.mxu1 %v5253_v61  ;;  %v779_v52 = vld [vmem:[#allocation8 + $0x1c0] sm:$0xff]  ;;  %v5314_v54 = vcombine.high %v764_v48, %v768_v49  ;;  %v5313_v59 = vcombine.low %v764_v48, %v768_v49  ;;  %v828_v48 = vld [vmem:[#allocation8 + $0x348] sm:$0xff] }
  0xb9   :  { %678 = vmatprep.subr.bf16.mxu1 %v5262_v1  ;;  %v5328_v58 = vcombine.high %v779_v52, %v783_v53  ;;  %v791_v61 = vld [vmem:[#allocation8 + $0x220] sm:$0xff]  ;;  %v5327_v63 = vcombine.low %v779_v52, %v783_v53  ;;  %v780_v1 = vld [vmem:[#allocation8 + $0x1c8] sm:$0xff] }
  0xba   :  { %v832_v49 = vld [vmem:[#allocation8 + $0x368] sm:$0xff]  ;;  %v843_v53 = vld [vmem:[#allocation8 + $0x3c0] sm:$0xff] }
  0xbb   :  { %638 = vmatpush1.bf16.msra.mxu0 %v5259_v57  ;;  %v776_v57 = vld [vmem:[#allocation8 + $0x1a8] sm:$0xff]  ;;  %v5378_v52 = vcombine.high %v828_v48, %v832_v49 }
  0xbc   :  { %639 = vmatprep.subr.bf16.mxu0 %v5268_v60  ;;  %679 = vmatpush1.bf16.msra.mxu1 %v5261_v7  ;;  %v787_v60 = vld [vmem:[#allocation8 + $0x200] sm:$0xff]  ;;  %v5322_v62 = vcombine.high %v772_v56, %v776_v57  ;;  %v5321_v4 = vcombine.low %v772_v56, %v776_v57  ;;  %v836_v56 = vld [vmem:[#allocation8 + $0x388] sm:$0xff] }
  0xbd   :  { %680 = vmatprep.subr.bf16.mxu1 %v5270_v10  ;;  %v5336_v3 = vcombine.high %v787_v60, %v791_v61  ;;  %v799_v7 = vld [vmem:[#allocation8 + $0x260] sm:$0xff]  ;;  %v5335_v9 = vcombine.low %v787_v60, %v791_v61  ;;  %v788_v10 = vld [vmem:[#allocation8 + $0x208] sm:$0xff] }
  0xbe   :  { %v840_v57 = vld [vmem:[#allocation8 + $0x3a8] sm:$0xff]  ;;  %v851_v61 = vld [vmem:[#allocation8 + $0x400] sm:$0xff] }
  0xbf   :  { %640 = vmatpush1.bf16.msra.mxu0 %v5267_v2  ;;  %v784_v2 = vld [vmem:[#allocation8 + $0x1e8] sm:$0xff]  ;;  %v5386_v60 = vcombine.high %v836_v56, %v840_v57 }
  0xc0   :  { %3837 = vmatprep.subr.bf16.mxu0 %v5272_v5  ;;  %681 = vmatpush1.bf16.msra.mxu1 %v5269_v15  ;;  %v795_v5 = vld [vmem:[#allocation8 + $0x240] sm:$0xff]  ;;  %v5330_v8 = vcombine.high %v780_v1, %v784_v2  ;;  %v5329_v13 = vcombine.low %v780_v1, %v784_v2  ;;  %v844_v2 = vld [vmem:[#allocation8 + $0x3c8] sm:$0xff] }
  0xc1   :  { %4001 = vmatprep.subr.bf16.mxu1 %v5274_v18  ;;  %v5344_v12 = vcombine.high %v795_v5, %v799_v7  ;;  %v807_v15 = vld [vmem:[#allocation8 + $0x2a0] sm:$0xff]  ;;  %v5343_v17 = vcombine.low %v795_v5, %v799_v7  ;;  %v796_v18 = vld [vmem:[#allocation8 + $0x248] sm:$0xff] }
  0xc2   :  { %658 = vmatmul.mubr.bf16.vlgmr.msra.gmra.mrb[4].mxu0 %v6395_v6 }
  0xc3   :  { %3838 = vmatpush1.bf16.msra.mxu0 %v5271_v11  ;;  %699 = vmatmul.mubr.bf16.vlgmr.msra.gmra.mrb[4].mxu1 %v6395_v6  ;;  %v5298_v6 = vcombine.high %v748_v32, %v752_v33  ;;  %v792_v11 = vld [vmem:[#allocation8 + $0x228] sm:$0xff] }
  0xc4   :  { %3839 = vmatprep.subr.bf16.mxu0 %v5280_v14  ;;  %4002 = vmatpush1.bf16.msra.mxu1 %v5273_v23  ;;  %v803_v14 = vld [vmem:[#allocation8 + $0x280] sm:$0xff]  ;;  %v5338_v16 = vcombine.high %v788_v10, %v792_v11  ;;  %v5337_v21 = vcombine.low %v788_v10, %v792_v11 }
  0xc5   :  { %4003 = vmatprep.subr.bf16.mxu1 %v5282_v26  ;;  %v5352_v20 = vcombine.high %v803_v14, %v807_v15  ;;  %v815_v23 = vld [vmem:[#allocation8 + $0x2e0] sm:$0xff]  ;;  %v5351_v25 = vcombine.low %v803_v14, %v807_v15  ;;  %v804_v26 = vld [vmem:[#allocation8 + $0x288] sm:$0xff] }
  0xc7   :  { %3840 = vmatpush1.bf16.msra.mxu0 %v5279_v19  ;;  %v800_v19 = vld [vmem:[#allocation8 + $0x268] sm:$0xff] }
  0xc8   :  { %3841 = vmatprep.subr.bf16.mxu0 %v5288_v22  ;;  %4004 = vmatpush1.bf16.msra.mxu1 %v5281_v31  ;;  %v811_v22 = vld [vmem:[#allocation8 + $0x2c0] sm:$0xff]  ;;  %v5346_v24 = vcombine.high %v796_v18, %v800_v19  ;;  %v5345_v29 = vcombine.low %v796_v18, %v800_v19 }
  0xc9   :  { %4005 = vmatprep.subr.bf16.mxu1 %v5290_v34  ;;  %v5360_v28 = vcombine.high %v811_v22, %v815_v23  ;;  %v823_v31 = vld [vmem:[#allocation8 + $0x320] sm:$0xff]  ;;  %v5359_v33 = vcombine.low %v811_v22, %v815_v23  ;;  %v812_v34 = vld [vmem:[#allocation8 + $0x2c8] sm:$0xff] }
  0xcb   :  { %3842 = vmatpush1.bf16.msra.mxu0 %v5287_v27  ;;  %v808_v27 = vld [vmem:[#allocation8 + $0x2a8] sm:$0xff] }
  0xcc   :  { %3843 = vmatprep.subr.bf16.mxu0 %v5296_v30  ;;  %4006 = vmatpush1.bf16.msra.mxu1 %v5289_v39  ;;  %v819_v30 = vld [vmem:[#allocation8 + $0x300] sm:$0xff]  ;;  %v5354_v32 = vcombine.high %v804_v26, %v808_v27  ;;  %v5353_v37 = vcombine.low %v804_v26, %v808_v27 }
  0xcd   :  { %4007 = vmatprep.subr.bf16.mxu1 %v5298_v6  ;;  %v5368_v36 = vcombine.high %v819_v30, %v823_v31  ;;  %v831_v39 = vld [vmem:[#allocation8 + $0x360] sm:$0xff]  ;;  %v5367_v41 = vcombine.low %v819_v30, %v823_v31  ;;  %v820_v6 = vld [vmem:[#allocation8 + $0x308] sm:$0xff] }
  0xce   :  { %v863_v30 = vld [vmem:[#allocation8 + $0x460] sm:$0xff]  ;;  %v860_v31 = vld [vmem:[#allocation8 + $0x448] sm:$0xff] }
  0xcf   :  { %3844 = vmatpush1.bf16.msra.mxu0 %v5295_v35  ;;  %v816_v35 = vld [vmem:[#allocation8 + $0x2e8] sm:$0xff] }
  0xd0   :  { %3845 = vmatprep.subr.bf16.mxu0 %v5304_v38  ;;  %4008 = vmatpush1.bf16.msra.mxu1 %v5297_v45  ;;  %v827_v38 = vld [vmem:[#allocation8 + $0x340] sm:$0xff]  ;;  %v5362_v40 = vcombine.high %v812_v34, %v816_v35  ;;  %v5361_v44 = vcombine.low %v812_v34, %v816_v35 }
  0xd1   :  { %4009 = vmatprep.subr.bf16.mxu1 %v5306_v46  ;;  %v5376_v43 = vcombine.high %v827_v38, %v831_v39  ;;  %v835_v45 = vld [vmem:[#allocation8 + $0x380] sm:$0xff] }
  0xd2   :  { %v839_v46 = vld [vmem:[#allocation8 + $0x3a0] sm:$0xff] }
  0xd3   :  { %3846 = vmatpush1.bf16.msra.mxu0 %v5303_v42  ;;  %v824_v42 = vld [vmem:[#allocation8 + $0x328] sm:$0xff] }
  0xd4   :  { %3847 = vmatprep.subr.bf16.mxu0 %v5312_v0  ;;  %4010 = vmatpush1.bf16.msra.mxu1 %v5305_v51  ;;  %v5370_v0 = vcombine.high %v820_v6, %v824_v42  ;;  %v5369_v51 = vcombine.low %v820_v6, %v824_v42  ;;  %v868_v6 = vld [vmem:[#allocation8 + $0x488] sm:$0xff] }
  0xd5   :  { %4011 = vmatprep.subr.bf16.mxu1 %v5314_v54  ;;  %v847_v54 = vld [vmem:[#allocation8 + $0x3e0] sm:$0xff]  ;;  %v872_v42 = vld [vmem:[#allocation8 + $0x4a8] sm:$0xff] }
  0xd6   :  { %v5391_v1 = vcombine.low %v843_v53, %v847_v54 }
  0xd7   :  { %3848 = vmatpush1.bf16.msra.mxu0 %v5311_v47  ;;  %v5375_v47 = vcombine.low %v827_v38, %v831_v39  ;;  %v867_v39 = vld [vmem:[#allocation8 + $0x480] sm:$0xff] }
  0xd8   :  { %3849 = vmatprep.subr.bf16.mxu0 %v5320_v50  ;;  %4012 = vmatpush1.bf16.msra.mxu1 %v5313_v59  ;;  %v5384_v50 = vcombine.high %v835_v45, %v839_v46  ;;  %v5377_v59 = vcombine.low %v828_v48, %v832_v49  ;;  %v5418_v49 = vcombine.high %v868_v6, %v872_v42 }
  0xd9   :  { %4013 = vmatprep.subr.bf16.mxu1 %v5322_v62  ;;  %v855_v62 = vld [vmem:[#allocation8 + $0x420] sm:$0xff] }
  0xda   :  { %v5399_v5 = vcombine.low %v851_v61, %v855_v62  ;;  %v5400_v7 = vcombine.high %v851_v61, %v855_v62  ;;  %v884_v61 = vld [vmem:[#allocation8 + $0x508] sm:$0xff] }
  0xdb   :  { %3850 = vmatpush1.bf16.msra.mxu0 %v5319_v55  ;;  %v5383_v55 = vcombine.low %v835_v45, %v839_v46  ;;  %v888_v62 = vld [vmem:[#allocation8 + $0x528] sm:$0xff] }
  0xdc   :  { %3851 = vmatprep.subr.bf16.mxu0 %v5328_v58  ;;  %4014 = vmatpush1.bf16.msra.mxu1 %v5321_v4  ;;  %v5392_v58 = vcombine.high %v843_v53, %v847_v54  ;;  %v856_v4 = vld [vmem:[#allocation8 + $0x428] sm:$0xff] }
  0xdd   :  { %4015 = vmatprep.subr.bf16.mxu1 %v5330_v8  ;;  %v880_v53 = vld [vmem:[#allocation8 + $0x4e8] sm:$0xff] }
  0xdf   :  { %3852 = vmatpush1.bf16.msra.mxu0 %v5327_v63  ;;  %v852_v63 = vld [vmem:[#allocation8 + $0x408] sm:$0xff] }
  0xe0   :  { %3853 = vmatprep.subr.bf16.mxu0 %v5336_v3  ;;  %4016 = vmatpush1.bf16.msra.mxu1 %v5329_v13  ;;  %v848_v3 = vld [vmem:[#allocation8 + $0x3e8] sm:$0xff]  ;;  %v5401_v8 = vcombine.low %v852_v63, %v856_v4  ;;  %v183_v13 = vlaneseq }
  0xe1   :  { %4017 = vmatprep.subr.bf16.mxu1 %v5338_v16  ;;  %v5394_v10 = vcombine.high %v844_v2, %v848_v3  ;;  %v5393_v11 = vcombine.low %v844_v2, %v848_v3  ;;  %v6406_v16 = vld [vmem:[#allocation7] sm:$0xff]  ;;  %v5434_v3 = vcombine.high %v884_v61, %v888_v62 }
  0xe2   :  { %v6403_v14 = vshrl.u32 %v183_v13, 7  ;;  %v899_v13 = vld [vmem:[#allocation8 + $0x580] sm:$0xff] }
  0xe3   :  { %3854 = vmatpush1.bf16.msra.mxu0 %v5335_v9  ;;  %v5385_v9 = vcombine.low %v836_v56, %v840_v57  ;;  %v5417_v56 = vcombine.low %v868_v6, %v872_v42 }
  0xe4   :  { %3855 = vmatprep.subr.bf16.mxu0 %v5344_v12  ;;  %4018 = vmatpush1.bf16.msra.mxu1 %v5337_v21  ;;  %v5402_v12 = vcombine.high %v852_v63, %v856_v4  ;;  %v185_v15 = vsub.s32 0, %v6403_v14  ;;  %v197_v21 = vsub.s32 3, %v6403_v14  ;;  %v891_v4 = vld [vmem:[#allocation8 + $0x540] sm:$0xff] }
  0xe5   :  { %4019 = vmatprep.subr.bf16.mxu1 %v5346_v24 }
  0xe6   :  { %v186_v18 = vrot.slane %v6406_v16, %v185_v15 }
  0xe7   :  { %3856 = vmatpush1.bf16.msra.mxu0 %v5343_v17  ;;  %v189_v17 = vsub.s32 1, %v6403_v14 }
  0xe8   :  { %3857 = vmatprep.subr.bf16.mxu0 %v5352_v20  ;;  %4020 = vmatpush1.bf16.msra.mxu1 %v5345_v29 }
  0xe9   :  { %4021 = vmatprep.subr.bf16.mxu1 %v5354_v32  ;;  %v190_v19 = vrot.slane %v6406_v16, %v189_v17  ;;  %v864_v32 = vld [vmem:[#allocation8 + $0x468] sm:$0xff] }
  0xea   :  { %v5410_v38 = vcombine.high %v860_v31, %v864_v32  ;;  %v5409_v46 = vcombine.low %v860_v31, %v864_v32 }
  0xeb   :  { %3858 = vmatpush1.bf16.msra.mxu0 %v5351_v25 }
  0xec   :  { %3859 = vmatprep.subr.bf16.mxu0 %v5360_v28  ;;  %4022 = vmatpush1.bf16.msra.mxu1 %v5353_v37  ;;  %v859_v28 = vld [vmem:[#allocation8 + $0x440] sm:$0xff] }
  0xed   :  { %4023 = vmatprep.subr.bf16.mxu1 %v5362_v40  ;;  %v5408_v37 = vcombine.high %v859_v28, %v863_v30  ;;  %v5407_v45 = vcombine.low %v859_v28, %v863_v30  ;;  %v908_v28 = vld [vmem:[#allocation8 + $0x5c8] sm:$0xff] }
  0xef   :  { %3860 = vmatpush1.bf16.msra.mxu0 %v5359_v33  ;;  %v198_v33 = vrot.slane %v6406_v16, %v197_v21 }
  0xf0   :  { %3861 = vmatprep.subr.bf16.mxu0 %v5368_v36  ;;  %4024 = vmatpush1.bf16.msra.mxu1 %v5361_v44 }
  0xf1   :  { %4025 = vmatprep.subr.bf16.mxu1 %v5370_v0 }
  0xf3   :  { %3862 = vmatpush1.bf16.msra.mxu0 %v5367_v41  ;;  %v871_v41 = vld [vmem:[#allocation8 + $0x4a0] sm:$0xff] }
  0xf4   :  { %3863 = vmatprep.subr.bf16.mxu0 %v5376_v43  ;;  %4026 = vmatpush1.bf16.msra.mxu1 %v5369_v51  ;;  %v5416_v48 = vcombine.high %v867_v39, %v871_v41  ;;  %v879_v51 = vld [vmem:[#allocation8 + $0x4e0] sm:$0xff] }
  0xf5   :  { %4027 = vmatprep.subr.bf16.mxu1 %v5378_v52  ;;  %v876_v52 = vld [vmem:[#allocation8 + $0x4c8] sm:$0xff] }
  0xf7   :  { %3864 = vmatpush1.bf16.msra.mxu0 %v5375_v47 }
  0xf8   :  { %3865 = vmatprep.subr.bf16.mxu0 %v5384_v50  ;;  %4028 = vmatpush1.bf16.msra.mxu1 %v5377_v59  ;;  %v875_v50 = vld [vmem:[#allocation8 + $0x4c0] sm:$0xff] }
  0xf9   :  { %4029 = vmatprep.subr.bf16.mxu1 %v5386_v60  ;;  %v5424_v57 = vcombine.high %v875_v50, %v879_v51  ;;  %v883_v59 = vld [vmem:[#allocation8 + $0x500] sm:$0xff]  ;;  %v5423_v63 = vcombine.low %v875_v50, %v879_v51  ;;  %v928_v50 = vld [vmem:[#allocation8 + $0x668] sm:$0xff] }
  0xfa   :  { %v887_v60 = vld [vmem:[#allocation8 + $0x520] sm:$0xff] }
  0xfb   :  { %3866 = vmatpush1.bf16.msra.mxu0 %v5383_v55  ;;  %v5415_v55 = vcombine.low %v867_v39, %v871_v41  ;;  %v5432_v2 = vcombine.high %v883_v59, %v887_v60  ;;  %v916_v39 = vld [vmem:[#allocation8 + $0x608] sm:$0xff] }
  0xfc   :  { %3867 = vmatprep.subr.bf16.mxu0 %v5392_v58  ;;  %4030 = vmatpush1.bf16.msra.mxu1 %v5385_v9  ;;  %v5426_v58 = vcombine.high %v876_v52, %v880_v53  ;;  %v5431_v9 = vcombine.low %v883_v59, %v887_v60  ;;  %v935_v59 = vld [vmem:[#allocation8 + $0x6a0] sm:$0xff]  ;;  %v932_v60 = vld [vmem:[#allocation8 + $0x688] sm:$0xff] }
  0xfd   :  { %4031 = vmatprep.subr.bf16.mxu1 %v5394_v10  ;;  %v5433_v10 = vcombine.low %v884_v61, %v888_v62  ;;  %v936_v61 = vld [vmem:[#allocation8 + $0x6a8] sm:$0xff] }
  0xff   :  { %3868 = vmatpush1.bf16.msra.mxu0 %v5391_v1  ;;  %v5425_v1 = vcombine.low %v876_v52, %v880_v53 }
 0x100   :  { %3878 = vmatprep.subr.bf16.mxu0 %v5400_v7  ;;  %4032 = vmatpush1.bf16.msra.mxu1 %v5393_v11  ;;  %v892_v7 = vld [vmem:[#allocation8 + $0x548] sm:$0xff] }
 0x101   :  { %4042 = vmatprep.subr.bf16.mxu1 %v5402_v12 }
 0x175   :  { %v577_v20 = vpop.f32.mrb[0].mxu0  ;;  %v6421_v35 = vpop.f32.mrb[0].mxu1 }
 0x176   :  { %v578_v22 = vadd.f32 %v577_v20, %v186_v18  ;;  %v579_v23 = vpop.f32.mrb[1].mxu0  ;;  %v620_v40 = vpop.f32.mrb[1].mxu1  ;;  %v903_v18 = vld [vmem:[#allocation8 + $0x5a0] sm:$0xff]  ;;  %v904_v20 = vld [vmem:[#allocation8 + $0x5a8] sm:$0xff] }
 0x177   :  { %v580_v24 = vadd.f32 %v579_v23, %v190_v19  ;;  %v581_v25 = vpop.f32.mrb[2].mxu0  ;;  %v621_v43 = vadd.f32 %v620_v40, %v198_v33  ;;  %v622_v44 = vpop.f32.mrb[2].mxu1  ;;  %v900_v19 = vld [vmem:[#allocation8 + $0x588] sm:$0xff]  ;;  %v5447_v30 = vcombine.low %v899_v13, %v903_v18 }
 0x178   :  { %v707_v26 = vmax.f32 %v578_v22, 0.0  ;;  %v582_v27 = vpop.f32.mrb[3].mxu0  ;;  %v623_v0 = vpop.f32.mrb[3].mxu1  ;;  %v5450_v25 = vcombine.high %v900_v19, %v904_v20  ;;  %v5449_v31 = vcombine.low %v900_v19, %v904_v20  ;;  %v920_v40 = vld [vmem:[#allocation8 + $0x628] sm:$0xff]  ;;  %v951_v19 = vld [vmem:[#allocation8 + $0x720] sm:$0xff] }
 0x179   :  { %v708_v29 = vmax.f32 %v580_v24, 0.0  ;;  %v710_v47 = vmax.f32 %v621_v43, 0.0  ;;  %v5448_v24 = vcombine.high %v899_v13, %v903_v18  ;;  %v911_v27 = vld [vmem:[#allocation8 + $0x5e0] sm:$0xff]  ;;  %v5465_v52 = vcombine.low %v916_v39, %v920_v40  ;;  %v948_v20 = vld [vmem:[#allocation8 + $0x708] sm:$0xff] }
 0x17a   :  { %v6423_v36 = vpack.c.bf16 %v707_v26, %v707_v26  ;;  %v907_v26 = vld [vmem:[#allocation8 + $0x5c0] sm:$0xff] }
 0x17b   :  { %v6419_v34 = vpack.c.bf16 %v708_v29, %v708_v29  ;;  %v6429_v54 = vpack.c.bf16 %v710_v47, %v710_v47  ;;  %v912_v29 = vld [vmem:[#allocation8 + $0x5e8] sm:$0xff]  ;;  %v5456_v32 = vcombine.high %v907_v26, %v911_v27  ;;  %v5455_v42 = vcombine.low %v907_v26, %v911_v27  ;;  %v947_v18 = vld [vmem:[#allocation8 + $0x700] sm:$0xff] }
 0x17c   :  { %v5458_v33 = vcombine.high %v908_v28, %v912_v29  ;;  %v5457_v43 = vcombine.low %v908_v28, %v912_v29  ;;  %v955_v27 = vld [vmem:[#allocation8 + $0x740] sm:$0xff]  ;;  %v956_v29 = vld [vmem:[#allocation8 + $0x748] sm:$0xff] }
 0x17d   :  { %3869 = vmatprep.mubr.bf16.mxu0 %v6419_v34  ;;  %4033 = vmatprep.mubr.bf16.mxu1 %v6419_v34  ;;  %v959_v28 = vld [vmem:[#allocation8 + $0x760] sm:$0xff] }
 0x17e   :  { %3870 = vmatmul.mubr.bf16.vlgmr.msra.gmra.mrb[8].mxu0 %v6423_v36  ;;  %4034 = vmatmul.mubr.bf16.vlgmr.msra.gmra.mrb[8].mxu1 %v6423_v36 }
 0x17f   :  { %3879 = vmatpush1.bf16.msra.mxu0 %v5399_v5  ;;  %4043 = vmatpush1.bf16.msra.mxu1 %v5401_v8  ;;  %v895_v5 = vld [vmem:[#allocation8 + $0x560] sm:$0xff]  ;;  %v896_v8 = vld [vmem:[#allocation8 + $0x568] sm:$0xff] }
 0x180   :  { %3880 = vmatprep.subr.bf16.mxu0 %v5408_v37  ;;  %4044 = vmatprep.subr.bf16.mxu1 %v5410_v38  ;;  %v5440_v11 = vcombine.high %v891_v4, %v895_v5  ;;  %v5442_v12 = vcombine.high %v892_v7, %v896_v8  ;;  %v5439_v22 = vcombine.low %v891_v4, %v895_v5  ;;  %v915_v37 = vld [vmem:[#allocation8 + $0x600] sm:$0xff] }
 0x181   :  { %3910 = vmatprep.mubr.bf16.mxu0 %v6429_v54  ;;  %4074 = vmatprep.mubr.bf16.mxu1 %v6429_v54  ;;  %v5441_v23 = vcombine.low %v892_v7, %v896_v8  ;;  %v919_v38 = vld [vmem:[#allocation8 + $0x620] sm:$0xff]  ;;  %v5482_v4 = vcombine.high %v932_v60, %v936_v61  ;;  %v940_v8 = vld [vmem:[#allocation8 + $0x6c8] sm:$0xff] }
 0x182   :  { %v5464_v0 = vcombine.high %v915_v37, %v919_v38  ;;  %v5463_v51 = vcombine.low %v915_v37, %v919_v38  ;;  %v939_v5 = vld [vmem:[#allocation8 + $0x6c0] sm:$0xff]  ;;  %v5504_v37 = vcombine.high %v955_v27, %v959_v28 }
 0x183   :  { %3881 = vmatpush1.bf16.msra.mxu0 %v5407_v45  ;;  %4045 = vmatpush1.bf16.msra.mxu1 %v5409_v46  ;;  %v5466_v45 = vcombine.high %v916_v39, %v920_v40  ;;  %v923_v46 = vld [vmem:[#allocation8 + $0x640] sm:$0xff] }
 0x184   :  { %3882 = vmatprep.subr.bf16.mxu0 %v5416_v48  ;;  %4046 = vmatprep.subr.bf16.mxu1 %v5418_v49  ;;  %v927_v48 = vld [vmem:[#allocation8 + $0x660] sm:$0xff]  ;;  %v924_v49 = vld [vmem:[#allocation8 + $0x648] sm:$0xff] }
 0x185   :  { %v943_v7 = vld [vmem:[#allocation8 + $0x6e0] sm:$0xff] }
 0x186   :  { %v963_v39 = vld [vmem:[#allocation8 + $0x780] sm:$0xff] }
 0x187   :  { %3883 = vmatpush1.bf16.msra.mxu0 %v5415_v55  ;;  %4047 = vmatpush1.bf16.msra.mxu1 %v5417_v56  ;;  %v5472_v55 = vcombine.high %v923_v46, %v927_v48  ;;  %v5474_v56 = vcombine.high %v924_v49, %v928_v50  ;;  %v967_v40 = vld [vmem:[#allocation8 + $0x7a0] sm:$0xff] }
 0x188   :  { %3884 = vmatprep.subr.bf16.mxu0 %v5424_v57  ;;  %4048 = vmatprep.subr.bf16.mxu1 %v5426_v58  ;;  %v931_v57 = vld [vmem:[#allocation8 + $0x680] sm:$0xff] }
 0x18b   :  { %3885 = vmatpush1.bf16.msra.mxu0 %v5423_v63  ;;  %4049 = vmatpush1.bf16.msra.mxu1 %v5425_v1  ;;  %v5471_v1 = vcombine.low %v923_v46, %v927_v48 }
 0x18c   :  { %3886 = vmatprep.subr.bf16.mxu0 %v5432_v2  ;;  %4050 = vmatprep.subr.bf16.mxu1 %v5434_v3  ;;  %v5473_v2 = vcombine.low %v924_v49, %v928_v50  ;;  %v5480_v3 = vcombine.high %v931_v57, %v935_v59  ;;  %v971_v49 = vld [vmem:[#allocation8 + $0x7c0] sm:$0xff] }
 0x18d   :  { %v975_v50 = vld [vmem:[#allocation8 + $0x7e0] sm:$0xff] }
 0x18f   :  { %3887 = vmatpush1.bf16.msra.mxu0 %v5431_v9  ;;  %4051 = vmatpush1.bf16.msra.mxu1 %v5433_v10  ;;  %v944_v9 = vld [vmem:[#allocation8 + $0x6e8] sm:$0xff]  ;;  %v5479_v10 = vcombine.low %v931_v57, %v935_v59  ;;  %v5511_v57 = vcombine.low %v963_v39, %v967_v40 }
 0x190   :  { %3888 = vmatprep.subr.bf16.mxu0 %v5440_v11  ;;  %4052 = vmatprep.subr.bf16.mxu1 %v5442_v12  ;;  %v5481_v11 = vcombine.low %v932_v60, %v936_v61  ;;  %v5488_v12 = vcombine.high %v939_v5, %v943_v7  ;;  %v5490_v13 = vcombine.high %v940_v8, %v944_v9 }
 0x191   :  { %v5520_v60 = vcombine.high %v971_v49, %v975_v50 }
 0x193   :  { %3889 = vmatpush1.bf16.msra.mxu0 %v5439_v22  ;;  %4053 = vmatpush1.bf16.msra.mxu1 %v5441_v23  ;;  %v952_v22 = vld [vmem:[#allocation8 + $0x728] sm:$0xff]  ;;  %v5487_v23 = vcombine.low %v939_v5, %v943_v7  ;;  %v5519_v5 = vcombine.low %v971_v49, %v975_v50 }
 0x194   :  { %3890 = vmatprep.subr.bf16.mxu0 %v5448_v24  ;;  %4054 = vmatprep.subr.bf16.mxu1 %v5450_v25  ;;  %v5489_v24 = vcombine.low %v940_v8, %v944_v9  ;;  %v5496_v25 = vcombine.high %v947_v18, %v951_v19  ;;  %v5498_v26 = vcombine.high %v948_v20, %v952_v22  ;;  %v987_v9 = vld [vmem:[#allocation8 + $0x840] sm:$0xff] }
 0x195   :  { %v6433_v41 = vpop.f32.mrb[4].mxu0 }
 0x196   :  { %v6435_v6 = vpop.f32.mrb[5].mxu0  ;;  %v6437_v53 = vpop.f32.mrb[4].mxu1 }
 0x197   :  { %3891 = vmatpush1.bf16.msra.mxu0 %v5447_v30  ;;  %4055 = vmatpush1.bf16.msra.mxu1 %v5449_v31  ;;  %v663_v44 = vpop.f32.mrb[6].mxu0  ;;  %v6439_v58 = vpop.f32.mrb[5].mxu1  ;;  %v960_v30 = vld [vmem:[#allocation8 + $0x768] sm:$0xff]  ;;  %v193_v31 = vsub.s32 2, %v6403_v14 }
 0x198   :  { %3892 = vmatprep.subr.bf16.mxu0 %v5456_v32  ;;  %4056 = vmatprep.subr.bf16.mxu1 %v5458_v33  ;;  %v664_v47 = vpop.f32.mrb[7].mxu0  ;;  %v704_v62 = vpop.f32.mrb[6].mxu1  ;;  %v5495_v32 = vcombine.low %v947_v18, %v951_v19  ;;  %v5497_v33 = vcombine.low %v948_v20, %v952_v22  ;;  %v5506_v38 = vcombine.high %v956_v29, %v960_v30  ;;  %v205_v44 = vsub.s32 5, %v6403_v14 }
 0x199   :  { %v705_v63 = vpop.f32.mrb[7].mxu1  ;;  %v5505_v46 = vcombine.low %v956_v29, %v960_v30  ;;  %v5512_v47 = vcombine.high %v963_v39, %v967_v40  ;;  %v979_v62 = vld [vmem:[#allocation8 + $0x800] sm:$0xff]  ;;  %v1008_v39 = vld [vmem:[#allocation8 + $0x8e8] sm:$0xff] }
 0x19a   :  { %v983_v63 = vld [vmem:[#allocation8 + $0x820] sm:$0xff] }
 0x19b   :  { %3893 = vmatpush1.bf16.msra.mxu0 %v5455_v42  ;;  %4057 = vmatpush1.bf16.msra.mxu1 %v5457_v43  ;;  %v964_v42 = vld [vmem:[#allocation8 + $0x788] sm:$0xff]  ;;  %v5527_v19 = vcombine.low %v979_v62, %v983_v63 }
 0x19c   :  { %3894 = vmatprep.subr.bf16.mxu0 %v5464_v0  ;;  %4058 = vmatprep.subr.bf16.mxu1 %v5466_v45  ;;  %v968_v43 = vld [vmem:[#allocation8 + $0x7a8] sm:$0xff]  ;;  %v194_v0 = vrot.slane %v6406_v16, %v193_v31  ;;  %v5503_v45 = vcombine.low %v955_v27, %v959_v28 }
 0x19d   :  { %v5514_v48 = vcombine.high %v964_v42, %v968_v43  ;;  %v5513_v59 = vcombine.low %v964_v42, %v968_v43 }
 0x19f   :  { %3895 = vmatpush1.bf16.msra.mxu0 %v5463_v51  ;;  %4059 = vmatpush1.bf16.msra.mxu1 %v5465_v52  ;;  %v972_v51 = vld [vmem:[#allocation8 + $0x7c8] sm:$0xff] }
 0x1a0   :  { %3896 = vmatprep.subr.bf16.mxu0 %v5472_v55  ;;  %4060 = vmatprep.subr.bf16.mxu1 %v5474_v56  ;;  %v976_v52 = vld [vmem:[#allocation8 + $0x7e8] sm:$0xff]  ;;  %v206_v55 = vrot.slane %v6406_v16, %v205_v44  ;;  %v619_v56 = vadd.f32 %v6421_v35, %v194_v0  ;;  %v5528_v35 = vcombine.high %v979_v62, %v983_v63 }
 0x1a1   :  { %v5522_v61 = vcombine.high %v972_v51, %v976_v52  ;;  %v5521_v7 = vcombine.low %v972_v51, %v976_v52 }
 0x1a3   :  { %3897 = vmatpush1.bf16.msra.mxu0 %v5471_v1  ;;  %4061 = vmatpush1.bf16.msra.mxu1 %v5473_v2  ;;  %v980_v1 = vld [vmem:[#allocation8 + $0x808] sm:$0xff] }
 0x1a4   :  { %3898 = vmatprep.subr.bf16.mxu0 %v5480_v3  ;;  %4062 = vmatprep.subr.bf16.mxu1 %v5482_v4  ;;  %v984_v2 = vld [vmem:[#allocation8 + $0x828] sm:$0xff]  ;;  %v662_v3 = vadd.f32 %v6435_v6, %v206_v55  ;;  %v709_v4 = vmax.f32 %v619_v56, 0.0  ;;  %v1019_v55 = vld [vmem:[#allocation8 + $0x940] sm:$0xff] }
 0x1a5   :  { %v5530_v8 = vcombine.high %v980_v1, %v984_v2  ;;  %v5529_v6 = vcombine.low %v980_v1, %v984_v2  ;;  %v1023_v56 = vld [vmem:[#allocation8 + $0x960] sm:$0xff] }
 0x1a6   :  { %v6451_v18 = vpack.c.bf16 %v709_v4, %v709_v4  ;;  %v5568_v62 = vcombine.high %v1019_v55, %v1023_v56  ;;  %v1027_v1 = vld [vmem:[#allocation8 + $0x980] sm:$0xff]  ;;  %v1032_v4 = vld [vmem:[#allocation8 + $0x9a8] sm:$0xff] }
 0x1a7   :  { %3899 = vmatpush1.bf16.msra.mxu0 %v5479_v10  ;;  %4063 = vmatpush1.bf16.msra.mxu1 %v5481_v11  ;;  %v991_v10 = vld [vmem:[#allocation8 + $0x860] sm:$0xff]  ;;  %v988_v11 = vld [vmem:[#allocation8 + $0x848] sm:$0xff] }
 0x1a8   :  { %3900 = vmatprep.subr.bf16.mxu0 %v5488_v12  ;;  %4064 = vmatprep.subr.bf16.mxu1 %v5490_v13  ;;  %v992_v12 = vld [vmem:[#allocation8 + $0x868] sm:$0xff]  ;;  %v712_v13 = vmax.f32 %v662_v3, 0.0  ;;  %v5536_v20 = vcombine.high %v987_v9, %v991_v10  ;;  %v5535_v28 = vcombine.low %v987_v9, %v991_v10  ;;  %v1031_v2 = vld [vmem:[#allocation8 + $0x9a0] sm:$0xff] }
 0x1a9   :  { %v5538_v22 = vcombine.high %v988_v11, %v992_v12  ;;  %v5537_v29 = vcombine.low %v988_v11, %v992_v12  ;;  %v1028_v3 = vld [vmem:[#allocation8 + $0x988] sm:$0xff]  ;;  %v1035_v9 = vld [vmem:[#allocation8 + $0x9c0] sm:$0xff] }
 0x1aa   :  { %v6453_v27 = vpack.c.bf16 %v712_v13, %v712_v13  ;;  %v1039_v10 = vld [vmem:[#allocation8 + $0x9e0] sm:$0xff]  ;;  %v1036_v11 = vld [vmem:[#allocation8 + $0x9c8] sm:$0xff]  ;;  %v5575_v13 = vcombine.low %v1027_v1, %v1031_v2 }
 0x1ab   :  { %3901 = vmatpush1.bf16.msra.mxu0 %v5487_v23  ;;  %4065 = vmatpush1.bf16.msra.mxu1 %v5489_v24  ;;  %v995_v23 = vld [vmem:[#allocation8 + $0x880] sm:$0xff]  ;;  %v1040_v12 = vld [vmem:[#allocation8 + $0x9e8] sm:$0xff] }
 0x1ac   :  { %3902 = vmatprep.subr.bf16.mxu0 %v5496_v25  ;;  %4066 = vmatprep.subr.bf16.mxu1 %v5498_v26  ;;  %v999_v24 = vld [vmem:[#allocation8 + $0x8a0] sm:$0xff]  ;;  %v996_v25 = vld [vmem:[#allocation8 + $0x888] sm:$0xff] }
 0x1ad   :  { %v1000_v26 = vld [vmem:[#allocation8 + $0x8a8] sm:$0xff]  ;;  %v5544_v30 = vcombine.high %v995_v23, %v999_v24  ;;  %v5543_v40 = vcombine.low %v995_v23, %v999_v24  ;;  %v1047_v23 = vld [vmem:[#allocation8 + $0xa20] sm:$0xff] }
 0x1ae   :  { %v5545_v42 = vcombine.low %v996_v25, %v1000_v26  ;;  %v1044_v24 = vld [vmem:[#allocation8 + $0xa08] sm:$0xff] }
 0x1af   :  { %3903 = vmatpush1.bf16.msra.mxu0 %v5495_v32  ;;  %4067 = vmatpush1.bf16.msra.mxu1 %v5497_v33  ;;  %v5546_v32 = vcombine.high %v996_v25, %v1000_v26  ;;  %v1003_v33 = vld [vmem:[#allocation8 + $0x8c0] sm:$0xff]  ;;  %v1048_v25 = vld [vmem:[#allocation8 + $0xa28] sm:$0xff]  ;;  %v5583_v26 = vcombine.low %v1035_v9, %v1039_v10 }
 0x1b0   :  { %3904 = vmatprep.subr.bf16.mxu0 %v5504_v37  ;;  %4068 = vmatprep.subr.bf16.mxu1 %v5506_v38  ;;  %v1007_v37 = vld [vmem:[#allocation8 + $0x8e0] sm:$0xff]  ;;  %v1004_v38 = vld [vmem:[#allocation8 + $0x8c8] sm:$0xff] }
 0x1b1   :  { %v5552_v43 = vcombine.high %v1003_v33, %v1007_v37  ;;  %v5554_v0 = vcombine.high %v1004_v38, %v1008_v39  ;;  %v5551_v49 = vcombine.low %v1003_v33, %v1007_v37  ;;  %v5553_v50 = vcombine.low %v1004_v38, %v1008_v39  ;;  %v1055_v33 = vld [vmem:[#allocation8 + $0xa60] sm:$0xff]  ;;  %v1052_v37 = vld [vmem:[#allocation8 + $0xa48] sm:$0xff] }
 0x1b2   :  { %v1056_v38 = vld [vmem:[#allocation8 + $0xa68] sm:$0xff] }
 0x1b3   :  { %3905 = vmatpush1.bf16.msra.mxu0 %v5503_v45  ;;  %4069 = vmatpush1.bf16.msra.mxu1 %v5505_v46  ;;  %v1011_v45 = vld [vmem:[#allocation8 + $0x900] sm:$0xff] }
 0x1b4   :  { %3906 = vmatprep.subr.bf16.mxu0 %v5512_v47  ;;  %4070 = vmatprep.subr.bf16.mxu1 %v5514_v48  ;;  %v1015_v46 = vld [vmem:[#allocation8 + $0x920] sm:$0xff]  ;;  %v1012_v47 = vld [vmem:[#allocation8 + $0x908] sm:$0xff] }
 0x1b5   :  { %v1016_v48 = vld [vmem:[#allocation8 + $0x928] sm:$0xff]  ;;  %v5560_v51 = vcombine.high %v1011_v45, %v1015_v46 }
 0x1b6   :  { %v5562_v52 = vcombine.high %v1012_v47, %v1016_v48 }
 0x1b7   :  { %3907 = vmatpush1.bf16.msra.mxu0 %v5511_v57  ;;  %4071 = vmatpush1.bf16.msra.mxu1 %v5513_v59  ;;  %v1020_v57 = vld [vmem:[#allocation8 + $0x948] sm:$0xff] }
 0x1b8   :  { %3908 = vmatprep.subr.bf16.mxu0 %v5520_v60  ;;  %4072 = vmatprep.subr.bf16.mxu1 %v5522_v61  ;;  %v1024_v59 = vld [vmem:[#allocation8 + $0x968] sm:$0xff]  ;;  %v5559_v60 = vcombine.low %v1011_v45, %v1015_v46  ;;  %v5561_v61 = vcombine.low %v1012_v47, %v1016_v48  ;;  %v1063_v45 = vld [vmem:[#allocation8 + $0xaa0] sm:$0xff] }
 0x1b9   :  { %v5570_v63 = vcombine.high %v1020_v57, %v1024_v59  ;;  %v1060_v46 = vld [vmem:[#allocation8 + $0xa88] sm:$0xff] }
 0x1ba   :  { %v1064_v47 = vld [vmem:[#allocation8 + $0xaa8] sm:$0xff] }
 0x1bb   :  { %3909 = vmatpush1.bf16.msra.mxu0 %v5519_v5  ;;  %4073 = vmatpush1.bf16.msra.mxu1 %v5521_v7  ;;  %v5567_v5 = vcombine.low %v1019_v55, %v1023_v56  ;;  %v5569_v7 = vcombine.low %v1020_v57, %v1024_v59  ;;  %v1071_v55 = vld [vmem:[#allocation8 + $0xae0] sm:$0xff]  ;;  %v1068_v56 = vld [vmem:[#allocation8 + $0xac8] sm:$0xff] }
 0x1bc   :  { %3919 = vmatprep.subr.bf16.mxu0 %v5528_v35  ;;  %4083 = vmatprep.subr.bf16.mxu1 %v5530_v8  ;;  %v5576_v35 = vcombine.high %v1027_v1, %v1031_v2  ;;  %v5578_v8 = vcombine.high %v1028_v3, %v1032_v4  ;;  %v1072_v57 = vld [vmem:[#allocation8 + $0xae8] sm:$0xff]  ;;  %v1079_v1 = vld [vmem:[#allocation8 + $0xb20] sm:$0xff] }
 0x1bd   :  { %v1076_v2 = vld [vmem:[#allocation8 + $0xb08] sm:$0xff] }
 0x1be   :  { %3911 = vmatmul.mubr.bf16.vlgmr.msra.gmra.mrb[8].mxu0 %v6451_v18  ;;  %4075 = vmatmul.mubr.bf16.vlgmr.msra.gmra.mrb[8].mxu1 %v6451_v18 }
 0x1bf   :  { %3920 = vmatpush1.bf16.msra.mxu0 %v5527_v19  ;;  %4084 = vmatpush1.bf16.msra.mxu1 %v5529_v6  ;;  %v5577_v19 = vcombine.low %v1028_v3, %v1032_v4  ;;  %v5584_v6 = vcombine.high %v1035_v9, %v1039_v10  ;;  %v1080_v3 = vld [vmem:[#allocation8 + $0xb28] sm:$0xff]  ;;  %v1087_v9 = vld [vmem:[#allocation8 + $0xb60] sm:$0xff] }
 0x1c0   :  { %3921 = vmatprep.subr.bf16.mxu0 %v5536_v20  ;;  %4085 = vmatprep.subr.bf16.mxu1 %v5538_v22  ;;  %v5586_v20 = vcombine.high %v1036_v11, %v1040_v12  ;;  %v1043_v22 = vld [vmem:[#allocation8 + $0xa00] sm:$0xff]  ;;  %v1084_v10 = vld [vmem:[#allocation8 + $0xb48] sm:$0xff] }
 0x1c1   :  { %3951 = vmatprep.mubr.bf16.mxu0 %v6453_v27  ;;  %4115 = vmatprep.mubr.bf16.mxu1 %v6453_v27  ;;  %v5591_v39 = vcombine.low %v1043_v22, %v1047_v23 }
 0x1c3   :  { %3922 = vmatpush1.bf16.msra.mxu0 %v5535_v28  ;;  %4086 = vmatpush1.bf16.msra.mxu1 %v5537_v29  ;;  %v5585_v28 = vcombine.low %v1036_v11, %v1040_v12  ;;  %v5592_v29 = vcombine.high %v1043_v22, %v1047_v23  ;;  %v1088_v11 = vld [vmem:[#allocation8 + $0xb68] sm:$0xff]  ;;  %v201_v12 = vsub.s32 4, %v6403_v14  ;;  %v1091_v22 = vld [vmem:[#allocation8 + $0xb80] sm:$0xff] }
 0x1c4   :  { %3923 = vmatprep.subr.bf16.mxu0 %v5544_v30  ;;  %4087 = vmatprep.subr.bf16.mxu1 %v5546_v32  ;;  %v5594_v30 = vcombine.high %v1044_v24, %v1048_v25  ;;  %v1051_v32 = vld [vmem:[#allocation8 + $0xa40] sm:$0xff] }
 0x1c5   :  { %v5599_v48 = vcombine.low %v1051_v32, %v1055_v33  ;;  %v1095_v23 = vld [vmem:[#allocation8 + $0xba0] sm:$0xff] }
 0x1c7   :  { %3924 = vmatpush1.bf16.msra.mxu0 %v5543_v40  ;;  %4088 = vmatpush1.bf16.msra.mxu1 %v5545_v42  ;;  %v5593_v40 = vcombine.low %v1044_v24, %v1048_v25  ;;  %v5600_v42 = vcombine.high %v1051_v32, %v1055_v33  ;;  %v1092_v24 = vld [vmem:[#allocation8 + $0xb88] sm:$0xff]  ;;  %v5640_v32 = vcombine.high %v1091_v22, %v1095_v23 }
 0x1c8   :  { %3925 = vmatprep.subr.bf16.mxu0 %v5552_v43  ;;  %4089 = vmatprep.subr.bf16.mxu1 %v5554_v0  ;;  %v5602_v43 = vcombine.high %v1052_v37, %v1056_v38  ;;  %v1059_v0 = vld [vmem:[#allocation8 + $0xa80] sm:$0xff]  ;;  %v1096_v25 = vld [vmem:[#allocation8 + $0xba8] sm:$0xff] }
 0x1c9   :  { %v5607_v59 = vcombine.low %v1059_v0, %v1063_v45  ;;  %v5642_v33 = vcombine.high %v1092_v24, %v1096_v25 }
 0x1cb   :  { %3926 = vmatpush1.bf16.msra.mxu0 %v5551_v49  ;;  %4090 = vmatpush1.bf16.msra.mxu1 %v5553_v50  ;;  %v5601_v49 = vcombine.low %v1052_v37, %v1056_v38  ;;  %v5608_v50 = vcombine.high %v1059_v0, %v1063_v45  ;;  %v1099_v37 = vld [vmem:[#allocation8 + $0xbc0] sm:$0xff]  ;;  %v5639_v0 = vcombine.low %v1091_v22, %v1095_v23  ;;  %v1132_v22 = vld [vmem:[#allocation8 + $0xcc8] sm:$0xff] }
 0x1cc   :  { %3927 = vmatprep.subr.bf16.mxu0 %v5560_v51  ;;  %4091 = vmatprep.subr.bf16.mxu1 %v5562_v52  ;;  %v5610_v51 = vcombine.high %v1060_v46, %v1064_v47  ;;  %v1067_v52 = vld [vmem:[#allocation8 + $0xac0] sm:$0xff]  ;;  %v5641_v45 = vcombine.low %v1092_v24, %v1096_v25  ;;  %v1136_v23 = vld [vmem:[#allocation8 + $0xce8] sm:$0xff] }
 0x1cd   :  { %v5615_v4 = vcombine.low %v1067_v52, %v1071_v55  ;;  %v1103_v38 = vld [vmem:[#allocation8 + $0xbe0] sm:$0xff] }
 0x1cf   :  { %3928 = vmatpush1.bf16.msra.mxu0 %v5559_v60  ;;  %4092 = vmatpush1.bf16.msra.mxu1 %v5561_v61  ;;  %v5609_v60 = vcombine.low %v1060_v46, %v1064_v47  ;;  %v5616_v61 = vcombine.high %v1067_v52, %v1071_v55  ;;  %v5648_v46 = vcombine.high %v1099_v37, %v1103_v38 }
 0x1d0   :  { %3929 = vmatprep.subr.bf16.mxu0 %v5568_v62  ;;  %4093 = vmatprep.subr.bf16.mxu1 %v5570_v63  ;;  %v5618_v62 = vcombine.high %v1068_v56, %v1072_v57  ;;  %v1075_v63 = vld [vmem:[#allocation8 + $0xb00] sm:$0xff] }
 0x1d3   :  { %3930 = vmatpush1.bf16.msra.mxu0 %v5567_v5  ;;  %4094 = vmatpush1.bf16.msra.mxu1 %v5569_v7  ;;  %v5617_v5 = vcombine.low %v1068_v56, %v1072_v57  ;;  %v5624_v7 = vcombine.high %v1075_v63, %v1079_v1 }
 0x1d4   :  { %3931 = vmatprep.subr.bf16.mxu0 %v5576_v35  ;;  %4095 = vmatprep.subr.bf16.mxu1 %v5578_v8  ;;  %v5626_v35 = vcombine.high %v1076_v2, %v1080_v3  ;;  %v1083_v8 = vld [vmem:[#allocation8 + $0xb40] sm:$0xff] }
 0x1d7   :  { %3932 = vmatpush1.bf16.msra.mxu0 %v5575_v13  ;;  %4096 = vmatpush1.bf16.msra.mxu1 %v5577_v19  ;;  %v5623_v13 = vcombine.low %v1075_v63, %v1079_v1  ;;  %v5625_v19 = vcombine.low %v1076_v2, %v1080_v3 }
 0x1d8   :  { %3933 = vmatprep.subr.bf16.mxu0 %v5584_v6  ;;  %4097 = vmatprep.subr.bf16.mxu1 %v5586_v20  ;;  %v5632_v6 = vcombine.high %v1083_v8, %v1087_v9  ;;  %v5634_v20 = vcombine.high %v1084_v10, %v1088_v11 }
 0x1db   :  { %3934 = vmatpush1.bf16.msra.mxu0 %v5583_v26  ;;  %4098 = vmatpush1.bf16.msra.mxu1 %v5585_v28  ;;  %v213_v26 = vsub.s32 7, %v6403_v14  ;;  %v202_v28 = vrot.slane %v6406_v16, %v201_v12 }
 0x1dc   :  { %3935 = vmatprep.subr.bf16.mxu0 %v5592_v29  ;;  %4099 = vmatprep.subr.bf16.mxu1 %v5594_v30  ;;  %v5631_v29 = vcombine.low %v1083_v8, %v1087_v9  ;;  %v5633_v30 = vcombine.low %v1084_v10, %v1088_v11  ;;  %v1128_v8 = vld [vmem:[#allocation8 + $0xca8] sm:$0xff] }
 0x1df   :  { %3936 = vmatpush1.bf16.msra.mxu0 %v5591_v39  ;;  %4100 = vmatpush1.bf16.msra.mxu1 %v5593_v40  ;;  %v1100_v39 = vld [vmem:[#allocation8 + $0xbc8] sm:$0xff] }
 0x1e0   :  { %3937 = vmatprep.subr.bf16.mxu0 %v5600_v42  ;;  %4101 = vmatprep.subr.bf16.mxu1 %v5602_v43  ;;  %v1104_v40 = vld [vmem:[#allocation8 + $0xbe8] sm:$0xff]  ;;  %v214_v42 = vrot.slane %v6406_v16, %v213_v26  ;;  %v660_v43 = vadd.f32 %v6433_v41, %v202_v28  ;;  %v5647_v16 = vcombine.low %v1099_v37, %v1103_v38 }
 0x1e1   :  { %v5650_v47 = vcombine.high %v1100_v39, %v1104_v40  ;;  %v5649_v56 = vcombine.low %v1100_v39, %v1104_v40  ;;  %v1144_v37 = vld [vmem:[#allocation8 + $0xd28] sm:$0xff]  ;;  %v5681_v39 = vcombine.low %v1132_v22, %v1136_v23 }
 0x1e2   :  { %v703_v52 = vadd.f32 %v6439_v58, %v214_v42  ;;  %v711_v55 = vmax.f32 %v660_v43, 0.0  ;;  %v1147_v43 = vld [vmem:[#allocation8 + $0xd40] sm:$0xff] }
 0x1e3   :  { %3938 = vmatpush1.bf16.msra.mxu0 %v5599_v48  ;;  %4102 = vmatpush1.bf16.msra.mxu1 %v5601_v49  ;;  %v1107_v48 = vld [vmem:[#allocation8 + $0xc00] sm:$0xff] }
 0x1e4   :  { %3939 = vmatprep.subr.bf16.mxu0 %v5608_v50  ;;  %4103 = vmatprep.subr.bf16.mxu1 %v5610_v51  ;;  %v1111_v49 = vld [vmem:[#allocation8 + $0xc20] sm:$0xff]  ;;  %v1108_v50 = vld [vmem:[#allocation8 + $0xc08] sm:$0xff]  ;;  %v714_v63 = vmax.f32 %v703_v52, 0.0  ;;  %v6469_v1 = vpack.c.bf16 %v711_v55, %v711_v55 }
 0x1e5   :  { %v1112_v51 = vld [vmem:[#allocation8 + $0xc28] sm:$0xff]  ;;  %v5656_v41 = vcombine.high %v1107_v48, %v1111_v49  ;;  %v5655_v2 = vcombine.low %v1107_v48, %v1111_v49  ;;  %v1159_v52 = vld [vmem:[#allocation8 + $0xda0] sm:$0xff] }
 0x1e6   :  { %v5658_v57 = vcombine.high %v1108_v50, %v1112_v51  ;;  %v5657_v58 = vcombine.low %v1108_v50, %v1112_v51  ;;  %v6471_v9 = vpack.c.bf16 %v714_v63, %v714_v63  ;;  %v1155_v51 = vld [vmem:[#allocation8 + $0xd80] sm:$0xff]  ;;  %v1156_v55 = vld [vmem:[#allocation8 + $0xd88] sm:$0xff] }
 0x1e7   :  { %3940 = vmatpush1.bf16.msra.mxu0 %v5607_v59  ;;  %4104 = vmatpush1.bf16.msra.mxu1 %v5609_v60  ;;  %v1115_v59 = vld [vmem:[#allocation8 + $0xc40] sm:$0xff]  ;;  %v1168_v63 = vld [vmem:[#allocation8 + $0xde8] sm:$0xff] }
 0x1e8   :  { %3941 = vmatprep.subr.bf16.mxu0 %v5616_v61  ;;  %4105 = vmatprep.subr.bf16.mxu1 %v5618_v62  ;;  %v1119_v60 = vld [vmem:[#allocation8 + $0xc60] sm:$0xff]  ;;  %v1116_v61 = vld [vmem:[#allocation8 + $0xc48] sm:$0xff] }
 0x1e9   :  { %v1120_v62 = vld [vmem:[#allocation8 + $0xc68] sm:$0xff]  ;;  %v5664_v3 = vcombine.high %v1115_v59, %v1119_v60  ;;  %v5663_v10 = vcombine.low %v1115_v59, %v1119_v60  ;;  %v1163_v60 = vld [vmem:[#allocation8 + $0xdc0] sm:$0xff] }
 0x1ea   :  { %v5665_v11 = vcombine.low %v1116_v61, %v1120_v62 }
 0x1eb   :  { %3942 = vmatpush1.bf16.msra.mxu0 %v5615_v4  ;;  %4106 = vmatpush1.bf16.msra.mxu1 %v5617_v5  ;;  %v5666_v4 = vcombine.high %v1116_v61, %v1120_v62  ;;  %v1123_v5 = vld [vmem:[#allocation8 + $0xc80] sm:$0xff]  ;;  %v1164_v62 = vld [vmem:[#allocation8 + $0xdc8] sm:$0xff] }
 0x1ec   :  { %3943 = vmatprep.subr.bf16.mxu0 %v5624_v7  ;;  %4107 = vmatprep.subr.bf16.mxu1 %v5626_v35  ;;  %v1127_v7 = vld [vmem:[#allocation8 + $0xca0] sm:$0xff]  ;;  %v1124_v35 = vld [vmem:[#allocation8 + $0xc88] sm:$0xff] }
 0x1ed   :  { %v5671_v24 = vcombine.low %v1123_v5, %v1127_v7  ;;  %v5673_v25 = vcombine.low %v1124_v35, %v1128_v8  ;;  %v1167_v61 = vld [vmem:[#allocation8 + $0xde0] sm:$0xff] }
 0x1ef   :  { %3944 = vmatpush1.bf16.msra.mxu0 %v5623_v13  ;;  %4108 = vmatpush1.bf16.msra.mxu1 %v5625_v19  ;;  %v5672_v13 = vcombine.high %v1123_v5, %v1127_v7  ;;  %v5674_v19 = vcombine.high %v1124_v35, %v1128_v8  ;;  %v1171_v5 = vld [vmem:[#allocation8 + $0xe00] sm:$0xff]  ;;  %v1172_v35 = vld [vmem:[#allocation8 + $0xe08] sm:$0xff] }
 0x1f0   :  { %3945 = vmatprep.subr.bf16.mxu0 %v5632_v6  ;;  %4109 = vmatprep.subr.bf16.mxu1 %v5634_v20  ;;  %v1131_v6 = vld [vmem:[#allocation8 + $0xcc0] sm:$0xff]  ;;  %v1176_v8 = vld [vmem:[#allocation8 + $0xe28] sm:$0xff] }
 0x1f1   :  { %v1135_v20 = vld [vmem:[#allocation8 + $0xce0] sm:$0xff] }
 0x1f2   :  { %v5680_v28 = vcombine.high %v1131_v6, %v1135_v20  ;;  %v5679_v38 = vcombine.low %v1131_v6, %v1135_v20  ;;  %v1175_v7 = vld [vmem:[#allocation8 + $0xe20] sm:$0xff] }
 0x1f3   :  { %3946 = vmatpush1.bf16.msra.mxu0 %v5631_v29  ;;  %4110 = vmatpush1.bf16.msra.mxu1 %v5633_v30  ;;  %v5682_v29 = vcombine.high %v1132_v22, %v1136_v23  ;;  %v1139_v30 = vld [vmem:[#allocation8 + $0xd00] sm:$0xff]  ;;  %v1180_v22 = vld [vmem:[#allocation8 + $0xe48] sm:$0xff] }
 0x1f4   :  { %3947 = vmatprep.subr.bf16.mxu0 %v5640_v32  ;;  %4111 = vmatprep.subr.bf16.mxu1 %v5642_v33  ;;  %v1143_v32 = vld [vmem:[#allocation8 + $0xd20] sm:$0xff]  ;;  %v1140_v33 = vld [vmem:[#allocation8 + $0xd08] sm:$0xff] }
 0x1f5   :  { %v5688_v40 = vcombine.high %v1139_v30, %v1143_v32  ;;  %v5690_v42 = vcombine.high %v1140_v33, %v1144_v37  ;;  %v5689_v48 = vcombine.low %v1140_v33, %v1144_v37  ;;  %v1179_v6 = vld [vmem:[#allocation8 + $0xe40] sm:$0xff]  ;;  %v1184_v23 = vld [vmem:[#allocation8 + $0xe68] sm:$0xff] }
 0x1f6   :  { %v1183_v20 = vld [vmem:[#allocation8 + $0xe60] sm:$0xff]  ;;  %v1188_v33 = vld [vmem:[#allocation8 + $0xe88] sm:$0xff] }
 0x1f7   :  { %3948 = vmatpush1.bf16.msra.mxu0 %v5639_v0  ;;  %4112 = vmatpush1.bf16.msra.mxu1 %v5641_v45  ;;  %v1151_v0 = vld [vmem:[#allocation8 + $0xd60] sm:$0xff]  ;;  %v1148_v45 = vld [vmem:[#allocation8 + $0xd48] sm:$0xff] }
 0x1f8   :  { %3949 = vmatprep.subr.bf16.mxu0 %v5648_v46  ;;  %4113 = vmatprep.subr.bf16.mxu1 %v5650_v47  ;;  %v1152_v46 = vld [vmem:[#allocation8 + $0xd68] sm:$0xff]  ;;  %v5687_v47 = vcombine.low %v1139_v30, %v1143_v32  ;;  %v5696_v49 = vcombine.high %v1147_v43, %v1151_v0  ;;  %v1187_v30 = vld [vmem:[#allocation8 + $0xe80] sm:$0xff] }
 0x1f9   :  { %v5698_v50 = vcombine.high %v1148_v45, %v1152_v46  ;;  %v1191_v32 = vld [vmem:[#allocation8 + $0xea0] sm:$0xff]  ;;  %v1192_v37 = vld [vmem:[#allocation8 + $0xea8] sm:$0xff] }
 0x1fb   :  { %3950 = vmatpush1.bf16.msra.mxu0 %v5647_v16  ;;  %4114 = vmatpush1.bf16.msra.mxu1 %v5649_v56  ;;  %v1160_v16 = vld [vmem:[#allocation8 + $0xda8] sm:$0xff]  ;;  %v5695_v56 = vcombine.low %v1147_v43, %v1151_v0  ;;  %v1195_v43 = vld [vmem:[#allocation8 + $0xec0] sm:$0xff] }
 0x1fc   :  { %3960 = vmatprep.subr.bf16.mxu0 %v5656_v41  ;;  %4124 = vmatprep.subr.bf16.mxu1 %v5658_v57  ;;  %v5697_v41 = vcombine.low %v1148_v45, %v1152_v46  ;;  %v5704_v57 = vcombine.high %v1155_v51, %v1159_v52  ;;  %v5706_v59 = vcombine.high %v1156_v55, %v1160_v16  ;;  %v1199_v0 = vld [vmem:[#allocation8 + $0xee0] sm:$0xff]  ;;  %v1196_v45 = vld [vmem:[#allocation8 + $0xec8] sm:$0xff] }
 0x1fd   :  { %v1200_v46 = vld [vmem:[#allocation8 + $0xee8] sm:$0xff] }
 0x1fe   :  { %3952 = vmatmul.mubr.bf16.vlgmr.msra.gmra.mrb[8].mxu0 %v6469_v1  ;;  %4116 = vmatmul.mubr.bf16.vlgmr.msra.gmra.mrb[8].mxu1 %v6469_v1 }
 0x1ff   :  { %3961 = vmatpush1.bf16.msra.mxu0 %v5655_v2  ;;  %4125 = vmatpush1.bf16.msra.mxu1 %v5657_v58  ;;  %v5703_v2 = vcombine.low %v1155_v51, %v1159_v52  ;;  %v5705_v58 = vcombine.low %v1156_v55, %v1160_v16  ;;  %v1203_v51 = vld [vmem:[#allocation8 + $0xf00] sm:$0xff]  ;;  %v1204_v55 = vld [vmem:[#allocation8 + $0xf08] sm:$0xff] }
 0x200   :  { %3962 = vmatprep.subr.bf16.mxu0 %v5664_v3  ;;  %4126 = vmatprep.subr.bf16.mxu1 %v5666_v4  ;;  %v5712_v3 = vcombine.high %v1163_v60, %v1167_v61  ;;  %v5714_v4 = vcombine.high %v1164_v62, %v1168_v63  ;;  %v1207_v52 = vld [vmem:[#allocation8 + $0xf20] sm:$0xff]  ;;  %v1208_v16 = vld [vmem:[#allocation8 + $0xf28] sm:$0xff] }
 0x201   :  { %3992 = vmatprep.mubr.bf16.mxu0 %v6471_v9  ;;  %4156 = vmatprep.mubr.bf16.mxu1 %v6471_v9 }
 0x203   :  { %3963 = vmatpush1.bf16.msra.mxu0 %v5663_v10  ;;  %4127 = vmatpush1.bf16.msra.mxu1 %v5665_v11  ;;  %v5711_v10 = vcombine.low %v1163_v60, %v1167_v61  ;;  %v5713_v11 = vcombine.low %v1164_v62, %v1168_v63  ;;  %v1211_v60 = vld [vmem:[#allocation8 + $0xf40] sm:$0xff]  ;;  %v1212_v62 = vld [vmem:[#allocation8 + $0xf48] sm:$0xff] }
 0x204   :  { %3964 = vmatprep.subr.bf16.mxu0 %v5672_v13  ;;  %4128 = vmatprep.subr.bf16.mxu1 %v5674_v19  ;;  %v5720_v13 = vcombine.high %v1171_v5, %v1175_v7  ;;  %v5722_v19 = vcombine.high %v1172_v35, %v1176_v8  ;;  %v1215_v61 = vld [vmem:[#allocation8 + $0xf60] sm:$0xff]  ;;  %v1216_v63 = vld [vmem:[#allocation8 + $0xf68] sm:$0xff] }
 0x207   :  { %3965 = vmatpush1.bf16.msra.mxu0 %v5671_v24  ;;  %4129 = vmatpush1.bf16.msra.mxu1 %v5673_v25  ;;  %v5719_v24 = vcombine.low %v1171_v5, %v1175_v7  ;;  %v5721_v25 = vcombine.low %v1172_v35, %v1176_v8  ;;  %v5762_v5 = vcombine.high %v1212_v62, %v1216_v63  ;;  %v1219_v7 = vld [vmem:[#allocation8 + $0xf80] sm:$0xff]  ;;  %v1220_v8 = vld [vmem:[#allocation8 + $0xf88] sm:$0xff] }
 0x208   :  { %3966 = vmatprep.subr.bf16.mxu0 %v5680_v28  ;;  %4130 = vmatprep.subr.bf16.mxu1 %v5682_v29  ;;  %v5728_v28 = vcombine.high %v1179_v6, %v1183_v20  ;;  %v5730_v29 = vcombine.high %v1180_v22, %v1184_v23  ;;  %v1223_v35 = vld [vmem:[#allocation8 + $0xfa0] sm:$0xff] }
 0x20b   :  { %3967 = vmatpush1.bf16.msra.mxu0 %v5679_v38  ;;  %4131 = vmatpush1.bf16.msra.mxu1 %v5681_v39  ;;  %v5727_v38 = vcombine.low %v1179_v6, %v1183_v20  ;;  %v5729_v39 = vcombine.low %v1180_v22, %v1184_v23  ;;  %v5768_v20 = vcombine.high %v1219_v7, %v1223_v35  ;;  %v1227_v23 = vld [vmem:[#allocation8 + $0xfc0] sm:$0xff] }
 0x20c   :  { %3968 = vmatprep.subr.bf16.mxu0 %v5688_v40  ;;  %4132 = vmatprep.subr.bf16.mxu1 %v5690_v42  ;;  %v5736_v40 = vcombine.high %v1187_v30, %v1191_v32  ;;  %v5738_v42 = vcombine.high %v1188_v33, %v1192_v37 }
 0x20f   :  { %3969 = vmatpush1.bf16.msra.mxu0 %v5687_v47  ;;  %4133 = vmatpush1.bf16.msra.mxu1 %v5689_v48  ;;  %v5735_v47 = vcombine.low %v1187_v30, %v1191_v32  ;;  %v5737_v48 = vcombine.low %v1188_v33, %v1192_v37 }
 0x210   :  { %3970 = vmatprep.subr.bf16.mxu0 %v5696_v49  ;;  %4134 = vmatprep.subr.bf16.mxu1 %v5698_v50  ;;  %v5744_v49 = vcombine.high %v1195_v43, %v1199_v0  ;;  %v5746_v50 = vcombine.high %v1196_v45, %v1200_v46 }
 0x213   :  { %3971 = vmatpush1.bf16.msra.mxu0 %v5695_v56  ;;  %4135 = vmatpush1.bf16.msra.mxu1 %v5697_v41  ;;  %v5743_v56 = vcombine.low %v1195_v43, %v1199_v0  ;;  %v5745_v41 = vcombine.low %v1196_v45, %v1200_v46 }
 0x214   :  { %3972 = vmatprep.subr.bf16.mxu0 %v5704_v57  ;;  %4136 = vmatprep.subr.bf16.mxu1 %v5706_v59  ;;  %v5752_v57 = vcombine.high %v1203_v51, %v1207_v52  ;;  %v5754_v59 = vcombine.high %v1204_v55, %v1208_v16 }
 0x217   :  { %3973 = vmatpush1.bf16.msra.mxu0 %v5703_v2  ;;  %4137 = vmatpush1.bf16.msra.mxu1 %v5705_v58  ;;  %v5751_v2 = vcombine.low %v1203_v51, %v1207_v52  ;;  %v5753_v58 = vcombine.low %v1204_v55, %v1208_v16 }
 0x218   :  { %3974 = vmatprep.subr.bf16.mxu0 %v5712_v3  ;;  %4138 = vmatprep.subr.bf16.mxu1 %v5714_v4  ;;  %v209_v3 = vsub.s32 6, %v6403_v14  ;;  %v5760_v4 = vcombine.high %v1211_v60, %v1215_v61 }
 0x21b   :  { %3975 = vmatpush1.bf16.msra.mxu0 %v5711_v10  ;;  %4139 = vmatpush1.bf16.msra.mxu1 %v5713_v11  ;;  %v1224_v10 = vld [vmem:[#allocation8 + $0xfa8] sm:$0xff]  ;;  %v5759_v11 = vcombine.low %v1211_v60, %v1215_v61  ;;  %v746_v60 = vld [vmem:[#allocation8 + $0xb8] sm:$0xff] }
 0x21c   :  { %3976 = vmatprep.subr.bf16.mxu0 %v5720_v13  ;;  %4140 = vmatprep.subr.bf16.mxu1 %v5722_v19  ;;  %v5761_v13 = vcombine.low %v1212_v62, %v1216_v63  ;;  %v6069_v19 = vld [vmem:[#allocation7] sm:$0xff]  ;;  %v5770_v22 = vcombine.high %v1220_v8, %v1224_v10  ;;  %v5769_v30 = vcombine.low %v1220_v8, %v1224_v10 }
 0x21d   :  { %v210_v6 = vrot.slane %v6069_v19, %v209_v3  ;;  %v761_v19 = vld [vmem:[#allocation8 + $0x130] sm:$0xff] }
 0x21f   :  { %3977 = vmatpush1.bf16.msra.mxu0 %v5719_v24  ;;  %4141 = vmatpush1.bf16.msra.mxu1 %v5721_v25  ;;  %v1231_v24 = vld [vmem:[#allocation8 + $0xfe0] sm:$0xff]  ;;  %v1228_v25 = vld [vmem:[#allocation8 + $0xfc8] sm:$0xff]  ;;  %v701_v32 = vadd.f32 %v6437_v53, %v210_v6  ;;  %v734_v53 = vld [vmem:[#allocation8 + $0x58] sm:$0xff] }
 0x220   :  { %3978 = vmatprep.subr.bf16.mxu0 %v5728_v28  ;;  %4142 = vmatprep.subr.bf16.mxu1 %v5730_v29  ;;  %v1232_v28 = vld [vmem:[#allocation8 + $0xfe8] sm:$0xff]  ;;  %v5767_v29 = vcombine.low %v1219_v7, %v1223_v35  ;;  %v5776_v33 = vcombine.high %v1227_v23, %v1231_v24  ;;  %v5775_v43 = vcombine.low %v1227_v23, %v1231_v24  ;;  %v754_v7 = vld [vmem:[#allocation8 + $0xf8] sm:$0xff] }
 0x221   :  { %v5778_v37 = vcombine.high %v1228_v25, %v1232_v28  ;;  %v5777_v0 = vcombine.low %v1228_v25, %v1232_v28  ;;  %v713_v45 = vmax.f32 %v701_v32, 0.0  ;;  %v762_v6 = vld [vmem:[#allocation8 + $0x138] sm:$0xff]  ;;  %v765_v25 = vld [vmem:[#allocation8 + $0x150] sm:$0xff] }
 0x222   :  { %v769_v28 = vld [vmem:[#allocation8 + $0x170] sm:$0xff] }
 0x223   :  { %3979 = vmatpush1.bf16.msra.mxu0 %v5727_v38  ;;  %4143 = vmatpush1.bf16.msra.mxu1 %v5729_v39  ;;  %v725_v38 = vld [vmem:[#allocation8 + $0x10] sm:$0xff]  ;;  %v6481_v52 = vpack.c.bf16 %v713_v45, %v713_v45 }
 0x224   :  { %3980 = vmatprep.subr.bf16.mxu0 %v5736_v40  ;;  %4144 = vmatprep.subr.bf16.mxu1 %v5738_v42  ;;  %v729_v39 = vld [vmem:[#allocation8 + $0x30] sm:$0xff]  ;;  %v726_v40 = vld [vmem:[#allocation8 + $0x18] sm:$0xff] }
 0x225   :  { %v730_v42 = vld [vmem:[#allocation8 + $0x38] sm:$0xff]  ;;  %v5276_v46 = vcombine.high %v725_v38, %v729_v39  ;;  %v5275_v51 = vcombine.low %v725_v38, %v729_v39  ;;  %v773_v39 = vld [vmem:[#allocation8 + $0x190] sm:$0xff] }
 0x226   :  { %v5277_v55 = vcombine.low %v726_v40, %v730_v42 }
 0x227   :  { %3981 = vmatpush1.bf16.msra.mxu0 %v5735_v47  ;;  %4145 = vmatpush1.bf16.msra.mxu1 %v5737_v48  ;;  %v5278_v47 = vcombine.high %v726_v40, %v730_v42  ;;  %v733_v48 = vld [vmem:[#allocation8 + $0x50] sm:$0xff]  ;;  %v774_v42 = vld [vmem:[#allocation8 + $0x198] sm:$0xff] }
 0x228   :  { %3982 = vmatprep.subr.bf16.mxu0 %v5744_v49  ;;  %4146 = vmatprep.subr.bf16.mxu1 %v5746_v50  ;;  %v737_v49 = vld [vmem:[#allocation8 + $0x70] sm:$0xff]  ;;  %v738_v50 = vld [vmem:[#allocation8 + $0x78] sm:$0xff] }
 0x229   :  { %v5284_v16 = vcombine.high %v733_v48, %v737_v49  ;;  %v5283_v61 = vcombine.low %v733_v48, %v737_v49  ;;  %v5285_v62 = vcombine.low %v734_v53, %v738_v50  ;;  %v777_v40 = vld [vmem:[#allocation8 + $0x1b0] sm:$0xff] }
 0x22a   :  { %v781_v48 = vld [vmem:[#allocation8 + $0x1d0] sm:$0xff] }
 0x22b   :  { %3983 = vmatpush1.bf16.msra.mxu0 %v5743_v56  ;;  %4147 = vmatpush1.bf16.msra.mxu1 %v5745_v41  ;;  %v5286_v56 = vcombine.high %v734_v53, %v738_v50  ;;  %v741_v41 = vld [vmem:[#allocation8 + $0x90] sm:$0xff]  ;;  %v782_v53 = vld [vmem:[#allocation8 + $0x1d8] sm:$0xff] }
 0x22c   :  { %3984 = vmatprep.subr.bf16.mxu0 %v5752_v57  ;;  %4148 = vmatprep.subr.bf16.mxu1 %v5754_v59  ;;  %v745_v57 = vld [vmem:[#allocation8 + $0xb0] sm:$0xff]  ;;  %v742_v59 = vld [vmem:[#allocation8 + $0x98] sm:$0xff] }
 0x22d   :  { %v5292_v63 = vcombine.high %v741_v41, %v745_v57  ;;  %v5291_v35 = vcombine.low %v741_v41, %v745_v57  ;;  %v5293_v8 = vcombine.low %v742_v59, %v746_v60  ;;  %v785_v49 = vld [vmem:[#allocation8 + $0x1f0] sm:$0xff]  ;;  %v786_v50 = vld [vmem:[#allocation8 + $0x1f8] sm:$0xff] }
 0x22e   :  { %v789_v41 = vld [vmem:[#allocation8 + $0x210] sm:$0xff] }
 0x22f   :  { %3985 = vmatpush1.bf16.msra.mxu0 %v5751_v2  ;;  %4149 = vmatpush1.bf16.msra.mxu1 %v5753_v58  ;;  %v5294_v2 = vcombine.high %v742_v59, %v746_v60  ;;  %v749_v58 = vld [vmem:[#allocation8 + $0xd0] sm:$0xff]  ;;  %v790_v59 = vld [vmem:[#allocation8 + $0x218] sm:$0xff] }
 0x230   :  { %3986 = vmatprep.subr.bf16.mxu0 %v5760_v4  ;;  %4150 = vmatprep.subr.bf16.mxu1 %v5762_v5  ;;  %v753_v4 = vld [vmem:[#allocation8 + $0xf0] sm:$0xff]  ;;  %v750_v5 = vld [vmem:[#allocation8 + $0xd8] sm:$0xff] }
 0x231   :  { %v5300_v10 = vcombine.high %v749_v58, %v753_v4  ;;  %v793_v57 = vld [vmem:[#allocation8 + $0x230] sm:$0xff]  ;;  %v794_v60 = vld [vmem:[#allocation8 + $0x238] sm:$0xff] }
 0x233   :  { %3987 = vmatpush1.bf16.msra.mxu0 %v5759_v11  ;;  %4151 = vmatpush1.bf16.msra.mxu1 %v5761_v13  ;;  %v5302_v11 = vcombine.high %v750_v5, %v754_v7  ;;  %v757_v13 = vld [vmem:[#allocation8 + $0x110] sm:$0xff] }
 0x234   :  { %3988 = vmatprep.subr.bf16.mxu0 %v5768_v20  ;;  %4152 = vmatprep.subr.bf16.mxu1 %v5770_v22  ;;  %v5299_v20 = vcombine.low %v749_v58, %v753_v4  ;;  %v5301_v22 = vcombine.low %v750_v5, %v754_v7  ;;  %v5308_v23 = vcombine.high %v757_v13, %v761_v19  ;;  %v797_v58 = vld [vmem:[#allocation8 + $0x250] sm:$0xff]  ;;  %v798_v5 = vld [vmem:[#allocation8 + $0x258] sm:$0xff] }
 0x235   :  { %v5307_v32 = vcombine.low %v757_v13, %v761_v19  ;;  %v801_v4 = vld [vmem:[#allocation8 + $0x270] sm:$0xff]  ;;  %v802_v7 = vld [vmem:[#allocation8 + $0x278] sm:$0xff] }
 0x236   :  { %v805_v13 = vld [vmem:[#allocation8 + $0x290] sm:$0xff] }
 0x237   :  { %3989 = vmatpush1.bf16.msra.mxu0 %v5767_v29  ;;  %4153 = vmatpush1.bf16.msra.mxu1 %v5769_v30  ;;  %v766_v29 = vld [vmem:[#allocation8 + $0x158] sm:$0xff]  ;;  %v809_v19 = vld [vmem:[#allocation8 + $0x2b0] sm:$0xff] }
 0x238   :  { %3990 = vmatprep.subr.bf16.mxu0 %v5776_v33  ;;  %4154 = vmatprep.subr.bf16.mxu1 %v5778_v37  ;;  %v770_v30 = vld [vmem:[#allocation8 + $0x178] sm:$0xff]  ;;  %v5316_v37 = vcombine.high %v765_v25, %v769_v28 }
 0x239   :  { %v5318_v38 = vcombine.high %v766_v29, %v770_v30  ;;  %v5317_v45 = vcombine.low %v766_v29, %v770_v30  ;;  %v814_v29 = vld [vmem:[#allocation8 + $0x2d8] sm:$0xff] }
 0x23a   :  { %v818_v30 = vld [vmem:[#allocation8 + $0x2f8] sm:$0xff] }
 0x23b   :  { %3991 = vmatpush1.bf16.msra.mxu0 %v5775_v43  ;;  %4155 = vmatpush1.bf16.msra.mxu1 %v5777_v0  ;;  %v778_v43 = vld [vmem:[#allocation8 + $0x1b8] sm:$0xff]  ;;  %v5315_v0 = vcombine.low %v765_v25, %v769_v28  ;;  %v813_v25 = vld [vmem:[#allocation8 + $0x2d0] sm:$0xff] }
 0x23c   :  { %4165 = vmatprep.subr.bf16.mxu0 %v5276_v46  ;;  %4329 = vmatprep.subr.bf16.mxu1 %v5278_v47  ;;  %v5324_v46 = vcombine.high %v773_v39, %v777_v40  ;;  %v5326_v47 = vcombine.high %v774_v42, %v778_v43  ;;  %v817_v28 = vld [vmem:[#allocation8 + $0x2f0] sm:$0xff] }
 0x23e   :  { %3993 = vmatmul.mubr.bf16.vlgmr.msra.gmra.mrb[8].mxu0 %v6481_v52  ;;  %4157 = vmatmul.mubr.bf16.vlgmr.msra.gmra.mrb[8].mxu1 %v6481_v52 }
 0x23f   :  { %4166 = vmatpush1.bf16.msra.mxu0 %v5275_v51  ;;  %4197 = vmatprep.mubr.bf16.mxu0 %v6419_v34  ;;  %v5323_v51 = vcombine.low %v773_v39, %v777_v40  ;;  %v821_v39 = vld [vmem:[#allocation8 + $0x310] sm:$0xff] }
 0x240   :  { %4330 = vmatpush1.bf16.msra.mxu1 %v5277_v55  ;;  %4361 = vmatprep.mubr.bf16.mxu1 %v6419_v34  ;;  %v758_v34 = vld [vmem:[#allocation8 + $0x118] sm:$0xff]  ;;  %v5325_v55 = vcombine.low %v774_v42, %v778_v43  ;;  %v825_v40 = vld [vmem:[#allocation8 + $0x330] sm:$0xff] }
 0x241   :  { %4167 = vmatprep.subr.bf16.mxu0 %v5284_v16  ;;  %4331 = vmatprep.subr.bf16.mxu1 %v5286_v56  ;;  %v5310_v24 = vcombine.high %v758_v34, %v762_v6  ;;  %v5309_v33 = vcombine.low %v758_v34, %v762_v6  ;;  %v5332_v16 = vcombine.high %v781_v48, %v785_v49  ;;  %v806_v34 = vld [vmem:[#allocation8 + $0x298] sm:$0xff] }
 0x242   :  { %v5334_v56 = vcombine.high %v782_v53, %v786_v50  ;;  %v810_v6 = vld [vmem:[#allocation8 + $0x2b8] sm:$0xff] }
 0x243   :  { %4168 = vmatpush1.bf16.msra.mxu0 %v5283_v61  ;;  %v5331_v61 = vcombine.low %v781_v48, %v785_v49  ;;  %v822_v42 = vld [vmem:[#allocation8 + $0x318] sm:$0xff]  ;;  %v829_v48 = vld [vmem:[#allocation8 + $0x350] sm:$0xff] }
 0x244   :  { %4332 = vmatpush1.bf16.msra.mxu1 %v5285_v62  ;;  %4169 = vmatprep.subr.bf16.mxu0 %v5292_v63  ;;  %v5333_v62 = vcombine.low %v782_v53, %v786_v50  ;;  %v5340_v63 = vcombine.high %v789_v41, %v793_v57  ;;  %v826_v43 = vld [vmem:[#allocation8 + $0x338] sm:$0xff]  ;;  %v833_v49 = vld [vmem:[#allocation8 + $0x370] sm:$0xff] }
 0x245   :  { %4333 = vmatprep.subr.bf16.mxu1 %v5294_v2  ;;  %v5342_v2 = vcombine.high %v790_v59, %v794_v60  ;;  %v830_v53 = vld [vmem:[#allocation8 + $0x358] sm:$0xff] }
 0x246   :  { %v834_v50 = vld [vmem:[#allocation8 + $0x378] sm:$0xff] }
 0x247   :  { %4170 = vmatpush1.bf16.msra.mxu0 %v5291_v35  ;;  %v5339_v35 = vcombine.low %v789_v41, %v793_v57  ;;  %v837_v41 = vld [vmem:[#allocation8 + $0x390] sm:$0xff] }
 0x248   :  { %4334 = vmatpush1.bf16.msra.mxu1 %v5293_v8  ;;  %4171 = vmatprep.subr.bf16.mxu0 %v5300_v10  ;;  %v5341_v8 = vcombine.low %v790_v59, %v794_v60  ;;  %v5348_v10 = vcombine.high %v797_v58, %v801_v4  ;;  %v841_v57 = vld [vmem:[#allocation8 + $0x3b0] sm:$0xff]  ;;  %v838_v59 = vld [vmem:[#allocation8 + $0x398] sm:$0xff] }
 0x249   :  { %4335 = vmatprep.subr.bf16.mxu1 %v5302_v11  ;;  %v5350_v11 = vcombine.high %v798_v5, %v802_v7  ;;  %v842_v60 = vld [vmem:[#allocation8 + $0x3b8] sm:$0xff] }
 0x24b   :  { %4172 = vmatpush1.bf16.msra.mxu0 %v5299_v20  ;;  %v5347_v20 = vcombine.low %v797_v58, %v801_v4  ;;  %v845_v58 = vld [vmem:[#allocation8 + $0x3d0] sm:$0xff] }
 0x24c   :  { %4336 = vmatpush1.bf16.msra.mxu1 %v5301_v22  ;;  %4173 = vmatprep.subr.bf16.mxu0 %v5308_v23  ;;  %v5349_v22 = vcombine.low %v798_v5, %v802_v7  ;;  %v5356_v23 = vcombine.high %v805_v13, %v809_v19  ;;  %v849_v4 = vld [vmem:[#allocation8 + $0x3f0] sm:$0xff]  ;;  %v846_v5 = vld [vmem:[#allocation8 + $0x3d8] sm:$0xff] }
 0x24d   :  { %4337 = vmatprep.subr.bf16.mxu1 %v5310_v24  ;;  %v5358_v24 = vcombine.high %v806_v34, %v810_v6  ;;  %v850_v7 = vld [vmem:[#allocation8 + $0x3f8] sm:$0xff] }
 0x24f   :  { %4174 = vmatpush1.bf16.msra.mxu0 %v5307_v32  ;;  %v5355_v32 = vcombine.low %v805_v13, %v809_v19  ;;  %v853_v13 = vld [vmem:[#allocation8 + $0x410] sm:$0xff] }
 0x250   :  { %4338 = vmatpush1.bf16.msra.mxu1 %v5309_v33  ;;  %4175 = vmatprep.subr.bf16.mxu0 %v5316_v37  ;;  %v5357_v33 = vcombine.low %v806_v34, %v810_v6  ;;  %v5364_v37 = vcombine.high %v813_v25, %v817_v28  ;;  %v857_v19 = vld [vmem:[#allocation8 + $0x430] sm:$0xff]  ;;  %v854_v34 = vld [vmem:[#allocation8 + $0x418] sm:$0xff] }
 0x251   :  { %4339 = vmatprep.subr.bf16.mxu1 %v5318_v38  ;;  %v5366_v38 = vcombine.high %v814_v29, %v818_v30  ;;  %v858_v6 = vld [vmem:[#allocation8 + $0x438] sm:$0xff] }
 0x253   :  { %4176 = vmatpush1.bf16.msra.mxu0 %v5315_v0  ;;  %v5363_v0 = vcombine.low %v813_v25, %v817_v28  ;;  %v861_v25 = vld [vmem:[#allocation8 + $0x450] sm:$0xff] }
 0x254   :  { %4340 = vmatpush1.bf16.msra.mxu1 %v5317_v45  ;;  %4177 = vmatprep.subr.bf16.mxu0 %v5324_v46  ;;  %v5365_v45 = vcombine.low %v814_v29, %v818_v30  ;;  %v5372_v46 = vcombine.high %v821_v39, %v825_v40  ;;  %v865_v28 = vld [vmem:[#allocation8 + $0x470] sm:$0xff]  ;;  %v5403_v29 = vcombine.low %v853_v13, %v857_v19  ;;  %v862_v30 = vld [vmem:[#allocation8 + $0x458] sm:$0xff] }
 0x255   :  { %4341 = vmatprep.subr.bf16.mxu1 %v5326_v47  ;;  %v5374_v47 = vcombine.high %v822_v42, %v826_v43 }
 0x257   :  { %4178 = vmatpush1.bf16.msra.mxu0 %v5323_v51  ;;  %v5371_v51 = vcombine.low %v821_v39, %v825_v40  ;;  %v873_v39 = vld [vmem:[#allocation8 + $0x4b0] sm:$0xff] }
 0x258   :  { %4342 = vmatpush1.bf16.msra.mxu1 %v5325_v55  ;;  %4179 = vmatprep.subr.bf16.mxu0 %v5332_v16  ;;  %v5373_v55 = vcombine.low %v822_v42, %v826_v43  ;;  %v5380_v16 = vcombine.high %v829_v48, %v833_v49  ;;  %v870_v42 = vld [vmem:[#allocation8 + $0x498] sm:$0xff] }
 0x259   :  { %4343 = vmatprep.subr.bf16.mxu1 %v5334_v56  ;;  %v5382_v56 = vcombine.high %v830_v53, %v834_v50  ;;  %v874_v43 = vld [vmem:[#allocation8 + $0x4b8] sm:$0xff] }
 0x25b   :  { %4180 = vmatpush1.bf16.msra.mxu0 %v5331_v61  ;;  %v5379_v61 = vcombine.low %v829_v48, %v833_v49  ;;  %v877_v48 = vld [vmem:[#allocation8 + $0x4d0] sm:$0xff] }
 0x25c   :  { %4344 = vmatpush1.bf16.msra.mxu1 %v5333_v62  ;;  %4181 = vmatprep.subr.bf16.mxu0 %v5340_v63  ;;  %v5381_v62 = vcombine.low %v830_v53, %v834_v50  ;;  %v5388_v63 = vcombine.high %v837_v41, %v841_v57  ;;  %v881_v49 = vld [vmem:[#allocation8 + $0x4f0] sm:$0xff]  ;;  %v878_v53 = vld [vmem:[#allocation8 + $0x4d8] sm:$0xff] }
 0x25d   :  { %4345 = vmatprep.subr.bf16.mxu1 %v5342_v2  ;;  %v5390_v2 = vcombine.high %v838_v59, %v842_v60  ;;  %v882_v50 = vld [vmem:[#allocation8 + $0x4f8] sm:$0xff] }
 0x25f   :  { %4182 = vmatpush1.bf16.msra.mxu0 %v5339_v35  ;;  %v5387_v35 = vcombine.low %v837_v41, %v841_v57  ;;  %v889_v41 = vld [vmem:[#allocation8 + $0x530] sm:$0xff]  ;;  %v886_v57 = vld [vmem:[#allocation8 + $0x518] sm:$0xff] }
 0x260   :  { %4346 = vmatpush1.bf16.msra.mxu1 %v5341_v8  ;;  %4183 = vmatprep.subr.bf16.mxu0 %v5348_v10  ;;  %v5389_v8 = vcombine.low %v838_v59, %v842_v60  ;;  %v5396_v10 = vcombine.high %v845_v58, %v849_v4  ;;  %v890_v59 = vld [vmem:[#allocation8 + $0x538] sm:$0xff]  ;;  %v5429_v60 = vcombine.low %v878_v53, %v882_v50 }
 0x261   :  { %4347 = vmatprep.subr.bf16.mxu1 %v5350_v11  ;;  %v5398_v11 = vcombine.high %v846_v5, %v850_v7 }
 0x263   :  { %4184 = vmatpush1.bf16.msra.mxu0 %v5347_v20  ;;  %v5395_v20 = vcombine.low %v845_v58, %v849_v4  ;;  %v894_v58 = vld [vmem:[#allocation8 + $0x558] sm:$0xff] }
 0x264   :  { %4348 = vmatpush1.bf16.msra.mxu1 %v5349_v22  ;;  %4185 = vmatprep.subr.bf16.mxu0 %v5356_v23  ;;  %v5397_v22 = vcombine.low %v846_v5, %v850_v7  ;;  %v5404_v23 = vcombine.high %v853_v13, %v857_v19  ;;  %v898_v4 = vld [vmem:[#allocation8 + $0x578] sm:$0xff]  ;;  %v5437_v7 = vcombine.low %v886_v57, %v890_v59 }
 0x265   :  { %4349 = vmatprep.subr.bf16.mxu1 %v5358_v24  ;;  %v5406_v24 = vcombine.high %v854_v34, %v858_v6  ;;  %v902_v13 = vld [vmem:[#allocation8 + $0x598] sm:$0xff] }
 0x266   :  { %v906_v19 = vld [vmem:[#allocation8 + $0x5b8] sm:$0xff] }
 0x267   :  { %4186 = vmatpush1.bf16.msra.mxu0 %v5355_v32  ;;  %v866_v32 = vld [vmem:[#allocation8 + $0x478] sm:$0xff] }
 0x268   :  { %4350 = vmatpush1.bf16.msra.mxu1 %v5357_v33  ;;  %4187 = vmatprep.subr.bf16.mxu0 %v5364_v37  ;;  %v5405_v33 = vcombine.low %v854_v34, %v858_v6  ;;  %v5412_v37 = vcombine.high %v861_v25, %v865_v28  ;;  %v5414_v40 = vcombine.high %v862_v30, %v866_v32 }
 0x269   :  { %4351 = vmatprep.subr.bf16.mxu1 %v5366_v38  ;;  %v869_v38 = vld [vmem:[#allocation8 + $0x490] sm:$0xff]  ;;  %v5445_v6 = vcombine.low %v894_v58, %v898_v4 }
 0x26b   :  { %4188 = vmatpush1.bf16.msra.mxu0 %v5363_v0  ;;  %v5411_v0 = vcombine.low %v861_v25, %v865_v28  ;;  %v910_v25 = vld [vmem:[#allocation8 + $0x5d8] sm:$0xff] }
 0x26c   :  { %4352 = vmatpush1.bf16.msra.mxu1 %v5365_v45  ;;  %4189 = vmatprep.subr.bf16.mxu0 %v5372_v46  ;;  %v5413_v45 = vcombine.low %v862_v30, %v866_v32  ;;  %v5420_v46 = vcombine.high %v869_v38, %v873_v39  ;;  %v914_v28 = vld [vmem:[#allocation8 + $0x5f8] sm:$0xff]  ;;  %v5453_v30 = vcombine.low %v902_v13, %v906_v19 }
 0x26d   :  { %4353 = vmatprep.subr.bf16.mxu1 %v5374_v47  ;;  %v5422_v47 = vcombine.high %v870_v42, %v874_v43 }
 0x26f   :  { %4190 = vmatpush1.bf16.msra.mxu0 %v5371_v51  ;;  %v5419_v51 = vcombine.low %v869_v38, %v873_v39  ;;  %v921_v38 = vld [vmem:[#allocation8 + $0x630] sm:$0xff]  ;;  %v918_v39 = vld [vmem:[#allocation8 + $0x618] sm:$0xff] }
 0x270   :  { %4354 = vmatpush1.bf16.msra.mxu1 %v5373_v55  ;;  %4191 = vmatprep.subr.bf16.mxu0 %v5380_v16  ;;  %v5428_v55 = vcombine.high %v877_v48, %v881_v49  ;;  %v5430_v16 = vcombine.high %v878_v53, %v882_v50 }
 0x271   :  { %4355 = vmatprep.subr.bf16.mxu1 %v5382_v56  ;;  %v885_v56 = vld [vmem:[#allocation8 + $0x510] sm:$0xff] }
 0x272   :  { %v5435_v5 = vcombine.low %v885_v56, %v889_v41 }
 0x273   :  { %4192 = vmatpush1.bf16.msra.mxu0 %v5379_v61  ;;  %v5436_v61 = vcombine.high %v885_v56, %v889_v41  ;;  %v934_v56 = vld [vmem:[#allocation8 + $0x698] sm:$0xff] }
 0x274   :  { %4356 = vmatpush1.bf16.msra.mxu1 %v5381_v62  ;;  %4193 = vmatprep.subr.bf16.mxu0 %v5388_v63  ;;  %v5438_v62 = vcombine.high %v886_v57, %v890_v59  ;;  %v893_v63 = vld [vmem:[#allocation8 + $0x550] sm:$0xff]  ;;  %v938_v41 = vld [vmem:[#allocation8 + $0x6b8] sm:$0xff] }
 0x275   :  { %4357 = vmatprep.subr.bf16.mxu1 %v5390_v2  ;;  %v897_v2 = vld [vmem:[#allocation8 + $0x570] sm:$0xff] }
 0x276   :  { %v5443_v34 = vcombine.low %v893_v63, %v897_v2 }
 0x277   :  { %4194 = vmatpush1.bf16.msra.mxu0 %v5387_v35  ;;  %v5444_v35 = vcombine.high %v893_v63, %v897_v2  ;;  %v942_v63 = vld [vmem:[#allocation8 + $0x6d8] sm:$0xff] }
 0x278   :  { %4358 = vmatpush1.bf16.msra.mxu1 %v5389_v8  ;;  %4195 = vmatprep.subr.bf16.mxu0 %v5396_v10  ;;  %v5446_v8 = vcombine.high %v894_v58, %v898_v4  ;;  %v901_v10 = vld [vmem:[#allocation8 + $0x590] sm:$0xff]  ;;  %v946_v2 = vld [vmem:[#allocation8 + $0x6f8] sm:$0xff]  ;;  %v5485_v4 = vcombine.low %v934_v56, %v938_v41 }
 0x279   :  { %4359 = vmatprep.subr.bf16.mxu1 %v5398_v11  ;;  %v905_v11 = vld [vmem:[#allocation8 + $0x5b0] sm:$0xff] }
 0x27b   :  { %4196 = vmatpush1.bf16.msra.mxu0 %v5395_v20  ;;  %v5452_v20 = vcombine.high %v901_v10, %v905_v11 }
 0x27c   :  { %4360 = vmatpush1.bf16.msra.mxu1 %v5397_v22  ;;  %4206 = vmatprep.subr.bf16.mxu0 %v5404_v23  ;;  %v5454_v22 = vcombine.high %v902_v13, %v906_v19  ;;  %v909_v23 = vld [vmem:[#allocation8 + $0x5d0] sm:$0xff]  ;;  %v5493_v19 = vcombine.low %v942_v63, %v946_v2 }
 0x27d   :  { %4370 = vmatprep.subr.bf16.mxu1 %v5406_v24  ;;  %v913_v24 = vld [vmem:[#allocation8 + $0x5f0] sm:$0xff] }
 0x27e   :  { %4198 = vmatmul.mubr.bf16.vlgmr.msra.gmra.mrb[12].mxu0 %v6423_v36  ;;  %v5460_v32 = vcombine.high %v909_v23, %v913_v24 }
 0x27f   :  { %4362 = vmatmul.mubr.bf16.vlgmr.msra.gmra.mrb[12].mxu1 %v6423_v36  ;;  %4207 = vmatpush1.bf16.msra.mxu0 %v5403_v29  ;;  %v5421_v36 = vcombine.low %v870_v42, %v874_v43  ;;  %v5451_v29 = vcombine.low %v901_v10, %v905_v11  ;;  %v5459_v42 = vcombine.low %v909_v23, %v913_v24  ;;  %v950_v10 = vld [vmem:[#allocation8 + $0x718] sm:$0xff] }
 0x280   :  { %4238 = vmatprep.mubr.bf16.mxu0 %v6429_v54  ;;  %4371 = vmatpush1.bf16.msra.mxu1 %v5405_v33  ;;  %v5462_v33 = vcombine.high %v910_v25, %v914_v28  ;;  %v5461_v43 = vcombine.low %v910_v25, %v914_v28  ;;  %v954_v11 = vld [vmem:[#allocation8 + $0x738] sm:$0xff] }
 0x281   :  { %4402 = vmatprep.mubr.bf16.mxu1 %v6429_v54  ;;  %4208 = vmatprep.subr.bf16.mxu0 %v5412_v37  ;;  %v5427_v54 = vcombine.low %v877_v48, %v881_v49  ;;  %v917_v37 = vld [vmem:[#allocation8 + $0x610] sm:$0xff]  ;;  %v926_v48 = vld [vmem:[#allocation8 + $0x658] sm:$0xff]  ;;  %v5501_v28 = vcombine.low %v950_v10, %v954_v11 }
 0x282   :  { %4372 = vmatprep.subr.bf16.mxu1 %v5414_v40  ;;  %v922_v40 = vld [vmem:[#allocation8 + $0x638] sm:$0xff]  ;;  %v5467_v53 = vcombine.low %v917_v37, %v921_v38 }
 0x283   :  { %4209 = vmatpush1.bf16.msra.mxu0 %v5411_v0  ;;  %v5468_v0 = vcombine.high %v917_v37, %v921_v38  ;;  %v930_v49 = vld [vmem:[#allocation8 + $0x678] sm:$0xff]  ;;  %v5469_v50 = vcombine.low %v918_v39, %v922_v40 }
 0x284   :  { %4373 = vmatpush1.bf16.msra.mxu1 %v5413_v45  ;;  %4210 = vmatprep.subr.bf16.mxu0 %v5420_v46  ;;  %v5470_v45 = vcombine.high %v918_v39, %v922_v40  ;;  %v925_v46 = vld [vmem:[#allocation8 + $0x650] sm:$0xff]  ;;  %v5477_v59 = vcombine.low %v926_v48, %v930_v49  ;;  %v958_v23 = vld [vmem:[#allocation8 + $0x758] sm:$0xff] }
 0x285   :  { %4374 = vmatprep.subr.bf16.mxu1 %v5422_v47  ;;  %v929_v47 = vld [vmem:[#allocation8 + $0x670] sm:$0xff]  ;;  %v962_v24 = vld [vmem:[#allocation8 + $0x778] sm:$0xff] }
 0x286   :  { %v5475_v57 = vcombine.low %v925_v46, %v929_v47  ;;  %v966_v37 = vld [vmem:[#allocation8 + $0x798] sm:$0xff]  ;;  %v5509_v40 = vcombine.low %v958_v23, %v962_v24 }
 0x287   :  { %4211 = vmatpush1.bf16.msra.mxu0 %v5419_v51  ;;  %v5476_v51 = vcombine.high %v925_v46, %v929_v47  ;;  %v970_v38 = vld [vmem:[#allocation8 + $0x7b8] sm:$0xff] }
 0x288   :  { %4375 = vmatpush1.bf16.msra.mxu1 %v5421_v36  ;;  %4212 = vmatprep.subr.bf16.mxu0 %v5428_v55  ;;  %v5478_v36 = vcombine.high %v926_v48, %v930_v49  ;;  %v933_v55 = vld [vmem:[#allocation8 + $0x690] sm:$0xff]  ;;  %v974_v46 = vld [vmem:[#allocation8 + $0x7d8] sm:$0xff]  ;;  %v5517_v49 = vcombine.low %v966_v37, %v970_v38 }
 0x289   :  { %4376 = vmatprep.subr.bf16.mxu1 %v5430_v16  ;;  %v937_v16 = vld [vmem:[#allocation8 + $0x6b0] sm:$0xff]  ;;  %v978_v47 = vld [vmem:[#allocation8 + $0x7f8] sm:$0xff] }
 0x28a   :  { %v5483_v58 = vcombine.low %v933_v55, %v937_v16 }
 0x28b   :  { %4213 = vmatpush1.bf16.msra.mxu0 %v5427_v54  ;;  %v5484_v54 = vcombine.high %v933_v55, %v937_v16  ;;  %v982_v55 = vld [vmem:[#allocation8 + $0x818] sm:$0xff] }
 0x28c   :  { %4377 = vmatpush1.bf16.msra.mxu1 %v5429_v60  ;;  %4214 = vmatprep.subr.bf16.mxu0 %v5436_v61  ;;  %v5486_v60 = vcombine.high %v934_v56, %v938_v41  ;;  %v941_v61 = vld [vmem:[#allocation8 + $0x6d0] sm:$0xff]  ;;  %v986_v16 = vld [vmem:[#allocation8 + $0x838] sm:$0xff]  ;;  %v5525_v41 = vcombine.low %v974_v46, %v978_v47 }
 0x28d   :  { %4378 = vmatprep.subr.bf16.mxu1 %v5438_v62  ;;  %v945_v62 = vld [vmem:[#allocation8 + $0x6f0] sm:$0xff] }
 0x28e   :  { %v5491_v13 = vcombine.low %v941_v61, %v945_v62 }
 0x28f   :  { %4215 = vmatpush1.bf16.msra.mxu0 %v5435_v5  ;;  %v5492_v5 = vcombine.high %v941_v61, %v945_v62  ;;  %v990_v62 = vld [vmem:[#allocation8 + $0x858] sm:$0xff] }
 0x290   :  { %4379 = vmatpush1.bf16.msra.mxu1 %v5437_v7  ;;  %4216 = vmatprep.subr.bf16.mxu0 %v5444_v35  ;;  %v5494_v7 = vcombine.high %v942_v63, %v946_v2  ;;  %v949_v35 = vld [vmem:[#allocation8 + $0x710] sm:$0xff]  ;;  %v994_v63 = vld [vmem:[#allocation8 + $0x878] sm:$0xff]  ;;  %v5533_v2 = vcombine.low %v982_v55, %v986_v16 }
 0x291   :  { %4380 = vmatprep.subr.bf16.mxu1 %v5446_v8  ;;  %v953_v8 = vld [vmem:[#allocation8 + $0x730] sm:$0xff] }
 0x292   :  { %v5499_v25 = vcombine.low %v949_v35, %v953_v8 }
 0x293   :  { %4217 = vmatpush1.bf16.msra.mxu0 %v5443_v34  ;;  %v5500_v34 = vcombine.high %v949_v35, %v953_v8  ;;  %v998_v35 = vld [vmem:[#allocation8 + $0x898] sm:$0xff] }
 0x294   :  { %4381 = vmatpush1.bf16.msra.mxu1 %v5445_v6  ;;  %4218 = vmatprep.subr.bf16.mxu0 %v5452_v20  ;;  %v5502_v6 = vcombine.high %v950_v10, %v954_v11  ;;  %v957_v20 = vld [vmem:[#allocation8 + $0x750] sm:$0xff]  ;;  %v1002_v8 = vld [vmem:[#allocation8 + $0x8b8] sm:$0xff]  ;;  %v5541_v11 = vcombine.low %v990_v62, %v994_v63 }
 0x295   :  { %4382 = vmatprep.subr.bf16.mxu1 %v5454_v22  ;;  %v961_v22 = vld [vmem:[#allocation8 + $0x770] sm:$0xff] }
 0x296   :  { %v5507_v39 = vcombine.low %v957_v20, %v961_v22 }
 0x297   :  { %4219 = vmatpush1.bf16.msra.mxu0 %v5451_v29  ;;  %v5508_v29 = vcombine.high %v957_v20, %v961_v22  ;;  %v1006_v20 = vld [vmem:[#allocation8 + $0x8d8] sm:$0xff] }
 0x298   :  { %4383 = vmatpush1.bf16.msra.mxu1 %v5453_v30  ;;  %4220 = vmatprep.subr.bf16.mxu0 %v5460_v32  ;;  %v5510_v30 = vcombine.high %v958_v23, %v962_v24  ;;  %v965_v32 = vld [vmem:[#allocation8 + $0x790] sm:$0xff]  ;;  %v1010_v22 = vld [vmem:[#allocation8 + $0x8f8] sm:$0xff] }
 0x299   :  { %4384 = vmatprep.subr.bf16.mxu1 %v5462_v33  ;;  %v969_v33 = vld [vmem:[#allocation8 + $0x7b0] sm:$0xff] }
 0x29a   :  { %v5515_v48 = vcombine.low %v965_v32, %v969_v33 }
 0x29b   :  { %4221 = vmatpush1.bf16.msra.mxu0 %v5459_v42  ;;  %v5516_v42 = vcombine.high %v965_v32, %v969_v33  ;;  %v1018_v32 = vld [vmem:[#allocation8 + $0x938] sm:$0xff]  ;;  %v5557_v33 = vcombine.low %v1006_v20, %v1010_v22 }
 0x29c   :  { %4385 = vmatpush1.bf16.msra.mxu1 %v5461_v43  ;;  %4222 = vmatprep.subr.bf16.mxu0 %v5468_v0  ;;  %v5518_v43 = vcombine.high %v966_v37, %v970_v38  ;;  %v973_v0 = vld [vmem:[#allocation8 + $0x7d0] sm:$0xff] }
 0x29d   :  { %4386 = vmatprep.subr.bf16.mxu1 %v5470_v45  ;;  %v977_v45 = vld [vmem:[#allocation8 + $0x7f0] sm:$0xff] }
 0x29e   :  { %v5523_v56 = vcombine.low %v973_v0, %v977_v45 }
 0x29f   :  { %4223 = vmatpush1.bf16.msra.mxu0 %v5467_v53  ;;  %v5524_v53 = vcombine.high %v973_v0, %v977_v45 }
 0x2a0   :  { %4387 = vmatpush1.bf16.msra.mxu1 %v5469_v50  ;;  %4224 = vmatprep.subr.bf16.mxu0 %v5476_v51  ;;  %v5526_v50 = vcombine.high %v974_v46, %v978_v47  ;;  %v981_v51 = vld [vmem:[#allocation8 + $0x810] sm:$0xff] }
 0x2a1   :  { %4388 = vmatprep.subr.bf16.mxu1 %v5478_v36  ;;  %v985_v36 = vld [vmem:[#allocation8 + $0x830] sm:$0xff] }
 0x2a2   :  { %v5531_v61 = vcombine.low %v981_v51, %v985_v36 }
 0x2a3   :  { %4225 = vmatpush1.bf16.msra.mxu0 %v5475_v57  ;;  %v5532_v57 = vcombine.high %v981_v51, %v985_v36 }
 0x2a4   :  { %4389 = vmatpush1.bf16.msra.mxu1 %v5477_v59  ;;  %4226 = vmatprep.subr.bf16.mxu0 %v5484_v54  ;;  %v5534_v59 = vcombine.high %v982_v55, %v986_v16  ;;  %v989_v54 = vld [vmem:[#allocation8 + $0x850] sm:$0xff] }
 0x2a5   :  { %4390 = vmatprep.subr.bf16.mxu1 %v5486_v60  ;;  %v993_v60 = vld [vmem:[#allocation8 + $0x870] sm:$0xff] }
 0x2a6   :  { %v5539_v10 = vcombine.low %v989_v54, %v993_v60 }
 0x2a7   :  { %4227 = vmatpush1.bf16.msra.mxu0 %v5483_v58  ;;  %v5540_v58 = vcombine.high %v989_v54, %v993_v60 }
 0x2a8   :  { %4391 = vmatpush1.bf16.msra.mxu1 %v5485_v4  ;;  %4228 = vmatprep.subr.bf16.mxu0 %v5492_v5  ;;  %v997_v4 = vld [vmem:[#allocation8 + $0x890] sm:$0xff] }
 0x2a9   :  { %4392 = vmatprep.subr.bf16.mxu1 %v5494_v7  ;;  %v1001_v5 = vld [vmem:[#allocation8 + $0x8b0] sm:$0xff]  ;;  %v5542_v7 = vcombine.high %v990_v62, %v994_v63 }
 0x2aa   :  { %v5547_v23 = vcombine.low %v997_v4, %v1001_v5  ;;  %v1045_v63 = vld [vmem:[#allocation8 + $0xa10] sm:$0xff] }
 0x2ab   :  { %4229 = vmatpush1.bf16.msra.mxu0 %v5491_v13  ;;  %v5548_v13 = vcombine.high %v997_v4, %v1001_v5  ;;  %v1050_v4 = vld [vmem:[#allocation8 + $0xa38] sm:$0xff] }
 0x2ac   :  { %4393 = vmatpush1.bf16.msra.mxu1 %v5493_v19  ;;  %4230 = vmatprep.subr.bf16.mxu0 %v5500_v34  ;;  %v5550_v19 = vcombine.high %v998_v35, %v1002_v8  ;;  %v1005_v34 = vld [vmem:[#allocation8 + $0x8d0] sm:$0xff] }
 0x2ad   :  { %4394 = vmatprep.subr.bf16.mxu1 %v5502_v6  ;;  %v1009_v6 = vld [vmem:[#allocation8 + $0x8f0] sm:$0xff] }
 0x2ae   :  { %v5556_v24 = vcombine.high %v1005_v34, %v1009_v6 }
 0x2af   :  { %4231 = vmatpush1.bf16.msra.mxu0 %v5499_v25  ;;  %v5558_v25 = vcombine.high %v1006_v20, %v1010_v22 }
 0x2b0   :  { %4395 = vmatpush1.bf16.msra.mxu1 %v5501_v28  ;;  %4232 = vmatprep.subr.bf16.mxu0 %v5508_v29  ;;  %v1013_v28 = vld [vmem:[#allocation8 + $0x910] sm:$0xff] }
 0x2b1   :  { %4396 = vmatprep.subr.bf16.mxu1 %v5510_v30  ;;  %v1017_v29 = vld [vmem:[#allocation8 + $0x930] sm:$0xff]  ;;  %v1014_v30 = vld [vmem:[#allocation8 + $0x918] sm:$0xff] }
 0x2b2   :  { %v5564_v37 = vcombine.high %v1013_v28, %v1017_v29  ;;  %v5566_v38 = vcombine.high %v1014_v30, %v1018_v32  ;;  %v5563_v0 = vcombine.low %v1013_v28, %v1017_v29  ;;  %v5565_v45 = vcombine.low %v1014_v30, %v1018_v32 }
 0x2b3   :  { %4233 = vmatpush1.bf16.msra.mxu0 %v5507_v39  ;;  %v1021_v39 = vld [vmem:[#allocation8 + $0x950] sm:$0xff] }
 0x2b4   :  { %4397 = vmatpush1.bf16.msra.mxu1 %v5509_v40  ;;  %4234 = vmatprep.subr.bf16.mxu0 %v5516_v42  ;;  %v1025_v40 = vld [vmem:[#allocation8 + $0x970] sm:$0xff]  ;;  %v1022_v42 = vld [vmem:[#allocation8 + $0x958] sm:$0xff] }
 0x2b5   :  { %4398 = vmatprep.subr.bf16.mxu1 %v5518_v43  ;;  %v1026_v43 = vld [vmem:[#allocation8 + $0x978] sm:$0xff]  ;;  %v5572_v46 = vcombine.high %v1021_v39, %v1025_v40  ;;  %v5571_v51 = vcombine.low %v1021_v39, %v1025_v40 }
 0x2b6   :  { %v5574_v47 = vcombine.high %v1022_v42, %v1026_v43  ;;  %v5573_v36 = vcombine.low %v1022_v42, %v1026_v43 }
 0x2b7   :  { %4235 = vmatpush1.bf16.msra.mxu0 %v5515_v48  ;;  %v1029_v48 = vld [vmem:[#allocation8 + $0x990] sm:$0xff] }
 0x2b8   :  { %4399 = vmatpush1.bf16.msra.mxu1 %v5517_v49  ;;  %4236 = vmatprep.subr.bf16.mxu0 %v5524_v53  ;;  %v1033_v49 = vld [vmem:[#allocation8 + $0x9b0] sm:$0xff]  ;;  %v1030_v53 = vld [vmem:[#allocation8 + $0x998] sm:$0xff] }
 0x2b9   :  { %4400 = vmatprep.subr.bf16.mxu1 %v5526_v50  ;;  %v1034_v50 = vld [vmem:[#allocation8 + $0x9b8] sm:$0xff]  ;;  %v5580_v55 = vcombine.high %v1029_v48, %v1033_v49  ;;  %v5579_v54 = vcombine.low %v1029_v48, %v1033_v49 }
 0x2ba   :  { %v5582_v16 = vcombine.high %v1030_v53, %v1034_v50  ;;  %v5581_v60 = vcombine.low %v1030_v53, %v1034_v50 }
 0x2bb   :  { %4237 = vmatpush1.bf16.msra.mxu0 %v5523_v56  ;;  %v1037_v56 = vld [vmem:[#allocation8 + $0x9d0] sm:$0xff] }
 0x2bc   :  { %4401 = vmatpush1.bf16.msra.mxu1 %v5525_v41  ;;  %4247 = vmatprep.subr.bf16.mxu0 %v5532_v57  ;;  %v1041_v41 = vld [vmem:[#allocation8 + $0x9f0] sm:$0xff]  ;;  %v1038_v57 = vld [vmem:[#allocation8 + $0x9d8] sm:$0xff] }
 0x2bd   :  { %4411 = vmatprep.subr.bf16.mxu1 %v5534_v59  ;;  %v1042_v59 = vld [vmem:[#allocation8 + $0x9f8] sm:$0xff]  ;;  %v5587_v5 = vcombine.low %v1037_v56, %v1041_v41 }
 0x2be   :  { %4239 = vmatmul.mubr.bf16.vlgmr.msra.gmra.mrb[12].mxu0 %v6451_v18  ;;  %v5590_v62 = vcombine.high %v1038_v57, %v1042_v59 }
 0x2bf   :  { %4403 = vmatmul.mubr.bf16.vlgmr.msra.gmra.mrb[12].mxu1 %v6451_v18  ;;  %4248 = vmatpush1.bf16.msra.mxu0 %v5531_v61  ;;  %v5549_v18 = vcombine.low %v998_v35, %v1002_v8  ;;  %v5588_v61 = vcombine.high %v1037_v56, %v1041_v41 }
 0x2c0   :  { %4279 = vmatprep.mubr.bf16.mxu0 %v6453_v27  ;;  %4412 = vmatpush1.bf16.msra.mxu1 %v5533_v2  ;;  %v1049_v2 = vld [vmem:[#allocation8 + $0xa30] sm:$0xff] }
 0x2c1   :  { %4443 = vmatprep.mubr.bf16.mxu1 %v6453_v27  ;;  %4249 = vmatprep.subr.bf16.mxu0 %v5540_v58  ;;  %v5555_v27 = vcombine.low %v1005_v34, %v1009_v6  ;;  %v1046_v58 = vld [vmem:[#allocation8 + $0xa18] sm:$0xff]  ;;  %v5596_v35 = vcombine.high %v1045_v63, %v1049_v2  ;;  %v5595_v34 = vcombine.low %v1045_v63, %v1049_v2 }
 0x2c2   :  { %4413 = vmatprep.subr.bf16.mxu1 %v5542_v7  ;;  %v5589_v7 = vcombine.low %v1038_v57, %v1042_v59  ;;  %v5598_v8 = vcombine.high %v1046_v58, %v1050_v4  ;;  %v5597_v6 = vcombine.low %v1046_v58, %v1050_v4 }
 0x2c3   :  { %4250 = vmatpush1.bf16.msra.mxu0 %v5539_v10  ;;  %v1053_v10 = vld [vmem:[#allocation8 + $0xa50] sm:$0xff] }
 0x2c4   :  { %4414 = vmatpush1.bf16.msra.mxu1 %v5541_v11  ;;  %4251 = vmatprep.subr.bf16.mxu0 %v5548_v13  ;;  %v1057_v11 = vld [vmem:[#allocation8 + $0xa70] sm:$0xff]  ;;  %v1054_v13 = vld [vmem:[#allocation8 + $0xa58] sm:$0xff] }
 0x2c5   :  { %4415 = vmatprep.subr.bf16.mxu1 %v5550_v19  ;;  %v1058_v19 = vld [vmem:[#allocation8 + $0xa78] sm:$0xff]  ;;  %v5604_v20 = vcombine.high %v1053_v10, %v1057_v11  ;;  %v5603_v28 = vcombine.low %v1053_v10, %v1057_v11 }
 0x2c6   :  { %v5606_v22 = vcombine.high %v1054_v13, %v1058_v19  ;;  %v5605_v29 = vcombine.low %v1054_v13, %v1058_v19 }
 0x2c7   :  { %4252 = vmatpush1.bf16.msra.mxu0 %v5547_v23  ;;  %v1061_v23 = vld [vmem:[#allocation8 + $0xa90] sm:$0xff] }
 0x2c8   :  { %4416 = vmatpush1.bf16.msra.mxu1 %v5549_v18  ;;  %4253 = vmatprep.subr.bf16.mxu0 %v5556_v24  ;;  %v1065_v18 = vld [vmem:[#allocation8 + $0xab0] sm:$0xff]  ;;  %v1062_v24 = vld [vmem:[#allocation8 + $0xa98] sm:$0xff] }
 0x2c9   :  { %4417 = vmatprep.subr.bf16.mxu1 %v5558_v25  ;;  %v1066_v25 = vld [vmem:[#allocation8 + $0xab8] sm:$0xff]  ;;  %v5612_v30 = vcombine.high %v1061_v23, %v1065_v18  ;;  %v5611_v39 = vcombine.low %v1061_v23, %v1065_v18 }
 0x2ca   :  { %v5614_v32 = vcombine.high %v1062_v24, %v1066_v25  ;;  %v5613_v40 = vcombine.low %v1062_v24, %v1066_v25 }
 0x2cb   :  { %4254 = vmatpush1.bf16.msra.mxu0 %v5555_v27  ;;  %v1069_v27 = vld [vmem:[#allocation8 + $0xad0] sm:$0xff] }
 0x2cc   :  { %4418 = vmatpush1.bf16.msra.mxu1 %v5557_v33  ;;  %4255 = vmatprep.subr.bf16.mxu0 %v5564_v37  ;;  %v1073_v33 = vld [vmem:[#allocation8 + $0xaf0] sm:$0xff]  ;;  %v1070_v37 = vld [vmem:[#allocation8 + $0xad8] sm:$0xff] }
 0x2cd   :  { %4419 = vmatprep.subr.bf16.mxu1 %v5566_v38  ;;  %v1074_v38 = vld [vmem:[#allocation8 + $0xaf8] sm:$0xff]  ;;  %v5620_v42 = vcombine.high %v1069_v27, %v1073_v33  ;;  %v5619_v48 = vcombine.low %v1069_v27, %v1073_v33 }
 0x2ce   :  { %v5622_v43 = vcombine.high %v1070_v37, %v1074_v38  ;;  %v5621_v49 = vcombine.low %v1070_v37, %v1074_v38  ;;  %v1122_v27 = vld [vmem:[#allocation8 + $0xc78] sm:$0xff]  ;;  %v1125_v38 = vld [vmem:[#allocation8 + $0xc90] sm:$0xff] }
 0x2cf   :  { %4256 = vmatpush1.bf16.msra.mxu0 %v5563_v0  ;;  %v1077_v0 = vld [vmem:[#allocation8 + $0xb10] sm:$0xff] }
 0x2d0   :  { %4420 = vmatpush1.bf16.msra.mxu1 %v5565_v45  ;;  %4257 = vmatprep.subr.bf16.mxu0 %v5572_v46  ;;  %v1081_v45 = vld [vmem:[#allocation8 + $0xb30] sm:$0xff]  ;;  %v1078_v46 = vld [vmem:[#allocation8 + $0xb18] sm:$0xff] }
 0x2d1   :  { %4421 = vmatprep.subr.bf16.mxu1 %v5574_v47  ;;  %v1082_v47 = vld [vmem:[#allocation8 + $0xb38] sm:$0xff]  ;;  %v5628_v53 = vcombine.high %v1077_v0, %v1081_v45  ;;  %v5627_v56 = vcombine.low %v1077_v0, %v1081_v45 }
 0x2d2   :  { %v5630_v50 = vcombine.high %v1078_v46, %v1082_v47  ;;  %v5629_v41 = vcombine.low %v1078_v46, %v1082_v47 }
 0x2d3   :  { %4258 = vmatpush1.bf16.msra.mxu0 %v5571_v51  ;;  %v1085_v51 = vld [vmem:[#allocation8 + $0xb50] sm:$0xff] }
 0x2d4   :  { %4422 = vmatpush1.bf16.msra.mxu1 %v5573_v36  ;;  %4259 = vmatprep.subr.bf16.mxu0 %v5580_v55  ;;  %v1089_v36 = vld [vmem:[#allocation8 + $0xb70] sm:$0xff]  ;;  %v1086_v55 = vld [vmem:[#allocation8 + $0xb58] sm:$0xff] }
 0x2d5   :  { %4423 = vmatprep.subr.bf16.mxu1 %v5582_v16  ;;  %v1090_v16 = vld [vmem:[#allocation8 + $0xb78] sm:$0xff]  ;;  %v5636_v57 = vcombine.high %v1085_v51, %v1089_v36  ;;  %v5635_v63 = vcombine.low %v1085_v51, %v1089_v36 }
 0x2d6   :  { %v5638_v59 = vcombine.high %v1086_v55, %v1090_v16  ;;  %v5637_v2 = vcombine.low %v1086_v55, %v1090_v16  ;;  %v1141_v16 = vld [vmem:[#allocation8 + $0xd10] sm:$0xff] }
 0x2d7   :  { %4260 = vmatpush1.bf16.msra.mxu0 %v5579_v54  ;;  %v1093_v54 = vld [vmem:[#allocation8 + $0xb90] sm:$0xff] }
 0x2d8   :  { %4424 = vmatpush1.bf16.msra.mxu1 %v5581_v60  ;;  %4261 = vmatprep.subr.bf16.mxu0 %v5588_v61  ;;  %v1097_v60 = vld [vmem:[#allocation8 + $0xbb0] sm:$0xff]  ;;  %v1094_v61 = vld [vmem:[#allocation8 + $0xb98] sm:$0xff] }
 0x2d9   :  { %4425 = vmatprep.subr.bf16.mxu1 %v5590_v62  ;;  %v1098_v62 = vld [vmem:[#allocation8 + $0xbb8] sm:$0xff]  ;;  %v5644_v58 = vcombine.high %v1093_v54, %v1097_v60  ;;  %v5643_v10 = vcombine.low %v1093_v54, %v1097_v60 }
 0x2da   :  { %v5646_v4 = vcombine.high %v1094_v61, %v1098_v62  ;;  %v5645_v11 = vcombine.low %v1094_v61, %v1098_v62  ;;  %v1149_v61 = vld [vmem:[#allocation8 + $0xd50] sm:$0xff] }
 0x2db   :  { %4262 = vmatpush1.bf16.msra.mxu0 %v5587_v5  ;;  %v1101_v5 = vld [vmem:[#allocation8 + $0xbd0] sm:$0xff] }
 0x2dc   :  { %4426 = vmatpush1.bf16.msra.mxu1 %v5589_v7  ;;  %4263 = vmatprep.subr.bf16.mxu0 %v5596_v35  ;;  %v1105_v7 = vld [vmem:[#allocation8 + $0xbf0] sm:$0xff]  ;;  %v1102_v35 = vld [vmem:[#allocation8 + $0xbd8] sm:$0xff] }
 0x2dd   :  { %4427 = vmatprep.subr.bf16.mxu1 %v5598_v8  ;;  %v1106_v8 = vld [vmem:[#allocation8 + $0xbf8] sm:$0xff]  ;;  %v5652_v13 = vcombine.high %v1101_v5, %v1105_v7  ;;  %v5651_v23 = vcombine.low %v1101_v5, %v1105_v7  ;;  %v1153_v62 = vld [vmem:[#allocation8 + $0xd70] sm:$0xff] }
 0x2de   :  { %v5654_v19 = vcombine.high %v1102_v35, %v1106_v8  ;;  %v5653_v18 = vcombine.low %v1102_v35, %v1106_v8  ;;  %v5700_v5 = vcombine.high %v1149_v61, %v1153_v62  ;;  %v1157_v35 = vld [vmem:[#allocation8 + $0xd90] sm:$0xff] }
 0x2df   :  { %4264 = vmatpush1.bf16.msra.mxu0 %v5595_v34  ;;  %v1109_v34 = vld [vmem:[#allocation8 + $0xc10] sm:$0xff] }
 0x2e0   :  { %4428 = vmatpush1.bf16.msra.mxu1 %v5597_v6  ;;  %4265 = vmatprep.subr.bf16.mxu0 %v5604_v20  ;;  %v1113_v6 = vld [vmem:[#allocation8 + $0xc30] sm:$0xff]  ;;  %v1110_v20 = vld [vmem:[#allocation8 + $0xc18] sm:$0xff] }
 0x2e1   :  { %4429 = vmatprep.subr.bf16.mxu1 %v5606_v22  ;;  %v1114_v22 = vld [vmem:[#allocation8 + $0xc38] sm:$0xff]  ;;  %v5660_v24 = vcombine.high %v1109_v34, %v1113_v6  ;;  %v1161_v8 = vld [vmem:[#allocation8 + $0xdb0] sm:$0xff] }
 0x2e2   :  { %v5662_v25 = vcombine.high %v1110_v20, %v1114_v22  ;;  %v5661_v33 = vcombine.low %v1110_v20, %v1114_v22 }
 0x2e3   :  { %4266 = vmatpush1.bf16.msra.mxu0 %v5603_v28  ;;  %v1117_v28 = vld [vmem:[#allocation8 + $0xc50] sm:$0xff] }
 0x2e4   :  { %4430 = vmatpush1.bf16.msra.mxu1 %v5605_v29  ;;  %4267 = vmatprep.subr.bf16.mxu0 %v5612_v30  ;;  %v1121_v29 = vld [vmem:[#allocation8 + $0xc70] sm:$0xff]  ;;  %v5659_v30 = vcombine.low %v1109_v34, %v1113_v6  ;;  %v5708_v34 = vcombine.high %v1157_v35, %v1161_v8 }
 0x2e5   :  { %4431 = vmatprep.subr.bf16.mxu1 %v5614_v32  ;;  %v1118_v32 = vld [vmem:[#allocation8 + $0xc58] sm:$0xff]  ;;  %v5668_v37 = vcombine.high %v1117_v28, %v1121_v29  ;;  %v5667_v0 = vcombine.low %v1117_v28, %v1121_v29 }
 0x2e6   :  { %v5669_v45 = vcombine.low %v1118_v32, %v1122_v27  ;;  %v1166_v28 = vld [vmem:[#allocation8 + $0xdd8] sm:$0xff] }
 0x2e7   :  { %4268 = vmatpush1.bf16.msra.mxu0 %v5611_v39  ;;  %v1129_v39 = vld [vmem:[#allocation8 + $0xcb0] sm:$0xff]  ;;  %v1170_v29 = vld [vmem:[#allocation8 + $0xdf8] sm:$0xff] }
 0x2e8   :  { %4432 = vmatpush1.bf16.msra.mxu1 %v5613_v40  ;;  %4269 = vmatprep.subr.bf16.mxu0 %v5620_v42  ;;  %v5670_v40 = vcombine.high %v1118_v32, %v1122_v27  ;;  %v1126_v42 = vld [vmem:[#allocation8 + $0xc98] sm:$0xff]  ;;  %v5676_v46 = vcombine.high %v1125_v38, %v1129_v39  ;;  %v5675_v51 = vcombine.low %v1125_v38, %v1129_v39 }
 0x2e9   :  { %4433 = vmatprep.subr.bf16.mxu1 %v5622_v43  ;;  %v1130_v43 = vld [vmem:[#allocation8 + $0xcb8] sm:$0xff]  ;;  %v5707_v27 = vcombine.low %v1157_v35, %v1161_v8 }
 0x2ea   :  { %v5678_v47 = vcombine.high %v1126_v42, %v1130_v43 }
 0x2eb   :  { %4270 = vmatpush1.bf16.msra.mxu0 %v5619_v48  ;;  %v1133_v48 = vld [vmem:[#allocation8 + $0xcd0] sm:$0xff] }
 0x2ec   :  { %4434 = vmatpush1.bf16.msra.mxu1 %v5621_v49  ;;  %4271 = vmatprep.subr.bf16.mxu0 %v5628_v53  ;;  %v1137_v49 = vld [vmem:[#allocation8 + $0xcf0] sm:$0xff]  ;;  %v1134_v53 = vld [vmem:[#allocation8 + $0xcd8] sm:$0xff] }
 0x2ed   :  { %4435 = vmatprep.subr.bf16.mxu1 %v5630_v50  ;;  %v1138_v50 = vld [vmem:[#allocation8 + $0xcf8] sm:$0xff]  ;;  %v5684_v36 = vcombine.high %v1133_v48, %v1137_v49 }
 0x2ee   :  { %v5686_v55 = vcombine.high %v1134_v53, %v1138_v50 }
 0x2ef   :  { %4272 = vmatpush1.bf16.msra.mxu0 %v5627_v56  ;;  %v1145_v56 = vld [vmem:[#allocation8 + $0xd30] sm:$0xff] }
 0x2f0   :  { %4436 = vmatpush1.bf16.msra.mxu1 %v5629_v41  ;;  %4273 = vmatprep.subr.bf16.mxu0 %v5636_v57  ;;  %v1142_v41 = vld [vmem:[#allocation8 + $0xd18] sm:$0xff]  ;;  %v5692_v54 = vcombine.high %v1141_v16, %v1145_v56 }
 0x2f1   :  { %4437 = vmatprep.subr.bf16.mxu1 %v5638_v59  ;;  %v1146_v57 = vld [vmem:[#allocation8 + $0xd38] sm:$0xff]  ;;  %v5685_v59 = vcombine.low %v1134_v53, %v1138_v50  ;;  %v1181_v53 = vld [vmem:[#allocation8 + $0xe50] sm:$0xff] }
 0x2f2   :  { %v5694_v60 = vcombine.high %v1142_v41, %v1146_v57  ;;  %v1185_v50 = vld [vmem:[#allocation8 + $0xe70] sm:$0xff] }
 0x2f3   :  { %4274 = vmatpush1.bf16.msra.mxu0 %v5635_v63  ;;  %v1150_v63 = vld [vmem:[#allocation8 + $0xd58] sm:$0xff] }
 0x2f4   :  { %4438 = vmatpush1.bf16.msra.mxu1 %v5637_v2  ;;  %4275 = vmatprep.subr.bf16.mxu0 %v5644_v58  ;;  %v1154_v2 = vld [vmem:[#allocation8 + $0xd78] sm:$0xff]  ;;  %v5691_v58 = vcombine.low %v1141_v16, %v1145_v56  ;;  %v5732_v16 = vcombine.high %v1181_v53, %v1185_v50 }
 0x2f5   :  { %4439 = vmatprep.subr.bf16.mxu1 %v5646_v4  ;;  %v5693_v4 = vcombine.low %v1142_v41, %v1146_v57  ;;  %v5702_v7 = vcombine.high %v1150_v63, %v1154_v2  ;;  %v1189_v41 = vld [vmem:[#allocation8 + $0xe90] sm:$0xff] }
 0x2f6   :  { %v1193_v57 = vld [vmem:[#allocation8 + $0xeb0] sm:$0xff] }
 0x2f7   :  { %4276 = vmatpush1.bf16.msra.mxu0 %v5643_v10  ;;  %v1158_v10 = vld [vmem:[#allocation8 + $0xd98] sm:$0xff] }
 0x2f8   :  { %4440 = vmatpush1.bf16.msra.mxu1 %v5645_v11  ;;  %4277 = vmatprep.subr.bf16.mxu0 %v5652_v13  ;;  %v1162_v11 = vld [vmem:[#allocation8 + $0xdb8] sm:$0xff]  ;;  %v5699_v13 = vcombine.low %v1149_v61, %v1153_v62  ;;  %v5740_v61 = vcombine.high %v1189_v41, %v1193_v57 }
 0x2f9   :  { %4441 = vmatprep.subr.bf16.mxu1 %v5654_v19  ;;  %v5701_v19 = vcombine.low %v1150_v63, %v1154_v2  ;;  %v5710_v22 = vcombine.high %v1158_v10, %v1162_v11  ;;  %v5709_v38 = vcombine.low %v1158_v10, %v1162_v11  ;;  %v1197_v63 = vld [vmem:[#allocation8 + $0xed0] sm:$0xff] }
 0x2fa   :  { %v1201_v2 = vld [vmem:[#allocation8 + $0xef0] sm:$0xff] }
 0x2fb   :  { %4278 = vmatpush1.bf16.msra.mxu0 %v5651_v23  ;;  %v1165_v23 = vld [vmem:[#allocation8 + $0xdd0] sm:$0xff]  ;;  %v5748_v35 = vcombine.high %v1197_v63, %v1201_v2 }
 0x2fc   :  { %4442 = vmatpush1.bf16.msra.mxu1 %v5653_v18  ;;  %4288 = vmatprep.subr.bf16.mxu0 %v5660_v24  ;;  %v1169_v18 = vld [vmem:[#allocation8 + $0xdf0] sm:$0xff] }
 0x2fd   :  { %4452 = vmatprep.subr.bf16.mxu1 %v5662_v25  ;;  %v5716_v39 = vcombine.high %v1165_v23, %v1169_v18  ;;  %v1205_v10 = vld [vmem:[#allocation8 + $0xf10] sm:$0xff] }
 0x2fe   :  { %4280 = vmatmul.mubr.bf16.vlgmr.msra.gmra.mrb[12].mxu0 %v6469_v1  ;;  %v1209_v11 = vld [vmem:[#allocation8 + $0xf30] sm:$0xff] }
 0x2ff   :  { %4444 = vmatmul.mubr.bf16.vlgmr.msra.gmra.mrb[12].mxu1 %v6469_v1  ;;  %4289 = vmatpush1.bf16.msra.mxu0 %v5659_v30  ;;  %v5677_v1 = vcombine.low %v1126_v42, %v1130_v43  ;;  %v1173_v42 = vld [vmem:[#allocation8 + $0xe10] sm:$0xff] }
 0x300   :  { %4320 = vmatprep.mubr.bf16.mxu0 %v6471_v9  ;;  %4453 = vmatpush1.bf16.msra.mxu1 %v5661_v33  ;;  %v1177_v43 = vld [vmem:[#allocation8 + $0xe30] sm:$0xff] }
 0x301   :  { %4484 = vmatprep.mubr.bf16.mxu1 %v6471_v9  ;;  %4290 = vmatprep.subr.bf16.mxu0 %v5668_v37  ;;  %v5683_v9 = vcombine.low %v1133_v48, %v1137_v49  ;;  %v5724_v48 = vcombine.high %v1173_v42, %v1177_v43 }
 0x302   :  { %4454 = vmatprep.subr.bf16.mxu1 %v5670_v40  ;;  %v5718_v40 = vcombine.high %v1166_v28, %v1170_v29 }
 0x303   :  { %4291 = vmatpush1.bf16.msra.mxu0 %v5667_v0  ;;  %v1174_v0 = vld [vmem:[#allocation8 + $0xe18] sm:$0xff] }
 0x304   :  { %4455 = vmatpush1.bf16.msra.mxu1 %v5669_v45  ;;  %4292 = vmatprep.subr.bf16.mxu0 %v5676_v46  ;;  %v1178_v45 = vld [vmem:[#allocation8 + $0xe38] sm:$0xff]  ;;  %v5715_v46 = vcombine.low %v1165_v23, %v1169_v18  ;;  %v5756_v23 = vcombine.high %v1205_v10, %v1209_v11 }
 0x305   :  { %4456 = vmatprep.subr.bf16.mxu1 %v5678_v47  ;;  %v5717_v47 = vcombine.low %v1166_v28, %v1170_v29  ;;  %v5726_v49 = vcombine.high %v1174_v0, %v1178_v45  ;;  %v1213_v28 = vld [vmem:[#allocation8 + $0xf50] sm:$0xff] }
 0x306   :  { %v1217_v29 = vld [vmem:[#allocation8 + $0xf70] sm:$0xff] }
 0x307   :  { %4293 = vmatpush1.bf16.msra.mxu0 %v5675_v51  ;;  %v1182_v51 = vld [vmem:[#allocation8 + $0xe58] sm:$0xff] }
 0x308   :  { %4457 = vmatpush1.bf16.msra.mxu1 %v5677_v1  ;;  %4294 = vmatprep.subr.bf16.mxu0 %v5684_v36  ;;  %v1186_v1 = vld [vmem:[#allocation8 + $0xe78] sm:$0xff]  ;;  %v5723_v36 = vcombine.low %v1173_v42, %v1177_v43 }
 0x309   :  { %4458 = vmatprep.subr.bf16.mxu1 %v5686_v55  ;;  %v5725_v55 = vcombine.low %v1174_v0, %v1178_v45  ;;  %v5734_v56 = vcombine.high %v1182_v51, %v1186_v1  ;;  %v1222_v42 = vld [vmem:[#allocation8 + $0xf98] sm:$0xff]  ;;  %v6507_v0 = vld [vmem:[#allocation10] sm:$0xff]  ;;  %v5763_v45 = vcombine.low %v1213_v28, %v1217_v29 }
 0x30a   :  { %v1226_v43 = vld [vmem:[#allocation8 + $0xfb8] sm:$0xff] }
 0x30b   :  { %4295 = vmatpush1.bf16.msra.mxu0 %v5683_v9  ;;  %v1190_v9 = vld [vmem:[#allocation8 + $0xe98] sm:$0xff] }
 0x30c   :  { %4459 = vmatpush1.bf16.msra.mxu1 %v5685_v59  ;;  %4296 = vmatprep.subr.bf16.mxu0 %v5692_v54  ;;  %v1194_v59 = vld [vmem:[#allocation8 + $0xeb8] sm:$0xff]  ;;  %v5731_v54 = vcombine.low %v1181_v53, %v1185_v50  ;;  %v1233_v53 = vld [vmem:[#allocation8 + $0xff0] sm:$0xff]  ;;  %v1244_v50 = vrot.slane %v6507_v0, %v189_v17 }
 0x30d   :  { %4460 = vmatprep.subr.bf16.mxu1 %v5694_v60  ;;  %v5733_v60 = vcombine.low %v1182_v51, %v1186_v1  ;;  %v5742_v62 = vcombine.high %v1190_v9, %v1194_v59  ;;  %v1230_v51 = vld [vmem:[#allocation8 + $0xfd8] sm:$0xff] }
 0x30e   :  { %v1234_v1 = vld [vmem:[#allocation8 + $0xff8] sm:$0xff] }
 0x30f   :  { %4297 = vmatpush1.bf16.msra.mxu0 %v5691_v58  ;;  %v1198_v58 = vld [vmem:[#allocation8 + $0xed8] sm:$0xff] }
 0x310   :  { %4461 = vmatpush1.bf16.msra.mxu1 %v5693_v4  ;;  %4298 = vmatprep.subr.bf16.mxu0 %v5700_v5  ;;  %v1202_v4 = vld [vmem:[#allocation8 + $0xef8] sm:$0xff]  ;;  %v5739_v5 = vcombine.low %v1189_v41, %v1193_v57  ;;  %v5782_v41 = vcombine.high %v1230_v51, %v1234_v1 }
 0x311   :  { %v6499_v6 = vpop.f32.mrb[8].mxu0  ;;  %v6501_v20 = vpop.f32.mrb[8].mxu1  ;;  %4462 = vmatprep.subr.bf16.mxu1 %v5702_v7  ;;  %v5741_v7 = vcombine.low %v1190_v9, %v1194_v59  ;;  %v5750_v8 = vcombine.high %v1198_v58, %v1202_v4  ;;  %v5781_v59 = vcombine.low %v1230_v51, %v1234_v1  ;;  %v6040_v51 = vld [vmem:[#allocation11 + $0x180] sm:$0xff]   ;;  %v6041_v1 = vld [vmem:[#allocation11 + $0x148] sm:$0xff]  }
 0x312   :  { %v6503_v24 = vpop.f32.mrb[9].mxu0  ;;  %v6505_v25 = vpop.f32.mrb[9].mxu1 }
 0x313   :  { %v3998_v30 = vpop.f32.mrb[10].mxu0  ;;  %v4162_v32 = vpop.f32.mrb[10].mxu1  ;;  %4299 = vmatpush1.bf16.msra.mxu0 %v5699_v13  ;;  %v1206_v13 = vld [vmem:[#allocation8 + $0xf18] sm:$0xff]  ;;  %v5937_v57 = vadd.f32 %v6503_v24, %v1244_v50 }
 0x314   :  { %4463 = vmatpush1.bf16.msra.mxu1 %v5701_v19  ;;  %v3999_v33 = vpop.f32.mrb[11].mxu0  ;;  %v4163_v37 = vpop.f32.mrb[11].mxu1  ;;  %4300 = vmatprep.subr.bf16.mxu0 %v5708_v34  ;;  %v1210_v19 = vld [vmem:[#allocation8 + $0xf38] sm:$0xff]  ;;  %v5747_v34 = vcombine.low %v1197_v63, %v1201_v2  ;;  %v6008_v63 = vld [vmem:[#allocation11 + $0x80] sm:$0xff]   ;;  %v6009_v2 = vld [vmem:[#allocation11 + $0x48] sm:$0xff]  }
 0x315   :  { %4464 = vmatprep.subr.bf16.mxu1 %v5710_v22  ;;  %v5749_v22 = vcombine.low %v1198_v58, %v1202_v4  ;;  %v5758_v18 = vcombine.high %v1206_v13, %v1210_v19  ;;  %v1214_v30 = vld [vmem:[#allocation8 + $0xf58] sm:$0xff]  ;;  %v5757_v33 = vcombine.low %v1206_v13, %v1210_v19  ;;  %v5764_v37 = vcombine.high %v1213_v28, %v1217_v29  ;;  %v6011_v4 = vld [vmem:[#allocation11 + $0x8] sm:$0xff]   ;;  %v6018_v13 = vld [vmem:[#allocation11 + $0xd8] sm:$0xff]  }
 0x316   :  { %v1218_v32 = vld [vmem:[#allocation8 + $0xf78] sm:$0xff]  ;;  %v6020_v19 = vld [vmem:[#allocation11 + $0x98] sm:$0xff]   ;;  %v6025_v28 = vld [vmem:[#allocation11 + $0x68] sm:$0xff]  }
 0x317   :  { %4301 = vmatpush1.bf16.msra.mxu0 %v5707_v27  ;;  %v5755_v27 = vcombine.low %v1205_v10, %v1209_v11  ;;  %v6016_v10 = vld [vmem:[#allocation11 + $0x90] sm:$0xff]   ;;  %v6017_v11 = vld [vmem:[#allocation11 + $0x58] sm:$0xff]   ;;  %v6026_v29 = vld [vmem:[#allocation11 + $0xe8] sm:$0xff]  }
 0x318   :  { %4465 = vmatpush1.bf16.msra.mxu1 %v5709_v38  ;;  %4302 = vmatprep.subr.bf16.mxu0 %v5716_v39  ;;  %v5766_v38 = vcombine.high %v1214_v30, %v1218_v32  ;;  %v1221_v39 = vld [vmem:[#allocation8 + $0xf90] sm:$0xff] }
 0x319   :  { %4466 = vmatprep.subr.bf16.mxu1 %v5718_v40  ;;  %v1225_v40 = vld [vmem:[#allocation8 + $0xfb0] sm:$0xff] }
 0x31b   :  { %4303 = vmatpush1.bf16.msra.mxu0 %v5715_v46  ;;  %v5765_v46 = vcombine.low %v1214_v30, %v1218_v32  ;;  %v6027_v30 = vld [vmem:[#allocation11 + $0x28] sm:$0xff]   ;;  %v1240_v32 = vrot.slane %v6507_v0, %v185_v15 }
 0x31c   :  { %4467 = vmatpush1.bf16.msra.mxu1 %v5717_v47  ;;  %4304 = vmatprep.subr.bf16.mxu0 %v5724_v48  ;;  %v5772_v47 = vcombine.high %v1221_v39, %v1225_v40  ;;  %v5774_v48 = vcombine.high %v1222_v42, %v1226_v43 }
 0x31d   :  { %4468 = vmatprep.subr.bf16.mxu1 %v5726_v49  ;;  %v1229_v49 = vld [vmem:[#allocation8 + $0xfd0] sm:$0xff] }
 0x31e   :  { %v5779_v17 = vcombine.low %v1229_v49, %v1233_v53 }
 0x31f   :  { %4305 = vmatpush1.bf16.msra.mxu0 %v5723_v36  ;;  %v1252_v36 = vrot.slane %v6507_v0, %v197_v21  ;;  %v6006_v21 = vld [vmem:[#allocation11 + $0xc0] sm:$0xff]  }
 0x320   :  { %4469 = vmatpush1.bf16.msra.mxu1 %v5725_v55  ;;  %4306 = vmatprep.subr.bf16.mxu0 %v5732_v16  ;;  %v5771_v55 = vcombine.low %v1221_v39, %v1225_v40  ;;  %v5773_v16 = vcombine.low %v1222_v42, %v1226_v43  ;;  %v6031_v39 = vld [vmem:[#allocation11 + $0x30] sm:$0xff]   ;;  %v5936_v40 = vadd.f32 %v6499_v6, %v1240_v32  ;;  %v6033_v43 = vld [vmem:[#allocation11 + $0x78] sm:$0xff]   ;;  %v6039_v6 = vld [vmem:[#allocation11 + $0x100] sm:$0xff]  }
 0x321   :  { %4470 = vmatprep.subr.bf16.mxu1 %v5734_v56  ;;  %v5780_v56 = vcombine.high %v1229_v49, %v1233_v53  ;;  %v5939_v9 = vadd.f32 %v6505_v25, %v1252_v36  ;;  %v6010_v25 = vld [vmem:[#allocation11 + $0xc8] sm:$0xff]   ;;  %v6032_v42 = vld [vmem:[#allocation11 + $0xb0] sm:$0xff]   ;;  %v6038_v53 = vld [vmem:[#allocation11 + $0x1c0] sm:$0xff]  }
 0x322   :  { %v6042_v36 = vld [vmem:[#allocation11 + $0x1c8] sm:$0xff]  }
 0x323   :  { %4307 = vmatpush1.bf16.msra.mxu0 %v5731_v54  ;;  %v6005_v54 = vld [vmem:[#allocation11 + $0x40] sm:$0xff]  }
 0x324   :  { %4471 = vmatpush1.bf16.msra.mxu1 %v5733_v60  ;;  %4308 = vmatprep.subr.bf16.mxu0 %v5740_v61  ;;  %v4494_v60 = vmax.f32 %v5937_v57, 0.0  ;;  %v4496_v61 = vmax.f32 %v5939_v9, 0.0  ;;  %v6047_v57 = vld [vmem:[#allocation11 + $0x110] sm:$0xff]  }
 0x325   :  { %4472 = vmatprep.subr.bf16.mxu1 %v5742_v62  ;;  %v6007_v62 = vld [vmem:[#allocation11] sm:$0xff]   ;;  %v6048_v9 = vld [vmem:[#allocation11 + $0x190] sm:$0xff]  }
 0x326   :  { %v4502_v24 = vpack.c.bf16 %v4494_v60, %v4494_v60  ;;  %v4504_v58 = vpack.c.bf16 %v4496_v61, %v4496_v61  ;;  %v6053_v60 = vld [vmem:[#allocation11 + $0x160] sm:$0xff]  }
 0x327   :  { %4309 = vmatpush1.bf16.msra.mxu0 %v5739_v5  ;;  %v6012_v5 = vld [vmem:[#allocation11 + $0x88] sm:$0xff]   ;;  %v6054_v61 = vld [vmem:[#allocation11 + $0x1e0] sm:$0xff]  }
 0x328   :  { %4473 = vmatpush1.bf16.msra.mxu1 %v5741_v7  ;;  %4310 = vmatprep.subr.bf16.mxu0 %v5748_v35  ;;  %v6013_v7 = vld [vmem:[#allocation11 + $0x50] sm:$0xff]  }
 0x329   :  { %4474 = vmatprep.subr.bf16.mxu1 %v5750_v8  ;;  %v6014_v35 = vld [vmem:[#allocation11 + $0xd0] sm:$0xff]  }
 0x32a   :  { %v6015_v8 = vld [vmem:[#allocation11 + $0x10] sm:$0xff]  }
 0x32b   :  { %4311 = vmatpush1.bf16.msra.mxu0 %v5747_v34  ;;  %v6021_v34 = vld [vmem:[#allocation11 + $0x60] sm:$0xff]  }
 0x32c   :  { %4475 = vmatpush1.bf16.msra.mxu1 %v5749_v22  ;;  %4312 = vmatprep.subr.bf16.mxu0 %v5756_v23  ;;  %v6022_v22 = vld [vmem:[#allocation11 + $0xe0] sm:$0xff]  }
 0x32d   :  { %4476 = vmatprep.subr.bf16.mxu1 %v5758_v18  ;;  %v6023_v23 = vld [vmem:[#allocation11 + $0x20] sm:$0xff]  }
 0x32e   :  { %v6024_v18 = vld [vmem:[#allocation11 + $0xa0] sm:$0xff]  }
 0x32f   :  { %4313 = vmatpush1.bf16.msra.mxu0 %v5755_v27  ;;  %v6028_v27 = vld [vmem:[#allocation11 + $0xa8] sm:$0xff]  }
 0x330   :  { %4477 = vmatpush1.bf16.msra.mxu1 %v5757_v33  ;;  %4314 = vmatprep.subr.bf16.mxu0 %v5764_v37  ;;  %v6029_v33 = vld [vmem:[#allocation11 + $0x70] sm:$0xff]   ;;  %v1248_v37 = vrot.slane %v6507_v0, %v193_v31  ;;  %v6036_v31 = vld [vmem:[#allocation11 + $0xb8] sm:$0xff]  }
 0x331   :  { %4478 = vmatprep.subr.bf16.mxu1 %v5766_v38  ;;  %v6030_v38 = vld [vmem:[#allocation11 + $0xf0] sm:$0xff]  }
 0x332   :  { %v5938_v15 = vadd.f32 %v6501_v20, %v1248_v37 }
 0x333   :  { %4315 = vmatpush1.bf16.msra.mxu0 %v5763_v45  ;;  %v6034_v45 = vld [vmem:[#allocation11 + $0xf8] sm:$0xff]  }
 0x334   :  { %4479 = vmatpush1.bf16.msra.mxu1 %v5765_v46  ;;  %4316 = vmatprep.subr.bf16.mxu0 %v5772_v47  ;;  %v6035_v46 = vld [vmem:[#allocation11 + $0x38] sm:$0xff]   ;;  %v4493_v47 = vmax.f32 %v5936_v40, 0.0  ;;  %v4495_v49 = vmax.f32 %v5938_v15, 0.0 }
 0x335   :  { %4480 = vmatprep.subr.bf16.mxu1 %v5774_v48  ;;  %v6037_v48 = vld [vmem:[#allocation11 + $0x140] sm:$0xff]  }
 0x336   :  { %v4501_v50 = vpack.c.bf16 %v4493_v47, %v4493_v47  ;;  %v4503_v20 = vpack.c.bf16 %v4495_v49, %v4495_v49 }
 0x337   :  { %4317 = vmatpush1.bf16.msra.mxu0 %v5771_v55  ;;  %v6043_v55 = vld [vmem:[#allocation11 + $0x108] sm:$0xff]  }
 0x338   :  { %4481 = vmatpush1.bf16.msra.mxu1 %v5773_v16  ;;  %4318 = vmatprep.subr.bf16.mxu0 %v5780_v56  ;;  %v6044_v16 = vld [vmem:[#allocation11 + $0x188] sm:$0xff]   ;;  %v6045_v56 = vld [vmem:[#allocation11 + $0x150] sm:$0xff]  }
 0x339   :  { %4482 = vmatprep.subr.bf16.mxu1 %v5782_v41  ;;  %v6046_v41 = vld [vmem:[#allocation11 + $0x1d0] sm:$0xff]  }
 0x33b   :  { %4319 = vmatpush1.bf16.msra.mxu0 %v5779_v17  ;;  %v6049_v17 = vld [vmem:[#allocation11 + $0x158] sm:$0xff]  }
 0x33c   :  { %4483 = vmatpush1.bf16.msra.mxu1 %v5781_v59  ;;  %5848 = vmatprep.subr.bf16.mxu0 %v6005_v54  ;;  %v6050_v59 = vld [vmem:[#allocation11 + $0x1d8] sm:$0xff]  }
 0x33d   :  { %5870 = vmatprep.subr.bf16.mxu1 %v6006_v21  ;;  %v6051_v54 = vld [vmem:[#allocation11 + $0x118] sm:$0xff]  }
 0x33e   :  { %4321 = vmatmul.mubr.bf16.vlgmr.msra.gmra.mrb[12].mxu0 %v6481_v52  ;;  %v6052_v21 = vld [vmem:[#allocation11 + $0x198] sm:$0xff]  }
 0x33f   :  { %4485 = vmatmul.mubr.bf16.vlgmr.msra.gmra.mrb[12].mxu1 %v6481_v52  ;;  %5849 = vmatpush3.bf16.msra.mxu0 %v6007_v62  ;;  %v6019_v52 = vld [vmem:[#allocation11 + $0x18] sm:$0xff]   ;;  %v6055_v62 = vld [vmem:[#allocation11 + $0x120] sm:$0xff]  }
 0x340   :  { %5060 = vmatprep.mubr.bf16.mxu0 %v4502_v24  ;;  %5871 = vmatpush3.bf16.msra.mxu1 %v6008_v63  ;;  %v6056_v63 = vld [vmem:[#allocation11 + $0x1a0] sm:$0xff]   ;;  %v6058_v24 = vld [vmem:[#allocation11 + $0x1e8] sm:$0xff]  }
 0x341   :  { %5100 = vmatprep.mubr.bf16.mxu1 %v4504_v58  ;;  %5850 = vmatprep.subr.bf16.mxu0 %v6009_v2  ;;  %v6057_v2 = vld [vmem:[#allocation11 + $0x168] sm:$0xff]  }
 0x342   :  { %5872 = vmatprep.subr.bf16.mxu1 %v6010_v25  ;;  %v6059_v25 = vld [vmem:[#allocation11 + $0x128] sm:$0xff]  }
 0x343   :  { %5851 = vmatpush3.bf16.msra.mxu0 %v6011_v4  ;;  %v6060_v58 = vld [vmem:[#allocation11 + $0x1a8] sm:$0xff]   ;;  %v6061_v4 = vld [vmem:[#allocation11 + $0x170] sm:$0xff]  }
 0x344   :  { %5873 = vmatpush3.bf16.msra.mxu1 %v6012_v5  ;;  %5852 = vmatprep.subr.bf16.mxu0 %v6013_v7  ;;  %v6062_v5 = vld [vmem:[#allocation11 + $0x1f0] sm:$0xff]  }
 0x345   :  { %5874 = vmatprep.subr.bf16.mxu1 %v6014_v35  ;;  %v6063_v7 = vld [vmem:[#allocation11 + $0x130] sm:$0xff]  }
 0x346   :  { %v6064_v35 = vld [vmem:[#allocation11 + $0x1b0] sm:$0xff]  }
 0x347   :  { %5853 = vmatpush3.bf16.msra.mxu0 %v6015_v8  ;;  %v6065_v8 = vld [vmem:[#allocation11 + $0x178] sm:$0xff]  }
 0x348   :  { %5875 = vmatpush3.bf16.msra.mxu1 %v6016_v10  ;;  %5854 = vmatprep.subr.bf16.mxu0 %v6017_v11  ;;  %v6066_v10 = vld [vmem:[#allocation11 + $0x1f8] sm:$0xff]  }
 0x349   :  { %5876 = vmatprep.subr.bf16.mxu1 %v6018_v13  ;;  %v6067_v11 = vld [vmem:[#allocation11 + $0x138] sm:$0xff]  }
 0x34a   :  { %v6068_v13 = vld [vmem:[#allocation11 + $0x1b8] sm:$0xff]  }
 0x34b   :  { %5855 = vmatpush3.bf16.msra.mxu0 %v6019_v52  ;;  %v1256_v52 = vrot.slane %v6507_v0, %v201_v12 }
 0x34c   :  { %5877 = vmatpush3.bf16.msra.mxu1 %v6020_v19  ;;  %5856 = vmatprep.subr.bf16.mxu0 %v6021_v34  ;;  %v1264_v19 = vrot.slane %v6507_v0, %v209_v3  ;;  %v1260_v34 = vrot.slane %v6507_v0, %v205_v44 }
 0x34d   :  { %5878 = vmatprep.subr.bf16.mxu1 %v6022_v22  ;;  %v1268_v22 = vrot.slane %v6507_v0, %v213_v26 }
 0x34f   :  { %5857 = vmatpush3.bf16.msra.mxu0 %v6023_v23 }
 0x350   :  { %5879 = vmatpush3.bf16.msra.mxu1 %v6024_v18  ;;  %5858 = vmatprep.subr.bf16.mxu0 %v6025_v28 }
 0x351   :  { %5880 = vmatprep.subr.bf16.mxu1 %v6026_v29 }
 0x353   :  { %5859 = vmatpush3.bf16.msra.mxu0 %v6027_v30 }
 0x354   :  { %5881 = vmatpush3.bf16.msra.mxu1 %v6028_v27  ;;  %5860 = vmatprep.subr.bf16.mxu0 %v6029_v33 }
 0x355   :  { %5882 = vmatprep.subr.bf16.mxu1 %v6030_v38 }
 0x357   :  { %5861 = vmatpush3.bf16.msra.mxu0 %v6031_v39 }
 0x358   :  { %5883 = vmatpush3.bf16.msra.mxu1 %v6032_v42  ;;  %5862 = vmatprep.subr.bf16.mxu0 %v6033_v43 }
 0x359   :  { %5884 = vmatprep.subr.bf16.mxu1 %v6034_v45 }
 0x35b   :  { %5863 = vmatpush3.bf16.msra.mxu0 %v6035_v46  ;;  %v5783_v46 = vld [vmem:[#allocation13] ss:$0 sm:$0xff] }
 0x35c   :  { %5885 = vmatpush3.bf16.msra.mxu1 %v6036_v31  ;;  %5892 = vmatprep.subr.bf16.mxu0 %v6037_v48 }
 0x35d   :  { %5914 = vmatprep.subr.bf16.mxu1 %v6038_v53 }
 0x35e   :  { %5061 = vmatmul.mubr.bf16.vlgmr.msra.gmra.mrb[16].mxu0 %v4501_v50 }
 0x35f   :  { %5101 = vmatmul.mubr.bf16.vlgmr.msra.gmra.mrb[16].mxu1 %v4503_v20  ;;  %5893 = vmatpush3.bf16.msra.mxu0 %v6039_v6 }
 0x360   :  { %5915 = vmatpush3.bf16.msra.mxu1 %v6040_v51  ;;  %5894 = vmatprep.subr.bf16.mxu0 %v6041_v1 }
 0x361   :  { %5916 = vmatprep.subr.bf16.mxu1 %v6042_v36 }
 0x363   :  { %5895 = vmatpush3.bf16.msra.mxu0 %v6043_v55 }
 0x364   :  { %5917 = vmatpush3.bf16.msra.mxu1 %v6044_v16  ;;  %5896 = vmatprep.subr.bf16.mxu0 %v6045_v56 }
 0x365   :  { %5918 = vmatprep.subr.bf16.mxu1 %v6046_v41 }
 0x367   :  { %5897 = vmatpush3.bf16.msra.mxu0 %v6047_v57 }
 0x368   :  { %5919 = vmatpush3.bf16.msra.mxu1 %v6048_v9  ;;  %5898 = vmatprep.subr.bf16.mxu0 %v6049_v17 }
 0x369   :  { %5920 = vmatprep.subr.bf16.mxu1 %v6050_v59 }
 0x36b   :  { %5899 = vmatpush3.bf16.msra.mxu0 %v6051_v54 }
 0x36c   :  { %5921 = vmatpush3.bf16.msra.mxu1 %v6052_v21  ;;  %5900 = vmatprep.subr.bf16.mxu0 %v6053_v60 }
 0x36d   :  { %5922 = vmatprep.subr.bf16.mxu1 %v6054_v61 }
 0x36f   :  { %5901 = vmatpush3.bf16.msra.mxu0 %v6055_v62 }
 0x370   :  { %5923 = vmatpush3.bf16.msra.mxu1 %v6056_v63  ;;  %5902 = vmatprep.subr.bf16.mxu0 %v6057_v2 }
 0x371   :  { %5924 = vmatprep.subr.bf16.mxu1 %v6058_v24 }
 0x373   :  { %5903 = vmatpush3.bf16.msra.mxu0 %v6059_v25 }
 0x374   :  { %5925 = vmatpush3.bf16.msra.mxu1 %v6060_v58  ;;  %5904 = vmatprep.subr.bf16.mxu0 %v6061_v4 }
 0x375   :  { %5926 = vmatprep.subr.bf16.mxu1 %v6062_v5 }
 0x377   :  { %5905 = vmatpush3.bf16.msra.mxu0 %v6063_v7 }
 0x378   :  { %5927 = vmatpush3.bf16.msra.mxu1 %v6064_v35  ;;  %5906 = vmatprep.subr.bf16.mxu0 %v6065_v8 }
 0x379   :  { %5928 = vmatprep.subr.bf16.mxu1 %v6066_v10 }
 0x37b   :  { %5907 = vmatpush3.bf16.msra.mxu0 %v6067_v11 }
 0x37c   :  { %5929 = vmatpush3.bf16.msra.mxu1 %v6068_v13 }
 0x411   :  { %v4322_v23 = vpop.f32.mrb[12].mxu0 }
 0x412   :  { %v5940_v18 = vadd.f32 %v4322_v23, %v1256_v52  ;;  %v4486_v28 = vpop.f32.mrb[12].mxu1  ;;  %v4324_v29 = vpop.f32.mrb[13].mxu0 }
 0x413   :  { %v5942_v30 = vadd.f32 %v4486_v28, %v1264_v19  ;;  %v5941_v32 = vadd.f32 %v4324_v29, %v1260_v34  ;;  %v4488_v27 = vpop.f32.mrb[13].mxu1  ;;  %v4326_v12 = vpop.f32.mrb[14].mxu0 }
 0x414   :  { %v4497_v33 = vmax.f32 %v5940_v18, 0.0  ;;  %v5943_v37 = vadd.f32 %v4488_v27, %v1268_v22  ;;  %v4490_v38 = vpop.f32.mrb[14].mxu1  ;;  %v4327_v3 = vpop.f32.mrb[15].mxu0 }
 0x415   :  { %v4499_v39 = vmax.f32 %v5942_v30, 0.0  ;;  %v4498_v40 = vmax.f32 %v5941_v32, 0.0  ;;  %v4491_v42 = vpop.f32.mrb[15].mxu1 }
 0x416   :  { %v4500_v44 = vmax.f32 %v5943_v37, 0.0  ;;  %v4505_v14 = vpack.c.bf16 %v4497_v33, %v4497_v33 }
 0x417   :  { %v4506_v43 = vpack.c.bf16 %v4498_v40, %v4498_v40  ;;  %v4507_v26 = vpack.c.bf16 %v4499_v39, %v4499_v39 }
 0x418   :  { %v4508_v15 = vpack.c.bf16 %v4500_v44, %v4500_v44 }
 0x419   :  { %5140 = vmatprep.mubr.bf16.mxu0 %v4506_v43 }
 0x41a   :  { %5180 = vmatprep.mubr.bf16.mxu1 %v4508_v15  ;;  %5141 = vmatmul.mubr.bf16.vlgmr.msra.gmra.mrb[20].mxu0 %v4505_v14 }
 0x41b   :  { %5181 = vmatmul.mubr.bf16.vlgmr.msra.gmra.mrb[20].mxu1 %v4507_v26 }
 0x431   :  { %v5864_v0 = vpop.f32.mrb[16].mxu0 }
 0x432   :  { %v5886_v45 = vpop.f32.mrb[16].mxu1  ;;  %v5865_v47 = vpop.f32.mrb[17].mxu0 }
 0x433   :  { %v5866_v31 = vadd.f32 %v5865_v47, %v5864_v0  ;;  %v5887_v48 = vpop.f32.mrb[17].mxu1  ;;  %v5867_v49 = vpop.f32.mrb[18].mxu0 }
 0x434   :  { %v5888_v53 = vadd.f32 %v5887_v48, %v5886_v45  ;;  %v5889_v6 = vpop.f32.mrb[18].mxu1  ;;  %v5868_v50 = vpop.f32.mrb[19].mxu0 }
 0x435   :  { %v5063_v51 = vadd.f32 %v5866_v31, %v5783_v46  ;;  %v5890_v1 = vpop.f32.mrb[19].mxu1 }
 0x437   :  { %v5103_v20 = vadd.f32 %v5888_v53, %v5063_v51 }
 0x4ed   :  { %v5908_v36 = vpop.f32.mrb[20].mxu0 }
 0x4ee   :  { %v5930_v55 = vpop.f32.mrb[20].mxu1  ;;  %v5909_v16 = vpop.f32.mrb[21].mxu0 }
 0x4ef   :  { %v5910_v56 = vadd.f32 %v5909_v16, %v5908_v36  ;;  %v5931_v41 = vpop.f32.mrb[21].mxu1  ;;  %v5911_v57 = vpop.f32.mrb[22].mxu0 }
 0x4f0   :  { %v5932_v9 = vadd.f32 %v5931_v41, %v5930_v55  ;;  %v5933_v17 = vpop.f32.mrb[22].mxu1  ;;  %v5912_v59 = vpop.f32.mrb[23].mxu0 }
 0x4f1   :  { %v5143_v54 = vadd.f32 %v5910_v56, %v5103_v20  ;;  %v5934_v21 = vpop.f32.mrb[23].mxu1 }
 0x4f3   :  { %v5183_v60 = vadd.f32 %v5932_v9, %v5143_v54 }
 0x4f5   :  { %5188 = vst [vmem:[#allocation14] sm:$0xff] %v5183_v60 }
 0x4f6   :  { %6235 = shalt.err (!%p6232_p4)
}
 0x4f7   :  { %s6236_s11 = scalar_lea.hbm %s6558_s7, 128 }
 0x4f8   :  { %p6237_p5 = scmp.ne.s32.totalorder %s6558_s7, %s6236_s11  ;;  %p6240_p6 = scmp.lt.u32.totalorder %s6236_s11, %s6558_s7 }
 0x4fa   :  { %p6242_p7 = pnand %p6240_p6, %p6237_p5 }
 0x4fc   :  { %6245 = shalt.err (!%p6242_p7)
}
 0x4fd   :  { %5198 = dma.vmem_to_hbm [thread:$0]  %s5196_s13, 128, %s6558_s7, [#allocation4]  }
 0x4fe   :  { %6254 = dma.done.wait [#allocation4], 128  }
 0x4ff   :  { %6255 = vsyncadd [#allocation4], 4294967168 }
 0x500   :  { %5202 = vsyncpa [#allocation3], 1 }
 0x501   :  { %5203 = vsyncpa [#allocation6], 1 }
 0x502   :  { %5204 = vsyncpa [#allocation9], 1 }
 0x503   :  { %5205 = vsyncpa [#allocation12], 1 }
 0x504   :  { %5206 = vsyncpa [#allocation4], 1 }

// kernel: tpu_custom_call.1
= control target key start
LH: loop header
LB: loop body
LE: loop exit
PB: predicated region body
PF: predicated region fallthrough
CT: control target
= control target key end

     0   :  { %12 = vsyncpa [#allocation3], 0  ;;  %s6551_s0 = inlined_call_operand.hbm [shape: f32[8,128], index: 0, kind: input, shape index: {}]   ;;  %s6552_s1 = inlined_call_operand.hbm [shape: bf16[128,1024], index: 1, kind: input, shape index: {}]   ;;  %s6553_s2 = inlined_call_operand.hbm [shape: f32[1,1024], index: 2, kind: input, shape index: {}]   ;;  %s6554_s3 = inlined_call_operand.hbm [shape: bf16[1024,1024], index: 3, kind: input, shape index: {}]   ;;  %s6555_s4 = inlined_call_operand.hbm [shape: f32[1,1024], index: 4, kind: input, shape index: {}]   ;;  %s6556_s5 = inlined_call_operand.hbm [shape: bf16[1024,128], index: 5, kind: input, shape index: {}]   ;;  %s6557_s6 = inlined_call_operand.hbm [shape: f32[1,128], index: 6, kind: input, shape index: {}]   ;;  %s6558_s7 = inlined_call_operand.hbm [shape: f32[8,128], index: 7, kind: output, shape index: {}]  }
   0x1   :  { %13 = vsyncpa [#allocation6], 0 }
   0x2   :  { %14 = vsyncpa [#allocation9], 0 }
   0x3   :  { %15 = vsyncpa [#allocation12], 0 }
   0x4   :  { %16 = vsyncpa [#allocation4], 0  ;;  %s6256_s24 = smov [#allocation5]   ;;  %s6070_s28 = scalar_lea.hbm %s6552_s1, 8192 }
   0x5   :  { %s32_s25 = sshll.u32 %s6256_s24, 4  ;;  %p6071_p0 = scmp.ne.s32.totalorder %s6552_s1, %s6070_s28  ;;  %s33_s25 = int_to_ptr.vmem [resolvable:$true] %s32_s25 }
   0x6   :  { %p6074_p1 = scmp.lt.u32.totalorder %s6070_s28, %s6552_s1 }
   0x8   :  { %p6076_p2 = pnand %p6074_p1, %p6071_p0 }
   0xa   :  { %6079 = shalt.err (!%p6076_p2)
}
   0xb   :  { %s6080_s10 = scalar_lea.vmem %s33_s25, 8192  ;;  %p6085_p4 = scmp.lt.s32.totalorder %s33_s25, %s33_s25 }
   0xc   :  { %p6081_p3 = scmp.ne.s32.totalorder %s33_s25, %s6080_s10  ;;  %p6086_p5 = scmp.lt.s32.totalorder %s6080_s10, %s6080_s10 }
   0xe   :  { %p6087_p6 = por %p6086_p5, %p6085_p4 }
  0x10   :  { %p6088_p7 = pnand %p6087_p6, %p6081_p3 }
  0x12   :  { %6091 = shalt.err (!%p6088_p7)
}
  0x13   :  { %s6257_s11 = smov 512   ;;  %s6258_s12 = smov 32  }
  0x14   :  { %38 = dma.hbm_to_vmem [thread:$0]  %s6552_s1, 8192, %s33_s25, [#allocation6], %s6257_s11, %s6257_s11, %s6258_s12  }
  0x15   :  { %s6259_s15 = smov [#allocation8]   ;;  %s6260_s17 = smov [#allocation11]  }
  0x16   :  { %s54_s16 = sshll.u32 %s6259_s15, 4  ;;  %s76_s18 = sshll.u32 %s6260_s17, 4  ;;  %s55_s16 = int_to_ptr.vmem [resolvable:$true] %s54_s16  ;;  %s77_s18 = int_to_ptr.vmem [resolvable:$true] %s76_s18 }
  0x17   :  { %s6092_s21 = scalar_lea.hbm %s6554_s3, 65536 }
  0x18   :  { %p6093_p8 = scmp.ne.s32.totalorder %s6554_s3, %s6092_s21  ;;  %p6096_p9 = scmp.lt.u32.totalorder %s6092_s21, %s6554_s3 }
  0x1a   :  { %p6098_p10 = pnand %p6096_p9, %p6093_p8 }
  0x1c   :  { %6101 = shalt.err (!%p6098_p10)
}
  0x1d   :  { %s6102_s1 = scalar_lea.vmem %s55_s16, 65536  ;;  %p6107_p12 = scmp.lt.s32.totalorder %s55_s16, %s55_s16 }
  0x1e   :  { %p6103_p11 = scmp.ne.s32.totalorder %s55_s16, %s6102_s1  ;;  %p6108_p13 = scmp.lt.s32.totalorder %s6102_s1, %s6102_s1 }
  0x20   :  { %p6109_p0 = por %p6108_p13, %p6107_p12 }
  0x22   :  { %p6110_p1 = pnand %p6109_p0, %p6103_p11 }
  0x24   :  { %6113 = shalt.err (!%p6110_p1)
}
  0x25   :  { %60 = dma.hbm_to_vmem [thread:$0]  %s6554_s3, 65536, %s55_s16, [#allocation9], %s6257_s11, %s6257_s11, %s6258_s12  }
  0x26   :  { %s6114_s30 = scalar_lea.hbm %s6556_s5, 8192 }
  0x27   :  { %p6115_p2 = scmp.ne.s32.totalorder %s6556_s5, %s6114_s30  ;;  %p6118_p3 = scmp.lt.u32.totalorder %s6114_s30, %s6556_s5 }
  0x29   :  { %p6120_p4 = pnand %p6118_p3, %p6115_p2 }
  0x2b   :  { %6123 = shalt.err (!%p6120_p4)
}
  0x2c   :  { %s6124_s14 = scalar_lea.vmem %s77_s18, 8192  ;;  %p6129_p6 = scmp.lt.s32.totalorder %s77_s18, %s77_s18 }
  0x2d   :  { %p6125_p5 = scmp.ne.s32.totalorder %s77_s18, %s6124_s14  ;;  %p6130_p7 = scmp.lt.s32.totalorder %s6124_s14, %s6124_s14 }
  0x2f   :  { %p6131_p8 = por %p6130_p7, %p6129_p6 }
  0x31   :  { %p6132_p9 = pnand %p6131_p8, %p6125_p5 }
  0x33   :  { %6135 = shalt.err (!%p6132_p9)
}
  0x34   :  { %s6261_s3 = smov 64   ;;  %s6262_s11 = smov 4  }
  0x35   :  { %82 = dma.hbm_to_vmem [thread:$0]  %s6556_s5, 8192, %s77_s18, [#allocation12], %s6261_s3, %s6261_s3, %s6262_s11  }
  0x36   :  { %s6263_s16 = smov [#allocation2]   ;;  %s6264_s19 = smov [#allocation7]  }
  0x37   :  { %s23_s17 = sshll.u32 %s6263_s16, 4  ;;  %s45_s20 = sshll.u32 %s6264_s19, 4  ;;  %s24_s17 = int_to_ptr.vmem [resolvable:$true] %s23_s17  ;;  %s46_s20 = int_to_ptr.vmem [resolvable:$true] %s45_s20 }
  0x38   :  { %s6136_s23 = scalar_lea.hbm %s6551_s0, 128 }
  0x39   :  { %p6137_p10 = scmp.ne.s32.totalorder %s6551_s0, %s6136_s23  ;;  %p6140_p11 = scmp.lt.u32.totalorder %s6136_s23, %s6551_s0 }
  0x3b   :  { %p6142_p12 = pnand %p6140_p11, %p6137_p10 }
  0x3d   :  { %6145 = shalt.err (!%p6142_p12)
}
  0x3e   :  { %s6146_s5 = scalar_lea.vmem %s24_s17, 128  ;;  %p6151_p0 = scmp.lt.s32.totalorder %s24_s17, %s24_s17 }
  0x3f   :  { %p6147_p13 = scmp.ne.s32.totalorder %s24_s17, %s6146_s5  ;;  %p6152_p1 = scmp.lt.s32.totalorder %s6146_s5, %s6146_s5 }
  0x41   :  { %p6153_p2 = por %p6152_p1, %p6151_p0 }
  0x43   :  { %p6154_p3 = pnand %p6153_p2, %p6147_p13 }
  0x45   :  { %6157 = shalt.err (!%p6154_p3)
}
  0x46   :  { %26 = dma.hbm_to_vmem [thread:$0]  %s6551_s0, 128, %s24_s17, [#allocation3]  }
  0x47   :  { %s6158_s30 = scalar_lea.hbm %s6553_s2, 128 }
  0x48   :  { %p6159_p4 = scmp.ne.s32.totalorder %s6553_s2, %s6158_s30  ;;  %p6162_p5 = scmp.lt.u32.totalorder %s6158_s30, %s6553_s2 }
  0x4a   :  { %p6164_p6 = pnand %p6162_p5, %p6159_p4 }
  0x4c   :  { %6167 = shalt.err (!%p6164_p6)
}
  0x4d   :  { %s6168_s14 = scalar_lea.vmem %s46_s20, 128  ;;  %p6173_p8 = scmp.lt.s32.totalorder %s46_s20, %s46_s20 }
  0x4e   :  { %p6169_p7 = scmp.ne.s32.totalorder %s46_s20, %s6168_s14  ;;  %p6174_p9 = scmp.lt.s32.totalorder %s6168_s14, %s6168_s14 }
  0x50   :  { %p6175_p10 = por %p6174_p9, %p6173_p8 }
  0x52   :  { %p6176_p11 = pnand %p6175_p10, %p6169_p7 }
  0x54   :  { %6179 = shalt.err (!%p6176_p11)
}
  0x55   :  { %48 = dma.hbm_to_vmem [thread:$0]  %s6553_s2, 128, %s46_s20, [#allocation6]  }
  0x56   :  { %s6265_s11 = smov [#allocation10]   ;;  %s6266_s15 = smov [#allocation13]  }
  0x57   :  { %s67_s12 = sshll.u32 %s6265_s11, 4  ;;  %s89_s16 = sshll.u32 %s6266_s15, 4  ;;  %s68_s12 = int_to_ptr.vmem [resolvable:$true] %s67_s12  ;;  %s90_s16 = int_to_ptr.vmem [resolvable:$true] %s89_s16 }
  0x58   :  { %s6180_s21 = scalar_lea.hbm %s6555_s4, 128 }
  0x59   :  { %p6181_p12 = scmp.ne.s32.totalorder %s6555_s4, %s6180_s21  ;;  %p6184_p13 = scmp.lt.u32.totalorder %s6180_s21, %s6555_s4 }
  0x5b   :  { %p6186_p0 = pnand %p6184_p13, %p6181_p12 }
  0x5d   :  { %6189 = shalt.err (!%p6186_p0)
}
  0x5e   :  { %s6190_s2 = scalar_lea.vmem %s68_s12, 128  ;;  %p6195_p2 = scmp.lt.s32.totalorder %s68_s12, %s68_s12 }
  0x5f   :  { %p6191_p1 = scmp.ne.s32.totalorder %s68_s12, %s6190_s2  ;;  %p6196_p3 = scmp.lt.s32.totalorder %s6190_s2, %s6190_s2 }
  0x61   :  { %p6197_p4 = por %p6196_p3, %p6195_p2 }
  0x63   :  { %p6198_p5 = pnand %p6197_p4, %p6191_p1 }
  0x65   :  { %6201 = shalt.err (!%p6198_p5)
}
  0x66   :  { %70 = dma.hbm_to_vmem [thread:$0]  %s6555_s4, 128, %s68_s12, [#allocation9]  }
  0x67   :  { %s6202_s18 = scalar_lea.hbm %s6557_s6, 16 }
  0x68   :  { %p6203_p6 = scmp.ne.s32.totalorder %s6557_s6, %s6202_s18  ;;  %p6206_p7 = scmp.lt.u32.totalorder %s6202_s18, %s6557_s6 }
  0x6a   :  { %p6208_p8 = pnand %p6206_p7, %p6203_p6 }
  0x6c   :  { %6211 = shalt.err (!%p6208_p8)
}
  0x6d   :  { %s6212_s8 = scalar_lea.vmem %s90_s16, 16  ;;  %s6216_s9 = scalar_lea.vmem %s90_s16, 32 }
  0x6e   :  { %p6213_p9 = scmp.ne.s32.totalorder %s90_s16, %s6212_s8  ;;  %p6217_p10 = scmp.lt.s32.totalorder %s90_s16, %s90_s16 }
  0x6f   :  { %p6218_p11 = scmp.lt.s32.totalorder %s6216_s9, %s6212_s8 }
  0x71   :  { %p6219_p12 = por %p6218_p11, %p6217_p10 }
  0x73   :  { %p6220_p13 = pnand %p6219_p12, %p6213_p9 }
  0x75   :  { %6223 = shalt.err (!%p6220_p13)
}
  0x76   :  { %92 = dma.hbm_to_vmem [thread:$0]  %s6557_s6, 16, %s90_s16, [#allocation12]  }
  0x77   :  { %6246 = dma.done.wait [#allocation3], 128  }
  0x78   :  { %6247 = vsyncadd [#allocation3], 4294967168 }
  0x79   :  { %6248 = dma.done.wait [#allocation6], 8320  }
  0x7a   :  { %6249 = vsyncadd [#allocation6], 4294958976 }
  0x7b   :  { %6250 = dma.done.wait [#allocation9], 65664  }
  0x7c   :  { %6251 = vsyncadd [#allocation9], 4294901632 }
  0x7d   :  { %6252 = dma.done.wait [#allocation12], 8208  }
  0x7e   :  { %6253 = vsyncadd [#allocation12], 4294959088  ;;  %v6267_v0 = vmov 0   ;;  %v117_v1 = vld [vmem:[#allocation5] sm:$0xff]  ;;  %v118_v14 = vld [vmem:[#allocation5 + $0x8] sm:$0xff]  ;;  %s6268_s6 = smov [#allocation14]  }
  0x7f   :  { %575 = vmatprep.mubr.bf16.mxu0 %v6267_v0  ;;  %616 = vmatprep.mubr.bf16.mxu1 %v6267_v0  ;;  %v121_v2 = vld [vmem:[#allocation5 + $0x20] sm:$0xff]  ;;  %v122_v15 = vld [vmem:[#allocation5 + $0x28] sm:$0xff]  ;;  %v119_v58 = vld [vmem:[#allocation5 + $0x10] sm:$0xff]  ;;  %s5195_s13 = sshll.u32 %s6268_s6, 4  ;;  %s5196_s13 = int_to_ptr.vmem [resolvable:$true] %s5195_s13 }
  0x80   :  { %v125_v3 = vld [vmem:[#allocation5 + $0x40] sm:$0xff]  ;;  %v5208_v4 = vcombine.high %v117_v1, %v121_v2  ;;  %v5207_v5 = vcombine.low %v117_v1, %v121_v2  ;;  %v126_v16 = vld [vmem:[#allocation5 + $0x48] sm:$0xff]  ;;  %v5210_v18 = vcombine.high %v118_v14, %v122_v15  ;;  %v5209_v19 = vcombine.low %v118_v14, %v122_v15  ;;  %v123_v59 = vld [vmem:[#allocation5 + $0x30] sm:$0xff]  ;;  %s6224_s14 = scalar_lea.vmem %s5196_s13, 128  ;;  %p6229_p1 = scmp.lt.s32.totalorder %s5196_s13, %s5196_s13 }
  0x81   :  { %v129_v6 = vld [vmem:[#allocation5 + $0x60] sm:$0xff]  ;;  %v130_v17 = vld [vmem:[#allocation5 + $0x68] sm:$0xff]  ;;  %v115_v62 = vld [vmem:[#allocation2] sm:$0xff]  ;;  %v5212_v2 = vcombine.high %v119_v58, %v123_v59  ;;  %p6225_p0 = scmp.ne.s32.totalorder %s5196_s13, %s6224_s14  ;;  %p6230_p2 = scmp.lt.s32.totalorder %s6224_s14, %s6224_s14 }
  0x82   :  { %v5216_v7 = vcombine.high %v125_v3, %v129_v6  ;;  %v133_v8 = vld [vmem:[#allocation5 + $0x80] sm:$0xff]  ;;  %543 = vmatprep.subr.bf16.mxu0 %v5208_v4  ;;  %v5215_v10 = vcombine.low %v125_v3, %v129_v6  ;;  %v5218_v20 = vcombine.high %v126_v16, %v130_v17  ;;  %v134_v22 = vld [vmem:[#allocation5 + $0x88] sm:$0xff]  ;;  %584 = vmatprep.subr.bf16.mxu1 %v5210_v18  ;;  %v127_v4 = vld [vmem:[#allocation5 + $0x50] sm:$0xff] }
  0x83   :  { %v137_v9 = vld [vmem:[#allocation5 + $0xa0] sm:$0xff]  ;;  %544 = vmatpush1.bf16.msra.mxu0 %v5207_v5  ;;  %v138_v23 = vld [vmem:[#allocation5 + $0xa8] sm:$0xff]  ;;  %585 = vmatpush1.bf16.msra.mxu1 %v5209_v19  ;;  %v5217_v27 = vcombine.low %v126_v16, %v130_v17  ;;  %v131_v5 = vld [vmem:[#allocation5 + $0x70] sm:$0xff]  ;;  %v6395_v6 = vpack.c.bf16 %v115_v62, %v115_v62  ;;  %p6231_p3 = por %p6230_p2, %p6229_p1 }
  0x84   :  { %545 = vmatprep.subr.bf16.mxu0 %v5216_v7  ;;  %v5224_v11 = vcombine.high %v133_v8, %v137_v9  ;;  %v141_v12 = vld [vmem:[#allocation5 + $0xc0] sm:$0xff]  ;;  %v5223_v21 = vcombine.low %v133_v8, %v137_v9  ;;  %586 = vmatprep.subr.bf16.mxu1 %v5218_v20  ;;  %v5226_v28 = vcombine.high %v134_v22, %v138_v23  ;;  %v142_v30 = vld [vmem:[#allocation5 + $0xc8] sm:$0xff]  ;;  %v120_v9 = vld [vmem:[#allocation5 + $0x18] sm:$0xff] }
  0x85   :  { %v145_v13 = vld [vmem:[#allocation5 + $0xe0] sm:$0xff]  ;;  %v146_v31 = vld [vmem:[#allocation5 + $0xe8] sm:$0xff]  ;;  %v5225_v35 = vcombine.low %v134_v22, %v138_v23  ;;  %v5211_v8 = vcombine.low %v119_v58, %v123_v59  ;;  %v139_v14 = vld [vmem:[#allocation5 + $0xb0] sm:$0xff]  ;;  %v5219_v16 = vcombine.low %v127_v4, %v131_v5  ;;  %p6232_p4 = pnand %p6231_p3, %p6225_p0 }
  0x86   :  { %v5232_v24 = vcombine.high %v141_v12, %v145_v13  ;;  %v149_v25 = vld [vmem:[#allocation5 + $0x100] sm:$0xff]  ;;  %v5231_v29 = vcombine.low %v141_v12, %v145_v13  ;;  %v5234_v36 = vcombine.high %v142_v30, %v146_v31  ;;  %v150_v38 = vld [vmem:[#allocation5 + $0x108] sm:$0xff]  ;;  %v5233_v43 = vcombine.low %v142_v30, %v146_v31  ;;  %v135_v13 = vld [vmem:[#allocation5 + $0x90] sm:$0xff] }
  0x87   :  { %546 = vmatpush1.bf16.msra.mxu0 %v5215_v10  ;;  %v153_v26 = vld [vmem:[#allocation5 + $0x120] sm:$0xff]  ;;  %587 = vmatpush1.bf16.msra.mxu1 %v5217_v27  ;;  %v154_v39 = vld [vmem:[#allocation5 + $0x128] sm:$0xff]  ;;  %v124_v10 = vld [vmem:[#allocation5 + $0x38] sm:$0xff]  ;;  %v5228_v19 = vcombine.high %v135_v13, %v139_v14 }
  0x88   :  { %547 = vmatprep.subr.bf16.mxu0 %v5224_v11  ;;  %v5240_v32 = vcombine.high %v149_v25, %v153_v26  ;;  %v157_v33 = vld [vmem:[#allocation5 + $0x140] sm:$0xff]  ;;  %588 = vmatprep.subr.bf16.mxu1 %v5226_v28  ;;  %v5239_v37 = vcombine.low %v149_v25, %v153_v26  ;;  %v5242_v44 = vcombine.high %v150_v38, %v154_v39  ;;  %v158_v46 = vld [vmem:[#allocation5 + $0x148] sm:$0xff]  ;;  %v128_v17 = vld [vmem:[#allocation5 + $0x58] sm:$0xff] }
  0x89   :  { %v161_v34 = vld [vmem:[#allocation5 + $0x160] sm:$0xff]  ;;  %v162_v47 = vld [vmem:[#allocation5 + $0x168] sm:$0xff]  ;;  %v5241_v51 = vcombine.low %v150_v38, %v154_v39  ;;  %v5220_v11 = vcombine.high %v127_v4, %v131_v5  ;;  %v5214_v15 = vcombine.high %v120_v9, %v124_v10  ;;  %v132_v18 = vld [vmem:[#allocation5 + $0x78] sm:$0xff]  ;;  %v5213_v22 = vcombine.low %v120_v9, %v124_v10 }
  0x8a   :  { %v5248_v40 = vcombine.high %v157_v33, %v161_v34  ;;  %v165_v41 = vld [vmem:[#allocation5 + $0x180] sm:$0xff]  ;;  %v5247_v45 = vcombine.low %v157_v33, %v161_v34  ;;  %v5250_v52 = vcombine.high %v158_v46, %v162_v47  ;;  %v166_v54 = vld [vmem:[#allocation5 + $0x188] sm:$0xff]  ;;  %v5249_v57 = vcombine.low %v158_v46, %v162_v47  ;;  %v143_v20 = vld [vmem:[#allocation5 + $0xd0] sm:$0xff] }
  0x8b   :  { %548 = vmatpush1.bf16.msra.mxu0 %v5223_v21  ;;  %v169_v42 = vld [vmem:[#allocation5 + $0x1a0] sm:$0xff]  ;;  %589 = vmatpush1.bf16.msra.mxu1 %v5225_v35  ;;  %v170_v55 = vld [vmem:[#allocation5 + $0x1a8] sm:$0xff]  ;;  %v147_v21 = vld [vmem:[#allocation5 + $0xf0] sm:$0xff]  ;;  %v5222_v23 = vcombine.high %v128_v17, %v132_v18  ;;  %v5221_v30 = vcombine.low %v128_v17, %v132_v18 }
  0x8c   :  { %549 = vmatprep.subr.bf16.mxu0 %v5232_v24  ;;  %590 = vmatprep.subr.bf16.mxu1 %v5234_v36  ;;  %v5256_v48 = vcombine.high %v165_v41, %v169_v42  ;;  %v173_v49 = vld [vmem:[#allocation5 + $0x1c0] sm:$0xff]  ;;  %v5255_v53 = vcombine.low %v165_v41, %v169_v42  ;;  %v5258_v60 = vcombine.high %v166_v54, %v170_v55  ;;  %v174_v63 = vld [vmem:[#allocation5 + $0x1c8] sm:$0xff]  ;;  %v151_v25 = vld [vmem:[#allocation5 + $0x110] sm:$0xff] }
  0x8d   :  { %v177_v50 = vld [vmem:[#allocation5 + $0x1e0] sm:$0xff]  ;;  %v178_v1 = vld [vmem:[#allocation5 + $0x1e8] sm:$0xff]  ;;  %v5257_v3 = vcombine.low %v166_v54, %v170_v55  ;;  %v5227_v24 = vcombine.low %v135_v13, %v139_v14  ;;  %v155_v26 = vld [vmem:[#allocation5 + $0x130] sm:$0xff]  ;;  %v5235_v34 = vcombine.low %v143_v20, %v147_v21 }
  0x8e   :  { %v5264_v56 = vcombine.high %v173_v49, %v177_v50  ;;  %v5263_v61 = vcombine.low %v173_v49, %v177_v50  ;;  %v5266_v7 = vcombine.high %v174_v63, %v178_v1  ;;  %v5265_v12 = vcombine.low %v174_v63, %v178_v1  ;;  %v136_v27 = vld [vmem:[#allocation5 + $0x98] sm:$0xff]  ;;  %v159_v35 = vld [vmem:[#allocation5 + $0x150] sm:$0xff]  ;;  %v723_v58 = vld [vmem:[#allocation8] sm:$0xff] }
  0x8f   :  { %550 = vmatpush1.bf16.msra.mxu0 %v5231_v29  ;;  %591 = vmatpush1.bf16.msra.mxu1 %v5233_v43  ;;  %v140_v28 = vld [vmem:[#allocation5 + $0xb8] sm:$0xff]  ;;  %v5236_v29 = vcombine.high %v143_v20, %v147_v21  ;;  %v163_v36 = vld [vmem:[#allocation5 + $0x170] sm:$0xff]  ;;  %v5243_v42 = vcombine.low %v151_v25, %v155_v26  ;;  %v727_v59 = vld [vmem:[#allocation8 + $0x20] sm:$0xff] }
  0x90   :  { %551 = vmatprep.subr.bf16.mxu0 %v5240_v32  ;;  %592 = vmatprep.subr.bf16.mxu1 %v5242_v44  ;;  %v144_v31 = vld [vmem:[#allocation5 + $0xd8] sm:$0xff]  ;;  %v5230_v33 = vcombine.high %v136_v27, %v140_v28  ;;  %v5229_v38 = vcombine.low %v136_v27, %v140_v28  ;;  %v167_v43 = vld [vmem:[#allocation5 + $0x190] sm:$0xff]  ;;  %v5251_v49 = vcombine.low %v159_v35, %v163_v36  ;;  %v735_v4 = vld [vmem:[#allocation8 + $0x60] sm:$0xff] }
  0x91   :  { %v148_v32 = vld [vmem:[#allocation5 + $0xf8] sm:$0xff]  ;;  %v171_v44 = vld [vmem:[#allocation5 + $0x1b0] sm:$0xff]  ;;  %v5272_v5 = vcombine.high %v723_v58, %v727_v59  ;;  %v743_v13 = vld [vmem:[#allocation8 + $0xa0] sm:$0xff] }
  0x92   :  { %v152_v39 = vld [vmem:[#allocation5 + $0x118] sm:$0xff]  ;;  %v5238_v41 = vcombine.high %v144_v31, %v148_v32  ;;  %v175_v50 = vld [vmem:[#allocation5 + $0x1d0] sm:$0xff]  ;;  %v747_v20 = vld [vmem:[#allocation8 + $0xc0] sm:$0xff] }
  0x93   :  { %552 = vmatpush1.bf16.msra.mxu0 %v5239_v37  ;;  %593 = vmatpush1.bf16.msra.mxu1 %v5241_v51  ;;  %v5244_v37 = vcombine.high %v151_v25, %v155_v26  ;;  %v160_v46 = vld [vmem:[#allocation5 + $0x158] sm:$0xff]  ;;  %v179_v51 = vld [vmem:[#allocation5 + $0x1f0] sm:$0xff]  ;;  %v751_v21 = vld [vmem:[#allocation8 + $0xe0] sm:$0xff] }
  0x94   :  { %553 = vmatprep.subr.bf16.mxu0 %v5248_v40  ;;  %594 = vmatprep.subr.bf16.mxu1 %v5250_v52  ;;  %v156_v40 = vld [vmem:[#allocation5 + $0x138] sm:$0xff]  ;;  %v5260_v52 = vcombine.high %v167_v43, %v171_v44  ;;  %v728_v9 = vld [vmem:[#allocation8 + $0x28] sm:$0xff]  ;;  %v755_v28 = vld [vmem:[#allocation8 + $0x100] sm:$0xff] }
  0x95   :  { %v164_v47 = vld [vmem:[#allocation5 + $0x178] sm:$0xff]  ;;  %v736_v17 = vld [vmem:[#allocation8 + $0x68] sm:$0xff] }
  0x96   :  { %v168_v54 = vld [vmem:[#allocation5 + $0x198] sm:$0xff]  ;;  %v744_v25 = vld [vmem:[#allocation8 + $0xa8] sm:$0xff] }
  0x97   :  { %554 = vmatpush1.bf16.msra.mxu0 %v5247_v45  ;;  %595 = vmatpush1.bf16.msra.mxu1 %v5249_v57  ;;  %v5237_v45 = vcombine.low %v144_v31, %v148_v32  ;;  %v172_v55 = vld [vmem:[#allocation5 + $0x1b8] sm:$0xff]  ;;  %v5259_v57 = vcombine.low %v167_v43, %v171_v44  ;;  %v748_v32 = vld [vmem:[#allocation8 + $0xc8] sm:$0xff]  ;;  %v771_v43 = vld [vmem:[#allocation8 + $0x180] sm:$0xff] }
  0x98   :  { %555 = vmatprep.subr.bf16.mxu0 %v5256_v48  ;;  %596 = vmatprep.subr.bf16.mxu1 %v5258_v60  ;;  %v5246_v48 = vcombine.high %v152_v39, %v156_v40  ;;  %v5268_v60 = vcombine.high %v175_v50, %v179_v51  ;;  %v176_v62 = vld [vmem:[#allocation5 + $0x1d8] sm:$0xff]  ;;  %v5262_v1 = vcombine.high %v168_v54, %v172_v55  ;;  %v775_v44 = vld [vmem:[#allocation8 + $0x1a0] sm:$0xff] }
  0x99   :  { %v180_v63 = vld [vmem:[#allocation5 + $0x1f8] sm:$0xff] }
  0x9a   :  { %v5270_v10 = vcombine.high %v176_v62, %v180_v63 }
  0x9b   :  { %556 = vmatpush1.bf16.msra.mxu0 %v5255_v53  ;;  %597 = vmatpush1.bf16.msra.mxu1 %v5257_v3  ;;  %v5245_v53 = vcombine.low %v152_v39, %v156_v40  ;;  %v731_v3 = vld [vmem:[#allocation8 + $0x40] sm:$0xff]  ;;  %v756_v40 = vld [vmem:[#allocation8 + $0x108] sm:$0xff] }
  0x9c   :  { %557 = vmatprep.subr.bf16.mxu0 %v5264_v56  ;;  %598 = vmatprep.subr.bf16.mxu1 %v5266_v7  ;;  %v5254_v56 = vcombine.high %v160_v46, %v164_v47  ;;  %v5261_v7 = vcombine.low %v168_v54, %v172_v55  ;;  %v5280_v14 = vcombine.high %v731_v3, %v735_v4 }
  0x9d   :  { %v5319_v55 = vcombine.low %v771_v43, %v775_v44 }
  0x9f   :  { %558 = vmatpush1.bf16.msra.mxu0 %v5263_v61  ;;  %599 = vmatpush1.bf16.msra.mxu1 %v5265_v12  ;;  %v5253_v61 = vcombine.low %v160_v46, %v164_v47  ;;  %v739_v12 = vld [vmem:[#allocation8 + $0x80] sm:$0xff] }
  0xa0   :  { %625 = vmatprep.subr.bf16.mxu0 %v5212_v2  ;;  %666 = vmatprep.subr.bf16.mxu1 %v5214_v15  ;;  %v5267_v2 = vcombine.low %v175_v50, %v179_v51  ;;  %v5269_v15 = vcombine.low %v176_v62, %v180_v63  ;;  %v5287_v27 = vcombine.low %v739_v12, %v743_v13 }
  0xa1   :  { %v5320_v50 = vcombine.high %v771_v43, %v775_v44 }
  0xa2   :  { %576 = vmatmul.mubr.bf16.vlgmr.msra.gmra.mrb[0].mxu0 %v6395_v6  ;;  %617 = vmatmul.mubr.bf16.vlgmr.msra.gmra.mrb[0].mxu1 %v6395_v6 }
  0xa3   :  { %626 = vmatpush1.bf16.msra.mxu0 %v5211_v8  ;;  %657 = vmatprep.mubr.bf16.mxu0 %v6267_v0  ;;  %v724_v8 = vld [vmem:[#allocation8 + $0x8] sm:$0xff] }
  0xa4   :  { %627 = vmatprep.subr.bf16.mxu0 %v5220_v11  ;;  %667 = vmatpush1.bf16.msra.mxu1 %v5213_v22  ;;  %v5271_v11 = vcombine.low %v723_v58, %v727_v59  ;;  %v5274_v18 = vcombine.high %v724_v8, %v728_v9  ;;  %v5288_v22 = vcombine.high %v739_v12, %v743_v13 }
  0xa5   :  { %698 = vmatprep.mubr.bf16.mxu1 %v6267_v0  ;;  %668 = vmatprep.subr.bf16.mxu1 %v5222_v23  ;;  %v5252_v0 = vcombine.high %v159_v35, %v163_v36  ;;  %v5273_v23 = vcombine.low %v724_v8, %v728_v9  ;;  %v5295_v35 = vcombine.low %v747_v20, %v751_v21  ;;  %v763_v36 = vld [vmem:[#allocation8 + $0x140] sm:$0xff] }
  0xa7   :  { %628 = vmatpush1.bf16.msra.mxu0 %v5219_v16  ;;  %v732_v16 = vld [vmem:[#allocation8 + $0x48] sm:$0xff] }
  0xa8   :  { %629 = vmatprep.subr.bf16.mxu0 %v5228_v19  ;;  %669 = vmatpush1.bf16.msra.mxu1 %v5221_v30  ;;  %v5279_v19 = vcombine.low %v731_v3, %v735_v4  ;;  %v5282_v26 = vcombine.high %v732_v16, %v736_v17  ;;  %v5296_v30 = vcombine.high %v747_v20, %v751_v21 }
  0xa9   :  { %670 = vmatprep.subr.bf16.mxu1 %v5230_v33  ;;  %v5281_v31 = vcombine.low %v732_v16, %v736_v17  ;;  %v752_v33 = vld [vmem:[#allocation8 + $0xe8] sm:$0xff] }
  0xab   :  { %630 = vmatpush1.bf16.msra.mxu0 %v5227_v24  ;;  %v740_v24 = vld [vmem:[#allocation8 + $0x88] sm:$0xff] }
  0xac   :  { %631 = vmatprep.subr.bf16.mxu0 %v5236_v29  ;;  %671 = vmatpush1.bf16.msra.mxu1 %v5229_v38  ;;  %v759_v29 = vld [vmem:[#allocation8 + $0x120] sm:$0xff]  ;;  %v5289_v39 = vcombine.low %v740_v24, %v744_v25 }
  0xad   :  { %672 = vmatprep.subr.bf16.mxu1 %v5238_v41  ;;  %v5304_v38 = vcombine.high %v755_v28, %v759_v29  ;;  %v760_v41 = vld [vmem:[#allocation8 + $0x128] sm:$0xff] }
  0xae   :  { %v5306_v46 = vcombine.high %v756_v40, %v760_v41  ;;  %v5305_v51 = vcombine.low %v756_v40, %v760_v41 }
  0xaf   :  { %632 = vmatpush1.bf16.msra.mxu0 %v5235_v34  ;;  %v5290_v34 = vcombine.high %v740_v24, %v744_v25 }
  0xb0   :  { %633 = vmatprep.subr.bf16.mxu0 %v5244_v37  ;;  %673 = vmatpush1.bf16.msra.mxu1 %v5237_v45  ;;  %v767_v37 = vld [vmem:[#allocation8 + $0x160] sm:$0xff]  ;;  %v5297_v45 = vcombine.low %v748_v32, %v752_v33 }
  0xb1   :  { %674 = vmatprep.subr.bf16.mxu1 %v5246_v48  ;;  %v5311_v47 = vcombine.low %v763_v36, %v767_v37  ;;  %v764_v48 = vld [vmem:[#allocation8 + $0x148] sm:$0xff] }
  0xb3   :  { %634 = vmatpush1.bf16.msra.mxu0 %v5243_v42  ;;  %v5303_v42 = vcombine.low %v755_v28, %v759_v29 }
  0xb4   :  { %635 = vmatprep.subr.bf16.mxu0 %v5252_v0  ;;  %675 = vmatpush1.bf16.msra.mxu1 %v5245_v53  ;;  %v5312_v0 = vcombine.high %v763_v36, %v767_v37  ;;  %v783_v53 = vld [vmem:[#allocation8 + $0x1e0] sm:$0xff] }
  0xb5   :  { %676 = vmatprep.subr.bf16.mxu1 %v5254_v56  ;;  %v772_v56 = vld [vmem:[#allocation8 + $0x188] sm:$0xff] }
  0xb7   :  { %636 = vmatpush1.bf16.msra.mxu0 %v5251_v49  ;;  %v768_v49 = vld [vmem:[#allocation8 + $0x168] sm:$0xff] }
  0xb8   :  { %637 = vmatprep.subr.bf16.mxu0 %v5260_v52  ;;  %677 = vmatpush1.bf16.msra.mxu1 %v5253_v61  ;;  %v779_v52 = vld [vmem:[#allocation8 + $0x1c0] sm:$0xff]  ;;  %v5314_v54 = vcombine.high %v764_v48, %v768_v49  ;;  %v5313_v59 = vcombine.low %v764_v48, %v768_v49  ;;  %v828_v48 = vld [vmem:[#allocation8 + $0x348] sm:$0xff] }
  0xb9   :  { %678 = vmatprep.subr.bf16.mxu1 %v5262_v1  ;;  %v5328_v58 = vcombine.high %v779_v52, %v783_v53  ;;  %v791_v61 = vld [vmem:[#allocation8 + $0x220] sm:$0xff]  ;;  %v5327_v63 = vcombine.low %v779_v52, %v783_v53  ;;  %v780_v1 = vld [vmem:[#allocation8 + $0x1c8] sm:$0xff] }
  0xba   :  { %v832_v49 = vld [vmem:[#allocation8 + $0x368] sm:$0xff]  ;;  %v843_v53 = vld [vmem:[#allocation8 + $0x3c0] sm:$0xff] }
  0xbb   :  { %638 = vmatpush1.bf16.msra.mxu0 %v5259_v57  ;;  %v776_v57 = vld [vmem:[#allocation8 + $0x1a8] sm:$0xff]  ;;  %v5378_v52 = vcombine.high %v828_v48, %v832_v49 }
  0xbc   :  { %639 = vmatprep.subr.bf16.mxu0 %v5268_v60  ;;  %679 = vmatpush1.bf16.msra.mxu1 %v5261_v7  ;;  %v787_v60 = vld [vmem:[#allocation8 + $0x200] sm:$0xff]  ;;  %v5322_v62 = vcombine.high %v772_v56, %v776_v57  ;;  %v5321_v4 = vcombine.low %v772_v56, %v776_v57  ;;  %v836_v56 = vld [vmem:[#allocation8 + $0x388] sm:$0xff] }
  0xbd   :  { %680 = vmatprep.subr.bf16.mxu1 %v5270_v10  ;;  %v5336_v3 = vcombine.high %v787_v60, %v791_v61  ;;  %v799_v7 = vld [vmem:[#allocation8 + $0x260] sm:$0xff]  ;;  %v5335_v9 = vcombine.low %v787_v60, %v791_v61  ;;  %v788_v10 = vld [vmem:[#allocation8 + $0x208] sm:$0xff] }
  0xbe   :  { %v840_v57 = vld [vmem:[#allocation8 + $0x3a8] sm:$0xff]  ;;  %v851_v61 = vld [vmem:[#allocation8 + $0x400] sm:$0xff] }
  0xbf   :  { %640 = vmatpush1.bf16.msra.mxu0 %v5267_v2  ;;  %v784_v2 = vld [vmem:[#allocation8 + $0x1e8] sm:$0xff]  ;;  %v5386_v60 = vcombine.high %v836_v56, %v840_v57 }
  0xc0   :  { %3837 = vmatprep.subr.bf16.mxu0 %v5272_v5  ;;  %681 = vmatpush1.bf16.msra.mxu1 %v5269_v15  ;;  %v795_v5 = vld [vmem:[#allocation8 + $0x240] sm:$0xff]  ;;  %v5330_v8 = vcombine.high %v780_v1, %v784_v2  ;;  %v5329_v13 = vcombine.low %v780_v1, %v784_v2  ;;  %v844_v2 = vld [vmem:[#allocation8 + $0x3c8] sm:$0xff] }
  0xc1   :  { %4001 = vmatprep.subr.bf16.mxu1 %v5274_v18  ;;  %v5344_v12 = vcombine.high %v795_v5, %v799_v7  ;;  %v807_v15 = vld [vmem:[#allocation8 + $0x2a0] sm:$0xff]  ;;  %v5343_v17 = vcombine.low %v795_v5, %v799_v7  ;;  %v796_v18 = vld [vmem:[#allocation8 + $0x248] sm:$0xff] }
  0xc2   :  { %658 = vmatmul.mubr.bf16.vlgmr.msra.gmra.mrb[4].mxu0 %v6395_v6 }
  0xc3   :  { %3838 = vmatpush1.bf16.msra.mxu0 %v5271_v11  ;;  %699 = vmatmul.mubr.bf16.vlgmr.msra.gmra.mrb[4].mxu1 %v6395_v6  ;;  %v5298_v6 = vcombine.high %v748_v32, %v752_v33  ;;  %v792_v11 = vld [vmem:[#allocation8 + $0x228] sm:$0xff] }
  0xc4   :  { %3839 = vmatprep.subr.bf16.mxu0 %v5280_v14  ;;  %4002 = vmatpush1.bf16.msra.mxu1 %v5273_v23  ;;  %v803_v14 = vld [vmem:[#allocation8 + $0x280] sm:$0xff]  ;;  %v5338_v16 = vcombine.high %v788_v10, %v792_v11  ;;  %v5337_v21 = vcombine.low %v788_v10, %v792_v11 }
  0xc5   :  { %4003 = vmatprep.subr.bf16.mxu1 %v5282_v26  ;;  %v5352_v20 = vcombine.high %v803_v14, %v807_v15  ;;  %v815_v23 = vld [vmem:[#allocation8 + $0x2e0] sm:$0xff]  ;;  %v5351_v25 = vcombine.low %v803_v14, %v807_v15  ;;  %v804_v26 = vld [vmem:[#allocation8 + $0x288] sm:$0xff] }
  0xc7   :  { %3840 = vmatpush1.bf16.msra.mxu0 %v5279_v19  ;;  %v800_v19 = vld [vmem:[#allocation8 + $0x268] sm:$0xff] }
  0xc8   :  { %3841 = vmatprep.subr.bf16.mxu0 %v5288_v22  ;;  %4004 = vmatpush1.bf16.msra.mxu1 %v5281_v31  ;;  %v811_v22 = vld [vmem:[#allocation8 + $0x2c0] sm:$0xff]  ;;  %v5346_v24 = vcombine.high %v796_v18, %v800_v19  ;;  %v5345_v29 = vcombine.low %v796_v18, %v800_v19 }
  0xc9   :  { %4005 = vmatprep.subr.bf16.mxu1 %v5290_v34  ;;  %v5360_v28 = vcombine.high %v811_v22, %v815_v23  ;;  %v823_v31 = vld [vmem:[#allocation8 + $0x320] sm:$0xff]  ;;  %v5359_v33 = vcombine.low %v811_v22, %v815_v23  ;;  %v812_v34 = vld [vmem:[#allocation8 + $0x2c8] sm:$0xff] }
  0xcb   :  { %3842 = vmatpush1.bf16.msra.mxu0 %v5287_v27  ;;  %v808_v27 = vld [vmem:[#allocation8 + $0x2a8] sm:$0xff] }
  0xcc   :  { %3843 = vmatprep.subr.bf16.mxu0 %v5296_v30  ;;  %4006 = vmatpush1.bf16.msra.mxu1 %v5289_v39  ;;  %v819_v30 = vld [vmem:[#allocation8 + $0x300] sm:$0xff]  ;;  %v5354_v32 = vcombine.high %v804_v26, %v808_v27  ;;  %v5353_v37 = vcombine.low %v804_v26, %v808_v27 }
  0xcd   :  { %4007 = vmatprep.subr.bf16.mxu1 %v5298_v6  ;;  %v5368_v36 = vcombine.high %v819_v30, %v823_v31  ;;  %v831_v39 = vld [vmem:[#allocation8 + $0x360] sm:$0xff]  ;;  %v5367_v41 = vcombine.low %v819_v30, %v823_v31  ;;  %v820_v6 = vld [vmem:[#allocation8 + $0x308] sm:$0xff] }
  0xce   :  { %v863_v30 = vld [vmem:[#allocation8 + $0x460] sm:$0xff]  ;;  %v860_v31 = vld [vmem:[#allocation8 + $0x448] sm:$0xff] }
  0xcf   :  { %3844 = vmatpush1.bf16.msra.mxu0 %v5295_v35  ;;  %v816_v35 = vld [vmem:[#allocation8 + $0x2e8] sm:$0xff] }
  0xd0   :  { %3845 = vmatprep.subr.bf16.mxu0 %v5304_v38  ;;  %4008 = vmatpush1.bf16.msra.mxu1 %v5297_v45  ;;  %v827_v38 = vld [vmem:[#allocation8 + $0x340] sm:$0xff]  ;;  %v5362_v40 = vcombine.high %v812_v34, %v816_v35  ;;  %v5361_v44 = vcombine.low %v812_v34, %v816_v35 }
  0xd1   :  { %4009 = vmatprep.subr.bf16.mxu1 %v5306_v46  ;;  %v5376_v43 = vcombine.high %v827_v38, %v831_v39  ;;  %v835_v45 = vld [vmem:[#allocation8 + $0x380] sm:$0xff] }
  0xd2   :  { %v839_v46 = vld [vmem:[#allocation8 + $0x3a0] sm:$0xff] }
  0xd3   :  { %3846 = vmatpush1.bf16.msra.mxu0 %v5303_v42  ;;  %v824_v42 = vld [vmem:[#allocation8 + $0x328] sm:$0xff] }
  0xd4   :  { %3847 = vmatprep.subr.bf16.mxu0 %v5312_v0  ;;  %4010 = vmatpush1.bf16.msra.mxu1 %v5305_v51  ;;  %v5370_v0 = vcombine.high %v820_v6, %v824_v42  ;;  %v5369_v51 = vcombine.low %v820_v6, %v824_v42  ;;  %v868_v6 = vld [vmem:[#allocation8 + $0x488] sm:$0xff] }
  0xd5   :  { %4011 = vmatprep.subr.bf16.mxu1 %v5314_v54  ;;  %v847_v54 = vld [vmem:[#allocation8 + $0x3e0] sm:$0xff]  ;;  %v872_v42 = vld [vmem:[#allocation8 + $0x4a8] sm:$0xff] }
  0xd6   :  { %v5391_v1 = vcombine.low %v843_v53, %v847_v54 }
  0xd7   :  { %3848 = vmatpush1.bf16.msra.mxu0 %v5311_v47  ;;  %v5375_v47 = vcombine.low %v827_v38, %v831_v39  ;;  %v867_v39 = vld [vmem:[#allocation8 + $0x480] sm:$0xff] }
  0xd8   :  { %3849 = vmatprep.subr.bf16.mxu0 %v5320_v50  ;;  %4012 = vmatpush1.bf16.msra.mxu1 %v5313_v59  ;;  %v5384_v50 = vcombine.high %v835_v45, %v839_v46  ;;  %v5377_v59 = vcombine.low %v828_v48, %v832_v49  ;;  %v5418_v49 = vcombine.high %v868_v6, %v872_v42 }
  0xd9   :  { %4013 = vmatprep.subr.bf16.mxu1 %v5322_v62  ;;  %v855_v62 = vld [vmem:[#allocation8 + $0x420] sm:$0xff] }
  0xda   :  { %v5399_v5 = vcombine.low %v851_v61, %v855_v62  ;;  %v5400_v7 = vcombine.high %v851_v61, %v855_v62  ;;  %v884_v61 = vld [vmem:[#allocation8 + $0x508] sm:$0xff] }
  0xdb   :  { %3850 = vmatpush1.bf16.msra.mxu0 %v5319_v55  ;;  %v5383_v55 = vcombine.low %v835_v45, %v839_v46  ;;  %v888_v62 = vld [vmem:[#allocation8 + $0x528] sm:$0xff] }
  0xdc   :  { %3851 = vmatprep.subr.bf16.mxu0 %v5328_v58  ;;  %4014 = vmatpush1.bf16.msra.mxu1 %v5321_v4  ;;  %v5392_v58 = vcombine.high %v843_v53, %v847_v54  ;;  %v856_v4 = vld [vmem:[#allocation8 + $0x428] sm:$0xff] }
  0xdd   :  { %4015 = vmatprep.subr.bf16.mxu1 %v5330_v8  ;;  %v880_v53 = vld [vmem:[#allocation8 + $0x4e8] sm:$0xff] }
  0xdf   :  { %3852 = vmatpush1.bf16.msra.mxu0 %v5327_v63  ;;  %v852_v63 = vld [vmem:[#allocation8 + $0x408] sm:$0xff] }
  0xe0   :  { %3853 = vmatprep.subr.bf16.mxu0 %v5336_v3  ;;  %4016 = vmatpush1.bf16.msra.mxu1 %v5329_v13  ;;  %v848_v3 = vld [vmem:[#allocation8 + $0x3e8] sm:$0xff]  ;;  %v5401_v8 = vcombine.low %v852_v63, %v856_v4  ;;  %v183_v13 = vlaneseq }
  0xe1   :  { %4017 = vmatprep.subr.bf16.mxu1 %v5338_v16  ;;  %v5394_v10 = vcombine.high %v844_v2, %v848_v3  ;;  %v5393_v11 = vcombine.low %v844_v2, %v848_v3  ;;  %v6406_v16 = vld [vmem:[#allocation7] sm:$0xff]  ;;  %v5434_v3 = vcombine.high %v884_v61, %v888_v62 }
  0xe2   :  { %v6403_v14 = vshrl.u32 %v183_v13, 7  ;;  %v899_v13 = vld [vmem:[#allocation8 + $0x580] sm:$0xff] }
  0xe3   :  { %3854 = vmatpush1.bf16.msra.mxu0 %v5335_v9  ;;  %v5385_v9 = vcombine.low %v836_v56, %v840_v57  ;;  %v5417_v56 = vcombine.low %v868_v6, %v872_v42 }
  0xe4   :  { %3855 = vmatprep.subr.bf16.mxu0 %v5344_v12  ;;  %4018 = vmatpush1.bf16.msra.mxu1 %v5337_v21  ;;  %v5402_v12 = vcombine.high %v852_v63, %v856_v4  ;;  %v185_v15 = vsub.s32 0, %v6403_v14  ;;  %v197_v21 = vsub.s32 3, %v6403_v14  ;;  %v891_v4 = vld [vmem:[#allocation8 + $0x540] sm:$0xff] }
  0xe5   :  { %4019 = vmatprep.subr.bf16.mxu1 %v5346_v24 }
  0xe6   :  { %v186_v18 = vrot.slane %v6406_v16, %v185_v15 }
  0xe7   :  { %3856 = vmatpush1.bf16.msra.mxu0 %v5343_v17  ;;  %v189_v17 = vsub.s32 1, %v6403_v14 }
  0xe8   :  { %3857 = vmatprep.subr.bf16.mxu0 %v5352_v20  ;;  %4020 = vmatpush1.bf16.msra.mxu1 %v5345_v29 }
  0xe9   :  { %4021 = vmatprep.subr.bf16.mxu1 %v5354_v32  ;;  %v190_v19 = vrot.slane %v6406_v16, %v189_v17  ;;  %v864_v32 = vld [vmem:[#allocation8 + $0x468] sm:$0xff] }
  0xea   :  { %v5410_v38 = vcombine.high %v860_v31, %v864_v32  ;;  %v5409_v46 = vcombine.low %v860_v31, %v864_v32 }
  0xeb   :  { %3858 = vmatpush1.bf16.msra.mxu0 %v5351_v25 }
  0xec   :  { %3859 = vmatprep.subr.bf16.mxu0 %v5360_v28  ;;  %4022 = vmatpush1.bf16.msra.mxu1 %v5353_v37  ;;  %v859_v28 = vld [vmem:[#allocation8 + $0x440] sm:$0xff] }
  0xed   :  { %4023 = vmatprep.subr.bf16.mxu1 %v5362_v40  ;;  %v5408_v37 = vcombine.high %v859_v28, %v863_v30  ;;  %v5407_v45 = vcombine.low %v859_v28, %v863_v30  ;;  %v908_v28 = vld [vmem:[#allocation8 + $0x5c8] sm:$0xff] }
  0xef   :  { %3860 = vmatpush1.bf16.msra.mxu0 %v5359_v33  ;;  %v198_v33 = vrot.slane %v6406_v16, %v197_v21 }
  0xf0   :  { %3861 = vmatprep.subr.bf16.mxu0 %v5368_v36  ;;  %4024 = vmatpush1.bf16.msra.mxu1 %v5361_v44 }
  0xf1   :  { %4025 = vmatprep.subr.bf16.mxu1 %v5370_v0 }
  0xf3   :  { %3862 = vmatpush1.bf16.msra.mxu0 %v5367_v41  ;;  %v871_v41 = vld [vmem:[#allocation8 + $0x4a0] sm:$0xff] }
  0xf4   :  { %3863 = vmatprep.subr.bf16.mxu0 %v5376_v43  ;;  %4026 = vmatpush1.bf16.msra.mxu1 %v5369_v51  ;;  %v5416_v48 = vcombine.high %v867_v39, %v871_v41  ;;  %v879_v51 = vld [vmem:[#allocation8 + $0x4e0] sm:$0xff] }
  0xf5   :  { %4027 = vmatprep.subr.bf16.mxu1 %v5378_v52  ;;  %v876_v52 = vld [vmem:[#allocation8 + $0x4c8] sm:$0xff] }
  0xf7   :  { %3864 = vmatpush1.bf16.msra.mxu0 %v5375_v47 }
  0xf8   :  { %3865 = vmatprep.subr.bf16.mxu0 %v5384_v50  ;;  %4028 = vmatpush1.bf16.msra.mxu1 %v5377_v59  ;;  %v875_v50 = vld [vmem:[#allocation8 + $0x4c0] sm:$0xff] }
  0xf9   :  { %4029 = vmatprep.subr.bf16.mxu1 %v5386_v60  ;;  %v5424_v57 = vcombine.high %v875_v50, %v879_v51  ;;  %v883_v59 = vld [vmem:[#allocation8 + $0x500] sm:$0xff]  ;;  %v5423_v63 = vcombine.low %v875_v50, %v879_v51  ;;  %v928_v50 = vld [vmem:[#allocation8 + $0x668] sm:$0xff] }
  0xfa   :  { %v887_v60 = vld [vmem:[#allocation8 + $0x520] sm:$0xff] }
  0xfb   :  { %3866 = vmatpush1.bf16.msra.mxu0 %v5383_v55  ;;  %v5415_v55 = vcombine.low %v867_v39, %v871_v41  ;;  %v5432_v2 = vcombine.high %v883_v59, %v887_v60  ;;  %v916_v39 = vld [vmem:[#allocation8 + $0x608] sm:$0xff] }
  0xfc   :  { %3867 = vmatprep.subr.bf16.mxu0 %v5392_v58  ;;  %4030 = vmatpush1.bf16.msra.mxu1 %v5385_v9  ;;  %v5426_v58 = vcombine.high %v876_v52, %v880_v53  ;;  %v5431_v9 = vcombine.low %v883_v59, %v887_v60  ;;  %v935_v59 = vld [vmem:[#allocation8 + $0x6a0] sm:$0xff]  ;;  %v932_v60 = vld [vmem:[#allocation8 + $0x688] sm:$0xff] }
  0xfd   :  { %4031 = vmatprep.subr.bf16.mxu1 %v5394_v10  ;;  %v5433_v10 = vcombine.low %v884_v61, %v888_v62  ;;  %v936_v61 = vld [vmem:[#allocation8 + $0x6a8] sm:$0xff] }
  0xff   :  { %3868 = vmatpush1.bf16.msra.mxu0 %v5391_v1  ;;  %v5425_v1 = vcombine.low %v876_v52, %v880_v53 }
 0x100   :  { %3878 = vmatprep.subr.bf16.mxu0 %v5400_v7  ;;  %4032 = vmatpush1.bf16.msra.mxu1 %v5393_v11  ;;  %v892_v7 = vld [vmem:[#allocation8 + $0x548] sm:$0xff] }
 0x101   :  { %4042 = vmatprep.subr.bf16.mxu1 %v5402_v12 }
 0x175   :  { %v577_v20 = vpop.f32.mrb[0].mxu0  ;;  %v6421_v35 = vpop.f32.mrb[0].mxu1 }
 0x176   :  { %v578_v22 = vadd.f32 %v577_v20, %v186_v18  ;;  %v579_v23 = vpop.f32.mrb[1].mxu0  ;;  %v620_v40 = vpop.f32.mrb[1].mxu1  ;;  %v903_v18 = vld [vmem:[#allocation8 + $0x5a0] sm:$0xff]  ;;  %v904_v20 = vld [vmem:[#allocation8 + $0x5a8] sm:$0xff] }
 0x177   :  { %v580_v24 = vadd.f32 %v579_v23, %v190_v19  ;;  %v581_v25 = vpop.f32.mrb[2].mxu0  ;;  %v621_v43 = vadd.f32 %v620_v40, %v198_v33  ;;  %v622_v44 = vpop.f32.mrb[2].mxu1  ;;  %v900_v19 = vld [vmem:[#allocation8 + $0x588] sm:$0xff]  ;;  %v5447_v30 = vcombine.low %v899_v13, %v903_v18 }
 0x178   :  { %v707_v26 = vmax.f32 %v578_v22, 0.0  ;;  %v582_v27 = vpop.f32.mrb[3].mxu0  ;;  %v623_v0 = vpop.f32.mrb[3].mxu1  ;;  %v5450_v25 = vcombine.high %v900_v19, %v904_v20  ;;  %v5449_v31 = vcombine.low %v900_v19, %v904_v20  ;;  %v920_v40 = vld [vmem:[#allocation8 + $0x628] sm:$0xff]  ;;  %v951_v19 = vld [vmem:[#allocation8 + $0x720] sm:$0xff] }
 0x179   :  { %v708_v29 = vmax.f32 %v580_v24, 0.0  ;;  %v710_v47 = vmax.f32 %v621_v43, 0.0  ;;  %v5448_v24 = vcombine.high %v899_v13, %v903_v18  ;;  %v911_v27 = vld [vmem:[#allocation8 + $0x5e0] sm:$0xff]  ;;  %v5465_v52 = vcombine.low %v916_v39, %v920_v40  ;;  %v948_v20 = vld [vmem:[#allocation8 + $0x708] sm:$0xff] }
 0x17a   :  { %v6423_v36 = vpack.c.bf16 %v707_v26, %v707_v26  ;;  %v907_v26 = vld [vmem:[#allocation8 + $0x5c0] sm:$0xff] }
 0x17b   :  { %v6419_v34 = vpack.c.bf16 %v708_v29, %v708_v29  ;;  %v6429_v54 = vpack.c.bf16 %v710_v47, %v710_v47  ;;  %v912_v29 = vld [vmem:[#allocation8 + $0x5e8] sm:$0xff]  ;;  %v5456_v32 = vcombine.high %v907_v26, %v911_v27  ;;  %v5455_v42 = vcombine.low %v907_v26, %v911_v27  ;;  %v947_v18 = vld [vmem:[#allocation8 + $0x700] sm:$0xff] }
 0x17c   :  { %v5458_v33 = vcombine.high %v908_v28, %v912_v29  ;;  %v5457_v43 = vcombine.low %v908_v28, %v912_v29  ;;  %v955_v27 = vld [vmem:[#allocation8 + $0x740] sm:$0xff]  ;;  %v956_v29 = vld [vmem:[#allocation8 + $0x748] sm:$0xff] }
 0x17d   :  { %3869 = vmatprep.mubr.bf16.mxu0 %v6419_v34  ;;  %4033 = vmatprep.mubr.bf16.mxu1 %v6419_v34  ;;  %v959_v28 = vld [vmem:[#allocation8 + $0x760] sm:$0xff] }
 0x17e   :  { %3870 = vmatmul.mubr.bf16.vlgmr.msra.gmra.mrb[8].mxu0 %v6423_v36  ;;  %4034 = vmatmul.mubr.bf16.vlgmr.msra.gmra.mrb[8].mxu1 %v6423_v36 }
 0x17f   :  { %3879 = vmatpush1.bf16.msra.mxu0 %v5399_v5  ;;  %4043 = vmatpush1.bf16.msra.mxu1 %v5401_v8  ;;  %v895_v5 = vld [vmem:[#allocation8 + $0x560] sm:$0xff]  ;;  %v896_v8 = vld [vmem:[#allocation8 + $0x568] sm:$0xff] }
 0x180   :  { %3880 = vmatprep.subr.bf16.mxu0 %v5408_v37  ;;  %4044 = vmatprep.subr.bf16.mxu1 %v5410_v38  ;;  %v5440_v11 = vcombine.high %v891_v4, %v895_v5  ;;  %v5442_v12 = vcombine.high %v892_v7, %v896_v8  ;;  %v5439_v22 = vcombine.low %v891_v4, %v895_v5  ;;  %v915_v37 = vld [vmem:[#allocation8 + $0x600] sm:$0xff] }
 0x181   :  { %3910 = vmatprep.mubr.bf16.mxu0 %v6429_v54  ;;  %4074 = vmatprep.mubr.bf16.mxu1 %v6429_v54  ;;  %v5441_v23 = vcombine.low %v892_v7, %v896_v8  ;;  %v919_v38 = vld [vmem:[#allocation8 + $0x620] sm:$0xff]  ;;  %v5482_v4 = vcombine.high %v932_v60, %v936_v61  ;;  %v940_v8 = vld [vmem:[#allocation8 + $0x6c8] sm:$0xff] }
 0x182   :  { %v5464_v0 = vcombine.high %v915_v37, %v919_v38  ;;  %v5463_v51 = vcombine.low %v915_v37, %v919_v38  ;;  %v939_v5 = vld [vmem:[#allocation8 + $0x6c0] sm:$0xff]  ;;  %v5504_v37 = vcombine.high %v955_v27, %v959_v28 }
 0x183   :  { %3881 = vmatpush1.bf16.msra.mxu0 %v5407_v45  ;;  %4045 = vmatpush1.bf16.msra.mxu1 %v5409_v46  ;;  %v5466_v45 = vcombine.high %v916_v39, %v920_v40  ;;  %v923_v46 = vld [vmem:[#allocation8 + $0x640] sm:$0xff] }
 0x184   :  { %3882 = vmatprep.subr.bf16.mxu0 %v5416_v48  ;;  %4046 = vmatprep.subr.bf16.mxu1 %v5418_v49  ;;  %v927_v48 = vld [vmem:[#allocation8 + $0x660] sm:$0xff]  ;;  %v924_v49 = vld [vmem:[#allocation8 + $0x648] sm:$0xff] }
 0x185   :  { %v943_v7 = vld [vmem:[#allocation8 + $0x6e0] sm:$0xff] }
 0x186   :  { %v963_v39 = vld [vmem:[#allocation8 + $0x780] sm:$0xff] }
 0x187   :  { %3883 = vmatpush1.bf16.msra.mxu0 %v5415_v55  ;;  %4047 = vmatpush1.bf16.msra.mxu1 %v5417_v56  ;;  %v5472_v55 = vcombine.high %v923_v46, %v927_v48  ;;  %v5474_v56 = vcombine.high %v924_v49, %v928_v50  ;;  %v967_v40 = vld [vmem:[#allocation8 + $0x7a0] sm:$0xff] }
 0x188   :  { %3884 = vmatprep.subr.bf16.mxu0 %v5424_v57  ;;  %4048 = vmatprep.subr.bf16.mxu1 %v5426_v58  ;;  %v931_v57 = vld [vmem:[#allocation8 + $0x680] sm:$0xff] }
 0x18b   :  { %3885 = vmatpush1.bf16.msra.mxu0 %v5423_v63  ;;  %4049 = vmatpush1.bf16.msra.mxu1 %v5425_v1  ;;  %v5471_v1 = vcombine.low %v923_v46, %v927_v48 }
 0x18c   :  { %3886 = vmatprep.subr.bf16.mxu0 %v5432_v2  ;;  %4050 = vmatprep.subr.bf16.mxu1 %v5434_v3  ;;  %v5473_v2 = vcombine.low %v924_v49, %v928_v50  ;;  %v5480_v3 = vcombine.high %v931_v57, %v935_v59  ;;  %v971_v49 = vld [vmem:[#allocation8 + $0x7c0] sm:$0xff] }
 0x18d   :  { %v975_v50 = vld [vmem:[#allocation8 + $0x7e0] sm:$0xff] }
 0x18f   :  { %3887 = vmatpush1.bf16.msra.mxu0 %v5431_v9  ;;  %4051 = vmatpush1.bf16.msra.mxu1 %v5433_v10  ;;  %v944_v9 = vld [vmem:[#allocation8 + $0x6e8] sm:$0xff]  ;;  %v5479_v10 = vcombine.low %v931_v57, %v935_v59  ;;  %v5511_v57 = vcombine.low %v963_v39, %v967_v40 }
 0x190   :  { %3888 = vmatprep.subr.bf16.mxu0 %v5440_v11  ;;  %4052 = vmatprep.subr.bf16.mxu1 %v5442_v12  ;;  %v5481_v11 = vcombine.low %v932_v60, %v936_v61  ;;  %v5488_v12 = vcombine.high %v939_v5, %v943_v7  ;;  %v5490_v13 = vcombine.high %v940_v8, %v944_v9 }
 0x191   :  { %v5520_v60 = vcombine.high %v971_v49, %v975_v50 }
 0x193   :  { %3889 = vmatpush1.bf16.msra.mxu0 %v5439_v22  ;;  %4053 = vmatpush1.bf16.msra.mxu1 %v5441_v23  ;;  %v952_v22 = vld [vmem:[#allocation8 + $0x728] sm:$0xff]  ;;  %v5487_v23 = vcombine.low %v939_v5, %v943_v7  ;;  %v5519_v5 = vcombine.low %v971_v49, %v975_v50 }
 0x194   :  { %3890 = vmatprep.subr.bf16.mxu0 %v5448_v24  ;;  %4054 = vmatprep.subr.bf16.mxu1 %v5450_v25  ;;  %v5489_v24 = vcombine.low %v940_v8, %v944_v9  ;;  %v5496_v25 = vcombine.high %v947_v18, %v951_v19  ;;  %v5498_v26 = vcombine.high %v948_v20, %v952_v22  ;;  %v987_v9 = vld [vmem:[#allocation8 + $0x840] sm:$0xff] }
 0x195   :  { %v6433_v41 = vpop.f32.mrb[4].mxu0 }
 0x196   :  { %v6435_v6 = vpop.f32.mrb[5].mxu0  ;;  %v6437_v53 = vpop.f32.mrb[4].mxu1 }
 0x197   :  { %3891 = vmatpush1.bf16.msra.mxu0 %v5447_v30  ;;  %4055 = vmatpush1.bf16.msra.mxu1 %v5449_v31  ;;  %v663_v44 = vpop.f32.mrb[6].mxu0  ;;  %v6439_v58 = vpop.f32.mrb[5].mxu1  ;;  %v960_v30 = vld [vmem:[#allocation8 + $0x768] sm:$0xff]  ;;  %v193_v31 = vsub.s32 2, %v6403_v14 }
 0x198   :  { %3892 = vmatprep.subr.bf16.mxu0 %v5456_v32  ;;  %4056 = vmatprep.subr.bf16.mxu1 %v5458_v33  ;;  %v664_v47 = vpop.f32.mrb[7].mxu0  ;;  %v704_v62 = vpop.f32.mrb[6].mxu1  ;;  %v5495_v32 = vcombine.low %v947_v18, %v951_v19  ;;  %v5497_v33 = vcombine.low %v948_v20, %v952_v22  ;;  %v5506_v38 = vcombine.high %v956_v29, %v960_v30  ;;  %v205_v44 = vsub.s32 5, %v6403_v14 }
 0x199   :  { %v705_v63 = vpop.f32.mrb[7].mxu1  ;;  %v5505_v46 = vcombine.low %v956_v29, %v960_v30  ;;  %v5512_v47 = vcombine.high %v963_v39, %v967_v40  ;;  %v979_v62 = vld [vmem:[#allocation8 + $0x800] sm:$0xff]  ;;  %v1008_v39 = vld [vmem:[#allocation8 + $0x8e8] sm:$0xff] }
 0x19a   :  { %v983_v63 = vld [vmem:[#allocation8 + $0x820] sm:$0xff] }
 0x19b   :  { %3893 = vmatpush1.bf16.msra.mxu0 %v5455_v42  ;;  %4057 = vmatpush1.bf16.msra.mxu1 %v5457_v43  ;;  %v964_v42 = vld [vmem:[#allocation8 + $0x788] sm:$0xff]  ;;  %v5527_v19 = vcombine.low %v979_v62, %v983_v63 }
 0x19c   :  { %3894 = vmatprep.subr.bf16.mxu0 %v5464_v0  ;;  %4058 = vmatprep.subr.bf16.mxu1 %v5466_v45  ;;  %v968_v43 = vld [vmem:[#allocation8 + $0x7a8] sm:$0xff]  ;;  %v194_v0 = vrot.slane %v6406_v16, %v193_v31  ;;  %v5503_v45 = vcombine.low %v955_v27, %v959_v28 }
 0x19d   :  { %v5514_v48 = vcombine.high %v964_v42, %v968_v43  ;;  %v5513_v59 = vcombine.low %v964_v42, %v968_v43 }
 0x19f   :  { %3895 = vmatpush1.bf16.msra.mxu0 %v5463_v51  ;;  %4059 = vmatpush1.bf16.msra.mxu1 %v5465_v52  ;;  %v972_v51 = vld [vmem:[#allocation8 + $0x7c8] sm:$0xff] }
 0x1a0   :  { %3896 = vmatprep.subr.bf16.mxu0 %v5472_v55  ;;  %4060 = vmatprep.subr.bf16.mxu1 %v5474_v56  ;;  %v976_v52 = vld [vmem:[#allocation8 + $0x7e8] sm:$0xff]  ;;  %v206_v55 = vrot.slane %v6406_v16, %v205_v44  ;;  %v619_v56 = vadd.f32 %v6421_v35, %v194_v0  ;;  %v5528_v35 = vcombine.high %v979_v62, %v983_v63 }
 0x1a1   :  { %v5522_v61 = vcombine.high %v972_v51, %v976_v52  ;;  %v5521_v7 = vcombine.low %v972_v51, %v976_v52 }
 0x1a3   :  { %3897 = vmatpush1.bf16.msra.mxu0 %v5471_v1  ;;  %4061 = vmatpush1.bf16.msra.mxu1 %v5473_v2  ;;  %v980_v1 = vld [vmem:[#allocation8 + $0x808] sm:$0xff] }
 0x1a4   :  { %3898 = vmatprep.subr.bf16.mxu0 %v5480_v3  ;;  %4062 = vmatprep.subr.bf16.mxu1 %v5482_v4  ;;  %v984_v2 = vld [vmem:[#allocation8 + $0x828] sm:$0xff]  ;;  %v662_v3 = vadd.f32 %v6435_v6, %v206_v55  ;;  %v709_v4 = vmax.f32 %v619_v56, 0.0  ;;  %v1019_v55 = vld [vmem:[#allocation8 + $0x940] sm:$0xff] }
 0x1a5   :  { %v5530_v8 = vcombine.high %v980_v1, %v984_v2  ;;  %v5529_v6 = vcombine.low %v980_v1, %v984_v2  ;;  %v1023_v56 = vld [vmem:[#allocation8 + $0x960] sm:$0xff] }
 0x1a6   :  { %v6451_v18 = vpack.c.bf16 %v709_v4, %v709_v4  ;;  %v5568_v62 = vcombine.high %v1019_v55, %v1023_v56  ;;  %v1027_v1 = vld [vmem:[#allocation8 + $0x980] sm:$0xff]  ;;  %v1032_v4 = vld [vmem:[#allocation8 + $0x9a8] sm:$0xff] }
 0x1a7   :  { %3899 = vmatpush1.bf16.msra.mxu0 %v5479_v10  ;;  %4063 = vmatpush1.bf16.msra.mxu1 %v5481_v11  ;;  %v991_v10 = vld [vmem:[#allocation8 + $0x860] sm:$0xff]  ;;  %v988_v11 = vld [vmem:[#allocation8 + $0x848] sm:$0xff] }
 0x1a8   :  { %3900 = vmatprep.subr.bf16.mxu0 %v5488_v12  ;;  %4064 = vmatprep.subr.bf16.mxu1 %v5490_v13  ;;  %v992_v12 = vld [vmem:[#allocation8 + $0x868] sm:$0xff]  ;;  %v712_v13 = vmax.f32 %v662_v3, 0.0  ;;  %v5536_v20 = vcombine.high %v987_v9, %v991_v10  ;;  %v5535_v28 = vcombine.low %v987_v9, %v991_v10  ;;  %v1031_v2 = vld [vmem:[#allocation8 + $0x9a0] sm:$0xff] }
 0x1a9   :  { %v5538_v22 = vcombine.high %v988_v11, %v992_v12  ;;  %v5537_v29 = vcombine.low %v988_v11, %v992_v12  ;;  %v1028_v3 = vld [vmem:[#allocation8 + $0x988] sm:$0xff]  ;;  %v1035_v9 = vld [vmem:[#allocation8 + $0x9c0] sm:$0xff] }
 0x1aa   :  { %v6453_v27 = vpack.c.bf16 %v712_v13, %v712_v13  ;;  %v1039_v10 = vld [vmem:[#allocation8 + $0x9e0] sm:$0xff]  ;;  %v1036_v11 = vld [vmem:[#allocation8 + $0x9c8] sm:$0xff]  ;;  %v5575_v13 = vcombine.low %v1027_v1, %v1031_v2 }
 0x1ab   :  { %3901 = vmatpush1.bf16.msra.mxu0 %v5487_v23  ;;  %4065 = vmatpush1.bf16.msra.mxu1 %v5489_v24  ;;  %v995_v23 = vld [vmem:[#allocation8 + $0x880] sm:$0xff]  ;;  %v1040_v12 = vld [vmem:[#allocation8 + $0x9e8] sm:$0xff] }
 0x1ac   :  { %3902 = vmatprep.subr.bf16.mxu0 %v5496_v25  ;;  %4066 = vmatprep.subr.bf16.mxu1 %v5498_v26  ;;  %v999_v24 = vld [vmem:[#allocation8 + $0x8a0] sm:$0xff]  ;;  %v996_v25 = vld [vmem:[#allocation8 + $0x888] sm:$0xff] }
 0x1ad   :  { %v1000_v26 = vld [vmem:[#allocation8 + $0x8a8] sm:$0xff]  ;;  %v5544_v30 = vcombine.high %v995_v23, %v999_v24  ;;  %v5543_v40 = vcombine.low %v995_v23, %v999_v24  ;;  %v1047_v23 = vld [vmem:[#allocation8 + $0xa20] sm:$0xff] }
 0x1ae   :  { %v5545_v42 = vcombine.low %v996_v25, %v1000_v26  ;;  %v1044_v24 = vld [vmem:[#allocation8 + $0xa08] sm:$0xff] }
 0x1af   :  { %3903 = vmatpush1.bf16.msra.mxu0 %v5495_v32  ;;  %4067 = vmatpush1.bf16.msra.mxu1 %v5497_v33  ;;  %v5546_v32 = vcombine.high %v996_v25, %v1000_v26  ;;  %v1003_v33 = vld [vmem:[#allocation8 + $0x8c0] sm:$0xff]  ;;  %v1048_v25 = vld [vmem:[#allocation8 + $0xa28] sm:$0xff]  ;;  %v5583_v26 = vcombine.low %v1035_v9, %v1039_v10 }
 0x1b0   :  { %3904 = vmatprep.subr.bf16.mxu0 %v5504_v37  ;;  %4068 = vmatprep.subr.bf16.mxu1 %v5506_v38  ;;  %v1007_v37 = vld [vmem:[#allocation8 + $0x8e0] sm:$0xff]  ;;  %v1004_v38 = vld [vmem:[#allocation8 + $0x8c8] sm:$0xff] }
 0x1b1   :  { %v5552_v43 = vcombine.high %v1003_v33, %v1007_v37  ;;  %v5554_v0 = vcombine.high %v1004_v38, %v1008_v39  ;;  %v5551_v49 = vcombine.low %v1003_v33, %v1007_v37  ;;  %v5553_v50 = vcombine.low %v1004_v38, %v1008_v39  ;;  %v1055_v33 = vld [vmem:[#allocation8 + $0xa60] sm:$0xff]  ;;  %v1052_v37 = vld [vmem:[#allocation8 + $0xa48] sm:$0xff] }
 0x1b2   :  { %v1056_v38 = vld [vmem:[#allocation8 + $0xa68] sm:$0xff] }
 0x1b3   :  { %3905 = vmatpush1.bf16.msra.mxu0 %v5503_v45  ;;  %4069 = vmatpush1.bf16.msra.mxu1 %v5505_v46  ;;  %v1011_v45 = vld [vmem:[#allocation8 + $0x900] sm:$0xff] }
 0x1b4   :  { %3906 = vmatprep.subr.bf16.mxu0 %v5512_v47  ;;  %4070 = vmatprep.subr.bf16.mxu1 %v5514_v48  ;;  %v1015_v46 = vld [vmem:[#allocation8 + $0x920] sm:$0xff]  ;;  %v1012_v47 = vld [vmem:[#allocation8 + $0x908] sm:$0xff] }
 0x1b5   :  { %v1016_v48 = vld [vmem:[#allocation8 + $0x928] sm:$0xff]  ;;  %v5560_v51 = vcombine.high %v1011_v45, %v1015_v46 }
 0x1b6   :  { %v5562_v52 = vcombine.high %v1012_v47, %v1016_v48 }
 0x1b7   :  { %3907 = vmatpush1.bf16.msra.mxu0 %v5511_v57  ;;  %4071 = vmatpush1.bf16.msra.mxu1 %v5513_v59  ;;  %v1020_v57 = vld [vmem:[#allocation8 + $0x948] sm:$0xff] }
 0x1b8   :  { %3908 = vmatprep.subr.bf16.mxu0 %v5520_v60  ;;  %4072 = vmatprep.subr.bf16.mxu1 %v5522_v61  ;;  %v1024_v59 = vld [vmem:[#allocation8 + $0x968] sm:$0xff]  ;;  %v5559_v60 = vcombine.low %v1011_v45, %v1015_v46  ;;  %v5561_v61 = vcombine.low %v1012_v47, %v1016_v48  ;;  %v1063_v45 = vld [vmem:[#allocation8 + $0xaa0] sm:$0xff] }
 0x1b9   :  { %v5570_v63 = vcombine.high %v1020_v57, %v1024_v59  ;;  %v1060_v46 = vld [vmem:[#allocation8 + $0xa88] sm:$0xff] }
 0x1ba   :  { %v1064_v47 = vld [vmem:[#allocation8 + $0xaa8] sm:$0xff] }
 0x1bb   :  { %3909 = vmatpush1.bf16.msra.mxu0 %v5519_v5  ;;  %4073 = vmatpush1.bf16.msra.mxu1 %v5521_v7  ;;  %v5567_v5 = vcombine.low %v1019_v55, %v1023_v56  ;;  %v5569_v7 = vcombine.low %v1020_v57, %v1024_v59  ;;  %v1071_v55 = vld [vmem:[#allocation8 + $0xae0] sm:$0xff]  ;;  %v1068_v56 = vld [vmem:[#allocation8 + $0xac8] sm:$0xff] }
 0x1bc   :  { %3919 = vmatprep.subr.bf16.mxu0 %v5528_v35  ;;  %4083 = vmatprep.subr.bf16.mxu1 %v5530_v8  ;;  %v5576_v35 = vcombine.high %v1027_v1, %v1031_v2  ;;  %v5578_v8 = vcombine.high %v1028_v3, %v1032_v4  ;;  %v1072_v57 = vld [vmem:[#allocation8 + $0xae8] sm:$0xff]  ;;  %v1079_v1 = vld [vmem:[#allocation8 + $0xb20] sm:$0xff] }
 0x1bd   :  { %v1076_v2 = vld [vmem:[#allocation8 + $0xb08] sm:$0xff] }
 0x1be   :  { %3911 = vmatmul.mubr.bf16.vlgmr.msra.gmra.mrb[8].mxu0 %v6451_v18  ;;  %4075 = vmatmul.mubr.bf16.vlgmr.msra.gmra.mrb[8].mxu1 %v6451_v18 }
 0x1bf   :  { %3920 = vmatpush1.bf16.msra.mxu0 %v5527_v19  ;;  %4084 = vmatpush1.bf16.msra.mxu1 %v5529_v6  ;;  %v5577_v19 = vcombine.low %v1028_v3, %v1032_v4  ;;  %v5584_v6 = vcombine.high %v1035_v9, %v1039_v10  ;;  %v1080_v3 = vld [vmem:[#allocation8 + $0xb28] sm:$0xff]  ;;  %v1087_v9 = vld [vmem:[#allocation8 + $0xb60] sm:$0xff] }
 0x1c0   :  { %3921 = vmatprep.subr.bf16.mxu0 %v5536_v20  ;;  %4085 = vmatprep.subr.bf16.mxu1 %v5538_v22  ;;  %v5586_v20 = vcombine.high %v1036_v11, %v1040_v12  ;;  %v1043_v22 = vld [vmem:[#allocation8 + $0xa00] sm:$0xff]  ;;  %v1084_v10 = vld [vmem:[#allocation8 + $0xb48] sm:$0xff] }
 0x1c1   :  { %3951 = vmatprep.mubr.bf16.mxu0 %v6453_v27  ;;  %4115 = vmatprep.mubr.bf16.mxu1 %v6453_v27  ;;  %v5591_v39 = vcombine.low %v1043_v22, %v1047_v23 }
 0x1c3   :  { %3922 = vmatpush1.bf16.msra.mxu0 %v5535_v28  ;;  %4086 = vmatpush1.bf16.msra.mxu1 %v5537_v29  ;;  %v5585_v28 = vcombine.low %v1036_v11, %v1040_v12  ;;  %v5592_v29 = vcombine.high %v1043_v22, %v1047_v23  ;;  %v1088_v11 = vld [vmem:[#allocation8 + $0xb68] sm:$0xff]  ;;  %v201_v12 = vsub.s32 4, %v6403_v14  ;;  %v1091_v22 = vld [vmem:[#allocation8 + $0xb80] sm:$0xff] }
 0x1c4   :  { %3923 = vmatprep.subr.bf16.mxu0 %v5544_v30  ;;  %4087 = vmatprep.subr.bf16.mxu1 %v5546_v32  ;;  %v5594_v30 = vcombine.high %v1044_v24, %v1048_v25  ;;  %v1051_v32 = vld [vmem:[#allocation8 + $0xa40] sm:$0xff] }
 0x1c5   :  { %v5599_v48 = vcombine.low %v1051_v32, %v1055_v33  ;;  %v1095_v23 = vld [vmem:[#allocation8 + $0xba0] sm:$0xff] }
 0x1c7   :  { %3924 = vmatpush1.bf16.msra.mxu0 %v5543_v40  ;;  %4088 = vmatpush1.bf16.msra.mxu1 %v5545_v42  ;;  %v5593_v40 = vcombine.low %v1044_v24, %v1048_v25  ;;  %v5600_v42 = vcombine.high %v1051_v32, %v1055_v33  ;;  %v1092_v24 = vld [vmem:[#allocation8 + $0xb88] sm:$0xff]  ;;  %v5640_v32 = vcombine.high %v1091_v22, %v1095_v23 }
 0x1c8   :  { %3925 = vmatprep.subr.bf16.mxu0 %v5552_v43  ;;  %4089 = vmatprep.subr.bf16.mxu1 %v5554_v0  ;;  %v5602_v43 = vcombine.high %v1052_v37, %v1056_v38  ;;  %v1059_v0 = vld [vmem:[#allocation8 + $0xa80] sm:$0xff]  ;;  %v1096_v25 = vld [vmem:[#allocation8 + $0xba8] sm:$0xff] }
 0x1c9   :  { %v5607_v59 = vcombine.low %v1059_v0, %v1063_v45  ;;  %v5642_v33 = vcombine.high %v1092_v24, %v1096_v25 }
 0x1cb   :  { %3926 = vmatpush1.bf16.msra.mxu0 %v5551_v49  ;;  %4090 = vmatpush1.bf16.msra.mxu1 %v5553_v50  ;;  %v5601_v49 = vcombine.low %v1052_v37, %v1056_v38  ;;  %v5608_v50 = vcombine.high %v1059_v0, %v1063_v45  ;;  %v1099_v37 = vld [vmem:[#allocation8 + $0xbc0] sm:$0xff]  ;;  %v5639_v0 = vcombine.low %v1091_v22, %v1095_v23  ;;  %v1132_v22 = vld [vmem:[#allocation8 + $0xcc8] sm:$0xff] }
 0x1cc   :  { %3927 = vmatprep.subr.bf16.mxu0 %v5560_v51  ;;  %4091 = vmatprep.subr.bf16.mxu1 %v5562_v52  ;;  %v5610_v51 = vcombine.high %v1060_v46, %v1064_v47  ;;  %v1067_v52 = vld [vmem:[#allocation8 + $0xac0] sm:$0xff]  ;;  %v5641_v45 = vcombine.low %v1092_v24, %v1096_v25  ;;  %v1136_v23 = vld [vmem:[#allocation8 + $0xce8] sm:$0xff] }
 0x1cd   :  { %v5615_v4 = vcombine.low %v1067_v52, %v1071_v55  ;;  %v1103_v38 = vld [vmem:[#allocation8 + $0xbe0] sm:$0xff] }
 0x1cf   :  { %3928 = vmatpush1.bf16.msra.mxu0 %v5559_v60  ;;  %4092 = vmatpush1.bf16.msra.mxu1 %v5561_v61  ;;  %v5609_v60 = vcombine.low %v1060_v46, %v1064_v47  ;;  %v5616_v61 = vcombine.high %v1067_v52, %v1071_v55  ;;  %v5648_v46 = vcombine.high %v1099_v37, %v1103_v38 }
 0x1d0   :  { %3929 = vmatprep.subr.bf16.mxu0 %v5568_v62  ;;  %4093 = vmatprep.subr.bf16.mxu1 %v5570_v63  ;;  %v5618_v62 = vcombine.high %v1068_v56, %v1072_v57  ;;  %v1075_v63 = vld [vmem:[#allocation8 + $0xb00] sm:$0xff] }
 0x1d3   :  { %3930 = vmatpush1.bf16.msra.mxu0 %v5567_v5  ;;  %4094 = vmatpush1.bf16.msra.mxu1 %v5569_v7  ;;  %v5617_v5 = vcombine.low %v1068_v56, %v1072_v57  ;;  %v5624_v7 = vcombine.high %v1075_v63, %v1079_v1 }
 0x1d4   :  { %3931 = vmatprep.subr.bf16.mxu0 %v5576_v35  ;;  %4095 = vmatprep.subr.bf16.mxu1 %v5578_v8  ;;  %v5626_v35 = vcombine.high %v1076_v2, %v1080_v3  ;;  %v1083_v8 = vld [vmem:[#allocation8 + $0xb40] sm:$0xff] }
 0x1d7   :  { %3932 = vmatpush1.bf16.msra.mxu0 %v5575_v13  ;;  %4096 = vmatpush1.bf16.msra.mxu1 %v5577_v19  ;;  %v5623_v13 = vcombine.low %v1075_v63, %v1079_v1  ;;  %v5625_v19 = vcombine.low %v1076_v2, %v1080_v3 }
 0x1d8   :  { %3933 = vmatprep.subr.bf16.mxu0 %v5584_v6  ;;  %4097 = vmatprep.subr.bf16.mxu1 %v5586_v20  ;;  %v5632_v6 = vcombine.high %v1083_v8, %v1087_v9  ;;  %v5634_v20 = vcombine.high %v1084_v10, %v1088_v11 }
 0x1db   :  { %3934 = vmatpush1.bf16.msra.mxu0 %v5583_v26  ;;  %4098 = vmatpush1.bf16.msra.mxu1 %v5585_v28  ;;  %v213_v26 = vsub.s32 7, %v6403_v14  ;;  %v202_v28 = vrot.slane %v6406_v16, %v201_v12 }
 0x1dc   :  { %3935 = vmatprep.subr.bf16.mxu0 %v5592_v29  ;;  %4099 = vmatprep.subr.bf16.mxu1 %v5594_v30  ;;  %v5631_v29 = vcombine.low %v1083_v8, %v1087_v9  ;;  %v5633_v30 = vcombine.low %v1084_v10, %v1088_v11  ;;  %v1128_v8 = vld [vmem:[#allocation8 + $0xca8] sm:$0xff] }
 0x1df   :  { %3936 = vmatpush1.bf16.msra.mxu0 %v5591_v39  ;;  %4100 = vmatpush1.bf16.msra.mxu1 %v5593_v40  ;;  %v1100_v39 = vld [vmem:[#allocation8 + $0xbc8] sm:$0xff] }
 0x1e0   :  { %3937 = vmatprep.subr.bf16.mxu0 %v5600_v42  ;;  %4101 = vmatprep.subr.bf16.mxu1 %v5602_v43  ;;  %v1104_v40 = vld [vmem:[#allocation8 + $0xbe8] sm:$0xff]  ;;  %v214_v42 = vrot.slane %v6406_v16, %v213_v26  ;;  %v660_v43 = vadd.f32 %v6433_v41, %v202_v28  ;;  %v5647_v16 = vcombine.low %v1099_v37, %v1103_v38 }
 0x1e1   :  { %v5650_v47 = vcombine.high %v1100_v39, %v1104_v40  ;;  %v5649_v56 = vcombine.low %v1100_v39, %v1104_v40  ;;  %v1144_v37 = vld [vmem:[#allocation8 + $0xd28] sm:$0xff]  ;;  %v5681_v39 = vcombine.low %v1132_v22, %v1136_v23 }
 0x1e2   :  { %v703_v52 = vadd.f32 %v6439_v58, %v214_v42  ;;  %v711_v55 = vmax.f32 %v660_v43, 0.0  ;;  %v1147_v43 = vld [vmem:[#allocation8 + $0xd40] sm:$0xff] }
 0x1e3   :  { %3938 = vmatpush1.bf16.msra.mxu0 %v5599_v48  ;;  %4102 = vmatpush1.bf16.msra.mxu1 %v5601_v49  ;;  %v1107_v48 = vld [vmem:[#allocation8 + $0xc00] sm:$0xff] }
 0x1e4   :  { %3939 = vmatprep.subr.bf16.mxu0 %v5608_v50  ;;  %4103 = vmatprep.subr.bf16.mxu1 %v5610_v51  ;;  %v1111_v49 = vld [vmem:[#allocation8 + $0xc20] sm:$0xff]  ;;  %v1108_v50 = vld [vmem:[#allocation8 + $0xc08] sm:$0xff]  ;;  %v714_v63 = vmax.f32 %v703_v52, 0.0  ;;  %v6469_v1 = vpack.c.bf16 %v711_v55, %v711_v55 }
 0x1e5   :  { %v1112_v51 = vld [vmem:[#allocation8 + $0xc28] sm:$0xff]  ;;  %v5656_v41 = vcombine.high %v1107_v48, %v1111_v49  ;;  %v5655_v2 = vcombine.low %v1107_v48, %v1111_v49  ;;  %v1159_v52 = vld [vmem:[#allocation8 + $0xda0] sm:$0xff] }
 0x1e6   :  { %v5658_v57 = vcombine.high %v1108_v50, %v1112_v51  ;;  %v5657_v58 = vcombine.low %v1108_v50, %v1112_v51  ;;  %v6471_v9 = vpack.c.bf16 %v714_v63, %v714_v63  ;;  %v1155_v51 = vld [vmem:[#allocation8 + $0xd80] sm:$0xff]  ;;  %v1156_v55 = vld [vmem:[#allocation8 + $0xd88] sm:$0xff] }
 0x1e7   :  { %3940 = vmatpush1.bf16.msra.mxu0 %v5607_v59  ;;  %4104 = vmatpush1.bf16.msra.mxu1 %v5609_v60  ;;  %v1115_v59 = vld [vmem:[#allocation8 + $0xc40] sm:$0xff]  ;;  %v1168_v63 = vld [vmem:[#allocation8 + $0xde8] sm:$0xff] }
 0x1e8   :  { %3941 = vmatprep.subr.bf16.mxu0 %v5616_v61  ;;  %4105 = vmatprep.subr.bf16.mxu1 %v5618_v62  ;;  %v1119_v60 = vld [vmem:[#allocation8 + $0xc60] sm:$0xff]  ;;  %v1116_v61 = vld [vmem:[#allocation8 + $0xc48] sm:$0xff] }
 0x1e9   :  { %v1120_v62 = vld [vmem:[#allocation8 + $0xc68] sm:$0xff]  ;;  %v5664_v3 = vcombine.high %v1115_v59, %v1119_v60  ;;  %v5663_v10 = vcombine.low %v1115_v59, %v1119_v60  ;;  %v1163_v60 = vld [vmem:[#allocation8 + $0xdc0] sm:$0xff] }
 0x1ea   :  { %v5665_v11 = vcombine.low %v1116_v61, %v1120_v62 }
 0x1eb   :  { %3942 = vmatpush1.bf16.msra.mxu0 %v5615_v4  ;;  %4106 = vmatpush1.bf16.msra.mxu1 %v5617_v5  ;;  %v5666_v4 = vcombine.high %v1116_v61, %v1120_v62  ;;  %v1123_v5 = vld [vmem:[#allocation8 + $0xc80] sm:$0xff]  ;;  %v1164_v62 = vld [vmem:[#allocation8 + $0xdc8] sm:$0xff] }
 0x1ec   :  { %3943 = vmatprep.subr.bf16.mxu0 %v5624_v7  ;;  %4107 = vmatprep.subr.bf16.mxu1 %v5626_v35  ;;  %v1127_v7 = vld [vmem:[#allocation8 + $0xca0] sm:$0xff]  ;;  %v1124_v35 = vld [vmem:[#allocation8 + $0xc88] sm:$0xff] }
 0x1ed   :  { %v5671_v24 = vcombine.low %v1123_v5, %v1127_v7  ;;  %v5673_v25 = vcombine.low %v1124_v35, %v1128_v8  ;;  %v1167_v61 = vld [vmem:[#allocation8 + $0xde0] sm:$0xff] }
 0x1ef   :  { %3944 = vmatpush1.bf16.msra.mxu0 %v5623_v13  ;;  %4108 = vmatpush1.bf16.msra.mxu1 %v5625_v19  ;;  %v5672_v13 = vcombine.high %v1123_v5, %v1127_v7  ;;  %v5674_v19 = vcombine.high %v1124_v35, %v1128_v8  ;;  %v1171_v5 = vld [vmem:[#allocation8 + $0xe00] sm:$0xff]  ;;  %v1172_v35 = vld [vmem:[#allocation8 + $0xe08] sm:$0xff] }
 0x1f0   :  { %3945 = vmatprep.subr.bf16.mxu0 %v5632_v6  ;;  %4109 = vmatprep.subr.bf16.mxu1 %v5634_v20  ;;  %v1131_v6 = vld [vmem:[#allocation8 + $0xcc0] sm:$0xff]  ;;  %v1176_v8 = vld [vmem:[#allocation8 + $0xe28] sm:$0xff] }
 0x1f1   :  { %v1135_v20 = vld [vmem:[#allocation8 + $0xce0] sm:$0xff] }
 0x1f2   :  { %v5680_v28 = vcombine.high %v1131_v6, %v1135_v20  ;;  %v5679_v38 = vcombine.low %v1131_v6, %v1135_v20  ;;  %v1175_v7 = vld [vmem:[#allocation8 + $0xe20] sm:$0xff] }
 0x1f3   :  { %3946 = vmatpush1.bf16.msra.mxu0 %v5631_v29  ;;  %4110 = vmatpush1.bf16.msra.mxu1 %v5633_v30  ;;  %v5682_v29 = vcombine.high %v1132_v22, %v1136_v23  ;;  %v1139_v30 = vld [vmem:[#allocation8 + $0xd00] sm:$0xff]  ;;  %v1180_v22 = vld [vmem:[#allocation8 + $0xe48] sm:$0xff] }
 0x1f4   :  { %3947 = vmatprep.subr.bf16.mxu0 %v5640_v32  ;;  %4111 = vmatprep.subr.bf16.mxu1 %v5642_v33  ;;  %v1143_v32 = vld [vmem:[#allocation8 + $0xd20] sm:$0xff]  ;;  %v1140_v33 = vld [vmem:[#allocation8 + $0xd08] sm:$0xff] }
 0x1f5   :  { %v5688_v40 = vcombine.high %v1139_v30, %v1143_v32  ;;  %v5690_v42 = vcombine.high %v1140_v33, %v1144_v37  ;;  %v5689_v48 = vcombine.low %v1140_v33, %v1144_v37  ;;  %v1179_v6 = vld [vmem:[#allocation8 + $0xe40] sm:$0xff]  ;;  %v1184_v23 = vld [vmem:[#allocation8 + $0xe68] sm:$0xff] }
 0x1f6   :  { %v1183_v20 = vld [vmem:[#allocation8 + $0xe60] sm:$0xff]  ;;  %v1188_v33 = vld [vmem:[#allocation8 + $0xe88] sm:$0xff] }
 0x1f7   :  { %3948 = vmatpush1.bf16.msra.mxu0 %v5639_v0  ;;  %4112 = vmatpush1.bf16.msra.mxu1 %v5641_v45  ;;  %v1151_v0 = vld [vmem:[#allocation8 + $0xd60] sm:$0xff]  ;;  %v1148_v45 = vld [vmem:[#allocation8 + $0xd48] sm:$0xff] }
 0x1f8   :  { %3949 = vmatprep.subr.bf16.mxu0 %v5648_v46  ;;  %4113 = vmatprep.subr.bf16.mxu1 %v5650_v47  ;;  %v1152_v46 = vld [vmem:[#allocation8 + $0xd68] sm:$0xff]  ;;  %v5687_v47 = vcombine.low %v1139_v30, %v1143_v32  ;;  %v5696_v49 = vcombine.high %v1147_v43, %v1151_v0  ;;  %v1187_v30 = vld [vmem:[#allocation8 + $0xe80] sm:$0xff] }
 0x1f9   :  { %v5698_v50 = vcombine.high %v1148_v45, %v1152_v46  ;;  %v1191_v32 = vld [vmem:[#allocation8 + $0xea0] sm:$0xff]  ;;  %v1192_v37 = vld [vmem:[#allocation8 + $0xea8] sm:$0xff] }
 0x1fb   :  { %3950 = vmatpush1.bf16.msra.mxu0 %v5647_v16  ;;  %4114 = vmatpush1.bf16.msra.mxu1 %v5649_v56  ;;  %v1160_v16 = vld [vmem:[#allocation8 + $0xda8] sm:$0xff]  ;;  %v5695_v56 = vcombine.low %v1147_v43, %v1151_v0  ;;  %v1195_v43 = vld [vmem:[#allocation8 + $0xec0] sm:$0xff] }
 0x1fc   :  { %3960 = vmatprep.subr.bf16.mxu0 %v5656_v41  ;;  %4124 = vmatprep.subr.bf16.mxu1 %v5658_v57  ;;  %v5697_v41 = vcombine.low %v1148_v45, %v1152_v46  ;;  %v5704_v57 = vcombine.high %v1155_v51, %v1159_v52  ;;  %v5706_v59 = vcombine.high %v1156_v55, %v1160_v16  ;;  %v1199_v0 = vld [vmem:[#allocation8 + $0xee0] sm:$0xff]  ;;  %v1196_v45 = vld [vmem:[#allocation8 + $0xec8] sm:$0xff] }
 0x1fd   :  { %v1200_v46 = vld [vmem:[#allocation8 + $0xee8] sm:$0xff] }
 0x1fe   :  { %3952 = vmatmul.mubr.bf16.vlgmr.msra.gmra.mrb[8].mxu0 %v6469_v1  ;;  %4116 = vmatmul.mubr.bf16.vlgmr.msra.gmra.mrb[8].mxu1 %v6469_v1 }
 0x1ff   :  { %3961 = vmatpush1.bf16.msra.mxu0 %v5655_v2  ;;  %4125 = vmatpush1.bf16.msra.mxu1 %v5657_v58  ;;  %v5703_v2 = vcombine.low %v1155_v51, %v1159_v52  ;;  %v5705_v58 = vcombine.low %v1156_v55, %v1160_v16  ;;  %v1203_v51 = vld [vmem:[#allocation8 + $0xf00] sm:$0xff]  ;;  %v1204_v55 = vld [vmem:[#allocation8 + $0xf08] sm:$0xff] }
 0x200   :  { %3962 = vmatprep.subr.bf16.mxu0 %v5664_v3  ;;  %4126 = vmatprep.subr.bf16.mxu1 %v5666_v4  ;;  %v5712_v3 = vcombine.high %v1163_v60, %v1167_v61  ;;  %v5714_v4 = vcombine.high %v1164_v62, %v1168_v63  ;;  %v1207_v52 = vld [vmem:[#allocation8 + $0xf20] sm:$0xff]  ;;  %v1208_v16 = vld [vmem:[#allocation8 + $0xf28] sm:$0xff] }
 0x201   :  { %3992 = vmatprep.mubr.bf16.mxu0 %v6471_v9  ;;  %4156 = vmatprep.mubr.bf16.mxu1 %v6471_v9 }
 0x203   :  { %3963 = vmatpush1.bf16.msra.mxu0 %v5663_v10  ;;  %4127 = vmatpush1.bf16.msra.mxu1 %v5665_v11  ;;  %v5711_v10 = vcombine.low %v1163_v60, %v1167_v61  ;;  %v5713_v11 = vcombine.low %v1164_v62, %v1168_v63  ;;  %v1211_v60 = vld [vmem:[#allocation8 + $0xf40] sm:$0xff]  ;;  %v1212_v62 = vld [vmem:[#allocation8 + $0xf48] sm:$0xff] }
 0x204   :  { %3964 = vmatprep.subr.bf16.mxu0 %v5672_v13  ;;  %4128 = vmatprep.subr.bf16.mxu1 %v5674_v19  ;;  %v5720_v13 = vcombine.high %v1171_v5, %v1175_v7  ;;  %v5722_v19 = vcombine.high %v1172_v35, %v1176_v8  ;;  %v1215_v61 = vld [vmem:[#allocation8 + $0xf60] sm:$0xff]  ;;  %v1216_v63 = vld [vmem:[#allocation8 + $0xf68] sm:$0xff] }
 0x207   :  { %3965 = vmatpush1.bf16.msra.mxu0 %v5671_v24  ;;  %4129 = vmatpush1.bf16.msra.mxu1 %v5673_v25  ;;  %v5719_v24 = vcombine.low %v1171_v5, %v1175_v7  ;;  %v5721_v25 = vcombine.low %v1172_v35, %v1176_v8  ;;  %v5762_v5 = vcombine.high %v1212_v62, %v1216_v63  ;;  %v1219_v7 = vld [vmem:[#allocation8 + $0xf80] sm:$0xff]  ;;  %v1220_v8 = vld [vmem:[#allocation8 + $0xf88] sm:$0xff] }
 0x208   :  { %3966 = vmatprep.subr.bf16.mxu0 %v5680_v28  ;;  %4130 = vmatprep.subr.bf16.mxu1 %v5682_v29  ;;  %v5728_v28 = vcombine.high %v1179_v6, %v1183_v20  ;;  %v5730_v29 = vcombine.high %v1180_v22, %v1184_v23  ;;  %v1223_v35 = vld [vmem:[#allocation8 + $0xfa0] sm:$0xff] }
 0x20b   :  { %3967 = vmatpush1.bf16.msra.mxu0 %v5679_v38  ;;  %4131 = vmatpush1.bf16.msra.mxu1 %v5681_v39  ;;  %v5727_v38 = vcombine.low %v1179_v6, %v1183_v20  ;;  %v5729_v39 = vcombine.low %v1180_v22, %v1184_v23  ;;  %v5768_v20 = vcombine.high %v1219_v7, %v1223_v35  ;;  %v1227_v23 = vld [vmem:[#allocation8 + $0xfc0] sm:$0xff] }
 0x20c   :  { %3968 = vmatprep.subr.bf16.mxu0 %v5688_v40  ;;  %4132 = vmatprep.subr.bf16.mxu1 %v5690_v42  ;;  %v5736_v40 = vcombine.high %v1187_v30, %v1191_v32  ;;  %v5738_v42 = vcombine.high %v1188_v33, %v1192_v37 }
 0x20f   :  { %3969 = vmatpush1.bf16.msra.mxu0 %v5687_v47  ;;  %4133 = vmatpush1.bf16.msra.mxu1 %v5689_v48  ;;  %v5735_v47 = vcombine.low %v1187_v30, %v1191_v32  ;;  %v5737_v48 = vcombine.low %v1188_v33, %v1192_v37 }
 0x210   :  { %3970 = vmatprep.subr.bf16.mxu0 %v5696_v49  ;;  %4134 = vmatprep.subr.bf16.mxu1 %v5698_v50  ;;  %v5744_v49 = vcombine.high %v1195_v43, %v1199_v0  ;;  %v5746_v50 = vcombine.high %v1196_v45, %v1200_v46 }
 0x213   :  { %3971 = vmatpush1.bf16.msra.mxu0 %v5695_v56  ;;  %4135 = vmatpush1.bf16.msra.mxu1 %v5697_v41  ;;  %v5743_v56 = vcombine.low %v1195_v43, %v1199_v0  ;;  %v5745_v41 = vcombine.low %v1196_v45, %v1200_v46 }
 0x214   :  { %3972 = vmatprep.subr.bf16.mxu0 %v5704_v57  ;;  %4136 = vmatprep.subr.bf16.mxu1 %v5706_v59  ;;  %v5752_v57 = vcombine.high %v1203_v51, %v1207_v52  ;;  %v5754_v59 = vcombine.high %v1204_v55, %v1208_v16 }
 0x217   :  { %3973 = vmatpush1.bf16.msra.mxu0 %v5703_v2  ;;  %4137 = vmatpush1.bf16.msra.mxu1 %v5705_v58  ;;  %v5751_v2 = vcombine.low %v1203_v51, %v1207_v52  ;;  %v5753_v58 = vcombine.low %v1204_v55, %v1208_v16 }
 0x218   :  { %3974 = vmatprep.subr.bf16.mxu0 %v5712_v3  ;;  %4138 = vmatprep.subr.bf16.mxu1 %v5714_v4  ;;  %v209_v3 = vsub.s32 6, %v6403_v14  ;;  %v5760_v4 = vcombine.high %v1211_v60, %v1215_v61 }
 0x21b   :  { %3975 = vmatpush1.bf16.msra.mxu0 %v5711_v10  ;;  %4139 = vmatpush1.bf16.msra.mxu1 %v5713_v11  ;;  %v1224_v10 = vld [vmem:[#allocation8 + $0xfa8] sm:$0xff]  ;;  %v5759_v11 = vcombine.low %v1211_v60, %v1215_v61  ;;  %v746_v60 = vld [vmem:[#allocation8 + $0xb8] sm:$0xff] }
 0x21c   :  { %3976 = vmatprep.subr.bf16.mxu0 %v5720_v13  ;;  %4140 = vmatprep.subr.bf16.mxu1 %v5722_v19  ;;  %v5761_v13 = vcombine.low %v1212_v62, %v1216_v63  ;;  %v6069_v19 = vld [vmem:[#allocation7] sm:$0xff]  ;;  %v5770_v22 = vcombine.high %v1220_v8, %v1224_v10  ;;  %v5769_v30 = vcombine.low %v1220_v8, %v1224_v10 }
 0x21d   :  { %v210_v6 = vrot.slane %v6069_v19, %v209_v3  ;;  %v761_v19 = vld [vmem:[#allocation8 + $0x130] sm:$0xff] }
 0x21f   :  { %3977 = vmatpush1.bf16.msra.mxu0 %v5719_v24  ;;  %4141 = vmatpush1.bf16.msra.mxu1 %v5721_v25  ;;  %v1231_v24 = vld [vmem:[#allocation8 + $0xfe0] sm:$0xff]  ;;  %v1228_v25 = vld [vmem:[#allocation8 + $0xfc8] sm:$0xff]  ;;  %v701_v32 = vadd.f32 %v6437_v53, %v210_v6  ;;  %v734_v53 = vld [vmem:[#allocation8 + $0x58] sm:$0xff] }
 0x220   :  { %3978 = vmatprep.subr.bf16.mxu0 %v5728_v28  ;;  %4142 = vmatprep.subr.bf16.mxu1 %v5730_v29  ;;  %v1232_v28 = vld [vmem:[#allocation8 + $0xfe8] sm:$0xff]  ;;  %v5767_v29 = vcombine.low %v1219_v7, %v1223_v35  ;;  %v5776_v33 = vcombine.high %v1227_v23, %v1231_v24  ;;  %v5775_v43 = vcombine.low %v1227_v23, %v1231_v24  ;;  %v754_v7 = vld [vmem:[#allocation8 + $0xf8] sm:$0xff] }
 0x221   :  { %v5778_v37 = vcombine.high %v1228_v25, %v1232_v28  ;;  %v5777_v0 = vcombine.low %v1228_v25, %v1232_v28  ;;  %v713_v45 = vmax.f32 %v701_v32, 0.0  ;;  %v762_v6 = vld [vmem:[#allocation8 + $0x138] sm:$0xff]  ;;  %v765_v25 = vld [vmem:[#allocation8 + $0x150] sm:$0xff] }
 0x222   :  { %v769_v28 = vld [vmem:[#allocation8 + $0x170] sm:$0xff] }
 0x223   :  { %3979 = vmatpush1.bf16.msra.mxu0 %v5727_v38  ;;  %4143 = vmatpush1.bf16.msra.mxu1 %v5729_v39  ;;  %v725_v38 = vld [vmem:[#allocation8 + $0x10] sm:$0xff]  ;;  %v6481_v52 = vpack.c.bf16 %v713_v45, %v713_v45 }
 0x224   :  { %3980 = vmatprep.subr.bf16.mxu0 %v5736_v40  ;;  %4144 = vmatprep.subr.bf16.mxu1 %v5738_v42  ;;  %v729_v39 = vld [vmem:[#allocation8 + $0x30] sm:$0xff]  ;;  %v726_v40 = vld [vmem:[#allocation8 + $0x18] sm:$0xff] }
 0x225   :  { %v730_v42 = vld [vmem:[#allocation8 + $0x38] sm:$0xff]  ;;  %v5276_v46 = vcombine.high %v725_v38, %v729_v39  ;;  %v5275_v51 = vcombine.low %v725_v38, %v729_v39  ;;  %v773_v39 = vld [vmem:[#allocation8 + $0x190] sm:$0xff] }
 0x226   :  { %v5277_v55 = vcombine.low %v726_v40, %v730_v42 }
 0x227   :  { %3981 = vmatpush1.bf16.msra.mxu0 %v5735_v47  ;;  %4145 = vmatpush1.bf16.msra.mxu1 %v5737_v48  ;;  %v5278_v47 = vcombine.high %v726_v40, %v730_v42  ;;  %v733_v48 = vld [vmem:[#allocation8 + $0x50] sm:$0xff]  ;;  %v774_v42 = vld [vmem:[#allocation8 + $0x198] sm:$0xff] }
 0x228   :  { %3982 = vmatprep.subr.bf16.mxu0 %v5744_v49  ;;  %4146 = vmatprep.subr.bf16.mxu1 %v5746_v50  ;;  %v737_v49 = vld [vmem:[#allocation8 + $0x70] sm:$0xff]  ;;  %v738_v50 = vld [vmem:[#allocation8 + $0x78] sm:$0xff] }
 0x229   :  { %v5284_v16 = vcombine.high %v733_v48, %v737_v49  ;;  %v5283_v61 = vcombine.low %v733_v48, %v737_v49  ;;  %v5285_v62 = vcombine.low %v734_v53, %v738_v50  ;;  %v777_v40 = vld [vmem:[#allocation8 + $0x1b0] sm:$0xff] }
 0x22a   :  { %v781_v48 = vld [vmem:[#allocation8 + $0x1d0] sm:$0xff] }
 0x22b   :  { %3983 = vmatpush1.bf16.msra.mxu0 %v5743_v56  ;;  %4147 = vmatpush1.bf16.msra.mxu1 %v5745_v41  ;;  %v5286_v56 = vcombine.high %v734_v53, %v738_v50  ;;  %v741_v41 = vld [vmem:[#allocation8 + $0x90] sm:$0xff]  ;;  %v782_v53 = vld [vmem:[#allocation8 + $0x1d8] sm:$0xff] }
 0x22c   :  { %3984 = vmatprep.subr.bf16.mxu0 %v5752_v57  ;;  %4148 = vmatprep.subr.bf16.mxu1 %v5754_v59  ;;  %v745_v57 = vld [vmem:[#allocation8 + $0xb0] sm:$0xff]  ;;  %v742_v59 = vld [vmem:[#allocation8 + $0x98] sm:$0xff] }
 0x22d   :  { %v5292_v63 = vcombine.high %v741_v41, %v745_v57  ;;  %v5291_v35 = vcombine.low %v741_v41, %v745_v57  ;;  %v5293_v8 = vcombine.low %v742_v59, %v746_v60  ;;  %v785_v49 = vld [vmem:[#allocation8 + $0x1f0] sm:$0xff]  ;;  %v786_v50 = vld [vmem:[#allocation8 + $0x1f8] sm:$0xff] }
 0x22e   :  { %v789_v41 = vld [vmem:[#allocation8 + $0x210] sm:$0xff] }
 0x22f   :  { %3985 = vmatpush1.bf16.msra.mxu0 %v5751_v2  ;;  %4149 = vmatpush1.bf16.msra.mxu1 %v5753_v58  ;;  %v5294_v2 = vcombine.high %v742_v59, %v746_v60  ;;  %v749_v58 = vld [vmem:[#allocation8 + $0xd0] sm:$0xff]  ;;  %v790_v59 = vld [vmem:[#allocation8 + $0x218] sm:$0xff] }
 0x230   :  { %3986 = vmatprep.subr.bf16.mxu0 %v5760_v4  ;;  %4150 = vmatprep.subr.bf16.mxu1 %v5762_v5  ;;  %v753_v4 = vld [vmem:[#allocation8 + $0xf0] sm:$0xff]  ;;  %v750_v5 = vld [vmem:[#allocation8 + $0xd8] sm:$0xff] }
 0x231   :  { %v5300_v10 = vcombine.high %v749_v58, %v753_v4  ;;  %v793_v57 = vld [vmem:[#allocation8 + $0x230] sm:$0xff]  ;;  %v794_v60 = vld [vmem:[#allocation8 + $0x238] sm:$0xff] }
 0x233   :  { %3987 = vmatpush1.bf16.msra.mxu0 %v5759_v11  ;;  %4151 = vmatpush1.bf16.msra.mxu1 %v5761_v13  ;;  %v5302_v11 = vcombine.high %v750_v5, %v754_v7  ;;  %v757_v13 = vld [vmem:[#allocation8 + $0x110] sm:$0xff] }
 0x234   :  { %3988 = vmatprep.subr.bf16.mxu0 %v5768_v20  ;;  %4152 = vmatprep.subr.bf16.mxu1 %v5770_v22  ;;  %v5299_v20 = vcombine.low %v749_v58, %v753_v4  ;;  %v5301_v22 = vcombine.low %v750_v5, %v754_v7  ;;  %v5308_v23 = vcombine.high %v757_v13, %v761_v19  ;;  %v797_v58 = vld [vmem:[#allocation8 + $0x250] sm:$0xff]  ;;  %v798_v5 = vld [vmem:[#allocation8 + $0x258] sm:$0xff] }
 0x235   :  { %v5307_v32 = vcombine.low %v757_v13, %v761_v19  ;;  %v801_v4 = vld [vmem:[#allocation8 + $0x270] sm:$0xff]  ;;  %v802_v7 = vld [vmem:[#allocation8 + $0x278] sm:$0xff] }
 0x236   :  { %v805_v13 = vld [vmem:[#allocation8 + $0x290] sm:$0xff] }
 0x237   :  { %3989 = vmatpush1.bf16.msra.mxu0 %v5767_v29  ;;  %4153 = vmatpush1.bf16.msra.mxu1 %v5769_v30  ;;  %v766_v29 = vld [vmem:[#allocation8 + $0x158] sm:$0xff]  ;;  %v809_v19 = vld [vmem:[#allocation8 + $0x2b0] sm:$0xff] }
 0x238   :  { %3990 = vmatprep.subr.bf16.mxu0 %v5776_v33  ;;  %4154 = vmatprep.subr.bf16.mxu1 %v5778_v37  ;;  %v770_v30 = vld [vmem:[#allocation8 + $0x178] sm:$0xff]  ;;  %v5316_v37 = vcombine.high %v765_v25, %v769_v28 }
 0x239   :  { %v5318_v38 = vcombine.high %v766_v29, %v770_v30  ;;  %v5317_v45 = vcombine.low %v766_v29, %v770_v30  ;;  %v814_v29 = vld [vmem:[#allocation8 + $0x2d8] sm:$0xff] }
 0x23a   :  { %v818_v30 = vld [vmem:[#allocation8 + $0x2f8] sm:$0xff] }
 0x23b   :  { %3991 = vmatpush1.bf16.msra.mxu0 %v5775_v43  ;;  %4155 = vmatpush1.bf16.msra.mxu1 %v5777_v0  ;;  %v778_v43 = vld [vmem:[#allocation8 + $0x1b8] sm:$0xff]  ;;  %v5315_v0 = vcombine.low %v765_v25, %v769_v28  ;;  %v813_v25 = vld [vmem:[#allocation8 + $0x2d0] sm:$0xff] }
 0x23c   :  { %4165 = vmatprep.subr.bf16.mxu0 %v5276_v46  ;;  %4329 = vmatprep.subr.bf16.mxu1 %v5278_v47  ;;  %v5324_v46 = vcombine.high %v773_v39, %v777_v40  ;;  %v5326_v47 = vcombine.high %v774_v42, %v778_v43  ;;  %v817_v28 = vld [vmem:[#allocation8 + $0x2f0] sm:$0xff] }
 0x23e   :  { %3993 = vmatmul.mubr.bf16.vlgmr.msra.gmra.mrb[8].mxu0 %v6481_v52  ;;  %4157 = vmatmul.mubr.bf16.vlgmr.msra.gmra.mrb[8].mxu1 %v6481_v52 }
 0x23f   :  { %4166 = vmatpush1.bf16.msra.mxu0 %v5275_v51  ;;  %4197 = vmatprep.mubr.bf16.mxu0 %v6419_v34  ;;  %v5323_v51 = vcombine.low %v773_v39, %v777_v40  ;;  %v821_v39 = vld [vmem:[#allocation8 + $0x310] sm:$0xff] }
 0x240   :  { %4330 = vmatpush1.bf16.msra.mxu1 %v5277_v55  ;;  %4361 = vmatprep.mubr.bf16.mxu1 %v6419_v34  ;;  %v758_v34 = vld [vmem:[#allocation8 + $0x118] sm:$0xff]  ;;  %v5325_v55 = vcombine.low %v774_v42, %v778_v43  ;;  %v825_v40 = vld [vmem:[#allocation8 + $0x330] sm:$0xff] }
 0x241   :  { %4167 = vmatprep.subr.bf16.mxu0 %v5284_v16  ;;  %4331 = vmatprep.subr.bf16.mxu1 %v5286_v56  ;;  %v5310_v24 = vcombine.high %v758_v34, %v762_v6  ;;  %v5309_v33 = vcombine.low %v758_v34, %v762_v6  ;;  %v5332_v16 = vcombine.high %v781_v48, %v785_v49  ;;  %v806_v34 = vld [vmem:[#allocation8 + $0x298] sm:$0xff] }
 0x242   :  { %v5334_v56 = vcombine.high %v782_v53, %v786_v50  ;;  %v810_v6 = vld [vmem:[#allocation8 + $0x2b8] sm:$0xff] }
 0x243   :  { %4168 = vmatpush1.bf16.msra.mxu0 %v5283_v61  ;;  %v5331_v61 = vcombine.low %v781_v48, %v785_v49  ;;  %v822_v42 = vld [vmem:[#allocation8 + $0x318] sm:$0xff]  ;;  %v829_v48 = vld [vmem:[#allocation8 + $0x350] sm:$0xff] }
 0x244   :  { %4332 = vmatpush1.bf16.msra.mxu1 %v5285_v62  ;;  %4169 = vmatprep.subr.bf16.mxu0 %v5292_v63  ;;  %v5333_v62 = vcombine.low %v782_v53, %v786_v50  ;;  %v5340_v63 = vcombine.high %v789_v41, %v793_v57  ;;  %v826_v43 = vld [vmem:[#allocation8 + $0x338] sm:$0xff]  ;;  %v833_v49 = vld [vmem:[#allocation8 + $0x370] sm:$0xff] }
 0x245   :  { %4333 = vmatprep.subr.bf16.mxu1 %v5294_v2  ;;  %v5342_v2 = vcombine.high %v790_v59, %v794_v60  ;;  %v830_v53 = vld [vmem:[#allocation8 + $0x358] sm:$0xff] }
 0x246   :  { %v834_v50 = vld [vmem:[#allocation8 + $0x378] sm:$0xff] }
 0x247   :  { %4170 = vmatpush1.bf16.msra.mxu0 %v5291_v35  ;;  %v5339_v35 = vcombine.low %v789_v41, %v793_v57  ;;  %v837_v41 = vld [vmem:[#allocation8 + $0x390] sm:$0xff] }
 0x248   :  { %4334 = vmatpush1.bf16.msra.mxu1 %v5293_v8  ;;  %4171 = vmatprep.subr.bf16.mxu0 %v5300_v10  ;;  %v5341_v8 = vcombine.low %v790_v59, %v794_v60  ;;  %v5348_v10 = vcombine.high %v797_v58, %v801_v4  ;;  %v841_v57 = vld [vmem:[#allocation8 + $0x3b0] sm:$0xff]  ;;  %v838_v59 = vld [vmem:[#allocation8 + $0x398] sm:$0xff] }
 0x249   :  { %4335 = vmatprep.subr.bf16.mxu1 %v5302_v11  ;;  %v5350_v11 = vcombine.high %v798_v5, %v802_v7  ;;  %v842_v60 = vld [vmem:[#allocation8 + $0x3b8] sm:$0xff] }
 0x24b   :  { %4172 = vmatpush1.bf16.msra.mxu0 %v5299_v20  ;;  %v5347_v20 = vcombine.low %v797_v58, %v801_v4  ;;  %v845_v58 = vld [vmem:[#allocation8 + $0x3d0] sm:$0xff] }
 0x24c   :  { %4336 = vmatpush1.bf16.msra.mxu1 %v5301_v22  ;;  %4173 = vmatprep.subr.bf16.mxu0 %v5308_v23  ;;  %v5349_v22 = vcombine.low %v798_v5, %v802_v7  ;;  %v5356_v23 = vcombine.high %v805_v13, %v809_v19  ;;  %v849_v4 = vld [vmem:[#allocation8 + $0x3f0] sm:$0xff]  ;;  %v846_v5 = vld [vmem:[#allocation8 + $0x3d8] sm:$0xff] }
 0x24d   :  { %4337 = vmatprep.subr.bf16.mxu1 %v5310_v24  ;;  %v5358_v24 = vcombine.high %v806_v34, %v810_v6  ;;  %v850_v7 = vld [vmem:[#allocation8 + $0x3f8] sm:$0xff] }
 0x24f   :  { %4174 = vmatpush1.bf16.msra.mxu0 %v5307_v32  ;;  %v5355_v32 = vcombine.low %v805_v13, %v809_v19  ;;  %v853_v13 = vld [vmem:[#allocation8 + $0x410] sm:$0xff] }
 0x250   :  { %4338 = vmatpush1.bf16.msra.mxu1 %v5309_v33  ;;  %4175 = vmatprep.subr.bf16.mxu0 %v5316_v37  ;;  %v5357_v33 = vcombine.low %v806_v34, %v810_v6  ;;  %v5364_v37 = vcombine.high %v813_v25, %v817_v28  ;;  %v857_v19 = vld [vmem:[#allocation8 + $0x430] sm:$0xff]  ;;  %v854_v34 = vld [vmem:[#allocation8 + $0x418] sm:$0xff] }
 0x251   :  { %4339 = vmatprep.subr.bf16.mxu1 %v5318_v38  ;;  %v5366_v38 = vcombine.high %v814_v29, %v818_v30  ;;  %v858_v6 = vld [vmem:[#allocation8 + $0x438] sm:$0xff] }
 0x253   :  { %4176 = vmatpush1.bf16.msra.mxu0 %v5315_v0  ;;  %v5363_v0 = vcombine.low %v813_v25, %v817_v28  ;;  %v861_v25 = vld [vmem:[#allocation8 + $0x450] sm:$0xff] }
 0x254   :  { %4340 = vmatpush1.bf16.msra.mxu1 %v5317_v45  ;;  %4177 = vmatprep.subr.bf16.mxu0 %v5324_v46  ;;  %v5365_v45 = vcombine.low %v814_v29, %v818_v30  ;;  %v5372_v46 = vcombine.high %v821_v39, %v825_v40  ;;  %v865_v28 = vld [vmem:[#allocation8 + $0x470] sm:$0xff]  ;;  %v5403_v29 = vcombine.low %v853_v13, %v857_v19  ;;  %v862_v30 = vld [vmem:[#allocation8 + $0x458] sm:$0xff] }
 0x255   :  { %4341 = vmatprep.subr.bf16.mxu1 %v5326_v47  ;;  %v5374_v47 = vcombine.high %v822_v42, %v826_v43 }
 0x257   :  { %4178 = vmatpush1.bf16.msra.mxu0 %v5323_v51  ;;  %v5371_v51 = vcombine.low %v821_v39, %v825_v40  ;;  %v873_v39 = vld [vmem:[#allocation8 + $0x4b0] sm:$0xff] }
 0x258   :  { %4342 = vmatpush1.bf16.msra.mxu1 %v5325_v55  ;;  %4179 = vmatprep.subr.bf16.mxu0 %v5332_v16  ;;  %v5373_v55 = vcombine.low %v822_v42, %v826_v43  ;;  %v5380_v16 = vcombine.high %v829_v48, %v833_v49  ;;  %v870_v42 = vld [vmem:[#allocation8 + $0x498] sm:$0xff] }
 0x259   :  { %4343 = vmatprep.subr.bf16.mxu1 %v5334_v56  ;;  %v5382_v56 = vcombine.high %v830_v53, %v834_v50  ;;  %v874_v43 = vld [vmem:[#allocation8 + $0x4b8] sm:$0xff] }
 0x25b   :  { %4180 = vmatpush1.bf16.msra.mxu0 %v5331_v61  ;;  %v5379_v61 = vcombine.low %v829_v48, %v833_v49  ;;  %v877_v48 = vld [vmem:[#allocation8 + $0x4d0] sm:$0xff] }
 0x25c   :  { %4344 = vmatpush1.bf16.msra.mxu1 %v5333_v62  ;;  %4181 = vmatprep.subr.bf16.mxu0 %v5340_v63  ;;  %v5381_v62 = vcombine.low %v830_v53, %v834_v50  ;;  %v5388_v63 = vcombine.high %v837_v41, %v841_v57  ;;  %v881_v49 = vld [vmem:[#allocation8 + $0x4f0] sm:$0xff]  ;;  %v878_v53 = vld [vmem:[#allocation8 + $0x4d8] sm:$0xff] }
 0x25d   :  { %4345 = vmatprep.subr.bf16.mxu1 %v5342_v2  ;;  %v5390_v2 = vcombine.high %v838_v59, %v842_v60  ;;  %v882_v50 = vld [vmem:[#allocation8 + $0x4f8] sm:$0xff] }
 0x25f   :  { %4182 = vmatpush1.bf16.msra.mxu0 %v5339_v35  ;;  %v5387_v35 = vcombine.low %v837_v41, %v841_v57  ;;  %v889_v41 = vld [vmem:[#allocation8 + $0x530] sm:$0xff]  ;;  %v886_v57 = vld [vmem:[#allocation8 + $0x518] sm:$0xff] }
 0x260   :  { %4346 = vmatpush1.bf16.msra.mxu1 %v5341_v8  ;;  %4183 = vmatprep.subr.bf16.mxu0 %v5348_v10  ;;  %v5389_v8 = vcombine.low %v838_v59, %v842_v60  ;;  %v5396_v10 = vcombine.high %v845_v58, %v849_v4  ;;  %v890_v59 = vld [vmem:[#allocation8 + $0x538] sm:$0xff]  ;;  %v5429_v60 = vcombine.low %v878_v53, %v882_v50 }
 0x261   :  { %4347 = vmatprep.subr.bf16.mxu1 %v5350_v11  ;;  %v5398_v11 = vcombine.high %v846_v5, %v850_v7 }
 0x263   :  { %4184 = vmatpush1.bf16.msra.mxu0 %v5347_v20  ;;  %v5395_v20 = vcombine.low %v845_v58, %v849_v4  ;;  %v894_v58 = vld [vmem:[#allocation8 + $0x558] sm:$0xff] }
 0x264   :  { %4348 = vmatpush1.bf16.msra.mxu1 %v5349_v22  ;;  %4185 = vmatprep.subr.bf16.mxu0 %v5356_v23  ;;  %v5397_v22 = vcombine.low %v846_v5, %v850_v7  ;;  %v5404_v23 = vcombine.high %v853_v13, %v857_v19  ;;  %v898_v4 = vld [vmem:[#allocation8 + $0x578] sm:$0xff]  ;;  %v5437_v7 = vcombine.low %v886_v57, %v890_v59 }
 0x265   :  { %4349 = vmatprep.subr.bf16.mxu1 %v5358_v24  ;;  %v5406_v24 = vcombine.high %v854_v34, %v858_v6  ;;  %v902_v13 = vld [vmem:[#allocation8 + $0x598] sm:$0xff] }
 0x266   :  { %v906_v19 = vld [vmem:[#allocation8 + $0x5b8] sm:$0xff] }
 0x267   :  { %4186 = vmatpush1.bf16.msra.mxu0 %v5355_v32  ;;  %v866_v32 = vld [vmem:[#allocation8 + $0x478] sm:$0xff] }
 0x268   :  { %4350 = vmatpush1.bf16.msra.mxu1 %v5357_v33  ;;  %4187 = vmatprep.subr.bf16.mxu0 %v5364_v37  ;;  %v5405_v33 = vcombine.low %v854_v34, %v858_v6  ;;  %v5412_v37 = vcombine.high %v861_v25, %v865_v28  ;;  %v5414_v40 = vcombine.high %v862_v30, %v866_v32 }
 0x269   :  { %4351 = vmatprep.subr.bf16.mxu1 %v5366_v38  ;;  %v869_v38 = vld [vmem:[#allocation8 + $0x490] sm:$0xff]  ;;  %v5445_v6 = vcombine.low %v894_v58, %v898_v4 }
 0x26b   :  { %4188 = vmatpush1.bf16.msra.mxu0 %v5363_v0  ;;  %v5411_v0 = vcombine.low %v861_v25, %v865_v28  ;;  %v910_v25 = vld [vmem:[#allocation8 + $0x5d8] sm:$0xff] }
 0x26c   :  { %4352 = vmatpush1.bf16.msra.mxu1 %v5365_v45  ;;  %4189 = vmatprep.subr.bf16.mxu0 %v5372_v46  ;;  %v5413_v45 = vcombine.low %v862_v30, %v866_v32  ;;  %v5420_v46 = vcombine.high %v869_v38, %v873_v39  ;;  %v914_v28 = vld [vmem:[#allocation8 + $0x5f8] sm:$0xff]  ;;  %v5453_v30 = vcombine.low %v902_v13, %v906_v19 }
 0x26d   :  { %4353 = vmatprep.subr.bf16.mxu1 %v5374_v47  ;;  %v5422_v47 = vcombine.high %v870_v42, %v874_v43 }
 0x26f   :  { %4190 = vmatpush1.bf16.msra.mxu0 %v5371_v51  ;;  %v5419_v51 = vcombine.low %v869_v38, %v873_v39  ;;  %v921_v38 = vld [vmem:[#allocation8 + $0x630] sm:$0xff]  ;;  %v918_v39 = vld [vmem:[#allocation8 + $0x618] sm:$0xff] }
 0x270   :  { %4354 = vmatpush1.bf16.msra.mxu1 %v5373_v55  ;;  %4191 = vmatprep.subr.bf16.mxu0 %v5380_v16  ;;  %v5428_v55 = vcombine.high %v877_v48, %v881_v49  ;;  %v5430_v16 = vcombine.high %v878_v53, %v882_v50 }
 0x271   :  { %4355 = vmatprep.subr.bf16.mxu1 %v5382_v56  ;;  %v885_v56 = vld [vmem:[#allocation8 + $0x510] sm:$0xff] }
 0x272   :  { %v5435_v5 = vcombine.low %v885_v56, %v889_v41 }
 0x273   :  { %4192 = vmatpush1.bf16.msra.mxu0 %v5379_v61  ;;  %v5436_v61 = vcombine.high %v885_v56, %v889_v41  ;;  %v934_v56 = vld [vmem:[#allocation8 + $0x698] sm:$0xff] }
 0x274   :  { %4356 = vmatpush1.bf16.msra.mxu1 %v5381_v62  ;;  %4193 = vmatprep.subr.bf16.mxu0 %v5388_v63  ;;  %v5438_v62 = vcombine.high %v886_v57, %v890_v59  ;;  %v893_v63 = vld [vmem:[#allocation8 + $0x550] sm:$0xff]  ;;  %v938_v41 = vld [vmem:[#allocation8 + $0x6b8] sm:$0xff] }
 0x275   :  { %4357 = vmatprep.subr.bf16.mxu1 %v5390_v2  ;;  %v897_v2 = vld [vmem:[#allocation8 + $0x570] sm:$0xff] }
 0x276   :  { %v5443_v34 = vcombine.low %v893_v63, %v897_v2 }
 0x277   :  { %4194 = vmatpush1.bf16.msra.mxu0 %v5387_v35  ;;  %v5444_v35 = vcombine.high %v893_v63, %v897_v2  ;;  %v942_v63 = vld [vmem:[#allocation8 + $0x6d8] sm:$0xff] }
 0x278   :  { %4358 = vmatpush1.bf16.msra.mxu1 %v5389_v8  ;;  %4195 = vmatprep.subr.bf16.mxu0 %v5396_v10  ;;  %v5446_v8 = vcombine.high %v894_v58, %v898_v4  ;;  %v901_v10 = vld [vmem:[#allocation8 + $0x590] sm:$0xff]  ;;  %v946_v2 = vld [vmem:[#allocation8 + $0x6f8] sm:$0xff]  ;;  %v5485_v4 = vcombine.low %v934_v56, %v938_v41 }
 0x279   :  { %4359 = vmatprep.subr.bf16.mxu1 %v5398_v11  ;;  %v905_v11 = vld [vmem:[#allocation8 + $0x5b0] sm:$0xff] }
 0x27b   :  { %4196 = vmatpush1.bf16.msra.mxu0 %v5395_v20  ;;  %v5452_v20 = vcombine.high %v901_v10, %v905_v11 }
 0x27c   :  { %4360 = vmatpush1.bf16.msra.mxu1 %v5397_v22  ;;  %4206 = vmatprep.subr.bf16.mxu0 %v5404_v23  ;;  %v5454_v22 = vcombine.high %v902_v13, %v906_v19  ;;  %v909_v23 = vld [vmem:[#allocation8 + $0x5d0] sm:$0xff]  ;;  %v5493_v19 = vcombine.low %v942_v63, %v946_v2 }
 0x27d   :  { %4370 = vmatprep.subr.bf16.mxu1 %v5406_v24  ;;  %v913_v24 = vld [vmem:[#allocation8 + $0x5f0] sm:$0xff] }
 0x27e   :  { %4198 = vmatmul.mubr.bf16.vlgmr.msra.gmra.mrb[12].mxu0 %v6423_v36  ;;  %v5460_v32 = vcombine.high %v909_v23, %v913_v24 }
 0x27f   :  { %4362 = vmatmul.mubr.bf16.vlgmr.msra.gmra.mrb[12].mxu1 %v6423_v36  ;;  %4207 = vmatpush1.bf16.msra.mxu0 %v5403_v29  ;;  %v5421_v36 = vcombine.low %v870_v42, %v874_v43  ;;  %v5451_v29 = vcombine.low %v901_v10, %v905_v11  ;;  %v5459_v42 = vcombine.low %v909_v23, %v913_v24  ;;  %v950_v10 = vld [vmem:[#allocation8 + $0x718] sm:$0xff] }
 0x280   :  { %4238 = vmatprep.mubr.bf16.mxu0 %v6429_v54  ;;  %4371 = vmatpush1.bf16.msra.mxu1 %v5405_v33  ;;  %v5462_v33 = vcombine.high %v910_v25, %v914_v28  ;;  %v5461_v43 = vcombine.low %v910_v25, %v914_v28  ;;  %v954_v11 = vld [vmem:[#allocation8 + $0x738] sm:$0xff] }
 0x281   :  { %4402 = vmatprep.mubr.bf16.mxu1 %v6429_v54  ;;  %4208 = vmatprep.subr.bf16.mxu0 %v5412_v37  ;;  %v5427_v54 = vcombine.low %v877_v48, %v881_v49  ;;  %v917_v37 = vld [vmem:[#allocation8 + $0x610] sm:$0xff]  ;;  %v926_v48 = vld [vmem:[#allocation8 + $0x658] sm:$0xff]  ;;  %v5501_v28 = vcombine.low %v950_v10, %v954_v11 }
 0x282   :  { %4372 = vmatprep.subr.bf16.mxu1 %v5414_v40  ;;  %v922_v40 = vld [vmem:[#allocation8 + $0x638] sm:$0xff]  ;;  %v5467_v53 = vcombine.low %v917_v37, %v921_v38 }
 0x283   :  { %4209 = vmatpush1.bf16.msra.mxu0 %v5411_v0  ;;  %v5468_v0 = vcombine.high %v917_v37, %v921_v38  ;;  %v930_v49 = vld [vmem:[#allocation8 + $0x678] sm:$0xff]  ;;  %v5469_v50 = vcombine.low %v918_v39, %v922_v40 }
 0x284   :  { %4373 = vmatpush1.bf16.msra.mxu1 %v5413_v45  ;;  %4210 = vmatprep.subr.bf16.mxu0 %v5420_v46  ;;  %v5470_v45 = vcombine.high %v918_v39, %v922_v40  ;;  %v925_v46 = vld [vmem:[#allocation8 + $0x650] sm:$0xff]  ;;  %v5477_v59 = vcombine.low %v926_v48, %v930_v49  ;;  %v958_v23 = vld [vmem:[#allocation8 + $0x758] sm:$0xff] }
 0x285   :  { %4374 = vmatprep.subr.bf16.mxu1 %v5422_v47  ;;  %v929_v47 = vld [vmem:[#allocation8 + $0x670] sm:$0xff]  ;;  %v962_v24 = vld [vmem:[#allocation8 + $0x778] sm:$0xff] }
 0x286   :  { %v5475_v57 = vcombine.low %v925_v46, %v929_v47  ;;  %v966_v37 = vld [vmem:[#allocation8 + $0x798] sm:$0xff]  ;;  %v5509_v40 = vcombine.low %v958_v23, %v962_v24 }
 0x287   :  { %4211 = vmatpush1.bf16.msra.mxu0 %v5419_v51  ;;  %v5476_v51 = vcombine.high %v925_v46, %v929_v47  ;;  %v970_v38 = vld [vmem:[#allocation8 + $0x7b8] sm:$0xff] }
 0x288   :  { %4375 = vmatpush1.bf16.msra.mxu1 %v5421_v36  ;;  %4212 = vmatprep.subr.bf16.mxu0 %v5428_v55  ;;  %v5478_v36 = vcombine.high %v926_v48, %v930_v49  ;;  %v933_v55 = vld [vmem:[#allocation8 + $0x690] sm:$0xff]  ;;  %v974_v46 = vld [vmem:[#allocation8 + $0x7d8] sm:$0xff]  ;;  %v5517_v49 = vcombine.low %v966_v37, %v970_v38 }
 0x289   :  { %4376 = vmatprep.subr.bf16.mxu1 %v5430_v16  ;;  %v937_v16 = vld [vmem:[#allocation8 + $0x6b0] sm:$0xff]  ;;  %v978_v47 = vld [vmem:[#allocation8 + $0x7f8] sm:$0xff] }
 0x28a   :  { %v5483_v58 = vcombine.low %v933_v55, %v937_v16 }
 0x28b   :  { %4213 = vmatpush1.bf16.msra.mxu0 %v5427_v54  ;;  %v5484_v54 = vcombine.high %v933_v55, %v937_v16  ;;  %v982_v55 = vld [vmem:[#allocation8 + $0x818] sm:$0xff] }
 0x28c   :  { %4377 = vmatpush1.bf16.msra.mxu1 %v5429_v60  ;;  %4214 = vmatprep.subr.bf16.mxu0 %v5436_v61  ;;  %v5486_v60 = vcombine.high %v934_v56, %v938_v41  ;;  %v941_v61 = vld [vmem:[#allocation8 + $0x6d0] sm:$0xff]  ;;  %v986_v16 = vld [vmem:[#allocation8 + $0x838] sm:$0xff]  ;;  %v5525_v41 = vcombine.low %v974_v46, %v978_v47 }
 0x28d   :  { %4378 = vmatprep.subr.bf16.mxu1 %v5438_v62  ;;  %v945_v62 = vld [vmem:[#allocation8 + $0x6f0] sm:$0xff] }
 0x28e   :  { %v5491_v13 = vcombine.low %v941_v61, %v945_v62 }
 0x28f   :  { %4215 = vmatpush1.bf16.msra.mxu0 %v5435_v5  ;;  %v5492_v5 = vcombine.high %v941_v61, %v945_v62  ;;  %v990_v62 = vld [vmem:[#allocation8 + $0x858] sm:$0xff] }
 0x290   :  { %4379 = vmatpush1.bf16.msra.mxu1 %v5437_v7  ;;  %4216 = vmatprep.subr.bf16.mxu0 %v5444_v35  ;;  %v5494_v7 = vcombine.high %v942_v63, %v946_v2  ;;  %v949_v35 = vld [vmem:[#allocation8 + $0x710] sm:$0xff]  ;;  %v994_v63 = vld [vmem:[#allocation8 + $0x878] sm:$0xff]  ;;  %v5533_v2 = vcombine.low %v982_v55, %v986_v16 }
 0x291   :  { %4380 = vmatprep.subr.bf16.mxu1 %v5446_v8  ;;  %v953_v8 = vld [vmem:[#allocation8 + $0x730] sm:$0xff] }
 0x292   :  { %v5499_v25 = vcombine.low %v949_v35, %v953_v8 }
 0x293   :  { %4217 = vmatpush1.bf16.msra.mxu0 %v5443_v34  ;;  %v5500_v34 = vcombine.high %v949_v35, %v953_v8  ;;  %v998_v35 = vld [vmem:[#allocation8 + $0x898] sm:$0xff] }
 0x294   :  { %4381 = vmatpush1.bf16.msra.mxu1 %v5445_v6  ;;  %4218 = vmatprep.subr.bf16.mxu0 %v5452_v20  ;;  %v5502_v6 = vcombine.high %v950_v10, %v954_v11  ;;  %v957_v20 = vld [vmem:[#allocation8 + $0x750] sm:$0xff]  ;;  %v1002_v8 = vld [vmem:[#allocation8 + $0x8b8] sm:$0xff]  ;;  %v5541_v11 = vcombine.low %v990_v62, %v994_v63 }
 0x295   :  { %4382 = vmatprep.subr.bf16.mxu1 %v5454_v22  ;;  %v961_v22 = vld [vmem:[#allocation8 + $0x770] sm:$0xff] }
 0x296   :  { %v5507_v39 = vcombine.low %v957_v20, %v961_v22 }
 0x297   :  { %4219 = vmatpush1.bf16.msra.mxu0 %v5451_v29  ;;  %v5508_v29 = vcombine.high %v957_v20, %v961_v22  ;;  %v1006_v20 = vld [vmem:[#allocation8 + $0x8d8] sm:$0xff] }
 0x298   :  { %4383 = vmatpush1.bf16.msra.mxu1 %v5453_v30  ;;  %4220 = vmatprep.subr.bf16.mxu0 %v5460_v32  ;;  %v5510_v30 = vcombine.high %v958_v23, %v962_v24  ;;  %v965_v32 = vld [vmem:[#allocation8 + $0x790] sm:$0xff]  ;;  %v1010_v22 = vld [vmem:[#allocation8 + $0x8f8] sm:$0xff] }
 0x299   :  { %4384 = vmatprep.subr.bf16.mxu1 %v5462_v33  ;;  %v969_v33 = vld [vmem:[#allocation8 + $0x7b0] sm:$0xff] }
 0x29a   :  { %v5515_v48 = vcombine.low %v965_v32, %v969_v33 }
 0x29b   :  { %4221 = vmatpush1.bf16.msra.mxu0 %v5459_v42  ;;  %v5516_v42 = vcombine.high %v965_v32, %v969_v33  ;;  %v1018_v32 = vld [vmem:[#allocation8 + $0x938] sm:$0xff]  ;;  %v5557_v33 = vcombine.low %v1006_v20, %v1010_v22 }
 0x29c   :  { %4385 = vmatpush1.bf16.msra.mxu1 %v5461_v43  ;;  %4222 = vmatprep.subr.bf16.mxu0 %v5468_v0  ;;  %v5518_v43 = vcombine.high %v966_v37, %v970_v38  ;;  %v973_v0 = vld [vmem:[#allocation8 + $0x7d0] sm:$0xff] }
 0x29d   :  { %4386 = vmatprep.subr.bf16.mxu1 %v5470_v45  ;;  %v977_v45 = vld [vmem:[#allocation8 + $0x7f0] sm:$0xff] }
 0x29e   :  { %v5523_v56 = vcombine.low %v973_v0, %v977_v45 }
 0x29f   :  { %4223 = vmatpush1.bf16.msra.mxu0 %v5467_v53  ;;  %v5524_v53 = vcombine.high %v973_v0, %v977_v45 }
 0x2a0   :  { %4387 = vmatpush1.bf16.msra.mxu1 %v5469_v50  ;;  %4224 = vmatprep.subr.bf16.mxu0 %v5476_v51  ;;  %v5526_v50 = vcombine.high %v974_v46, %v978_v47  ;;  %v981_v51 = vld [vmem:[#allocation8 + $0x810] sm:$0xff] }
 0x2a1   :  { %4388 = vmatprep.subr.bf16.mxu1 %v5478_v36  ;;  %v985_v36 = vld [vmem:[#allocation8 + $0x830] sm:$0xff] }
 0x2a2   :  { %v5531_v61 = vcombine.low %v981_v51, %v985_v36 }
 0x2a3   :  { %4225 = vmatpush1.bf16.msra.mxu0 %v5475_v57  ;;  %v5532_v57 = vcombine.high %v981_v51, %v985_v36 }
 0x2a4   :  { %4389 = vmatpush1.bf16.msra.mxu1 %v5477_v59  ;;  %4226 = vmatprep.subr.bf16.mxu0 %v5484_v54  ;;  %v5534_v59 = vcombine.high %v982_v55, %v986_v16  ;;  %v989_v54 = vld [vmem:[#allocation8 + $0x850] sm:$0xff] }
 0x2a5   :  { %4390 = vmatprep.subr.bf16.mxu1 %v5486_v60  ;;  %v993_v60 = vld [vmem:[#allocation8 + $0x870] sm:$0xff] }
 0x2a6   :  { %v5539_v10 = vcombine.low %v989_v54, %v993_v60 }
 0x2a7   :  { %4227 = vmatpush1.bf16.msra.mxu0 %v5483_v58  ;;  %v5540_v58 = vcombine.high %v989_v54, %v993_v60 }
 0x2a8   :  { %4391 = vmatpush1.bf16.msra.mxu1 %v5485_v4  ;;  %4228 = vmatprep.subr.bf16.mxu0 %v5492_v5  ;;  %v997_v4 = vld [vmem:[#allocation8 + $0x890] sm:$0xff] }
 0x2a9   :  { %4392 = vmatprep.subr.bf16.mxu1 %v5494_v7  ;;  %v1001_v5 = vld [vmem:[#allocation8 + $0x8b0] sm:$0xff]  ;;  %v5542_v7 = vcombine.high %v990_v62, %v994_v63 }
 0x2aa   :  { %v5547_v23 = vcombine.low %v997_v4, %v1001_v5  ;;  %v1045_v63 = vld [vmem:[#allocation8 + $0xa10] sm:$0xff] }
 0x2ab   :  { %4229 = vmatpush1.bf16.msra.mxu0 %v5491_v13  ;;  %v5548_v13 = vcombine.high %v997_v4, %v1001_v5  ;;  %v1050_v4 = vld [vmem:[#allocation8 + $0xa38] sm:$0xff] }
 0x2ac   :  { %4393 = vmatpush1.bf16.msra.mxu1 %v5493_v19  ;;  %4230 = vmatprep.subr.bf16.mxu0 %v5500_v34  ;;  %v5550_v19 = vcombine.high %v998_v35, %v1002_v8  ;;  %v1005_v34 = vld [vmem:[#allocation8 + $0x8d0] sm:$0xff] }
 0x2ad   :  { %4394 = vmatprep.subr.bf16.mxu1 %v5502_v6  ;;  %v1009_v6 = vld [vmem:[#allocation8 + $0x8f0] sm:$0xff] }
 0x2ae   :  { %v5556_v24 = vcombine.high %v1005_v34, %v1009_v6 }
 0x2af   :  { %4231 = vmatpush1.bf16.msra.mxu0 %v5499_v25  ;;  %v5558_v25 = vcombine.high %v1006_v20, %v1010_v22 }
 0x2b0   :  { %4395 = vmatpush1.bf16.msra.mxu1 %v5501_v28  ;;  %4232 = vmatprep.subr.bf16.mxu0 %v5508_v29  ;;  %v1013_v28 = vld [vmem:[#allocation8 + $0x910] sm:$0xff] }
 0x2b1   :  { %4396 = vmatprep.subr.bf16.mxu1 %v5510_v30  ;;  %v1017_v29 = vld [vmem:[#allocation8 + $0x930] sm:$0xff]  ;;  %v1014_v30 = vld [vmem:[#allocation8 + $0x918] sm:$0xff] }
 0x2b2   :  { %v5564_v37 = vcombine.high %v1013_v28, %v1017_v29  ;;  %v5566_v38 = vcombine.high %v1014_v30, %v1018_v32  ;;  %v5563_v0 = vcombine.low %v1013_v28, %v1017_v29  ;;  %v5565_v45 = vcombine.low %v1014_v30, %v1018_v32 }
 0x2b3   :  { %4233 = vmatpush1.bf16.msra.mxu0 %v5507_v39  ;;  %v1021_v39 = vld [vmem:[#allocation8 + $0x950] sm:$0xff] }
 0x2b4   :  { %4397 = vmatpush1.bf16.msra.mxu1 %v5509_v40  ;;  %4234 = vmatprep.subr.bf16.mxu0 %v5516_v42  ;;  %v1025_v40 = vld [vmem:[#allocation8 + $0x970] sm:$0xff]  ;;  %v1022_v42 = vld [vmem:[#allocation8 + $0x958] sm:$0xff] }
 0x2b5   :  { %4398 = vmatprep.subr.bf16.mxu1 %v5518_v43  ;;  %v1026_v43 = vld [vmem:[#allocation8 + $0x978] sm:$0xff]  ;;  %v5572_v46 = vcombine.high %v1021_v39, %v1025_v40  ;;  %v5571_v51 = vcombine.low %v1021_v39, %v1025_v40 }
 0x2b6   :  { %v5574_v47 = vcombine.high %v1022_v42, %v1026_v43  ;;  %v5573_v36 = vcombine.low %v1022_v42, %v1026_v43 }
 0x2b7   :  { %4235 = vmatpush1.bf16.msra.mxu0 %v5515_v48  ;;  %v1029_v48 = vld [vmem:[#allocation8 + $0x990] sm:$0xff] }
 0x2b8   :  { %4399 = vmatpush1.bf16.msra.mxu1 %v5517_v49  ;;  %4236 = vmatprep.subr.bf16.mxu0 %v5524_v53  ;;  %v1033_v49 = vld [vmem:[#allocation8 + $0x9b0] sm:$0xff]  ;;  %v1030_v53 = vld [vmem:[#allocation8 + $0x998] sm:$0xff] }
 0x2b9   :  { %4400 = vmatprep.subr.bf16.mxu1 %v5526_v50  ;;  %v1034_v50 = vld [vmem:[#allocation8 + $0x9b8] sm:$0xff]  ;;  %v5580_v55 = vcombine.high %v1029_v48, %v1033_v49  ;;  %v5579_v54 = vcombine.low %v1029_v48, %v1033_v49 }
 0x2ba   :  { %v5582_v16 = vcombine.high %v1030_v53, %v1034_v50  ;;  %v5581_v60 = vcombine.low %v1030_v53, %v1034_v50 }
 0x2bb   :  { %4237 = vmatpush1.bf16.msra.mxu0 %v5523_v56  ;;  %v1037_v56 = vld [vmem:[#allocation8 + $0x9d0] sm:$0xff] }
 0x2bc   :  { %4401 = vmatpush1.bf16.msra.mxu1 %v5525_v41  ;;  %4247 = vmatprep.subr.bf16.mxu0 %v5532_v57  ;;  %v1041_v41 = vld [vmem:[#allocation8 + $0x9f0] sm:$0xff]  ;;  %v1038_v57 = vld [vmem:[#allocation8 + $0x9d8] sm:$0xff] }
 0x2bd   :  { %4411 = vmatprep.subr.bf16.mxu1 %v5534_v59  ;;  %v1042_v59 = vld [vmem:[#allocation8 + $0x9f8] sm:$0xff]  ;;  %v5587_v5 = vcombine.low %v1037_v56, %v1041_v41 }
 0x2be   :  { %4239 = vmatmul.mubr.bf16.vlgmr.msra.gmra.mrb[12].mxu0 %v6451_v18  ;;  %v5590_v62 = vcombine.high %v1038_v57, %v1042_v59 }
 0x2bf   :  { %4403 = vmatmul.mubr.bf16.vlgmr.msra.gmra.mrb[12].mxu1 %v6451_v18  ;;  %4248 = vmatpush1.bf16.msra.mxu0 %v5531_v61  ;;  %v5549_v18 = vcombine.low %v998_v35, %v1002_v8  ;;  %v5588_v61 = vcombine.high %v1037_v56, %v1041_v41 }
 0x2c0   :  { %4279 = vmatprep.mubr.bf16.mxu0 %v6453_v27  ;;  %4412 = vmatpush1.bf16.msra.mxu1 %v5533_v2  ;;  %v1049_v2 = vld [vmem:[#allocation8 + $0xa30] sm:$0xff] }
 0x2c1   :  { %4443 = vmatprep.mubr.bf16.mxu1 %v6453_v27  ;;  %4249 = vmatprep.subr.bf16.mxu0 %v5540_v58  ;;  %v5555_v27 = vcombine.low %v1005_v34, %v1009_v6  ;;  %v1046_v58 = vld [vmem:[#allocation8 + $0xa18] sm:$0xff]  ;;  %v5596_v35 = vcombine.high %v1045_v63, %v1049_v2  ;;  %v5595_v34 = vcombine.low %v1045_v63, %v1049_v2 }
 0x2c2   :  { %4413 = vmatprep.subr.bf16.mxu1 %v5542_v7  ;;  %v5589_v7 = vcombine.low %v1038_v57, %v1042_v59  ;;  %v5598_v8 = vcombine.high %v1046_v58, %v1050_v4  ;;  %v5597_v6 = vcombine.low %v1046_v58, %v1050_v4 }
 0x2c3   :  { %4250 = vmatpush1.bf16.msra.mxu0 %v5539_v10  ;;  %v1053_v10 = vld [vmem:[#allocation8 + $0xa50] sm:$0xff] }
 0x2c4   :  { %4414 = vmatpush1.bf16.msra.mxu1 %v5541_v11  ;;  %4251 = vmatprep.subr.bf16.mxu0 %v5548_v13  ;;  %v1057_v11 = vld [vmem:[#allocation8 + $0xa70] sm:$0xff]  ;;  %v1054_v13 = vld [vmem:[#allocation8 + $0xa58] sm:$0xff] }
 0x2c5   :  { %4415 = vmatprep.subr.bf16.mxu1 %v5550_v19  ;;  %v1058_v19 = vld [vmem:[#allocation8 + $0xa78] sm:$0xff]  ;;  %v5604_v20 = vcombine.high %v1053_v10, %v1057_v11  ;;  %v5603_v28 = vcombine.low %v1053_v10, %v1057_v11 }
 0x2c6   :  { %v5606_v22 = vcombine.high %v1054_v13, %v1058_v19  ;;  %v5605_v29 = vcombine.low %v1054_v13, %v1058_v19 }
 0x2c7   :  { %4252 = vmatpush1.bf16.msra.mxu0 %v5547_v23  ;;  %v1061_v23 = vld [vmem:[#allocation8 + $0xa90] sm:$0xff] }
 0x2c8   :  { %4416 = vmatpush1.bf16.msra.mxu1 %v5549_v18  ;;  %4253 = vmatprep.subr.bf16.mxu0 %v5556_v24  ;;  %v1065_v18 = vld [vmem:[#allocation8 + $0xab0] sm:$0xff]  ;;  %v1062_v24 = vld [vmem:[#allocation8 + $0xa98] sm:$0xff] }
 0x2c9   :  { %4417 = vmatprep.subr.bf16.mxu1 %v5558_v25  ;;  %v1066_v25 = vld [vmem:[#allocation8 + $0xab8] sm:$0xff]  ;;  %v5612_v30 = vcombine.high %v1061_v23, %v1065_v18  ;;  %v5611_v39 = vcombine.low %v1061_v23, %v1065_v18 }
 0x2ca   :  { %v5614_v32 = vcombine.high %v1062_v24, %v1066_v25  ;;  %v5613_v40 = vcombine.low %v1062_v24, %v1066_v25 }
 0x2cb   :  { %4254 = vmatpush1.bf16.msra.mxu0 %v5555_v27  ;;  %v1069_v27 = vld [vmem:[#allocation8 + $0xad0] sm:$0xff] }
 0x2cc   :  { %4418 = vmatpush1.bf16.msra.mxu1 %v5557_v33  ;;  %4255 = vmatprep.subr.bf16.mxu0 %v5564_v37  ;;  %v1073_v33 = vld [vmem:[#allocation8 + $0xaf0] sm:$0xff]  ;;  %v1070_v37 = vld [vmem:[#allocation8 + $0xad8] sm:$0xff] }
 0x2cd   :  { %4419 = vmatprep.subr.bf16.mxu1 %v5566_v38  ;;  %v1074_v38 = vld [vmem:[#allocation8 + $0xaf8] sm:$0xff]  ;;  %v5620_v42 = vcombine.high %v1069_v27, %v1073_v33  ;;  %v5619_v48 = vcombine.low %v1069_v27, %v1073_v33 }
 0x2ce   :  { %v5622_v43 = vcombine.high %v1070_v37, %v1074_v38  ;;  %v5621_v49 = vcombine.low %v1070_v37, %v1074_v38  ;;  %v1122_v27 = vld [vmem:[#allocation8 + $0xc78] sm:$0xff]  ;;  %v1125_v38 = vld [vmem:[#allocation8 + $0xc90] sm:$0xff] }
 0x2cf   :  { %4256 = vmatpush1.bf16.msra.mxu0 %v5563_v0  ;;  %v1077_v0 = vld [vmem:[#allocation8 + $0xb10] sm:$0xff] }
 0x2d0   :  { %4420 = vmatpush1.bf16.msra.mxu1 %v5565_v45  ;;  %4257 = vmatprep.subr.bf16.mxu0 %v5572_v46  ;;  %v1081_v45 = vld [vmem:[#allocation8 + $0xb30] sm:$0xff]  ;;  %v1078_v46 = vld [vmem:[#allocation8 + $0xb18] sm:$0xff] }
 0x2d1   :  { %4421 = vmatprep.subr.bf16.mxu1 %v5574_v47  ;;  %v1082_v47 = vld [vmem:[#allocation8 + $0xb38] sm:$0xff]  ;;  %v5628_v53 = vcombine.high %v1077_v0, %v1081_v45  ;;  %v5627_v56 = vcombine.low %v1077_v0, %v1081_v45 }
 0x2d2   :  { %v5630_v50 = vcombine.high %v1078_v46, %v1082_v47  ;;  %v5629_v41 = vcombine.low %v1078_v46, %v1082_v47 }
 0x2d3   :  { %4258 = vmatpush1.bf16.msra.mxu0 %v5571_v51  ;;  %v1085_v51 = vld [vmem:[#allocation8 + $0xb50] sm:$0xff] }
 0x2d4   :  { %4422 = vmatpush1.bf16.msra.mxu1 %v5573_v36  ;;  %4259 = vmatprep.subr.bf16.mxu0 %v5580_v55  ;;  %v1089_v36 = vld [vmem:[#allocation8 + $0xb70] sm:$0xff]  ;;  %v1086_v55 = vld [vmem:[#allocation8 + $0xb58] sm:$0xff] }
 0x2d5   :  { %4423 = vmatprep.subr.bf16.mxu1 %v5582_v16  ;;  %v1090_v16 = vld [vmem:[#allocation8 + $0xb78] sm:$0xff]  ;;  %v5636_v57 = vcombine.high %v1085_v51, %v1089_v36  ;;  %v5635_v63 = vcombine.low %v1085_v51, %v1089_v36 }
 0x2d6   :  { %v5638_v59 = vcombine.high %v1086_v55, %v1090_v16  ;;  %v5637_v2 = vcombine.low %v1086_v55, %v1090_v16  ;;  %v1141_v16 = vld [vmem:[#allocation8 + $0xd10] sm:$0xff] }
 0x2d7   :  { %4260 = vmatpush1.bf16.msra.mxu0 %v5579_v54  ;;  %v1093_v54 = vld [vmem:[#allocation8 + $0xb90] sm:$0xff] }
 0x2d8   :  { %4424 = vmatpush1.bf16.msra.mxu1 %v5581_v60  ;;  %4261 = vmatprep.subr.bf16.mxu0 %v5588_v61  ;;  %v1097_v60 = vld [vmem:[#allocation8 + $0xbb0] sm:$0xff]  ;;  %v1094_v61 = vld [vmem:[#allocation8 + $0xb98] sm:$0xff] }
 0x2d9   :  { %4425 = vmatprep.subr.bf16.mxu1 %v5590_v62  ;;  %v1098_v62 = vld [vmem:[#allocation8 + $0xbb8] sm:$0xff]  ;;  %v5644_v58 = vcombine.high %v1093_v54, %v1097_v60  ;;  %v5643_v10 = vcombine.low %v1093_v54, %v1097_v60 }
 0x2da   :  { %v5646_v4 = vcombine.high %v1094_v61, %v1098_v62  ;;  %v5645_v11 = vcombine.low %v1094_v61, %v1098_v62  ;;  %v1149_v61 = vld [vmem:[#allocation8 + $0xd50] sm:$0xff] }
 0x2db   :  { %4262 = vmatpush1.bf16.msra.mxu0 %v5587_v5  ;;  %v1101_v5 = vld [vmem:[#allocation8 + $0xbd0] sm:$0xff] }
 0x2dc   :  { %4426 = vmatpush1.bf16.msra.mxu1 %v5589_v7  ;;  %4263 = vmatprep.subr.bf16.mxu0 %v5596_v35  ;;  %v1105_v7 = vld [vmem:[#allocation8 + $0xbf0] sm:$0xff]  ;;  %v1102_v35 = vld [vmem:[#allocation8 + $0xbd8] sm:$0xff] }
 0x2dd   :  { %4427 = vmatprep.subr.bf16.mxu1 %v5598_v8  ;;  %v1106_v8 = vld [vmem:[#allocation8 + $0xbf8] sm:$0xff]  ;;  %v5652_v13 = vcombine.high %v1101_v5, %v1105_v7  ;;  %v5651_v23 = vcombine.low %v1101_v5, %v1105_v7  ;;  %v1153_v62 = vld [vmem:[#allocation8 + $0xd70] sm:$0xff] }
 0x2de   :  { %v5654_v19 = vcombine.high %v1102_v35, %v1106_v8  ;;  %v5653_v18 = vcombine.low %v1102_v35, %v1106_v8  ;;  %v5700_v5 = vcombine.high %v1149_v61, %v1153_v62  ;;  %v1157_v35 = vld [vmem:[#allocation8 + $0xd90] sm:$0xff] }
 0x2df   :  { %4264 = vmatpush1.bf16.msra.mxu0 %v5595_v34  ;;  %v1109_v34 = vld [vmem:[#allocation8 + $0xc10] sm:$0xff] }
 0x2e0   :  { %4428 = vmatpush1.bf16.msra.mxu1 %v5597_v6  ;;  %4265 = vmatprep.subr.bf16.mxu0 %v5604_v20  ;;  %v1113_v6 = vld [vmem:[#allocation8 + $0xc30] sm:$0xff]  ;;  %v1110_v20 = vld [vmem:[#allocation8 + $0xc18] sm:$0xff] }
 0x2e1   :  { %4429 = vmatprep.subr.bf16.mxu1 %v5606_v22  ;;  %v1114_v22 = vld [vmem:[#allocation8 + $0xc38] sm:$0xff]  ;;  %v5660_v24 = vcombine.high %v1109_v34, %v1113_v6  ;;  %v1161_v8 = vld [vmem:[#allocation8 + $0xdb0] sm:$0xff] }
 0x2e2   :  { %v5662_v25 = vcombine.high %v1110_v20, %v1114_v22  ;;  %v5661_v33 = vcombine.low %v1110_v20, %v1114_v22 }
 0x2e3   :  { %4266 = vmatpush1.bf16.msra.mxu0 %v5603_v28  ;;  %v1117_v28 = vld [vmem:[#allocation8 + $0xc50] sm:$0xff] }
 0x2e4   :  { %4430 = vmatpush1.bf16.msra.mxu1 %v5605_v29  ;;  %4267 = vmatprep.subr.bf16.mxu0 %v5612_v30  ;;  %v1121_v29 = vld [vmem:[#allocation8 + $0xc70] sm:$0xff]  ;;  %v5659_v30 = vcombine.low %v1109_v34, %v1113_v6  ;;  %v5708_v34 = vcombine.high %v1157_v35, %v1161_v8 }
 0x2e5   :  { %4431 = vmatprep.subr.bf16.mxu1 %v5614_v32  ;;  %v1118_v32 = vld [vmem:[#allocation8 + $0xc58] sm:$0xff]  ;;  %v5668_v37 = vcombine.high %v1117_v28, %v1121_v29  ;;  %v5667_v0 = vcombine.low %v1117_v28, %v1121_v29 }
 0x2e6   :  { %v5669_v45 = vcombine.low %v1118_v32, %v1122_v27  ;;  %v1166_v28 = vld [vmem:[#allocation8 + $0xdd8] sm:$0xff] }
 0x2e7   :  { %4268 = vmatpush1.bf16.msra.mxu0 %v5611_v39  ;;  %v1129_v39 = vld [vmem:[#allocation8 + $0xcb0] sm:$0xff]  ;;  %v1170_v29 = vld [vmem:[#allocation8 + $0xdf8] sm:$0xff] }
 0x2e8   :  { %4432 = vmatpush1.bf16.msra.mxu1 %v5613_v40  ;;  %4269 = vmatprep.subr.bf16.mxu0 %v5620_v42  ;;  %v5670_v40 = vcombine.high %v1118_v32, %v1122_v27  ;;  %v1126_v42 = vld [vmem:[#allocation8 + $0xc98] sm:$0xff]  ;;  %v5676_v46 = vcombine.high %v1125_v38, %v1129_v39  ;;  %v5675_v51 = vcombine.low %v1125_v38, %v1129_v39 }
 0x2e9   :  { %4433 = vmatprep.subr.bf16.mxu1 %v5622_v43  ;;  %v1130_v43 = vld [vmem:[#allocation8 + $0xcb8] sm:$0xff]  ;;  %v5707_v27 = vcombine.low %v1157_v35, %v1161_v8 }
 0x2ea   :  { %v5678_v47 = vcombine.high %v1126_v42, %v1130_v43 }
 0x2eb   :  { %4270 = vmatpush1.bf16.msra.mxu0 %v5619_v48  ;;  %v1133_v48 = vld [vmem:[#allocation8 + $0xcd0] sm:$0xff] }
 0x2ec   :  { %4434 = vmatpush1.bf16.msra.mxu1 %v5621_v49  ;;  %4271 = vmatprep.subr.bf16.mxu0 %v5628_v53  ;;  %v1137_v49 = vld [vmem:[#allocation8 + $0xcf0] sm:$0xff]  ;;  %v1134_v53 = vld [vmem:[#allocation8 + $0xcd8] sm:$0xff] }
 0x2ed   :  { %4435 = vmatprep.subr.bf16.mxu1 %v5630_v50  ;;  %v1138_v50 = vld [vmem:[#allocation8 + $0xcf8] sm:$0xff]  ;;  %v5684_v36 = vcombine.high %v1133_v48, %v1137_v49 }
 0x2ee   :  { %v5686_v55 = vcombine.high %v1134_v53, %v1138_v50 }
 0x2ef   :  { %4272 = vmatpush1.bf16.msra.mxu0 %v5627_v56  ;;  %v1145_v56 = vld [vmem:[#allocation8 + $0xd30] sm:$0xff] }
 0x2f0   :  { %4436 = vmatpush1.bf16.msra.mxu1 %v5629_v41  ;;  %4273 = vmatprep.subr.bf16.mxu0 %v5636_v57  ;;  %v1142_v41 = vld [vmem:[#allocation8 + $0xd18] sm:$0xff]  ;;  %v5692_v54 = vcombine.high %v1141_v16, %v1145_v56 }
 0x2f1   :  { %4437 = vmatprep.subr.bf16.mxu1 %v5638_v59  ;;  %v1146_v57 = vld [vmem:[#allocation8 + $0xd38] sm:$0xff]  ;;  %v5685_v59 = vcombine.low %v1134_v53, %v1138_v50  ;;  %v1181_v53 = vld [vmem:[#allocation8 + $0xe50] sm:$0xff] }
 0x2f2   :  { %v5694_v60 = vcombine.high %v1142_v41, %v1146_v57  ;;  %v1185_v50 = vld [vmem:[#allocation8 + $0xe70] sm:$0xff] }
 0x2f3   :  { %4274 = vmatpush1.bf16.msra.mxu0 %v5635_v63  ;;  %v1150_v63 = vld [vmem:[#allocation8 + $0xd58] sm:$0xff] }
 0x2f4   :  { %4438 = vmatpush1.bf16.msra.mxu1 %v5637_v2  ;;  %4275 = vmatprep.subr.bf16.mxu0 %v5644_v58  ;;  %v1154_v2 = vld [vmem:[#allocation8 + $0xd78] sm:$0xff]  ;;  %v5691_v58 = vcombine.low %v1141_v16, %v1145_v56  ;;  %v5732_v16 = vcombine.high %v1181_v53, %v1185_v50 }
 0x2f5   :  { %4439 = vmatprep.subr.bf16.mxu1 %v5646_v4  ;;  %v5693_v4 = vcombine.low %v1142_v41, %v1146_v57  ;;  %v5702_v7 = vcombine.high %v1150_v63, %v1154_v2  ;;  %v1189_v41 = vld [vmem:[#allocation8 + $0xe90] sm:$0xff] }
 0x2f6   :  { %v1193_v57 = vld [vmem:[#allocation8 + $0xeb0] sm:$0xff] }
 0x2f7   :  { %4276 = vmatpush1.bf16.msra.mxu0 %v5643_v10  ;;  %v1158_v10 = vld [vmem:[#allocation8 + $0xd98] sm:$0xff] }
 0x2f8   :  { %4440 = vmatpush1.bf16.msra.mxu1 %v5645_v11  ;;  %4277 = vmatprep.subr.bf16.mxu0 %v5652_v13  ;;  %v1162_v11 = vld [vmem:[#allocation8 + $0xdb8] sm:$0xff]  ;;  %v5699_v13 = vcombine.low %v1149_v61, %v1153_v62  ;;  %v5740_v61 = vcombine.high %v1189_v41, %v1193_v57 }
 0x2f9   :  { %4441 = vmatprep.subr.bf16.mxu1 %v5654_v19  ;;  %v5701_v19 = vcombine.low %v1150_v63, %v1154_v2  ;;  %v5710_v22 = vcombine.high %v1158_v10, %v1162_v11  ;;  %v5709_v38 = vcombine.low %v1158_v10, %v1162_v11  ;;  %v1197_v63 = vld [vmem:[#allocation8 + $0xed0] sm:$0xff] }
 0x2fa   :  { %v1201_v2 = vld [vmem:[#allocation8 + $0xef0] sm:$0xff] }
 0x2fb   :  { %4278 = vmatpush1.bf16.msra.mxu0 %v5651_v23  ;;  %v1165_v23 = vld [vmem:[#allocation8 + $0xdd0] sm:$0xff]  ;;  %v5748_v35 = vcombine.high %v1197_v63, %v1201_v2 }
 0x2fc   :  { %4442 = vmatpush1.bf16.msra.mxu1 %v5653_v18  ;;  %4288 = vmatprep.subr.bf16.mxu0 %v5660_v24  ;;  %v1169_v18 = vld [vmem:[#allocation8 + $0xdf0] sm:$0xff] }
 0x2fd   :  { %4452 = vmatprep.subr.bf16.mxu1 %v5662_v25  ;;  %v5716_v39 = vcombine.high %v1165_v23, %v1169_v18  ;;  %v1205_v10 = vld [vmem:[#allocation8 + $0xf10] sm:$0xff] }
 0x2fe   :  { %4280 = vmatmul.mubr.bf16.vlgmr.msra.gmra.mrb[12].mxu0 %v6469_v1  ;;  %v1209_v11 = vld [vmem:[#allocation8 + $0xf30] sm:$0xff] }
 0x2ff   :  { %4444 = vmatmul.mubr.bf16.vlgmr.msra.gmra.mrb[12].mxu1 %v6469_v1  ;;  %4289 = vmatpush1.bf16.msra.mxu0 %v5659_v30  ;;  %v5677_v1 = vcombine.low %v1126_v42, %v1130_v43  ;;  %v1173_v42 = vld [vmem:[#allocation8 + $0xe10] sm:$0xff] }
 0x300   :  { %4320 = vmatprep.mubr.bf16.mxu0 %v6471_v9  ;;  %4453 = vmatpush1.bf16.msra.mxu1 %v5661_v33  ;;  %v1177_v43 = vld [vmem:[#allocation8 + $0xe30] sm:$0xff] }
 0x301   :  { %4484 = vmatprep.mubr.bf16.mxu1 %v6471_v9  ;;  %4290 = vmatprep.subr.bf16.mxu0 %v5668_v37  ;;  %v5683_v9 = vcombine.low %v1133_v48, %v1137_v49  ;;  %v5724_v48 = vcombine.high %v1173_v42, %v1177_v43 }
 0x302   :  { %4454 = vmatprep.subr.bf16.mxu1 %v5670_v40  ;;  %v5718_v40 = vcombine.high %v1166_v28, %v1170_v29 }
 0x303   :  { %4291 = vmatpush1.bf16.msra.mxu0 %v5667_v0  ;;  %v1174_v0 = vld [vmem:[#allocation8 + $0xe18] sm:$0xff] }
 0x304   :  { %4455 = vmatpush1.bf16.msra.mxu1 %v5669_v45  ;;  %4292 = vmatprep.subr.bf16.mxu0 %v5676_v46  ;;  %v1178_v45 = vld [vmem:[#allocation8 + $0xe38] sm:$0xff]  ;;  %v5715_v46 = vcombine.low %v1165_v23, %v1169_v18  ;;  %v5756_v23 = vcombine.high %v1205_v10, %v1209_v11 }
 0x305   :  { %4456 = vmatprep.subr.bf16.mxu1 %v5678_v47  ;;  %v5717_v47 = vcombine.low %v1166_v28, %v1170_v29  ;;  %v5726_v49 = vcombine.high %v1174_v0, %v1178_v45  ;;  %v1213_v28 = vld [vmem:[#allocation8 + $0xf50] sm:$0xff] }
 0x306   :  { %v1217_v29 = vld [vmem:[#allocation8 + $0xf70] sm:$0xff] }
 0x307   :  { %4293 = vmatpush1.bf16.msra.mxu0 %v5675_v51  ;;  %v1182_v51 = vld [vmem:[#allocation8 + $0xe58] sm:$0xff] }
 0x308   :  { %4457 = vmatpush1.bf16.msra.mxu1 %v5677_v1  ;;  %4294 = vmatprep.subr.bf16.mxu0 %v5684_v36  ;;  %v1186_v1 = vld [vmem:[#allocation8 + $0xe78] sm:$0xff]  ;;  %v5723_v36 = vcombine.low %v1173_v42, %v1177_v43 }
 0x309   :  { %4458 = vmatprep.subr.bf16.mxu1 %v5686_v55  ;;  %v5725_v55 = vcombine.low %v1174_v0, %v1178_v45  ;;  %v5734_v56 = vcombine.high %v1182_v51, %v1186_v1  ;;  %v1222_v42 = vld [vmem:[#allocation8 + $0xf98] sm:$0xff]  ;;  %v6507_v0 = vld [vmem:[#allocation10] sm:$0xff]  ;;  %v5763_v45 = vcombine.low %v1213_v28, %v1217_v29 }
 0x30a   :  { %v1226_v43 = vld [vmem:[#allocation8 + $0xfb8] sm:$0xff] }
 0x30b   :  { %4295 = vmatpush1.bf16.msra.mxu0 %v5683_v9  ;;  %v1190_v9 = vld [vmem:[#allocation8 + $0xe98] sm:$0xff] }
 0x30c   :  { %4459 = vmatpush1.bf16.msra.mxu1 %v5685_v59  ;;  %4296 = vmatprep.subr.bf16.mxu0 %v5692_v54  ;;  %v1194_v59 = vld [vmem:[#allocation8 + $0xeb8] sm:$0xff]  ;;  %v5731_v54 = vcombine.low %v1181_v53, %v1185_v50  ;;  %v1233_v53 = vld [vmem:[#allocation8 + $0xff0] sm:$0xff]  ;;  %v1244_v50 = vrot.slane %v6507_v0, %v189_v17 }
 0x30d   :  { %4460 = vmatprep.subr.bf16.mxu1 %v5694_v60  ;;  %v5733_v60 = vcombine.low %v1182_v51, %v1186_v1  ;;  %v5742_v62 = vcombine.high %v1190_v9, %v1194_v59  ;;  %v1230_v51 = vld [vmem:[#allocation8 + $0xfd8] sm:$0xff] }
 0x30e   :  { %v1234_v1 = vld [vmem:[#allocation8 + $0xff8] sm:$0xff] }
 0x30f   :  { %4297 = vmatpush1.bf16.msra.mxu0 %v5691_v58  ;;  %v1198_v58 = vld [vmem:[#allocation8 + $0xed8] sm:$0xff] }
 0x310   :  { %4461 = vmatpush1.bf16.msra.mxu1 %v5693_v4  ;;  %4298 = vmatprep.subr.bf16.mxu0 %v5700_v5  ;;  %v1202_v4 = vld [vmem:[#allocation8 + $0xef8] sm:$0xff]  ;;  %v5739_v5 = vcombine.low %v1189_v41, %v1193_v57  ;;  %v5782_v41 = vcombine.high %v1230_v51, %v1234_v1 }
 0x311   :  { %v6499_v6 = vpop.f32.mrb[8].mxu0  ;;  %v6501_v20 = vpop.f32.mrb[8].mxu1  ;;  %4462 = vmatprep.subr.bf16.mxu1 %v5702_v7  ;;  %v5741_v7 = vcombine.low %v1190_v9, %v1194_v59  ;;  %v5750_v8 = vcombine.high %v1198_v58, %v1202_v4  ;;  %v5781_v59 = vcombine.low %v1230_v51, %v1234_v1  ;;  %v6040_v51 = vld [vmem:[#allocation11 + $0x180] sm:$0xff]   ;;  %v6041_v1 = vld [vmem:[#allocation11 + $0x148] sm:$0xff]  }
 0x312   :  { %v6503_v24 = vpop.f32.mrb[9].mxu0  ;;  %v6505_v25 = vpop.f32.mrb[9].mxu1 }
 0x313   :  { %v3998_v30 = vpop.f32.mrb[10].mxu0  ;;  %v4162_v32 = vpop.f32.mrb[10].mxu1  ;;  %4299 = vmatpush1.bf16.msra.mxu0 %v5699_v13  ;;  %v1206_v13 = vld [vmem:[#allocation8 + $0xf18] sm:$0xff]  ;;  %v5937_v57 = vadd.f32 %v6503_v24, %v1244_v50 }
 0x314   :  { %4463 = vmatpush1.bf16.msra.mxu1 %v5701_v19  ;;  %v3999_v33 = vpop.f32.mrb[11].mxu0  ;;  %v4163_v37 = vpop.f32.mrb[11].mxu1  ;;  %4300 = vmatprep.subr.bf16.mxu0 %v5708_v34  ;;  %v1210_v19 = vld [vmem:[#allocation8 + $0xf38] sm:$0xff]  ;;  %v5747_v34 = vcombine.low %v1197_v63, %v1201_v2  ;;  %v6008_v63 = vld [vmem:[#allocation11 + $0x80] sm:$0xff]   ;;  %v6009_v2 = vld [vmem:[#allocation11 + $0x48] sm:$0xff]  }
 0x315   :  { %4464 = vmatprep.subr.bf16.mxu1 %v5710_v22  ;;  %v5749_v22 = vcombine.low %v1198_v58, %v1202_v4  ;;  %v5758_v18 = vcombine.high %v1206_v13, %v1210_v19  ;;  %v1214_v30 = vld [vmem:[#allocation8 + $0xf58] sm:$0xff]  ;;  %v5757_v33 = vcombine.low %v1206_v13, %v1210_v19  ;;  %v5764_v37 = vcombine.high %v1213_v28, %v1217_v29  ;;  %v6011_v4 = vld [vmem:[#allocation11 + $0x8] sm:$0xff]   ;;  %v6018_v13 = vld [vmem:[#allocation11 + $0xd8] sm:$0xff]  }
 0x316   :  { %v1218_v32 = vld [vmem:[#allocation8 + $0xf78] sm:$0xff]  ;;  %v6020_v19 = vld [vmem:[#allocation11 + $0x98] sm:$0xff]   ;;  %v6025_v28 = vld [vmem:[#allocation11 + $0x68] sm:$0xff]  }
 0x317   :  { %4301 = vmatpush1.bf16.msra.mxu0 %v5707_v27  ;;  %v5755_v27 = vcombine.low %v1205_v10, %v1209_v11  ;;  %v6016_v10 = vld [vmem:[#allocation11 + $0x90] sm:$0xff]   ;;  %v6017_v11 = vld [vmem:[#allocation11 + $0x58] sm:$0xff]   ;;  %v6026_v29 = vld [vmem:[#allocation11 + $0xe8] sm:$0xff]  }
 0x318   :  { %4465 = vmatpush1.bf16.msra.mxu1 %v5709_v38  ;;  %4302 = vmatprep.subr.bf16.mxu0 %v5716_v39  ;;  %v5766_v38 = vcombine.high %v1214_v30, %v1218_v32  ;;  %v1221_v39 = vld [vmem:[#allocation8 + $0xf90] sm:$0xff] }
 0x319   :  { %4466 = vmatprep.subr.bf16.mxu1 %v5718_v40  ;;  %v1225_v40 = vld [vmem:[#allocation8 + $0xfb0] sm:$0xff] }
 0x31b   :  { %4303 = vmatpush1.bf16.msra.mxu0 %v5715_v46  ;;  %v5765_v46 = vcombine.low %v1214_v30, %v1218_v32  ;;  %v6027_v30 = vld [vmem:[#allocation11 + $0x28] sm:$0xff]   ;;  %v1240_v32 = vrot.slane %v6507_v0, %v185_v15 }
 0x31c   :  { %4467 = vmatpush1.bf16.msra.mxu1 %v5717_v47  ;;  %4304 = vmatprep.subr.bf16.mxu0 %v5724_v48  ;;  %v5772_v47 = vcombine.high %v1221_v39, %v1225_v40  ;;  %v5774_v48 = vcombine.high %v1222_v42, %v1226_v43 }
 0x31d   :  { %4468 = vmatprep.subr.bf16.mxu1 %v5726_v49  ;;  %v1229_v49 = vld [vmem:[#allocation8 + $0xfd0] sm:$0xff] }
 0x31e   :  { %v5779_v17 = vcombine.low %v1229_v49, %v1233_v53 }
 0x31f   :  { %4305 = vmatpush1.bf16.msra.mxu0 %v5723_v36  ;;  %v1252_v36 = vrot.slane %v6507_v0, %v197_v21  ;;  %v6006_v21 = vld [vmem:[#allocation11 + $0xc0] sm:$0xff]  }
 0x320   :  { %4469 = vmatpush1.bf16.msra.mxu1 %v5725_v55  ;;  %4306 = vmatprep.subr.bf16.mxu0 %v5732_v16  ;;  %v5771_v55 = vcombine.low %v1221_v39, %v1225_v40  ;;  %v5773_v16 = vcombine.low %v1222_v42, %v1226_v43  ;;  %v6031_v39 = vld [vmem:[#allocation11 + $0x30] sm:$0xff]   ;;  %v5936_v40 = vadd.f32 %v6499_v6, %v1240_v32  ;;  %v6033_v43 = vld [vmem:[#allocation11 + $0x78] sm:$0xff]   ;;  %v6039_v6 = vld [vmem:[#allocation11 + $0x100] sm:$0xff]  }
 0x321   :  { %4470 = vmatprep.subr.bf16.mxu1 %v5734_v56  ;;  %v5780_v56 = vcombine.high %v1229_v49, %v1233_v53  ;;  %v5939_v9 = vadd.f32 %v6505_v25, %v1252_v36  ;;  %v6010_v25 = vld [vmem:[#allocation11 + $0xc8] sm:$0xff]   ;;  %v6032_v42 = vld [vmem:[#allocation11 + $0xb0] sm:$0xff]   ;;  %v6038_v53 = vld [vmem:[#allocation11 + $0x1c0] sm:$0xff]  }
 0x322   :  { %v6042_v36 = vld [vmem:[#allocation11 + $0x1c8] sm:$0xff]  }
 0x323   :  { %4307 = vmatpush1.bf16.msra.mxu0 %v5731_v54  ;;  %v6005_v54 = vld [vmem:[#allocation11 + $0x40] sm:$0xff]  }
 0x324   :  { %4471 = vmatpush1.bf16.msra.mxu1 %v5733_v60  ;;  %4308 = vmatprep.subr.bf16.mxu0 %v5740_v61  ;;  %v4494_v60 = vmax.f32 %v5937_v57, 0.0  ;;  %v4496_v61 = vmax.f32 %v5939_v9, 0.0  ;;  %v6047_v57 = vld [vmem:[#allocation11 + $0x110] sm:$0xff]  }
 0x325   :  { %4472 = vmatprep.subr.bf16.mxu1 %v5742_v62  ;;  %v6007_v62 = vld [vmem:[#allocation11] sm:$0xff]   ;;  %v6048_v9 = vld [vmem:[#allocation11 + $0x190] sm:$0xff]  }
 0x326   :  { %v4502_v24 = vpack.c.bf16 %v4494_v60, %v4494_v60  ;;  %v4504_v58 = vpack.c.bf16 %v4496_v61, %v4496_v61  ;;  %v6053_v60 = vld [vmem:[#allocation11 + $0x160] sm:$0xff]  }
 0x327   :  { %4309 = vmatpush1.bf16.msra.mxu0 %v5739_v5  ;;  %v6012_v5 = vld [vmem:[#allocation11 + $0x88] sm:$0xff]   ;;  %v6054_v61 = vld [vmem:[#allocation11 + $0x1e0] sm:$0xff]  }
 0x328   :  { %4473 = vmatpush1.bf16.msra.mxu1 %v5741_v7  ;;  %4310 = vmatprep.subr.bf16.mxu0 %v5748_v35  ;;  %v6013_v7 = vld [vmem:[#allocation11 + $0x50] sm:$0xff]  }
 0x329   :  { %4474 = vmatprep.subr.bf16.mxu1 %v5750_v8  ;;  %v6014_v35 = vld [vmem:[#allocation11 + $0xd0] sm:$0xff]  }
 0x32a   :  { %v6015_v8 = vld [vmem:[#allocation11 + $0x10] sm:$0xff]  }
 0x32b   :  { %4311 = vmatpush1.bf16.msra.mxu0 %v5747_v34  ;;  %v6021_v34 = vld [vmem:[#allocation11 + $0x60] sm:$0xff]  }
 0x32c   :  { %4475 = vmatpush1.bf16.msra.mxu1 %v5749_v22  ;;  %4312 = vmatprep.subr.bf16.mxu0 %v5756_v23  ;;  %v6022_v22 = vld [vmem:[#allocation11 + $0xe0] sm:$0xff]  }
 0x32d   :  { %4476 = vmatprep.subr.bf16.mxu1 %v5758_v18  ;;  %v6023_v23 = vld [vmem:[#allocation11 + $0x20] sm:$0xff]  }
 0x32e   :  { %v6024_v18 = vld [vmem:[#allocation11 + $0xa0] sm:$0xff]  }
 0x32f   :  { %4313 = vmatpush1.bf16.msra.mxu0 %v5755_v27  ;;  %v6028_v27 = vld [vmem:[#allocation11 + $0xa8] sm:$0xff]  }
 0x330   :  { %4477 = vmatpush1.bf16.msra.mxu1 %v5757_v33  ;;  %4314 = vmatprep.subr.bf16.mxu0 %v5764_v37  ;;  %v6029_v33 = vld [vmem:[#allocation11 + $0x70] sm:$0xff]   ;;  %v1248_v37 = vrot.slane %v6507_v0, %v193_v31  ;;  %v6036_v31 = vld [vmem:[#allocation11 + $0xb8] sm:$0xff]  }
 0x331   :  { %4478 = vmatprep.subr.bf16.mxu1 %v5766_v38  ;;  %v6030_v38 = vld [vmem:[#allocation11 + $0xf0] sm:$0xff]  }
 0x332   :  { %v5938_v15 = vadd.f32 %v6501_v20, %v1248_v37 }
 0x333   :  { %4315 = vmatpush1.bf16.msra.mxu0 %v5763_v45  ;;  %v6034_v45 = vld [vmem:[#allocation11 + $0xf8] sm:$0xff]  }
 0x334   :  { %4479 = vmatpush1.bf16.msra.mxu1 %v5765_v46  ;;  %4316 = vmatprep.subr.bf16.mxu0 %v5772_v47  ;;  %v6035_v46 = vld [vmem:[#allocation11 + $0x38] sm:$0xff]   ;;  %v4493_v47 = vmax.f32 %v5936_v40, 0.0  ;;  %v4495_v49 = vmax.f32 %v5938_v15, 0.0 }
 0x335   :  { %4480 = vmatprep.subr.bf16.mxu1 %v5774_v48  ;;  %v6037_v48 = vld [vmem:[#allocation11 + $0x140] sm:$0xff]  }
 0x336   :  { %v4501_v50 = vpack.c.bf16 %v4493_v47, %v4493_v47  ;;  %v4503_v20 = vpack.c.bf16 %v4495_v49, %v4495_v49 }
 0x337   :  { %4317 = vmatpush1.bf16.msra.mxu0 %v5771_v55  ;;  %v6043_v55 = vld [vmem:[#allocation11 + $0x108] sm:$0xff]  }
 0x338   :  { %4481 = vmatpush1.bf16.msra.mxu1 %v5773_v16  ;;  %4318 = vmatprep.subr.bf16.mxu0 %v5780_v56  ;;  %v6044_v16 = vld [vmem:[#allocation11 + $0x188] sm:$0xff]   ;;  %v6045_v56 = vld [vmem:[#allocation11 + $0x150] sm:$0xff]  }
 0x339   :  { %4482 = vmatprep.subr.bf16.mxu1 %v5782_v41  ;;  %v6046_v41 = vld [vmem:[#allocation11 + $0x1d0] sm:$0xff]  }
 0x33b   :  { %4319 = vmatpush1.bf16.msra.mxu0 %v5779_v17  ;;  %v6049_v17 = vld [vmem:[#allocation11 + $0x158] sm:$0xff]  }
 0x33c   :  { %4483 = vmatpush1.bf16.msra.mxu1 %v5781_v59  ;;  %5848 = vmatprep.subr.bf16.mxu0 %v6005_v54  ;;  %v6050_v59 = vld [vmem:[#allocation11 + $0x1d8] sm:$0xff]  }
 0x33d   :  { %5870 = vmatprep.subr.bf16.mxu1 %v6006_v21  ;;  %v6051_v54 = vld [vmem:[#allocation11 + $0x118] sm:$0xff]  }
 0x33e   :  { %4321 = vmatmul.mubr.bf16.vlgmr.msra.gmra.mrb[12].mxu0 %v6481_v52  ;;  %v6052_v21 = vld [vmem:[#allocation11 + $0x198] sm:$0xff]  }
 0x33f   :  { %4485 = vmatmul.mubr.bf16.vlgmr.msra.gmra.mrb[12].mxu1 %v6481_v52  ;;  %5849 = vmatpush3.bf16.msra.mxu0 %v6007_v62  ;;  %v6019_v52 = vld [vmem:[#allocation11 + $0x18] sm:$0xff]   ;;  %v6055_v62 = vld [vmem:[#allocation11 + $0x120] sm:$0xff]  }
 0x340   :  { %5060 = vmatprep.mubr.bf16.mxu0 %v4502_v24  ;;  %5871 = vmatpush3.bf16.msra.mxu1 %v6008_v63  ;;  %v6056_v63 = vld [vmem:[#allocation11 + $0x1a0] sm:$0xff]   ;;  %v6058_v24 = vld [vmem:[#allocation11 + $0x1e8] sm:$0xff]  }
 0x341   :  { %5100 = vmatprep.mubr.bf16.mxu1 %v4504_v58  ;;  %5850 = vmatprep.subr.bf16.mxu0 %v6009_v2  ;;  %v6057_v2 = vld [vmem:[#allocation11 + $0x168] sm:$0xff]  }
 0x342   :  { %5872 = vmatprep.subr.bf16.mxu1 %v6010_v25  ;;  %v6059_v25 = vld [vmem:[#allocation11 + $0x128] sm:$0xff]  }
 0x343   :  { %5851 = vmatpush3.bf16.msra.mxu0 %v6011_v4  ;;  %v6060_v58 = vld [vmem:[#allocation11 + $0x1a8] sm:$0xff]   ;;  %v6061_v4 = vld [vmem:[#allocation11 + $0x170] sm:$0xff]  }
 0x344   :  { %5873 = vmatpush3.bf16.msra.mxu1 %v6012_v5  ;;  %5852 = vmatprep.subr.bf16.mxu0 %v6013_v7  ;;  %v6062_v5 = vld [vmem:[#allocation11 + $0x1f0] sm:$0xff]  }
 0x345   :  { %5874 = vmatprep.subr.bf16.mxu1 %v6014_v35  ;;  %v6063_v7 = vld [vmem:[#allocation11 + $0x130] sm:$0xff]  }
 0x346   :  { %v6064_v35 = vld [vmem:[#allocation11 + $0x1b0] sm:$0xff]  }
 0x347   :  { %5853 = vmatpush3.bf16.msra.mxu0 %v6015_v8  ;;  %v6065_v8 = vld [vmem:[#allocation11 + $0x178] sm:$0xff]  }
 0x348   :  { %5875 = vmatpush3.bf16.msra.mxu1 %v6016_v10  ;;  %5854 = vmatprep.subr.bf16.mxu0 %v6017_v11  ;;  %v6066_v10 = vld [vmem:[#allocation11 + $0x1f8] sm:$0xff]  }
 0x349   :  { %5876 = vmatprep.subr.bf16.mxu1 %v6018_v13  ;;  %v6067_v11 = vld [vmem:[#allocation11 + $0x138] sm:$0xff]  }
 0x34a   :  { %v6068_v13 = vld [vmem:[#allocation11 + $0x1b8] sm:$0xff]  }
 0x34b   :  { %5855 = vmatpush3.bf16.msra.mxu0 %v6019_v52  ;;  %v1256_v52 = vrot.slane %v6507_v0, %v201_v12 }
 0x34c   :  { %5877 = vmatpush3.bf16.msra.mxu1 %v6020_v19  ;;  %5856 = vmatprep.subr.bf16.mxu0 %v6021_v34  ;;  %v1264_v19 = vrot.slane %v6507_v0, %v209_v3  ;;  %v1260_v34 = vrot.slane %v6507_v0, %v205_v44 }
 0x34d   :  { %5878 = vmatprep.subr.bf16.mxu1 %v6022_v22  ;;  %v1268_v22 = vrot.slane %v6507_v0, %v213_v26 }
 0x34f   :  { %5857 = vmatpush3.bf16.msra.mxu0 %v6023_v23 }
 0x350   :  { %5879 = vmatpush3.bf16.msra.mxu1 %v6024_v18  ;;  %5858 = vmatprep.subr.bf16.mxu0 %v6025_v28 }
 0x351   :  { %5880 = vmatprep.subr.bf16.mxu1 %v6026_v29 }
 0x353   :  { %5859 = vmatpush3.bf16.msra.mxu0 %v6027_v30 }
 0x354   :  { %5881 = vmatpush3.bf16.msra.mxu1 %v6028_v27  ;;  %5860 = vmatprep.subr.bf16.mxu0 %v6029_v33 }
 0x355   :  { %5882 = vmatprep.subr.bf16.mxu1 %v6030_v38 }
 0x357   :  { %5861 = vmatpush3.bf16.msra.mxu0 %v6031_v39 }
 0x358   :  { %5883 = vmatpush3.bf16.msra.mxu1 %v6032_v42  ;;  %5862 = vmatprep.subr.bf16.mxu0 %v6033_v43 }
 0x359   :  { %5884 = vmatprep.subr.bf16.mxu1 %v6034_v45 }
 0x35b   :  { %5863 = vmatpush3.bf16.msra.mxu0 %v6035_v46  ;;  %v5783_v46 = vld [vmem:[#allocation13] ss:$0 sm:$0xff] }
 0x35c   :  { %5885 = vmatpush3.bf16.msra.mxu1 %v6036_v31  ;;  %5892 = vmatprep.subr.bf16.mxu0 %v6037_v48 }
 0x35d   :  { %5914 = vmatprep.subr.bf16.mxu1 %v6038_v53 }
 0x35e   :  { %5061 = vmatmul.mubr.bf16.vlgmr.msra.gmra.mrb[16].mxu0 %v4501_v50 }
 0x35f   :  { %5101 = vmatmul.mubr.bf16.vlgmr.msra.gmra.mrb[16].mxu1 %v4503_v20  ;;  %5893 = vmatpush3.bf16.msra.mxu0 %v6039_v6 }
 0x360   :  { %5915 = vmatpush3.bf16.msra.mxu1 %v6040_v51  ;;  %5894 = vmatprep.subr.bf16.mxu0 %v6041_v1 }
 0x361   :  { %5916 = vmatprep.subr.bf16.mxu1 %v6042_v36 }
 0x363   :  { %5895 = vmatpush3.bf16.msra.mxu0 %v6043_v55 }
 0x364   :  { %5917 = vmatpush3.bf16.msra.mxu1 %v6044_v16  ;;  %5896 = vmatprep.subr.bf16.mxu0 %v6045_v56 }
 0x365   :  { %5918 = vmatprep.subr.bf16.mxu1 %v6046_v41 }
 0x367   :  { %5897 = vmatpush3.bf16.msra.mxu0 %v6047_v57 }
 0x368   :  { %5919 = vmatpush3.bf16.msra.mxu1 %v6048_v9  ;;  %5898 = vmatprep.subr.bf16.mxu0 %v6049_v17 }
 0x369   :  { %5920 = vmatprep.subr.bf16.mxu1 %v6050_v59 }
 0x36b   :  { %5899 = vmatpush3.bf16.msra.mxu0 %v6051_v54 }
 0x36c   :  { %5921 = vmatpush3.bf16.msra.mxu1 %v6052_v21  ;;  %5900 = vmatprep.subr.bf16.mxu0 %v6053_v60 }
 0x36d   :  { %5922 = vmatprep.subr.bf16.mxu1 %v6054_v61 }
 0x36f   :  { %5901 = vmatpush3.bf16.msra.mxu0 %v6055_v62 }
 0x370   :  { %5923 = vmatpush3.bf16.msra.mxu1 %v6056_v63  ;;  %5902 = vmatprep.subr.bf16.mxu0 %v6057_v2 }
 0x371   :  { %5924 = vmatprep.subr.bf16.mxu1 %v6058_v24 }
 0x373   :  { %5903 = vmatpush3.bf16.msra.mxu0 %v6059_v25 }
 0x374   :  { %5925 = vmatpush3.bf16.msra.mxu1 %v6060_v58  ;;  %5904 = vmatprep.subr.bf16.mxu0 %v6061_v4 }
 0x375   :  { %5926 = vmatprep.subr.bf16.mxu1 %v6062_v5 }
 0x377   :  { %5905 = vmatpush3.bf16.msra.mxu0 %v6063_v7 }
 0x378   :  { %5927 = vmatpush3.bf16.msra.mxu1 %v6064_v35  ;;  %5906 = vmatprep.subr.bf16.mxu0 %v6065_v8 }
 0x379   :  { %5928 = vmatprep.subr.bf16.mxu1 %v6066_v10 }
 0x37b   :  { %5907 = vmatpush3.bf16.msra.mxu0 %v6067_v11 }
 0x37c   :  { %5929 = vmatpush3.bf16.msra.mxu1 %v6068_v13 }
 0x411   :  { %v4322_v23 = vpop.f32.mrb[12].mxu0 }
 0x412   :  { %v5940_v18 = vadd.f32 %v4322_v23, %v1256_v52  ;;  %v4486_v28 = vpop.f32.mrb[12].mxu1  ;;  %v4324_v29 = vpop.f32.mrb[13].mxu0 }
 0x413   :  { %v5942_v30 = vadd.f32 %v4486_v28, %v1264_v19  ;;  %v5941_v32 = vadd.f32 %v4324_v29, %v1260_v34  ;;  %v4488_v27 = vpop.f32.mrb[13].mxu1  ;;  %v4326_v12 = vpop.f32.mrb[14].mxu0 }
 0x414   :  { %v4497_v33 = vmax.f32 %v5940_v18, 0.0  ;;  %v5943_v37 = vadd.f32 %v4488_v27, %v1268_v22  ;;  %v4490_v38 = vpop.f32.mrb[14].mxu1  ;;  %v4327_v3 = vpop.f32.mrb[15].mxu0 }
 0x415   :  { %v4499_v39 = vmax.f32 %v5942_v30, 0.0  ;;  %v4498_v40 = vmax.f32 %v5941_v32, 0.0  ;;  %v4491_v42 = vpop.f32.mrb[15].mxu1 }
 0x416   :  { %v4500_v44 = vmax.f32 %v5943_v37, 0.0  ;;  %v4505_v14 = vpack.c.bf16 %v4497_v33, %v4497_v33 }
 0x417   :  { %v4506_v43 = vpack.c.bf16 %v4498_v40, %v4498_v40  ;;  %v4507_v26 = vpack.c.bf16 %v4499_v39, %v4499_v39 }
 0x418   :  { %v4508_v15 = vpack.c.bf16 %v4500_v44, %v4500_v44 }
 0x419   :  { %5140 = vmatprep.mubr.bf16.mxu0 %v4506_v43 }
 0x41a   :  { %5180 = vmatprep.mubr.bf16.mxu1 %v4508_v15  ;;  %5141 = vmatmul.mubr.bf16.vlgmr.msra.gmra.mrb[20].mxu0 %v4505_v14 }
 0x41b   :  { %5181 = vmatmul.mubr.bf16.vlgmr.msra.gmra.mrb[20].mxu1 %v4507_v26 }
 0x431   :  { %v5864_v0 = vpop.f32.mrb[16].mxu0 }
 0x432   :  { %v5886_v45 = vpop.f32.mrb[16].mxu1  ;;  %v5865_v47 = vpop.f32.mrb[17].mxu0 }
 0x433   :  { %v5866_v31 = vadd.f32 %v5865_v47, %v5864_v0  ;;  %v5887_v48 = vpop.f32.mrb[17].mxu1  ;;  %v5867_v49 = vpop.f32.mrb[18].mxu0 }
 0x434   :  { %v5888_v53 = vadd.f32 %v5887_v48, %v5886_v45  ;;  %v5889_v6 = vpop.f32.mrb[18].mxu1  ;;  %v5868_v50 = vpop.f32.mrb[19].mxu0 }
 0x435   :  { %v5063_v51 = vadd.f32 %v5866_v31, %v5783_v46  ;;  %v5890_v1 = vpop.f32.mrb[19].mxu1 }
 0x437   :  { %v5103_v20 = vadd.f32 %v5888_v53, %v5063_v51 }
 0x4ed   :  { %v5908_v36 = vpop.f32.mrb[20].mxu0 }
 0x4ee   :  { %v5930_v55 = vpop.f32.mrb[20].mxu1  ;;  %v5909_v16 = vpop.f32.mrb[21].mxu0 }
 0x4ef   :  { %v5910_v56 = vadd.f32 %v5909_v16, %v5908_v36  ;;  %v5931_v41 = vpop.f32.mrb[21].mxu1  ;;  %v5911_v57 = vpop.f32.mrb[22].mxu0 }
 0x4f0   :  { %v5932_v9 = vadd.f32 %v5931_v41, %v5930_v55  ;;  %v5933_v17 = vpop.f32.mrb[22].mxu1  ;;  %v5912_v59 = vpop.f32.mrb[23].mxu0 }
 0x4f1   :  { %v5143_v54 = vadd.f32 %v5910_v56, %v5103_v20  ;;  %v5934_v21 = vpop.f32.mrb[23].mxu1 }
 0x4f3   :  { %v5183_v60 = vadd.f32 %v5932_v9, %v5143_v54 }
 0x4f5   :  { %5188 = vst [vmem:[#allocation14] sm:$0xff] %v5183_v60 }
 0x4f6   :  { %6235 = shalt.err (!%p6232_p4)
}
 0x4f7   :  { %s6236_s11 = scalar_lea.hbm %s6558_s7, 128 }
 0x4f8   :  { %p6237_p5 = scmp.ne.s32.totalorder %s6558_s7, %s6236_s11  ;;  %p6240_p6 = scmp.lt.u32.totalorder %s6236_s11, %s6558_s7 }
 0x4fa   :  { %p6242_p7 = pnand %p6240_p6, %p6237_p5 }
 0x4fc   :  { %6245 = shalt.err (!%p6242_p7)
}
 0x4fd   :  { %5198 = dma.vmem_to_hbm [thread:$0]  %s5196_s13, 128, %s6558_s7, [#allocation4]  }
 0x4fe   :  { %6254 = dma.done.wait [#allocation4], 128  }
 0x4ff   :  { %6255 = vsyncadd [#allocation4], 4294967168 }
 0x500   :  { %5202 = vsyncpa [#allocation3], 1 }
 0x501   :  { %5203 = vsyncpa [#allocation6], 1 }
 0x502   :  { %5204 = vsyncpa [#allocation9], 1 }
 0x503   :  { %5205 = vsyncpa [#allocation12], 1 }
 0x504   :  { %5206 = vsyncpa [#allocation4], 1 }

</bundles_post_ra>
